<compile_context>
chip_gen: v7x
topology: tpu7x:2x2x1
jax: 0.10.0
libtpu: 0.0.40
codegen_flags: <defaults>
</compile_context>

<pallas_src>
import math
from functools import partial

import numpy as np
import jax
import jax.numpy as jnp
from jax.experimental import pallas as pl
from jax.experimental.pallas import tpu as pltpu


# Sized against v7x's 64 MiB VMEM (raise on v5e/v6e which have 128 MiB).
VMEM_LIMIT = 48 * 1024 * 1024


def _pick_tile(dim, prefs):
    """Largest preferred tile that exactly divides dim, else the full dim."""
    for p in prefs:
        if dim >= p and dim % p == 0:
            return p
    return dim


# ---------------------------------------------------------------------------
# Kernel 1: tiled matmul + bias/act + fused residual / adaLN-gate epilogue
# ---------------------------------------------------------------------------

def _token_linear_kernel(*refs, act, has_res, has_gate):
    x_ref, w_ref, b_ref = refs[0], refs[1], refs[2]
    p = 3
    res_ref = gate_ref = None
    if has_res:
        res_ref = refs[p]; p += 1
    if has_gate:
        gate_ref = refs[p]; p += 1
    o_ref = refs[p]
    acc_ref = refs[p + 1]

    k_idx = pl.program_id(3)

    @pl.when(k_idx == 0)
    def _init():
        acc_ref[...] = jnp.zeros(acc_ref.shape, acc_ref.dtype)

    acc_ref[...] += jnp.dot(x_ref[0], w_ref[...],
                            preferred_element_type=jnp.float32)

    @pl.when(k_idx == pl.num_programs(3) - 1)
    def _epilogue():
        y = acc_ref[...] + b_ref[...].astype(jnp.float32)
        if act == "gelu_tanh":
            y = jax.nn.gelu(y, approximate=True)
        elif act == "silu":
            y = y * jax.nn.sigmoid(y)
        if has_gate:
            y = y * gate_ref[0].astype(jnp.float32)       # (1, tn) broadcast
        if has_res:
            y = res_ref[0].astype(jnp.float32) + y
        o_ref[0] = y.astype(o_ref.dtype)


def token_linear(x, w, b, *, act="none", residual=None, gate=None,
                 res_broadcast=False, out_dtype=jnp.bfloat16):
    """y = act(x @ w + b); optionally y = residual + gate * y.

    x: (B, T, K)  w: (K, N)  b: (N,)  residual: (B, T, N) or (1, T, N)
    gate: (B, 1, N).  Matmul operands are bf16, accumulation f32.
    """
    B, T, K = x.shape
    N = w.shape[1]
    tm = _pick_tile(T, (256, 128, 64, 32, 16, 8))
    tn = _pick_tile(N, (256, 128))
    tk = _pick_tile(K, (512, 256, 128))
    grid = (B, T // tm, N // tn, K // tk)

    in_specs = [
        pl.BlockSpec((1, tm, tk), lambda b_, i, j, k: (b_, i, k)),
        pl.BlockSpec((tk, tn), lambda b_, i, j, k: (k, j)),
        pl.BlockSpec((1, tn), lambda b_, i, j, k: (0, j)),
    ]
    args = [x, w, b.reshape(1, N)]
    if residual is not None:
        if res_broadcast:
            in_specs.append(pl.BlockSpec((1, tm, tn), lambda b_, i, j, k: (0, i, j)))
        else:
            in_specs.append(pl.BlockSpec((1, tm, tn), lambda b_, i, j, k: (b_, i, j)))
        args.append(residual)
    if gate is not None:
        in_specs.append(pl.BlockSpec((1, 1, tn), lambda b_, i, j, k: (b_, 0, j)))
        args.append(gate)

    return pl.pallas_call(
        partial(_token_linear_kernel, act=act,
                has_res=residual is not None, has_gate=gate is not None),
        out_shape=jax.ShapeDtypeStruct((B, T, N), out_dtype),
        grid=grid,
        in_specs=in_specs,
        out_specs=pl.BlockSpec((1, tm, tn), lambda b_, i, j, k: (b_, i, j)),
        scratch_shapes=[pltpu.VMEM((tm, tn), jnp.float32)],
        compiler_params=pltpu.CompilerParams(
            dimension_semantics=("parallel", "parallel", "parallel", "arbitrary"),
            vmem_limit_bytes=VMEM_LIMIT),
    )(*args)


# ---------------------------------------------------------------------------
# Kernel 2: fused LayerNorm(no affine) + modulate + matmul (+ bias/act)
# ---------------------------------------------------------------------------

def _ln_mod_linear_kernel(x_ref, shift_ref, scale_ref, w_ref, b_ref, o_ref,
                          xn_ref, *, act, eps):
    # Normalize + modulate once per (b, i) tile; reuse across output column tiles.
    @pl.when(pl.program_id(2) == 0)
    def _prologue():
        x = x_ref[0].astype(jnp.float32)                     # (tm, K), f32 LN math
        mu = jnp.mean(x, axis=-1, keepdims=True)
        xc = x - mu
        var = jnp.mean(xc * xc, axis=-1, keepdims=True)
        xn = xc * jax.lax.rsqrt(var + eps)
        xm = xn * (1.0 + scale_ref[0].astype(jnp.float32)) + shift_ref[0].astype(jnp.float32)
        xn_ref[...] = xm.astype(xn_ref.dtype)                # bf16 matmul operand

    y = jnp.dot(xn_ref[...], w_ref[...], preferred_element_type=jnp.float32)
    y = y + b_ref[...].astype(jnp.float32)
    if act == "gelu_tanh":
        y = jax.nn.gelu(y, approximate=True)
    elif act == "silu":
        y = y * jax.nn.sigmoid(y)
    o_ref[0] = y.astype(o_ref.dtype)


def ln_mod_linear(x, shift, scale, w, b, *, act="none",
                  out_dtype=jnp.bfloat16, eps=1e-6):
    """out = act((LN(x) * (1 + scale) + shift) @ w + b).

    x: (B, T, K) (full K per tile, needed for LN), shift/scale: (B, 1, K).
    """
    B, T, K = x.shape
    N = w.shape[1]
    tm = _pick_tile(T, (256, 128, 64, 32, 16, 8))
    tn = _pick_tile(N, (256, 128))
    grid = (B, T // tm, N // tn)

    return pl.pallas_call(
        partial(_ln_mod_linear_kernel, act=act, eps=eps),
        out_shape=jax.ShapeDtypeStruct((B, T, N), out_dtype),
        grid=grid,
        in_specs=[
            pl.BlockSpec((1, tm, K), lambda b_, i, j: (b_, i, 0)),
            pl.BlockSpec((1, 1, K), lambda b_, i, j: (b_, 0, 0)),
            pl.BlockSpec((1, 1, K), lambda b_, i, j: (b_, 0, 0)),
            pl.BlockSpec((K, tn), lambda b_, i, j: (0, j)),
            pl.BlockSpec((1, tn), lambda b_, i, j: (0, j)),
        ],
        out_specs=pl.BlockSpec((1, tm, tn), lambda b_, i, j: (b_, i, j)),
        scratch_shapes=[pltpu.VMEM((tm, K), jnp.bfloat16)],
        compiler_params=pltpu.CompilerParams(
            dimension_semantics=("parallel", "parallel", "arbitrary"),
            vmem_limit_bytes=VMEM_LIMIT),
    )(x, shift, scale, w, b.reshape(1, N))


# ---------------------------------------------------------------------------
# Kernel 3: flash attention (online softmax, kv grid axis, lane-dense output)
# ---------------------------------------------------------------------------

def _flash_attn_kernel(q_ref, k_ref, v_ref, o_ref, m_ref, l_ref, acc_ref, *, heads):
    ki = pl.program_id(2)

    @pl.when(ki == 0)
    def _init():
        m_ref[...] = jnp.full(m_ref.shape, -1e30, dtype=m_ref.dtype)
        l_ref[...] = jnp.zeros(l_ref.shape, l_ref.dtype)
        acc_ref[...] = jnp.zeros(acc_ref.shape, acc_ref.dtype)

    q = q_ref[0]                      # (tq, H) bf16 (scale pre-folded into Wq)
    k = k_ref[0]                      # (tk, H) bf16
    v = v_ref[0]
    H = q.shape[-1]
    hd = H // heads

    for h in range(heads):            # static unroll over heads
        sl = slice(h * hd, (h + 1) * hd)
        # q_h @ k_h^T without an explicit transpose (contract on head_dim of both)
        s = jax.lax.dot_general(q[:, sl], k[:, sl], (((1,), (1,)), ((), ())),
                                preferred_element_type=jnp.float32)       # (tq, tk)
        m_prev = m_ref[h]                                                  # (tq, 1)
        l_prev = l_ref[h]
        m_new = jnp.maximum(m_prev, jnp.max(s, axis=-1, keepdims=True))
        alpha = jnp.exp(m_prev - m_new)
        p = jnp.exp(s - m_new)
        l_ref[h] = alpha * l_prev + jnp.sum(p, axis=-1, keepdims=True)
        pv = jnp.dot(p.astype(v.dtype), v[:, sl],
                     preferred_element_type=jnp.float32)                   # (tq, hd)
        acc_ref[h] = alpha * acc_ref[h] + pv
        m_ref[h] = m_new

    @pl.when(ki == pl.num_programs(2) - 1)
    def _finalize():
        outs = []
        for h in range(heads):
            inv = pl.reciprocal(l_ref[h], approx=True)                     # (tq, 1)
            outs.append(acc_ref[h] * inv)
        o_ref[0] = jnp.concatenate(outs, axis=-1).astype(o_ref.dtype)      # (tq, H)


def flash_attention(q_src, kv_src, *, hidden, heads, q_col, k_col, v_col):
    """q/k/v are H-wide column blocks of packed buffers (e.g. qkv:(B,T,3H)).

    Returns attention context (B, Tq, hidden) in bf16 with heads concatenated
    along the lane dim (no head transposes needed outside the kernel).
    """
    assert hidden % 128 == 0, "hidden must be a multiple of 128 for packed q/k/v column blocks"
    B, Tq, _ = q_src.shape
    _, Tk, _ = kv_src.shape
    tq = _pick_tile(Tq, (256, 128, 64, 32, 16, 8))
    tk = _pick_tile(Tk, (256, 128, 64, 32, 16, 8))
    grid = (B, Tq // tq, Tk // tk)

    return pl.pallas_call(
        partial(_flash_attn_kernel, heads=heads),
        out_shape=jax.ShapeDtypeStruct((B, Tq, hidden), jnp.bfloat16),
        grid=grid,
        in_specs=[
            pl.BlockSpec((1, tq, hidden), lambda b, qi, ki: (b, qi, q_col)),
            pl.BlockSpec((1, tk, hidden), lambda b, qi, ki: (b, ki, k_col)),
            pl.BlockSpec((1, tk, hidden), lambda b, qi, ki: (b, ki, v_col)),
        ],
        out_specs=pl.BlockSpec((1, tq, hidden), lambda b, qi, ki: (b, qi, 0)),
        scratch_shapes=[
            pltpu.VMEM((heads, tq, 1), jnp.float32),                 # m
            pltpu.VMEM((heads, tq, 1), jnp.float32),                 # l
            pltpu.VMEM((heads, tq, hidden // heads), jnp.float32),   # acc
        ],
        compiler_params=pltpu.CompilerParams(
            dimension_semantics=("parallel", "parallel", "arbitrary"),
            vmem_limit_bytes=VMEM_LIMIT),
    )(q_src, kv_src, kv_src)


# ---------------------------------------------------------------------------
# Host-side constants (sin-cos positional embedding, identical to reference)
# ---------------------------------------------------------------------------

def get_1d_sincos_pos_embed_from_grid(embed_dim, pos):
    assert embed_dim % 2 == 0
    omega = np.arange(embed_dim // 2, dtype=np.float64)
    omega /= embed_dim / 2.0
    omega = 1.0 / 10000 ** omega
    pos = pos.reshape(-1)
    out = np.einsum('m,d->md', pos, omega)
    return np.concatenate([np.sin(out), np.cos(out)], axis=1)


def get_3d_sincos_pos_embed(embed_dim, grid_size):
    grid_d = np.arange(grid_size[0], dtype=np.float32)
    grid_h = np.arange(grid_size[1], dtype=np.float32)
    grid_w = np.arange(grid_size[2], dtype=np.float32)
    grid = np.meshgrid(grid_d, grid_h, grid_w)
    grid = np.stack(grid, axis=0)
    grid = grid.reshape([3, 1, grid_size[0], grid_size[1], grid_size[2]])
    if embed_dim % 3 == 0:
        emb = np.concatenate([
            get_1d_sincos_pos_embed_from_grid(embed_dim // 3, grid[0]),
            get_1d_sincos_pos_embed_from_grid(embed_dim // 3, grid[1]),
            get_1d_sincos_pos_embed_from_grid(embed_dim // 3, grid[2])], axis=1)
    else:
        assert embed_dim % 4 == 0
        emb = np.concatenate([
            get_1d_sincos_pos_embed_from_grid(embed_dim // 2, grid[0]),
            get_1d_sincos_pos_embed_from_grid(embed_dim // 4, grid[1]),
            get_1d_sincos_pos_embed_from_grid(embed_dim // 4, grid[2])], axis=1)
    return emb


# ---------------------------------------------------------------------------
# Parameters (deterministic init; big matmul weights stored in bf16)
# ---------------------------------------------------------------------------

def init_params(key, cfg):
    H = cfg['hidden']; C = cfg['in_channels']
    pd, ph, pw = cfg['patch']
    ctx = cfg['context_dim']
    heads = cfg['num_heads']
    hd = H // heads
    mlp_h = int(H * cfg['mlp_ratio'])
    Kpe = C * pd * ph * pw
    Cout = cfg['out_channels']
    freq = 256
    H2 = H // 2
    scale = hd ** -0.5
    bf = jnp.bfloat16

    keys = iter(jax.random.split(key, 256))

    def w(shape, std=0.02):
        return std * jax.random.normal(next(keys), shape, dtype=jnp.float32)

    def b(n):
        return 0.01 * jax.random.normal(next(keys), (n,), dtype=jnp.float32)

    # TODO(synk): reference zero-inits adaLN + final linear; random init kept for benchmarking.
    p = dict(
        pe_w=w((Kpe, H)).astype(bf), pe_b=b(H),
        t_w1=w((freq, H2)), t_b1=b(H2), t_w2=w((H2, H2)), t_b2=b(H2),
        y_w1=w((ctx, H)), y_b1=b(H), y_w2=w((H, H2)), y_b2=b(H2),
        f_ada_w=w((H, 2 * H)), f_ada_b=b(2 * H),
        f_lin_w=w((H, pd * ph * pw * Cout)).astype(bf),
        f_lin_b=b(pd * ph * pw * Cout),
    )
    gd, gh, gw = [s // pp for s, pp in zip(cfg['input_size'], cfg['patch'])]
    p['pos_embed'] = jnp.asarray(get_3d_sincos_pos_embed(H, (gd, gh, gw)),
                                 dtype=jnp.float32)                       # (T, H)

    blocks = []
    for _ in range(cfg['depth']):
        qkv_w = w((H, 3 * H))
        qkv_b = b(3 * H)
        # fold attention scale (hd**-0.5) into the q projection (free at init)
        qkv_w = qkv_w.at[:, :H].multiply(scale)
        qkv_b = qkv_b.at[:H].multiply(scale)
        ca_q_w = w((H, H)) * scale
        blocks.append(dict(
            ada_w=w((H, 6 * H)), ada_b=b(6 * H),
            qkv_w=qkv_w.astype(bf), qkv_b=qkv_b,
            proj_w=w((H, H)).astype(bf), proj_b=b(H),
            ca_q_w=ca_q_w.astype(bf),
            ca_kv_w=jnp.concatenate([w((ctx, H)), w((ctx, H))], axis=1).astype(bf),
            ca_o_w=w((H, H)).astype(bf), ca_o_b=b(H),
            fc1_w=w((H, mlp_h)).astype(bf), fc1_b=b(mlp_h),
            fc2_w=w((mlp_h, H)).astype(bf), fc2_b=b(H),
        ))
    p['blocks'] = blocks
    return p


# ---------------------------------------------------------------------------
# DiT forward
# ---------------------------------------------------------------------------

def dit_forward(params, x, t, context, cfg):
    N, C, D, Hs, W = x.shape
    pd, ph, pw = cfg['patch']
    gd, gh, gw = D // pd, Hs // ph, W // pw
    T = gd * gh * gw
    H = cfg['hidden']
    heads = cfg['num_heads']
    Cout = cfg['out_channels']
    cdt = jnp.bfloat16

    # ---- PatchEmbed (Conv3d stride=kernel=patch == patchify + matmul) + pos_embed ----
    xp = x.reshape(N, C, gd, pd, gh, ph, gw, pw)
    xp = jnp.transpose(xp, (0, 2, 4, 6, 1, 3, 5, 7)).reshape(N, T, C * pd * ph * pw)
    tok = token_linear(xp.astype(cdt), params['pe_w'], params['pe_b'],
                       residual=params['pos_embed'][None], res_broadcast=True)   # (N,T,H) bf16

    # ---- conditioning path: tiny matmuls stay in plain XLA (latency-bound) ----
    half = 128                                        # frequency_embedding_size=256
    freqs = jnp.exp(-math.log(10000.0) * jnp.arange(half, dtype=jnp.float32) / half)
    args = t[:, None].astype(jnp.float32) * freqs[None]
    t_freq = jnp.concatenate([jnp.cos(args), jnp.sin(args)], axis=-1)             # (N, 256)
    t_emb = jax.nn.silu(t_freq @ params['t_w1'] + params['t_b1']) @ params['t_w2'] + params['t_b2']

    cond_pooled = jnp.mean(context.astype(jnp.float32), axis=1)   # mask is None -> plain mean
    y_emb = jax.nn.silu(cond_pooled @ params['y_w1'] + params['y_b1']) @ params['y_w2'] + params['y_b2']

    c = jnp.concatenate([t_emb, y_emb], axis=-1)                                  # (N, H)
    silu_c = jax.nn.silu(c)

    # all per-block adaLN projections batched into one matmul
    ada_w_all = jnp.concatenate([blk['ada_w'] for blk in params['blocks']], axis=1)
    ada_b_all = jnp.concatenate([blk['ada_b'] for blk in params['blocks']], axis=0)
    mods_all = silu_c @ ada_w_all + ada_b_all                                     # (N, depth*6H)

    zeros_bh = jnp.zeros((N, 1, H), jnp.float32)
    zeros_h = jnp.zeros((H,), jnp.float32)
    zeros_2h = jnp.zeros((2 * H,), jnp.float32)
    ctx_cdt = context.astype(cdt)

    x_tok = tok
    for bi, blk in enumerate(params['blocks']):
        mod = mods_all[:, bi * 6 * H:(bi + 1) * 6 * H]
        (shift_msa, scale_msa, gate_msa,
         shift_mlp, scale_mlp, gate_mlp) = [m.reshape(N, 1, H)
                                            for m in jnp.split(mod, 6, axis=1)]

        # --- self attention (timm Attention, qkv_bias=True; scale folded into Wq) ---
        qkv = ln_mod_linear(x_tok, shift_msa, scale_msa, blk['qkv_w'], blk['qkv_b'])  # (N,T,3H)
        attn = flash_attention(qkv, qkv, hidden=H, heads=heads, q_col=0, k_col=1, v_col=2)
        x_tok = token_linear(attn, blk['proj_w'], blk['proj_b'],
                             residual=x_tok, gate=gate_msa)

        # --- cross attention (text_cond=context is always passed in DiT.forward) ---
        # TODO(synk): norm_cross is plain LN (shift=scale=0); LDM-style CrossAttention assumed.
        q = ln_mod_linear(x_tok, zeros_bh, zeros_bh, blk['ca_q_w'], zeros_h)          # (N,T,H)
        kv = token_linear(ctx_cdt, blk['ca_kv_w'], zeros_2h)                           # (N,L,2H)
        ca = flash_attention(q, kv, hidden=H, heads=heads, q_col=0, k_col=0, v_col=1)
        x_tok = token_linear(ca, blk['ca_o_w'], blk['ca_o_b'], residual=x_tok)

        # --- MLP (fc1 -> GELU(tanh) -> fc2), gate+residual fused into fc2 ---
        h_mlp = ln_mod_linear(x_tok, shift_mlp, scale_mlp, blk['fc1_w'], blk['fc1_b'],
                              act="gelu_tanh")                                         # (N,T,mlp)
        x_tok = token_linear(h_mlp, blk['fc2_w'], blk['fc2_b'],
                             residual=x_tok, gate=gate_mlp)

    # ---- FinalLayer ----
    mod_f = silu_c @ params['f_ada_w'] + params['f_ada_b']
    shift_f, scale_f = [m.reshape(N, 1, H) for m in jnp.split(mod_f, 2, axis=1)]
    out = ln_mod_linear(x_tok, shift_f, scale_f, params['f_lin_w'], params['f_lin_b'],
                        out_dtype=jnp.float32)                                         # (N,T,P*Cout)

    # ---- unpatchify: 'ndhwopqc -> ncdohpwq' ----
    out = out.reshape(N, gd, gh, gw, pd, ph, pw, Cout)
    out = jnp.transpose(out, (0, 7, 1, 4, 2, 5, 3, 6))
    out = out.reshape(N, Cout, gd * pd, gh * ph, gw * pw)
    return out


# ---------------------------------------------------------------------------

if __name__ == "__main__":
    cfg = dict(
        input_size=(8, 8, 8), patch=(2, 2, 2), in_channels=4,
        hidden=128, depth=2, num_heads=4, mlp_ratio=4.0,
        context_dim=64, out_channels=4,    # learn_sigma=False -> out = in_channels
    )
    key = jax.random.PRNGKey(0)
    kp, kx, kt, kc = jax.random.split(key, 4)
    params = init_params(kp, cfg)

    x = jax.random.normal(kx, (2, 4, 8, 8, 8), dtype=jnp.float32)    # NCDHW
    t = jax.random.uniform(kt, (2,), dtype=jnp.float32) * 1000.0
    context = jax.random.normal(kc, (2, 16, 64), dtype=jnp.float32)  # (N, L, ctx_dim)

    fwd = jax.jit(partial(dit_forward, cfg=cfg))
    out = fwd(params, x, t, context)
    jax.block_until_ready(out)
    assert out.shape == (2, 4, 8, 8, 8), out.shape
    assert out.dtype == jnp.float32
    assert bool(jnp.isfinite(out).all())
    print("KERNEL_OK")
</pallas_src>

<mosaic_0001>
module attributes {stable_mosaic.version = 11 : i64} {
  func.func @_token_linear_kernel(%arg0: i32, %arg1: i32, %arg2: i32, %arg3: i32, %arg4: memref<1x16x64xbf16, #tpu.memory_space<vmem>>, %arg5: memref<64x256xbf16, #tpu.memory_space<vmem>>, %arg6: memref<1x256xf32, #tpu.memory_space<vmem>>, %arg7: memref<1x16x256xbf16, #tpu.memory_space<vmem>>, %arg8: memref<16x256xf32, #tpu.memory_space<vmem>>) attributes {dimension_semantics = [#tpu.dimension_semantics<parallel>, #tpu.dimension_semantics<parallel>, #tpu.dimension_semantics<parallel>, #tpu.dimension_semantics<arbitrary>], iteration_bounds = array<i64: 2, 1, 1, 1>, scalar_prefetch = 0 : i64, scratch_operands = 1 : i64, tpu.core_type = #tpu.core_type<tc>, window_params = [{transform_indices = @transform_0, window_bounds = array<i64: 1, 16, 64>}, {transform_indices = @transform_1, window_bounds = array<i64: 64, 256>}, {transform_indices = @transform_2, window_bounds = array<i64: 1, 256>}, {transform_indices = @transform_3, window_bounds = array<i64: 1, 16, 256>}]} {
    %c0_i32 = arith.constant 0 : i32
    %0 = arith.cmpi eq, %arg3, %c0_i32 : i32
    %1 = arith.extui %0 : i1 to i32
    %c0_i32_0 = arith.constant 0 : i32
    %2 = arith.cmpi ne, %1, %c0_i32_0 : i32
    scf.if %2 {
      %cst_11 = arith.constant 0.000000e+00 : f32
      %13 = vector.broadcast %cst_11 : f32 to vector<16x256xf32>
      %c0_12 = arith.constant 0 : index
      %c0_13 = arith.constant 0 : index
      %14 = vector.load %arg8[%c0_12, %c0_13] : memref<16x256xf32, #tpu.memory_space<vmem>>, vector<16x256xf32>
      tpu.vector_store %arg8[%c0_12, %c0_13], %13 {strides = array<i32>} : memref<16x256xf32, #tpu.memory_space<vmem>>, vector<16x256xf32>,
    } else {
    }
    %c0 = arith.constant 0 : index
    %c0_1 = arith.constant 0 : index
    %3 = vector.load %arg8[%c0, %c0_1] : memref<16x256xf32, #tpu.memory_space<vmem>>, vector<16x256xf32>
    %c0_2 = arith.constant 0 : index
    %c0_3 = arith.constant 0 : index
    %c0_4 = arith.constant 0 : index
    %4 = vector.load %arg4[%c0_2, %c0_3, %c0_4] : memref<1x16x64xbf16, #tpu.memory_space<vmem>>, vector<1x16x64xbf16>
    %5 = vector.shape_cast %4 : vector<1x16x64xbf16> to vector<16x64xbf16>
    %c0_5 = arith.constant 0 : index
    %c0_6 = arith.constant 0 : index
    %6 = vector.load %arg5[%c0_5, %c0_6] : memref<64x256xbf16, #tpu.memory_space<vmem>>, vector<64x256xbf16>
    %cst = arith.constant dense<0.000000e+00> : vector<16x256xf32>
    %7 = tpu.matmul %5, %6, %cst {dimension_numbers = #tpu.dot_dimension_numbers<[1], [0], [0], [1], [0, 0, 1, 1], [], []>} : vector<16x64xbf16>, vector<64x256xbf16>, vector<16x256xf32> -> vector<16x256xf32>
    %8 = arith.addf %3, %7 : vector<16x256xf32>
    %c0_7 = arith.constant 0 : index
    %c0_8 = arith.constant 0 : index
    %9 = vector.load %arg8[%c0_7, %c0_8] : memref<16x256xf32, #tpu.memory_space<vmem>>, vector<16x256xf32>
    tpu.vector_store %arg8[%c0_7, %c0_8], %8 {strides = array<i32>} : memref<16x256xf32, #tpu.memory_space<vmem>>, vector<16x256xf32>,
    %c0_i32_9 = arith.constant 0 : i32
    %10 = arith.cmpi eq, %arg3, %c0_i32_9 : i32
    %11 = arith.extui %10 : i1 to i32
    %c0_i32_10 = arith.constant 0 : i32
    %12 = arith.cmpi ne, %11, %c0_i32_10 : i32
    scf.if %12 {
      %c0_11 = arith.constant 0 : index
      %c0_12 = arith.constant 0 : index
      %13 = vector.load %arg8[%c0_11, %c0_12] : memref<16x256xf32, #tpu.memory_space<vmem>>, vector<16x256xf32>
      %c0_13 = arith.constant 0 : index
      %c0_14 = arith.constant 0 : index
      %14 = vector.load %arg6[%c0_13, %c0_14] : memref<1x256xf32, #tpu.memory_space<vmem>>, vector<1x256xf32>
      %15 = vector.broadcast %14 : vector<1x256xf32> to vector<16x256xf32>
      %16 = arith.addf %13, %15 : vector<16x256xf32>
      %17 = arith.truncf %16 : vector<16x256xf32> to vector<16x256xbf16>
      %c0_15 = arith.constant 0 : index
      %c0_16 = arith.constant 0 : index
      %c0_17 = arith.constant 0 : index
      %18 = vector.load %arg7[%c0_15, %c0_16, %c0_17] : memref<1x16x256xbf16, #tpu.memory_space<vmem>>, vector<1x16x256xbf16>
      %19 = vector.shape_cast %18 : vector<1x16x256xbf16> to vector<16x256xbf16>
      %20 = vector.shape_cast %17 : vector<16x256xbf16> to vector<1x16x256xbf16>
      tpu.vector_store %arg7[%c0_15, %c0_16, %c0_17], %20 {strides = array<i32>} : memref<1x16x256xbf16, #tpu.memory_space<vmem>>, vector<1x16x256xbf16>,
    } else {
    }
    return
  }
  func.func @transform_0(%arg0: i32, %arg1: i32, %arg2: i32, %arg3: i32) -> (i32, i32, i32) {
    %c0_i32 = arith.constant 0 : i32
    return %arg0, %arg1, %arg3 : i32, i32, i32
  }
  func.func @transform_1(%arg0: i32, %arg1: i32, %arg2: i32, %arg3: i32) -> (i32, i32) {
    %c0_i32 = arith.constant 0 : i32
    return %arg3, %arg2 : i32, i32
  }
  func.func @transform_2(%arg0: i32, %arg1: i32, %arg2: i32, %arg3: i32) -> (i32, i32) {
    %c0_i32 = arith.constant 0 : i32
    %c0_i32_0 = arith.constant 0 : i32
    return %c0_i32, %arg2 : i32, i32
  }
  func.func @transform_3(%arg0: i32, %arg1: i32, %arg2: i32, %arg3: i32) -> (i32, i32, i32) {
    %c0_i32 = arith.constant 0 : i32
    return %arg0, %arg1, %arg2 : i32, i32, i32
  }
}

module attributes {stable_mosaic.version = 11 : i64} {
  func.func @_token_linear_kernel(%arg0: i32, %arg1: i32, %arg2: i32, %arg3: i32, %arg4: memref<1x64x32xbf16, #tpu.memory_space<vmem>>, %arg5: memref<32x128xbf16, #tpu.memory_space<vmem>>, %arg6: memref<1x128xf32, #tpu.memory_space<vmem>>, %arg7: memref<1x64x128xf32, #tpu.memory_space<vmem>>, %arg8: memref<1x64x128xbf16, #tpu.memory_space<vmem>>, %arg9: memref<64x128xf32, #tpu.memory_space<vmem>>) attributes {dimension_semantics = [#tpu.dimension_semantics<parallel>, #tpu.dimension_semantics<parallel>, #tpu.dimension_semantics<parallel>, #tpu.dimension_semantics<arbitrary>], iteration_bounds = array<i64: 2, 1, 1, 1>, scalar_prefetch = 0 : i64, scratch_operands = 1 : i64, tpu.core_type = #tpu.core_type<tc>, window_params = [{transform_indices = @transform_0, window_bounds = array<i64: 1, 64, 32>}, {transform_indices = @transform_1, window_bounds = array<i64: 32, 128>}, {transform_indices = @transform_2, window_bounds = array<i64: 1, 128>}, {transform_indices = @transform_3, window_bounds = array<i64: 1, 64, 128>}, {transform_indices = @transform_4, window_bounds = array<i64: 1, 64, 128>}]} {
    %c0_i32 = arith.constant 0 : i32
    %0 = arith.cmpi eq, %arg3, %c0_i32 : i32
    %1 = arith.extui %0 : i1 to i32
    %c0_i32_0 = arith.constant 0 : i32
    %2 = arith.cmpi ne, %1, %c0_i32_0 : i32
    scf.if %2 {
      %cst_11 = arith.constant 0.000000e+00 : f32
      %13 = vector.broadcast %cst_11 : f32 to vector<64x128xf32>
      %c0_12 = arith.constant 0 : index
      %c0_13 = arith.constant 0 : index
      %14 = vector.load %arg9[%c0_12, %c0_13] : memref<64x128xf32, #tpu.memory_space<vmem>>, vector<64x128xf32>
      tpu.vector_store %arg9[%c0_12, %c0_13], %13 {strides = array<i32>} : memref<64x128xf32, #tpu.memory_space<vmem>>, vector<64x128xf32>,
    } else {
    }
    %c0 = arith.constant 0 : index
    %c0_1 = arith.constant 0 : index
    %3 = vector.load %arg9[%c0, %c0_1] : memref<64x128xf32, #tpu.memory_space<vmem>>, vector<64x128xf32>
    %c0_2 = arith.constant 0 : index
    %c0_3 = arith.constant 0 : index
    %c0_4 = arith.constant 0 : index
    %4 = vector.load %arg4[%c0_2, %c0_3, %c0_4] : memref<1x64x32xbf16, #tpu.memory_space<vmem>>, vector<1x64x32xbf16>
    %5 = vector.shape_cast %4 : vector<1x64x32xbf16> to vector<64x32xbf16>
    %c0_5 = arith.constant 0 : index
    %c0_6 = arith.constant 0 : index
    %6 = vector.load %arg5[%c0_5, %c0_6] : memref<32x128xbf16, #tpu.memory_space<vmem>>, vector<32x128xbf16>
    %cst = arith.constant dense<0.000000e+00> : vector<64x128xf32>
    %7 = tpu.matmul %5, %6, %cst {dimension_numbers = #tpu.dot_dimension_numbers<[1], [0], [0], [1], [0, 0, 1, 1], [], []>} : vector<64x32xbf16>, vector<32x128xbf16>, vector<64x128xf32> -> vector<64x128xf32>
    %8 = arith.addf %3, %7 : vector<64x128xf32>
    %c0_7 = arith.constant 0 : index
    %c0_8 = arith.constant 0 : index
    %9 = vector.load %arg9[%c0_7, %c0_8] : memref<64x128xf32, #tpu.memory_space<vmem>>, vector<64x128xf32>
    tpu.vector_store %arg9[%c0_7, %c0_8], %8 {strides = array<i32>} : memref<64x128xf32, #tpu.memory_space<vmem>>, vector<64x128xf32>,
    %c0_i32_9 = arith.constant 0 : i32
    %10 = arith.cmpi eq, %arg3, %c0_i32_9 : i32
    %11 = arith.extui %10 : i1 to i32
    %c0_i32_10 = arith.constant 0 : i32
    %12 = arith.cmpi ne, %11, %c0_i32_10 : i32
    scf.if %12 {
      %c0_11 = arith.constant 0 : index
      %c0_12 = arith.constant 0 : index
      %13 = vector.load %arg9[%c0_11, %c0_12] : memref<64x128xf32, #tpu.memory_space<vmem>>, vector<64x128xf32>
      %c0_13 = arith.constant 0 : index
      %c0_14 = arith.constant 0 : index
      %14 = vector.load %arg6[%c0_13, %c0_14] : memref<1x128xf32, #tpu.memory_space<vmem>>, vector<1x128xf32>
      %15 = vector.broadcast %14 : vector<1x128xf32> to vector<64x128xf32>
      %16 = arith.addf %13, %15 : vector<64x128xf32>
      %c0_15 = arith.constant 0 : index
      %c0_16 = arith.constant 0 : index
      %c0_17 = arith.constant 0 : index
      %17 = vector.load %arg7[%c0_15, %c0_16, %c0_17] : memref<1x64x128xf32, #tpu.memory_space<vmem>>, vector<1x64x128xf32>
      %18 = vector.shape_cast %17 : vector<1x64x128xf32> to vector<64x128xf32>
      %19 = arith.addf %18, %16 : vector<64x128xf32>
      %20 = arith.truncf %19 : vector<64x128xf32> to vector<64x128xbf16>
      %c0_18 = arith.constant 0 : index
      %c0_19 = arith.constant 0 : index
      %c0_20 = arith.constant 0 : index
      %21 = vector.load %arg8[%c0_18, %c0_19, %c0_20] : memref<1x64x128xbf16, #tpu.memory_space<vmem>>, vector<1x64x128xbf16>
      %22 = vector.shape_cast %21 : vector<1x64x128xbf16> to vector<64x128xbf16>
      %23 = vector.shape_cast %20 : vector<64x128xbf16> to vector<1x64x128xbf16>
      tpu.vector_store %arg8[%c0_18, %c0_19, %c0_20], %23 {strides = array<i32>} : memref<1x64x128xbf16, #tpu.memory_space<vmem>>, vector<1x64x128xbf16>,
    } else {
    }
    return
  }
  func.func @transform_0(%arg0: i32, %arg1: i32, %arg2: i32, %arg3: i32) -> (i32, i32, i32) {
    %c0_i32 = arith.constant 0 : i32
    return %arg0, %arg1, %arg3 : i32, i32, i32
  }
  func.func @transform_1(%arg0: i32, %arg1: i32, %arg2: i32, %arg3: i32) -> (i32, i32) {
    %c0_i32 = arith.constant 0 : i32
    return %arg3, %arg2 : i32, i32
  }
  func.func @transform_2(%arg0: i32, %arg1: i32, %arg2: i32, %arg3: i32) -> (i32, i32) {
    %c0_i32 = arith.constant 0 : i32
    %c0_i32_0 = arith.constant 0 : i32
    return %c0_i32, %arg2 : i32, i32
  }
  func.func @transform_3(%arg0: i32, %arg1: i32, %arg2: i32, %arg3: i32) -> (i32, i32, i32) {
    %c0_i32 = arith.constant 0 : i32
    %c0_i32_0 = arith.constant 0 : i32
    return %c0_i32, %arg1, %arg2 : i32, i32, i32
  }
  func.func @transform_4(%arg0: i32, %arg1: i32, %arg2: i32, %arg3: i32) -> (i32, i32, i32) {
    %c0_i32 = arith.constant 0 : i32
    return %arg0, %arg1, %arg2 : i32, i32, i32
  }
}

module attributes {stable_mosaic.version = 11 : i64} {
  func.func @_ln_mod_linear_kernel(%arg0: i32, %arg1: i32, %arg2: i32, %arg3: memref<1x64x128xbf16, #tpu.memory_space<vmem>>, %arg4: memref<1x1x128xf32, #tpu.memory_space<vmem>>, %arg5: memref<1x1x128xf32, #tpu.memory_space<vmem>>, %arg6: memref<128x128xbf16, #tpu.memory_space<vmem>>, %arg7: memref<1x128xf32, #tpu.memory_space<vmem>>, %arg8: memref<1x64x128xbf16, #tpu.memory_space<vmem>>, %arg9: memref<64x128xbf16, #tpu.memory_space<vmem>>) attributes {dimension_semantics = [#tpu.dimension_semantics<parallel>, #tpu.dimension_semantics<parallel>, #tpu.dimension_semantics<arbitrary>], iteration_bounds = array<i64: 2, 1, 3>, scalar_prefetch = 0 : i64, scratch_operands = 1 : i64, tpu.core_type = #tpu.core_type<tc>, window_params = [{transform_indices = @transform_0, window_bounds = array<i64: 1, 64, 128>}, {transform_indices = @transform_1, window_bounds = array<i64: 1, 1, 128>}, {transform_indices = @transform_2, window_bounds = array<i64: 1, 1, 128>}, {transform_indices = @transform_3, window_bounds = array<i64: 128, 128>}, {transform_indices = @transform_4, window_bounds = array<i64: 1, 128>}, {transform_indices = @transform_5, window_bounds = array<i64: 1, 64, 128>}]} {
    %c0_i32 = arith.constant 0 : i32
    %0 = arith.cmpi eq, %arg2, %c0_i32 : i32
    %1 = arith.extui %0 : i1 to i32
    %c0_i32_0 = arith.constant 0 : i32
    %2 = arith.cmpi ne, %1, %c0_i32_0 : i32
    scf.if %2 {
      %c0_9 = arith.constant 0 : index
      %c0_10 = arith.constant 0 : index
      %c0_11 = arith.constant 0 : index
      %13 = vector.load %arg3[%c0_9, %c0_10, %c0_11] : memref<1x64x128xbf16, #tpu.memory_space<vmem>>, vector<1x64x128xbf16>
      %14 = vector.shape_cast %13 : vector<1x64x128xbf16> to vector<64x128xbf16>
      %15 = arith.extf %14 : vector<64x128xbf16> to vector<64x128xf32>
      %cst_12 = arith.constant dense<0.000000e+00> : vector<64xf32>
      %16 = vector.multi_reduction <add>, %15, %cst_12 [1] : vector<64x128xf32> to vector<64xf32>
      %17 = vector.shape_cast %16 : vector<64xf32> to vector<64x1xf32>
      %cst_13 = arith.constant 1.280000e+02 : f32
      %18 = vector.broadcast %cst_13 : f32 to vector<64x1xf32>
      %19 = arith.divf %17, %18 : vector<64x1xf32>
      %20 = vector.broadcast %19 : vector<64x1xf32> to vector<64x128xf32>
      %21 = arith.subf %15, %20 : vector<64x128xf32>
      %22 = arith.mulf %21, %21 : vector<64x128xf32>
      %cst_14 = arith.constant dense<0.000000e+00> : vector<64xf32>
      %23 = vector.multi_reduction <add>, %22, %cst_14 [1] : vector<64x128xf32> to vector<64xf32>
      %24 = vector.shape_cast %23 : vector<64xf32> to vector<64x1xf32>
      %cst_15 = arith.constant 1.280000e+02 : f32
      %25 = vector.broadcast %cst_15 : f32 to vector<64x1xf32>
      %26 = arith.divf %24, %25 : vector<64x1xf32>
      %cst_16 = arith.constant 9.99999997E-7 : f32
      %27 = vector.broadcast %cst_16 : f32 to vector<64x1xf32>
      %28 = arith.addf %26, %27 : vector<64x1xf32>
      %29 = math.rsqrt %28 : vector<64x1xf32>
      %30 = vector.broadcast %29 : vector<64x1xf32> to vector<64x128xf32>
      %31 = arith.mulf %21, %30 : vector<64x128xf32>
      %c0_17 = arith.constant 0 : index
      %c0_18 = arith.constant 0 : index
      %c0_19 = arith.constant 0 : index
      %32 = vector.load %arg5[%c0_17, %c0_18, %c0_19] : memref<1x1x128xf32, #tpu.memory_space<vmem>>, vector<1x1x128xf32>
      %33 = vector.shape_cast %32 : vector<1x1x128xf32> to vector<1x128xf32>
      %cst_20 = arith.constant 1.000000e+00 : f32
      %34 = vector.broadcast %cst_20 : f32 to vector<1x128xf32>
      %35 = arith.addf %34, %33 : vector<1x128xf32>
      %36 = vector.broadcast %35 : vector<1x128xf32> to vector<64x128xf32>
      %37 = arith.mulf %31, %36 : vector<64x128xf32>
      %c0_21 = arith.constant 0 : index
      %c0_22 = arith.constant 0 : index
      %c0_23 = arith.constant 0 : index
      %38 = vector.load %arg4[%c0_21, %c0_22, %c0_23] : memref<1x1x128xf32, #tpu.memory_space<vmem>>, vector<1x1x128xf32>
      %39 = vector.shape_cast %38 : vector<1x1x128xf32> to vector<1x128xf32>
      %40 = vector.broadcast %39 : vector<1x128xf32> to vector<64x128xf32>
      %41 = arith.addf %37, %40 : vector<64x128xf32>
      %42 = arith.truncf %41 : vector<64x128xf32> to vector<64x128xbf16>
      %c0_24 = arith.constant 0 : index
      %c0_25 = arith.constant 0 : index
      %43 = vector.load %arg9[%c0_24, %c0_25] : memref<64x128xbf16, #tpu.memory_space<vmem>>, vector<64x128xbf16>
      tpu.vector_store %arg9[%c0_24, %c0_25], %42 {strides = array<i32>} : memref<64x128xbf16, #tpu.memory_space<vmem>>, vector<64x128xbf16>,
    } else {
    }
    %c0 = arith.constant 0 : index
    %c0_1 = arith.constant 0 : index
    %3 = vector.load %arg9[%c0, %c0_1] : memref<64x128xbf16, #tpu.memory_space<vmem>>, vector<64x128xbf16>
    %c0_2 = arith.constant 0 : index
    %c0_3 = arith.constant 0 : index
    %4 = vector.load %arg6[%c0_2, %c0_3] : memref<128x128xbf16, #tpu.memory_space<vmem>>, vector<128x128xbf16>
    %cst = arith.constant dense<0.000000e+00> : vector<64x128xf32>
    %5 = tpu.matmul %3, %4, %cst {dimension_numbers = #tpu.dot_dimension_numbers<[1], [0], [0], [1], [0, 0, 1, 1], [], []>} : vector<64x128xbf16>, vector<128x128xbf16>, vector<64x128xf32> -> vector<64x128xf32>
    %c0_4 = arith.constant 0 : index
    %c0_5 = arith.constant 0 : index
    %6 = vector.load %arg7[%c0_4, %c0_5] : memref<1x128xf32, #tpu.memory_space<vmem>>, vector<1x128xf32>
    %7 = vector.broadcast %6 : vector<1x128xf32> to vector<64x128xf32>
    %8 = arith.addf %5, %7 : vector<64x128xf32>
    %9 = arith.truncf %8 : vector<64x128xf32> to vector<64x128xbf16>
    %c0_6 = arith.constant 0 : index
    %c0_7 = arith.constant 0 : index
    %c0_8 = arith.constant 0 : index
    %10 = vector.load %arg8[%c0_6, %c0_7, %c0_8] : memref<1x64x128xbf16, #tpu.memory_space<vmem>>, vector<1x64x128xbf16>
    %11 = vector.shape_cast %10 : vector<1x64x128xbf16> to vector<64x128xbf16>
    %12 = vector.shape_cast %9 : vector<64x128xbf16> to vector<1x64x128xbf16>
    tpu.vector_store %arg8[%c0_6, %c0_7, %c0_8], %12 {strides = array<i32>} : memref<1x64x128xbf16, #tpu.memory_space<vmem>>, vector<1x64x128xbf16>,
    return
  }
  func.func @transform_0(%arg0: i32, %arg1: i32, %arg2: i32) -> (i32, i32, i32) {
    %c0_i32 = arith.constant 0 : i32
    %c0_i32_0 = arith.constant 0 : i32
    return %arg0, %arg1, %c0_i32 : i32, i32, i32
  }
  func.func @transform_1(%arg0: i32, %arg1: i32, %arg2: i32) -> (i32, i32, i32) {
    %c0_i32 = arith.constant 0 : i32
    %c0_i32_0 = arith.constant 0 : i32
    %c0_i32_1 = arith.constant 0 : i32
    return %arg0, %c0_i32, %c0_i32_0 : i32, i32, i32
  }
  func.func @transform_2(%arg0: i32, %arg1: i32, %arg2: i32) -> (i32, i32, i32) {
    %c0_i32 = arith.constant 0 : i32
    %c0_i32_0 = arith.constant 0 : i32
    %c0_i32_1 = arith.constant 0 : i32
    return %arg0, %c0_i32, %c0_i32_0 : i32, i32, i32
  }
  func.func @transform_3(%arg0: i32, %arg1: i32, %arg2: i32) -> (i32, i32) {
    %c0_i32 = arith.constant 0 : i32
    %c0_i32_0 = arith.constant 0 : i32
    return %c0_i32, %arg2 : i32, i32
  }
  func.func @transform_4(%arg0: i32, %arg1: i32, %arg2: i32) -> (i32, i32) {
    %c0_i32 = arith.constant 0 : i32
    %c0_i32_0 = arith.constant 0 : i32
    return %c0_i32, %arg2 : i32, i32
  }
  func.func @transform_5(%arg0: i32, %arg1: i32, %arg2: i32) -> (i32, i32, i32) {
    %c0_i32 = arith.constant 0 : i32
    return %arg0, %arg1, %arg2 : i32, i32, i32
  }
}

module attributes {stable_mosaic.version = 11 : i64} {
  func.func @_flash_attn_kernel(%arg0: i32, %arg1: i32, %arg2: i32, %arg3: memref<1x64x128xbf16, #tpu.memory_space<vmem>>, %arg4: memref<1x64x128xbf16, #tpu.memory_space<vmem>>, %arg5: memref<1x64x128xbf16, #tpu.memory_space<vmem>>, %arg6: memref<1x64x128xbf16, #tpu.memory_space<vmem>>, %arg7: memref<4x64x1xf32, #tpu.memory_space<vmem>>, %arg8: memref<4x64x1xf32, #tpu.memory_space<vmem>>, %arg9: memref<4x64x32xf32, #tpu.memory_space<vmem>>) attributes {dimension_semantics = [#tpu.dimension_semantics<parallel>, #tpu.dimension_semantics<parallel>, #tpu.dimension_semantics<arbitrary>], iteration_bounds = array<i64: 2, 1, 1>, scalar_prefetch = 0 : i64, scratch_operands = 3 : i64, tpu.core_type = #tpu.core_type<tc>, window_params = [{transform_indices = @transform_0, window_bounds = array<i64: 1, 64, 128>}, {transform_indices = @transform_1, window_bounds = array<i64: 1, 64, 128>}, {transform_indices = @transform_2, window_bounds = array<i64: 1, 64, 128>}, {transform_indices = @transform_3, window_bounds = array<i64: 1, 64, 128>}]} {
    %c0_i32 = arith.constant 0 : i32
    %0 = arith.cmpi eq, %arg2, %c0_i32 : i32
    %1 = arith.extui %0 : i1 to i32
    %c0_i32_0 = arith.constant 0 : i32
    %2 = arith.cmpi ne, %1, %c0_i32_0 : i32
    scf.if %2 {
      %cst_95 = arith.constant -1.000000e+30 : f32
      %156 = vector.broadcast %cst_95 : f32 to vector<4x64x1xf32>
      %c0_96 = arith.constant 0 : index
      %c0_97 = arith.constant 0 : index
      %c0_98 = arith.constant 0 : index
      %157 = vector.load %arg7[%c0_96, %c0_97, %c0_98] : memref<4x64x1xf32, #tpu.memory_space<vmem>>, vector<4x64x1xf32>
      tpu.vector_store %arg7[%c0_96, %c0_97, %c0_98], %156 {strides = array<i32>} : memref<4x64x1xf32, #tpu.memory_space<vmem>>, vector<4x64x1xf32>,
      %cst_99 = arith.constant 0.000000e+00 : f32
      %158 = vector.broadcast %cst_99 : f32 to vector<4x64x1xf32>
      %c0_100 = arith.constant 0 : index
      %c0_101 = arith.constant 0 : index
      %c0_102 = arith.constant 0 : index
      %159 = vector.load %arg8[%c0_100, %c0_101, %c0_102] : memref<4x64x1xf32, #tpu.memory_space<vmem>>, vector<4x64x1xf32>
      tpu.vector_store %arg8[%c0_100, %c0_101, %c0_102], %158 {strides = array<i32>} : memref<4x64x1xf32, #tpu.memory_space<vmem>>, vector<4x64x1xf32>,
      %cst_103 = arith.constant 0.000000e+00 : f32
      %160 = vector.broadcast %cst_103 : f32 to vector<4x64x32xf32>
      %c0_104 = arith.constant 0 : index
      %c0_105 = arith.constant 0 : index
      %c0_106 = arith.constant 0 : index
      %161 = vector.load %arg9[%c0_104, %c0_105, %c0_106] : memref<4x64x32xf32, #tpu.memory_space<vmem>>, vector<4x64x32xf32>
      tpu.vector_store %arg9[%c0_104, %c0_105, %c0_106], %160 {strides = array<i32>} : memref<4x64x32xf32, #tpu.memory_space<vmem>>, vector<4x64x32xf32>,
    } else {
    }
    %c0 = arith.constant 0 : index
    %c0_1 = arith.constant 0 : index
    %c0_2 = arith.constant 0 : index
    %3 = vector.load %arg3[%c0, %c0_1, %c0_2] : memref<1x64x128xbf16, #tpu.memory_space<vmem>>, vector<1x64x128xbf16>
    %4 = vector.shape_cast %3 : vector<1x64x128xbf16> to vector<64x128xbf16>
    %c0_3 = arith.constant 0 : index
    %c0_4 = arith.constant 0 : index
    %c0_5 = arith.constant 0 : index
    %5 = vector.load %arg4[%c0_3, %c0_4, %c0_5] : memref<1x64x128xbf16, #tpu.memory_space<vmem>>, vector<1x64x128xbf16>
    %6 = vector.shape_cast %5 : vector<1x64x128xbf16> to vector<64x128xbf16>
    %c0_6 = arith.constant 0 : index
    %c0_7 = arith.constant 0 : index
    %c0_8 = arith.constant 0 : index
    %7 = vector.load %arg5[%c0_6, %c0_7, %c0_8] : memref<1x64x128xbf16, #tpu.memory_space<vmem>>, vector<1x64x128xbf16>
    %8 = vector.shape_cast %7 : vector<1x64x128xbf16> to vector<64x128xbf16>
    %9 = vector.extract_strided_slice %4 {offsets = [0, 0], sizes = [64, 32], strides = [1, 1]} : vector<64x128xbf16> to vector<64x32xbf16>
    %10 = vector.extract_strided_slice %6 {offsets = [0, 0], sizes = [64, 32], strides = [1, 1]} : vector<64x128xbf16> to vector<64x32xbf16>
    %cst = arith.constant dense<0.000000e+00> : vector<64x64xf32>
    %11 = tpu.matmul %9, %10, %cst {dimension_numbers = #tpu.dot_dimension_numbers<[1], [1], [0], [0], [0, 0, 1, 0], [], []>} : vector<64x32xbf16>, vector<64x32xbf16>, vector<64x64xf32> -> vector<64x64xf32>
    %c0_9 = arith.constant 0 : index
    %c0_10 = arith.constant 0 : index
    %c0_11 = arith.constant 0 : index
    %12 = vector.load %arg7[%c0_9, %c0_10, %c0_11] : memref<4x64x1xf32, #tpu.memory_space<vmem>>, vector<1x64x1xf32>
    %13 = vector.shape_cast %12 : vector<1x64x1xf32> to vector<64x1xf32>
    %c0_12 = arith.constant 0 : index
    %c0_13 = arith.constant 0 : index
    %c0_14 = arith.constant 0 : index
    %14 = vector.load %arg8[%c0_12, %c0_13, %c0_14] : memref<4x64x1xf32, #tpu.memory_space<vmem>>, vector<1x64x1xf32>
    %15 = vector.shape_cast %14 : vector<1x64x1xf32> to vector<64x1xf32>
    %cst_15 = arith.constant dense<0xFF800000> : vector<64xf32>
    %16 = vector.multi_reduction <maximumf>, %11, %cst_15 [1] : vector<64x64xf32> to vector<64xf32>
    %17 = vector.shape_cast %16 : vector<64xf32> to vector<64x1xf32>
    %18 = arith.maximumf %13, %17 : vector<64x1xf32>
    %19 = arith.subf %13, %18 : vector<64x1xf32>
    %20 = math.exp %19 : vector<64x1xf32>
    %21 = vector.broadcast %18 : vector<64x1xf32> to vector<64x64xf32>
    %22 = arith.subf %11, %21 : vector<64x64xf32>
    %23 = math.exp %22 : vector<64x64xf32>
    %24 = arith.mulf %20, %15 : vector<64x1xf32>
    %cst_16 = arith.constant dense<0.000000e+00> : vector<64xf32>
    %25 = vector.multi_reduction <add>, %23, %cst_16 [1] : vector<64x64xf32> to vector<64xf32>
    %26 = vector.shape_cast %25 : vector<64xf32> to vector<64x1xf32>
    %27 = arith.addf %24, %26 : vector<64x1xf32>
    %c0_17 = arith.constant 0 : index
    %c0_18 = arith.constant 0 : index
    %c0_19 = arith.constant 0 : index
    %28 = vector.load %arg8[%c0_17, %c0_18, %c0_19] : memref<4x64x1xf32, #tpu.memory_space<vmem>>, vector<1x64x1xf32>
    %29 = vector.shape_cast %28 : vector<1x64x1xf32> to vector<64x1xf32>
    %30 = vector.shape_cast %27 : vector<64x1xf32> to vector<1x64x1xf32>
    tpu.vector_store %arg8[%c0_17, %c0_18, %c0_19], %30 {strides = array<i32>} : memref<4x64x1xf32, #tpu.memory_space<vmem>>, vector<1x64x1xf32>,
    %31 = arith.truncf %23 : vector<64x64xf32> to vector<64x64xbf16>
    %32 = vector.extract_strided_slice %8 {offsets = [0, 0], sizes = [64, 32], strides = [1, 1]} : vector<64x128xbf16> to vector<64x32xbf16>
    %cst_20 = arith.constant dense<0.000000e+00> : vector<64x32xf32>
    %33 = tpu.matmul %31, %32, %cst_20 {dimension_numbers = #tpu.dot_dimension_numbers<[1], [0], [0], [1], [0, 0, 1, 1], [], []>} : vector<64x64xbf16>, vector<64x32xbf16>, vector<64x32xf32> -> vector<64x32xf32>
    %c0_21 = arith.constant 0 : index
    %c0_22 = arith.constant 0 : index
    %c0_23 = arith.constant 0 : index
    %34 = vector.load %arg9[%c0_21, %c0_22, %c0_23] : memref<4x64x32xf32, #tpu.memory_space<vmem>>, vector<1x64x32xf32>
    %35 = vector.shape_cast %34 : vector<1x64x32xf32> to vector<64x32xf32>
    %36 = vector.broadcast %20 : vector<64x1xf32> to vector<64x32xf32>
    %37 = arith.mulf %36, %35 : vector<64x32xf32>
    %38 = arith.addf %37, %33 : vector<64x32xf32>
    %c0_24 = arith.constant 0 : index
    %c0_25 = arith.constant 0 : index
    %c0_26 = arith.constant 0 : index
    %39 = vector.load %arg9[%c0_24, %c0_25, %c0_26] : memref<4x64x32xf32, #tpu.memory_space<vmem>>, vector<1x64x32xf32>
    %40 = vector.shape_cast %39 : vector<1x64x32xf32> to vector<64x32xf32>
    %41 = vector.shape_cast %38 : vector<64x32xf32> to vector<1x64x32xf32>
    tpu.vector_store %arg9[%c0_24, %c0_25, %c0_26], %41 {strides = array<i32>} : memref<4x64x32xf32, #tpu.memory_space<vmem>>, vector<1x64x32xf32>,
    %c0_27 = arith.constant 0 : index
    %c0_28 = arith.constant 0 : index
    %c0_29 = arith.constant 0 : index
    %42 = vector.load %arg7[%c0_27, %c0_28, %c0_29] : memref<4x64x1xf32, #tpu.memory_space<vmem>>, vector<1x64x1xf32>
    %43 = vector.shape_cast %42 : vector<1x64x1xf32> to vector<64x1xf32>
    %44 = vector.shape_cast %18 : vector<64x1xf32> to vector<1x64x1xf32>
    tpu.vector_store %arg7[%c0_27, %c0_28, %c0_29], %44 {strides = array<i32>} : memref<4x64x1xf32, #tpu.memory_space<vmem>>, vector<1x64x1xf32>,
    %45 = vector.extract_strided_slice %4 {offsets = [0, 32], sizes = [64, 32], strides = [1, 1]} : vector<64x128xbf16> to vector<64x32xbf16>
    %46 = vector.extract_strided_slice %6 {offsets = [0, 32], sizes = [64, 32], strides = [1, 1]} : vector<64x128xbf16> to vector<64x32xbf16>
    %cst_30 = arith.constant dense<0.000000e+00> : vector<64x64xf32>
    %47 = tpu.matmul %45, %46, %cst_30 {dimension_numbers = #tpu.dot_dimension_numbers<[1], [1], [0], [0], [0, 0, 1, 0], [], []>} : vector<64x32xbf16>, vector<64x32xbf16>, vector<64x64xf32> -> vector<64x64xf32>
    %c1 = arith.constant 1 : index
    %c0_31 = arith.constant 0 : index
    %c0_32 = arith.constant 0 : index
    %48 = vector.load %arg7[%c1, %c0_31, %c0_32] : memref<4x64x1xf32, #tpu.memory_space<vmem>>, vector<1x64x1xf32>
    %49 = vector.shape_cast %48 : vector<1x64x1xf32> to vector<64x1xf32>
    %c1_33 = arith.constant 1 : index
    %c0_34 = arith.constant 0 : index
    %c0_35 = arith.constant 0 : index
    %50 = vector.load %arg8[%c1_33, %c0_34, %c0_35] : memref<4x64x1xf32, #tpu.memory_space<vmem>>, vector<1x64x1xf32>
    %51 = vector.shape_cast %50 : vector<1x64x1xf32> to vector<64x1xf32>
    %cst_36 = arith.constant dense<0xFF800000> : vector<64xf32>
    %52 = vector.multi_reduction <maximumf>, %47, %cst_36 [1] : vector<64x64xf32> to vector<64xf32>
    %53 = vector.shape_cast %52 : vector<64xf32> to vector<64x1xf32>
    %54 = arith.maximumf %49, %53 : vector<64x1xf32>
    %55 = arith.subf %49, %54 : vector<64x1xf32>
    %56 = math.exp %55 : vector<64x1xf32>
    %57 = vector.broadcast %54 : vector<64x1xf32> to vector<64x64xf32>
    %58 = arith.subf %47, %57 : vector<64x64xf32>
    %59 = math.exp %58 : vector<64x64xf32>
    %60 = arith.mulf %56, %51 : vector<64x1xf32>
    %cst_37 = arith.constant dense<0.000000e+00> : vector<64xf32>
    %61 = vector.multi_reduction <add>, %59, %cst_37 [1] : vector<64x64xf32> to vector<64xf32>
    %62 = vector.shape_cast %61 : vector<64xf32> to vector<64x1xf32>
    %63 = arith.addf %60, %62 : vector<64x1xf32>
    %c1_38 = arith.constant 1 : index
    %c0_39 = arith.constant 0 : index
    %c0_40 = arith.constant 0 : index
    %64 = vector.load %arg8[%c1_38, %c0_39, %c0_40] : memref<4x64x1xf32, #tpu.memory_space<vmem>>, vector<1x64x1xf32>
    %65 = vector.shape_cast %64 : vector<1x64x1xf32> to vector<64x1xf32>
    %66 = vector.shape_cast %63 : vector<64x1xf32> to vector<1x64x1xf32>
    tpu.vector_store %arg8[%c1_38, %c0_39, %c0_40], %66 {strides = array<i32>} : memref<4x64x1xf32, #tpu.memory_space<vmem>>, vector<1x64x1xf32>,
    %67 = arith.truncf %59 : vector<64x64xf32> to vector<64x64xbf16>
    %68 = vector.extract_strided_slice %8 {offsets = [0, 32], sizes = [64, 32], strides = [1, 1]} : vector<64x128xbf16> to vector<64x32xbf16>
    %cst_41 = arith.constant dense<0.000000e+00> : vector<64x32xf32>
    %69 = tpu.matmul %67, %68, %cst_41 {dimension_numbers = #tpu.dot_dimension_numbers<[1], [0], [0], [1], [0, 0, 1, 1], [], []>} : vector<64x64xbf16>, vector<64x32xbf16>, vector<64x32xf32> -> vector<64x32xf32>
    %c1_42 = arith.constant 1 : index
    %c0_43 = arith.constant 0 : index
    %c0_44 = arith.constant 0 : index
    %70 = vector.load %arg9[%c1_42, %c0_43, %c0_44] : memref<4x64x32xf32, #tpu.memory_space<vmem>>, vector<1x64x32xf32>
    %71 = vector.shape_cast %70 : vector<1x64x32xf32> to vector<64x32xf32>
    %72 = vector.broadcast %56 : vector<64x1xf32> to vector<64x32xf32>
    %73 = arith.mulf %72, %71 : vector<64x32xf32>
    %74 = arith.addf %73, %69 : vector<64x32xf32>
    %c1_45 = arith.constant 1 : index
    %c0_46 = arith.constant 0 : index
    %c0_47 = arith.constant 0 : index
    %75 = vector.load %arg9[%c1_45, %c0_46, %c0_47] : memref<4x64x32xf32, #tpu.memory_space<vmem>>, vector<1x64x32xf32>
    %76 = vector.shape_cast %75 : vector<1x64x32xf32> to vector<64x32xf32>
    %77 = vector.shape_cast %74 : vector<64x32xf32> to vector<1x64x32xf32>
    tpu.vector_store %arg9[%c1_45, %c0_46, %c0_47], %77 {strides = array<i32>} : memref<4x64x32xf32, #tpu.memory_space<vmem>>, vector<1x64x32xf32>,
    %c1_48 = arith.constant 1 : index
    %c0_49 = arith.constant 0 : index
    %c0_50 = arith.constant 0 : index
    %78 = vector.load %arg7[%c1_48, %c0_49, %c0_50] : memref<4x64x1xf32, #tpu.memory_space<vmem>>, vector<1x64x1xf32>
    %79 = vector.shape_cast %78 : vector<1x64x1xf32> to vector<64x1xf32>
    %80 = vector.shape_cast %54 : vector<64x1xf32> to vector<1x64x1xf32>
    tpu.vector_store %arg7[%c1_48, %c0_49, %c0_50], %80 {strides = array<i32>} : memref<4x64x1xf32, #tpu.memory_space<vmem>>, vector<1x64x1xf32>,
    %81 = vector.extract_strided_slice %4 {offsets = [0, 64], sizes = [64, 32], strides = [1, 1]} : vector<64x128xbf16> to vector<64x32xbf16>
    %82 = vector.extract_strided_slice %6 {offsets = [0, 64], sizes = [64, 32], strides = [1, 1]} : vector<64x128xbf16> to vector<64x32xbf16>
    %cst_51 = arith.constant dense<0.000000e+00> : vector<64x64xf32>
    %83 = tpu.matmul %81, %82, %cst_51 {dimension_numbers = #tpu.dot_dimension_numbers<[1], [1], [0], [0], [0, 0, 1, 0], [], []>} : vector<64x32xbf16>, vector<64x32xbf16>, vector<64x64xf32> -> vector<64x64xf32>
    %c2 = arith.constant 2 : index
    %c0_52 = arith.constant 0 : index
    %c0_53 = arith.constant 0 : index
    %84 = vector.load %arg7[%c2, %c0_52, %c0_53] : memref<4x64x1xf32, #tpu.memory_space<vmem>>, vector<1x64x1xf32>
    %85 = vector.shape_cast %84 : vector<1x64x1xf32> to vector<64x1xf32>
    %c2_54 = arith.constant 2 : index
    %c0_55 = arith.constant 0 : index
    %c0_56 = arith.constant 0 : index
    %86 = vector.load %arg8[%c2_54, %c0_55, %c0_56] : memref<4x64x1xf32, #tpu.memory_space<vmem>>, vector<1x64x1xf32>
    %87 = vector.shape_cast %86 : vector<1x64x1xf32> to vector<64x1xf32>
    %cst_57 = arith.constant dense<0xFF800000> : vector<64xf32>
    %88 = vector.multi_reduction <maximumf>, %83, %cst_57 [1] : vector<64x64xf32> to vector<64xf32>
    %89 = vector.shape_cast %88 : vector<64xf32> to vector<64x1xf32>
    %90 = arith.maximumf %85, %89 : vector<64x1xf32>
    %91 = arith.subf %85, %90 : vector<64x1xf32>
    %92 = math.exp %91 : vector<64x1xf32>
    %93 = vector.broadcast %90 : vector<64x1xf32> to vector<64x64xf32>
    %94 = arith.subf %83, %93 : vector<64x64xf32>
    %95 = math.exp %94 : vector<64x64xf32>
    %96 = arith.mulf %92, %87 : vector<64x1xf32>
    %cst_58 = arith.constant dense<0.000000e+00> : vector<64xf32>
    %97 = vector.multi_reduction <add>, %95, %cst_58 [1] : vector<64x64xf32> to vector<64xf32>
    %98 = vector.shape_cast %97 : vector<64xf32> to vector<64x1xf32>
    %99 = arith.addf %96, %98 : vector<64x1xf32>
    %c2_59 = arith.constant 2 : index
    %c0_60 = arith.constant 0 : index
    %c0_61 = arith.constant 0 : index
    %100 = vector.load %arg8[%c2_59, %c0_60, %c0_61] : memref<4x64x1xf32, #tpu.memory_space<vmem>>, vector<1x64x1xf32>
    %101 = vector.shape_cast %100 : vector<1x64x1xf32> to vector<64x1xf32>
    %102 = vector.shape_cast %99 : vector<64x1xf32> to vector<1x64x1xf32>
    tpu.vector_store %arg8[%c2_59, %c0_60, %c0_61], %102 {strides = array<i32>} : memref<4x64x1xf32, #tpu.memory_space<vmem>>, vector<1x64x1xf32>,
    %103 = arith.truncf %95 : vector<64x64xf32> to vector<64x64xbf16>
    %104 = vector.extract_strided_slice %8 {offsets = [0, 64], sizes = [64, 32], strides = [1, 1]} : vector<64x128xbf16> to vector<64x32xbf16>
    %cst_62 = arith.constant dense<0.000000e+00> : vector<64x32xf32>
    %105 = tpu.matmul %103, %104, %cst_62 {dimension_numbers = #tpu.dot_dimension_numbers<[1], [0], [0], [1], [0, 0, 1, 1], [], []>} : vector<64x64xbf16>, vector<64x32xbf16>, vector<64x32xf32> -> vector<64x32xf32>
    %c2_63 = arith.constant 2 : index
    %c0_64 = arith.constant 0 : index
    %c0_65 = arith.constant 0 : index
    %106 = vector.load %arg9[%c2_63, %c0_64, %c0_65] : memref<4x64x32xf32, #tpu.memory_space<vmem>>, vector<1x64x32xf32>
    %107 = vector.shape_cast %106 : vector<1x64x32xf32> to vector<64x32xf32>
    %108 = vector.broadcast %92 : vector<64x1xf32> to vector<64x32xf32>
    %109 = arith.mulf %108, %107 : vector<64x32xf32>
    %110 = arith.addf %109, %105 : vector<64x32xf32>
    %c2_66 = arith.constant 2 : index
    %c0_67 = arith.constant 0 : index
    %c0_68 = arith.constant 0 : index
    %111 = vector.load %arg9[%c2_66, %c0_67, %c0_68] : memref<4x64x32xf32, #tpu.memory_space<vmem>>, vector<1x64x32xf32>
    %112 = vector.shape_cast %111 : vector<1x64x32xf32> to vector<64x32xf32>
    %113 = vector.shape_cast %110 : vector<64x32xf32> to vector<1x64x32xf32>
    tpu.vector_store %arg9[%c2_66, %c0_67, %c0_68], %113 {strides = array<i32>} : memref<4x64x32xf32, #tpu.memory_space<vmem>>, vector<1x64x32xf32>,
    %c2_69 = arith.constant 2 : index
    %c0_70 = arith.constant 0 : index
    %c0_71 = arith.constant 0 : index
    %114 = vector.load %arg7[%c2_69, %c0_70, %c0_71] : memref<4x64x1xf32, #tpu.memory_space<vmem>>, vector<1x64x1xf32>
    %115 = vector.shape_cast %114 : vector<1x64x1xf32> to vector<64x1xf32>
    %116 = vector.shape_cast %90 : vector<64x1xf32> to vector<1x64x1xf32>
    tpu.vector_store %arg7[%c2_69, %c0_70, %c0_71], %116 {strides = array<i32>} : memref<4x64x1xf32, #tpu.memory_space<vmem>>, vector<1x64x1xf32>,
    %117 = vector.extract_strided_slice %4 {offsets = [0, 96], sizes = [64, 32], strides = [1, 1]} : vector<64x128xbf16> to vector<64x32xbf16>
    %118 = vector.extract_strided_slice %6 {offsets = [0, 96], sizes = [64, 32], strides = [1, 1]} : vector<64x128xbf16> to vector<64x32xbf16>
    %cst_72 = arith.constant dense<0.000000e+00> : vector<64x64xf32>
    %119 = tpu.matmul %117, %118, %cst_72 {dimension_numbers = #tpu.dot_dimension_numbers<[1], [1], [0], [0], [0, 0, 1, 0], [], []>} : vector<64x32xbf16>, vector<64x32xbf16>, vector<64x64xf32> -> vector<64x64xf32>
    %c3 = arith.constant 3 : index
    %c0_73 = arith.constant 0 : index
    %c0_74 = arith.constant 0 : index
    %120 = vector.load %arg7[%c3, %c0_73, %c0_74] : memref<4x64x1xf32, #tpu.memory_space<vmem>>, vector<1x64x1xf32>
    %121 = vector.shape_cast %120 : vector<1x64x1xf32> to vector<64x1xf32>
    %c3_75 = arith.constant 3 : index
    %c0_76 = arith.constant 0 : index
    %c0_77 = arith.constant 0 : index
    %122 = vector.load %arg8[%c3_75, %c0_76, %c0_77] : memref<4x64x1xf32, #tpu.memory_space<vmem>>, vector<1x64x1xf32>
    %123 = vector.shape_cast %122 : vector<1x64x1xf32> to vector<64x1xf32>
    %cst_78 = arith.constant dense<0xFF800000> : vector<64xf32>
    %124 = vector.multi_reduction <maximumf>, %119, %cst_78 [1] : vector<64x64xf32> to vector<64xf32>
    %125 = vector.shape_cast %124 : vector<64xf32> to vector<64x1xf32>
    %126 = arith.maximumf %121, %125 : vector<64x1xf32>
    %127 = arith.subf %121, %126 : vector<64x1xf32>
    %128 = math.exp %127 : vector<64x1xf32>
    %129 = vector.broadcast %126 : vector<64x1xf32> to vector<64x64xf32>
    %130 = arith.subf %119, %129 : vector<64x64xf32>
    %131 = math.exp %130 : vector<64x64xf32>
    %132 = arith.mulf %128, %123 : vector<64x1xf32>
    %cst_79 = arith.constant dense<0.000000e+00> : vector<64xf32>
    %133 = vector.multi_reduction <add>, %131, %cst_79 [1] : vector<64x64xf32> to vector<64xf32>
    %134 = vector.shape_cast %133 : vector<64xf32> to vector<64x1xf32>
    %135 = arith.addf %132, %134 : vector<64x1xf32>
    %c3_80 = arith.constant 3 : index
    %c0_81 = arith.constant 0 : index
    %c0_82 = arith.constant 0 : index
    %136 = vector.load %arg8[%c3_80, %c0_81, %c0_82] : memref<4x64x1xf32, #tpu.memory_space<vmem>>, vector<1x64x1xf32>
    %137 = vector.shape_cast %136 : vector<1x64x1xf32> to vector<64x1xf32>
    %138 = vector.shape_cast %135 : vector<64x1xf32> to vector<1x64x1xf32>
    tpu.vector_store %arg8[%c3_80, %c0_81, %c0_82], %138 {strides = array<i32>} : memref<4x64x1xf32, #tpu.memory_space<vmem>>, vector<1x64x1xf32>,
    %139 = arith.truncf %131 : vector<64x64xf32> to vector<64x64xbf16>
    %140 = vector.extract_strided_slice %8 {offsets = [0, 96], sizes = [64, 32], strides = [1, 1]} : vector<64x128xbf16> to vector<64x32xbf16>
    %cst_83 = arith.constant dense<0.000000e+00> : vector<64x32xf32>
    %141 = tpu.matmul %139, %140, %cst_83 {dimension_numbers = #tpu.dot_dimension_numbers<[1], [0], [0], [1], [0, 0, 1, 1], [], []>} : vector<64x64xbf16>, vector<64x32xbf16>, vector<64x32xf32> -> vector<64x32xf32>
    %c3_84 = arith.constant 3 : index
    %c0_85 = arith.constant 0 : index
    %c0_86 = arith.constant 0 : index
    %142 = vector.load %arg9[%c3_84, %c0_85, %c0_86] : memref<4x64x32xf32, #tpu.memory_space<vmem>>, vector<1x64x32xf32>
    %143 = vector.shape_cast %142 : vector<1x64x32xf32> to vector<64x32xf32>
    %144 = vector.broadcast %128 : vector<64x1xf32> to vector<64x32xf32>
    %145 = arith.mulf %144, %143 : vector<64x32xf32>
    %146 = arith.addf %145, %141 : vector<64x32xf32>
    %c3_87 = arith.constant 3 : index
    %c0_88 = arith.constant 0 : index
    %c0_89 = arith.constant 0 : index
    %147 = vector.load %arg9[%c3_87, %c0_88, %c0_89] : memref<4x64x32xf32, #tpu.memory_space<vmem>>, vector<1x64x32xf32>
    %148 = vector.shape_cast %147 : vector<1x64x32xf32> to vector<64x32xf32>
    %149 = vector.shape_cast %146 : vector<64x32xf32> to vector<1x64x32xf32>
    tpu.vector_store %arg9[%c3_87, %c0_88, %c0_89], %149 {strides = array<i32>} : memref<4x64x32xf32, #tpu.memory_space<vmem>>, vector<1x64x32xf32>,
    %c3_90 = arith.constant 3 : index
    %c0_91 = arith.constant 0 : index
    %c0_92 = arith.constant 0 : index
    %150 = vector.load %arg7[%c3_90, %c0_91, %c0_92] : memref<4x64x1xf32, #tpu.memory_space<vmem>>, vector<1x64x1xf32>
    %151 = vector.shape_cast %150 : vector<1x64x1xf32> to vector<64x1xf32>
    %152 = vector.shape_cast %126 : vector<64x1xf32> to vector<1x64x1xf32>
    tpu.vector_store %arg7[%c3_90, %c0_91, %c0_92], %152 {strides = array<i32>} : memref<4x64x1xf32, #tpu.memory_space<vmem>>, vector<1x64x1xf32>,
    %c0_i32_93 = arith.constant 0 : i32
    %153 = arith.cmpi eq, %arg2, %c0_i32_93 : i32
    %154 = arith.extui %153 : i1 to i32
    %c0_i32_94 = arith.constant 0 : i32
    %155 = arith.cmpi ne, %154, %c0_i32_94 : i32
    scf.if %155 {
      %c0_95 = arith.constant 0 : index
      %c0_96 = arith.constant 0 : index
      %c0_97 = arith.constant 0 : index
      %156 = vector.load %arg8[%c0_95, %c0_96, %c0_97] : memref<4x64x1xf32, #tpu.memory_space<vmem>>, vector<1x64x1xf32>
      %157 = vector.shape_cast %156 : vector<1x64x1xf32> to vector<64x1xf32>
      %158 = tpu.reciprocal %157 {approx = true} : vector<64x1xf32> -> vector<64x1xf32>
      %c0_98 = arith.constant 0 : index
      %c0_99 = arith.constant 0 : index
      %c0_100 = arith.constant 0 : index
      %159 = vector.load %arg9[%c0_98, %c0_99, %c0_100] : memref<4x64x32xf32, #tpu.memory_space<vmem>>, vector<1x64x32xf32>
      %160 = vector.shape_cast %159 : vector<1x64x32xf32> to vector<64x32xf32>
      %161 = vector.broadcast %158 : vector<64x1xf32> to vector<64x32xf32>
      %162 = arith.mulf %160, %161 : vector<64x32xf32>
      %c1_101 = arith.constant 1 : index
      %c0_102 = arith.constant 0 : index
      %c0_103 = arith.constant 0 : index
      %163 = vector.load %arg8[%c1_101, %c0_102, %c0_103] : memref<4x64x1xf32, #tpu.memory_space<vmem>>, vector<1x64x1xf32>
      %164 = vector.shape_cast %163 : vector<1x64x1xf32> to vector<64x1xf32>
      %165 = tpu.reciprocal %164 {approx = true} : vector<64x1xf32> -> vector<64x1xf32>
      %c1_104 = arith.constant 1 : index
      %c0_105 = arith.constant 0 : index
      %c0_106 = arith.constant 0 : index
      %166 = vector.load %arg9[%c1_104, %c0_105, %c0_106] : memref<4x64x32xf32, #tpu.memory_space<vmem>>, vector<1x64x32xf32>
      %167 = vector.shape_cast %166 : vector<1x64x32xf32> to vector<64x32xf32>
      %168 = vector.broadcast %165 : vector<64x1xf32> to vector<64x32xf32>
      %169 = arith.mulf %167, %168 : vector<64x32xf32>
      %c2_107 = arith.constant 2 : index
      %c0_108 = arith.constant 0 : index
      %c0_109 = arith.constant 0 : index
      %170 = vector.load %arg8[%c2_107, %c0_108, %c0_109] : memref<4x64x1xf32, #tpu.memory_space<vmem>>, vector<1x64x1xf32>
      %171 = vector.shape_cast %170 : vector<1x64x1xf32> to vector<64x1xf32>
      %172 = tpu.reciprocal %171 {approx = true} : vector<64x1xf32> -> vector<64x1xf32>
      %c2_110 = arith.constant 2 : index
      %c0_111 = arith.constant 0 : index
      %c0_112 = arith.constant 0 : index
      %173 = vector.load %arg9[%c2_110, %c0_111, %c0_112] : memref<4x64x32xf32, #tpu.memory_space<vmem>>, vector<1x64x32xf32>
      %174 = vector.shape_cast %173 : vector<1x64x32xf32> to vector<64x32xf32>
      %175 = vector.broadcast %172 : vector<64x1xf32> to vector<64x32xf32>
      %176 = arith.mulf %174, %175 : vector<64x32xf32>
      %c3_113 = arith.constant 3 : index
      %c0_114 = arith.constant 0 : index
      %c0_115 = arith.constant 0 : index
      %177 = vector.load %arg8[%c3_113, %c0_114, %c0_115] : memref<4x64x1xf32, #tpu.memory_space<vmem>>, vector<1x64x1xf32>
      %178 = vector.shape_cast %177 : vector<1x64x1xf32> to vector<64x1xf32>
      %179 = tpu.reciprocal %178 {approx = true} : vector<64x1xf32> -> vector<64x1xf32>
      %c3_116 = arith.constant 3 : index
      %c0_117 = arith.constant 0 : index
      %c0_118 = arith.constant 0 : index
      %180 = vector.load %arg9[%c3_116, %c0_117, %c0_118] : memref<4x64x32xf32, #tpu.memory_space<vmem>>, vector<1x64x32xf32>
      %181 = vector.shape_cast %180 : vector<1x64x32xf32> to vector<64x32xf32>
      %182 = vector.broadcast %179 : vector<64x1xf32> to vector<64x32xf32>
      %183 = arith.mulf %181, %182 : vector<64x32xf32>
      %184 = tpu.concatenate %162, %169, %176, %183 in 1 : vector<64x32xf32>, vector<64x32xf32>, vector<64x32xf32>, vector<64x32xf32> -> vector<64x128xf32>
      %185 = arith.truncf %184 : vector<64x128xf32> to vector<64x128xbf16>
      %c0_119 = arith.constant 0 : index
      %c0_120 = arith.constant 0 : index
      %c0_121 = arith.constant 0 : index
      %186 = vector.load %arg6[%c0_119, %c0_120, %c0_121] : memref<1x64x128xbf16, #tpu.memory_space<vmem>>, vector<1x64x128xbf16>
      %187 = vector.shape_cast %186 : vector<1x64x128xbf16> to vector<64x128xbf16>
      %188 = vector.shape_cast %185 : vector<64x128xbf16> to vector<1x64x128xbf16>
      tpu.vector_store %arg6[%c0_119, %c0_120, %c0_121], %188 {strides = array<i32>} : memref<1x64x128xbf16, #tpu.memory_space<vmem>>, vector<1x64x128xbf16>,
    } else {
    }
    return
  }
  func.func @transform_0(%arg0: i32, %arg1: i32, %arg2: i32) -> (i32, i32, i32) {
    %c0_i32 = arith.constant 0 : i32
    %c0_i32_0 = arith.constant 0 : i32
    return %arg0, %arg1, %c0_i32 : i32, i32, i32
  }
  func.func @transform_1(%arg0: i32, %arg1: i32, %arg2: i32) -> (i32, i32, i32) {
    %c1_i32 = arith.constant 1 : i32
    %c0_i32 = arith.constant 0 : i32
    return %arg0, %arg2, %c1_i32 : i32, i32, i32
  }
  func.func @transform_2(%arg0: i32, %arg1: i32, %arg2: i32) -> (i32, i32, i32) {
    %c2_i32 = arith.constant 2 : i32
    %c0_i32 = arith.constant 0 : i32
    return %arg0, %arg2, %c2_i32 : i32, i32, i32
  }
  func.func @transform_3(%arg0: i32, %arg1: i32, %arg2: i32) -> (i32, i32, i32) {
    %c0_i32 = arith.constant 0 : i32
    %c0_i32_0 = arith.constant 0 : i32
    return %arg0, %arg1, %c0_i32 : i32, i32, i32
  }
}

module attributes {stable_mosaic.version = 11 : i64} {
  func.func @_token_linear_kernel(%arg0: i32, %arg1: i32, %arg2: i32, %arg3: i32, %arg4: memref<1x64x128xbf16, #tpu.memory_space<vmem>>, %arg5: memref<128x128xbf16, #tpu.memory_space<vmem>>, %arg6: memref<1x128xf32, #tpu.memory_space<vmem>>, %arg7: memref<1x64x128xbf16, #tpu.memory_space<vmem>>, %arg8: memref<1x1x128xf32, #tpu.memory_space<vmem>>, %arg9: memref<1x64x128xbf16, #tpu.memory_space<vmem>>, %arg10: memref<64x128xf32, #tpu.memory_space<vmem>>) attributes {dimension_semantics = [#tpu.dimension_semantics<parallel>, #tpu.dimension_semantics<parallel>, #tpu.dimension_semantics<parallel>, #tpu.dimension_semantics<arbitrary>], iteration_bounds = array<i64: 2, 1, 1, 1>, scalar_prefetch = 0 : i64, scratch_operands = 1 : i64, tpu.core_type = #tpu.core_type<tc>, window_params = [{transform_indices = @transform_0, window_bounds = array<i64: 1, 64, 128>}, {transform_indices = @transform_1, window_bounds = array<i64: 128, 128>}, {transform_indices = @transform_2, window_bounds = array<i64: 1, 128>}, {transform_indices = @transform_3, window_bounds = array<i64: 1, 64, 128>}, {transform_indices = @transform_4, window_bounds = array<i64: 1, 1, 128>}, {transform_indices = @transform_5, window_bounds = array<i64: 1, 64, 128>}]} {
    %c0_i32 = arith.constant 0 : i32
    %0 = arith.cmpi eq, %arg3, %c0_i32 : i32
    %1 = arith.extui %0 : i1 to i32
    %c0_i32_0 = arith.constant 0 : i32
    %2 = arith.cmpi ne, %1, %c0_i32_0 : i32
    scf.if %2 {
      %cst_11 = arith.constant 0.000000e+00 : f32
      %13 = vector.broadcast %cst_11 : f32 to vector<64x128xf32>
      %c0_12 = arith.constant 0 : index
      %c0_13 = arith.constant 0 : index
      %14 = vector.load %arg10[%c0_12, %c0_13] : memref<64x128xf32, #tpu.memory_space<vmem>>, vector<64x128xf32>
      tpu.vector_store %arg10[%c0_12, %c0_13], %13 {strides = array<i32>} : memref<64x128xf32, #tpu.memory_space<vmem>>, vector<64x128xf32>,
    } else {
    }
    %c0 = arith.constant 0 : index
    %c0_1 = arith.constant 0 : index
    %3 = vector.load %arg10[%c0, %c0_1] : memref<64x128xf32, #tpu.memory_space<vmem>>, vector<64x128xf32>
    %c0_2 = arith.constant 0 : index
    %c0_3 = arith.constant 0 : index
    %c0_4 = arith.constant 0 : index
    %4 = vector.load %arg4[%c0_2, %c0_3, %c0_4] : memref<1x64x128xbf16, #tpu.memory_space<vmem>>, vector<1x64x128xbf16>
    %5 = vector.shape_cast %4 : vector<1x64x128xbf16> to vector<64x128xbf16>
    %c0_5 = arith.constant 0 : index
    %c0_6 = arith.constant 0 : index
    %6 = vector.load %arg5[%c0_5, %c0_6] : memref<128x128xbf16, #tpu.memory_space<vmem>>, vector<128x128xbf16>
    %cst = arith.constant dense<0.000000e+00> : vector<64x128xf32>
    %7 = tpu.matmul %5, %6, %cst {dimension_numbers = #tpu.dot_dimension_numbers<[1], [0], [0], [1], [0, 0, 1, 1], [], []>} : vector<64x128xbf16>, vector<128x128xbf16>, vector<64x128xf32> -> vector<64x128xf32>
    %8 = arith.addf %3, %7 : vector<64x128xf32>
    %c0_7 = arith.constant 0 : index
    %c0_8 = arith.constant 0 : index
    %9 = vector.load %arg10[%c0_7, %c0_8] : memref<64x128xf32, #tpu.memory_space<vmem>>, vector<64x128xf32>
    tpu.vector_store %arg10[%c0_7, %c0_8], %8 {strides = array<i32>} : memref<64x128xf32, #tpu.memory_space<vmem>>, vector<64x128xf32>,
    %c0_i32_9 = arith.constant 0 : i32
    %10 = arith.cmpi eq, %arg3, %c0_i32_9 : i32
    %11 = arith.extui %10 : i1 to i32
    %c0_i32_10 = arith.constant 0 : i32
    %12 = arith.cmpi ne, %11, %c0_i32_10 : i32
    scf.if %12 {
      %c0_11 = arith.constant 0 : index
      %c0_12 = arith.constant 0 : index
      %13 = vector.load %arg10[%c0_11, %c0_12] : memref<64x128xf32, #tpu.memory_space<vmem>>, vector<64x128xf32>
      %c0_13 = arith.constant 0 : index
      %c0_14 = arith.constant 0 : index
      %14 = vector.load %arg6[%c0_13, %c0_14] : memref<1x128xf32, #tpu.memory_space<vmem>>, vector<1x128xf32>
      %15 = vector.broadcast %14 : vector<1x128xf32> to vector<64x128xf32>
      %16 = arith.addf %13, %15 : vector<64x128xf32>
      %c0_15 = arith.constant 0 : index
      %c0_16 = arith.constant 0 : index
      %c0_17 = arith.constant 0 : index
      %17 = vector.load %arg8[%c0_15, %c0_16, %c0_17] : memref<1x1x128xf32, #tpu.memory_space<vmem>>, vector<1x1x128xf32>
      %18 = vector.shape_cast %17 : vector<1x1x128xf32> to vector<1x128xf32>
      %19 = vector.broadcast %18 : vector<1x128xf32> to vector<64x128xf32>
      %20 = arith.mulf %16, %19 : vector<64x128xf32>
      %c0_18 = arith.constant 0 : index
      %c0_19 = arith.constant 0 : index
      %c0_20 = arith.constant 0 : index
      %21 = vector.load %arg7[%c0_18, %c0_19, %c0_20] : memref<1x64x128xbf16, #tpu.memory_space<vmem>>, vector<1x64x128xbf16>
      %22 = vector.shape_cast %21 : vector<1x64x128xbf16> to vector<64x128xbf16>
      %23 = arith.extf %22 : vector<64x128xbf16> to vector<64x128xf32>
      %24 = arith.addf %23, %20 : vector<64x128xf32>
      %25 = arith.truncf %24 : vector<64x128xf32> to vector<64x128xbf16>
      %c0_21 = arith.constant 0 : index
      %c0_22 = arith.constant 0 : index
      %c0_23 = arith.constant 0 : index
      %26 = vector.load %arg9[%c0_21, %c0_22, %c0_23] : memref<1x64x128xbf16, #tpu.memory_space<vmem>>, vector<1x64x128xbf16>
      %27 = vector.shape_cast %26 : vector<1x64x128xbf16> to vector<64x128xbf16>
      %28 = vector.shape_cast %25 : vector<64x128xbf16> to vector<1x64x128xbf16>
      tpu.vector_store %arg9[%c0_21, %c0_22, %c0_23], %28 {strides = array<i32>} : memref<1x64x128xbf16, #tpu.memory_space<vmem>>, vector<1x64x128xbf16>,
    } else {
    }
    return
  }
  func.func @transform_0(%arg0: i32, %arg1: i32, %arg2: i32, %arg3: i32) -> (i32, i32, i32) {
    %c0_i32 = arith.constant 0 : i32
    return %arg0, %arg1, %arg3 : i32, i32, i32
  }
  func.func @transform_1(%arg0: i32, %arg1: i32, %arg2: i32, %arg3: i32) -> (i32, i32) {
    %c0_i32 = arith.constant 0 : i32
    return %arg3, %arg2 : i32, i32
  }
  func.func @transform_2(%arg0: i32, %arg1: i32, %arg2: i32, %arg3: i32) -> (i32, i32) {
    %c0_i32 = arith.constant 0 : i32
    %c0_i32_0 = arith.constant 0 : i32
    return %c0_i32, %arg2 : i32, i32
  }
  func.func @transform_3(%arg0: i32, %arg1: i32, %arg2: i32, %arg3: i32) -> (i32, i32, i32) {
    %c0_i32 = arith.constant 0 : i32
    return %arg0, %arg1, %arg2 : i32, i32, i32
  }
  func.func @transform_4(%arg0: i32, %arg1: i32, %arg2: i32, %arg3: i32) -> (i32, i32, i32) {
    %c0_i32 = arith.constant 0 : i32
    %c0_i32_0 = arith.constant 0 : i32
    return %arg0, %c0_i32, %arg2 : i32, i32, i32
  }
  func.func @transform_5(%arg0: i32, %arg1: i32, %arg2: i32, %arg3: i32) -> (i32, i32, i32) {
    %c0_i32 = arith.constant 0 : i32
    return %arg0, %arg1, %arg2 : i32, i32, i32
  }
}

module attributes {stable_mosaic.version = 11 : i64} {
  func.func @_ln_mod_linear_kernel(%arg0: i32, %arg1: i32, %arg2: i32, %arg3: memref<1x64x128xbf16, #tpu.memory_space<vmem>>, %arg4: memref<1x1x128xf32, #tpu.memory_space<vmem>>, %arg5: memref<1x1x128xf32, #tpu.memory_space<vmem>>, %arg6: memref<128x128xbf16, #tpu.memory_space<vmem>>, %arg7: memref<1x128xf32, #tpu.memory_space<vmem>>, %arg8: memref<1x64x128xbf16, #tpu.memory_space<vmem>>, %arg9: memref<64x128xbf16, #tpu.memory_space<vmem>>) attributes {dimension_semantics = [#tpu.dimension_semantics<parallel>, #tpu.dimension_semantics<parallel>, #tpu.dimension_semantics<arbitrary>], iteration_bounds = array<i64: 2, 1, 1>, scalar_prefetch = 0 : i64, scratch_operands = 1 : i64, tpu.core_type = #tpu.core_type<tc>, window_params = [{transform_indices = @transform_0, window_bounds = array<i64: 1, 64, 128>}, {transform_indices = @transform_1, window_bounds = array<i64: 1, 1, 128>}, {transform_indices = @transform_2, window_bounds = array<i64: 1, 1, 128>}, {transform_indices = @transform_3, window_bounds = array<i64: 128, 128>}, {transform_indices = @transform_4, window_bounds = array<i64: 1, 128>}, {transform_indices = @transform_5, window_bounds = array<i64: 1, 64, 128>}]} {
    %c0_i32 = arith.constant 0 : i32
    %0 = arith.cmpi eq, %arg2, %c0_i32 : i32
    %1 = arith.extui %0 : i1 to i32
    %c0_i32_0 = arith.constant 0 : i32
    %2 = arith.cmpi ne, %1, %c0_i32_0 : i32
    scf.if %2 {
      %c0_9 = arith.constant 0 : index
      %c0_10 = arith.constant 0 : index
      %c0_11 = arith.constant 0 : index
      %13 = vector.load %arg3[%c0_9, %c0_10, %c0_11] : memref<1x64x128xbf16, #tpu.memory_space<vmem>>, vector<1x64x128xbf16>
      %14 = vector.shape_cast %13 : vector<1x64x128xbf16> to vector<64x128xbf16>
      %15 = arith.extf %14 : vector<64x128xbf16> to vector<64x128xf32>
      %cst_12 = arith.constant dense<0.000000e+00> : vector<64xf32>
      %16 = vector.multi_reduction <add>, %15, %cst_12 [1] : vector<64x128xf32> to vector<64xf32>
      %17 = vector.shape_cast %16 : vector<64xf32> to vector<64x1xf32>
      %cst_13 = arith.constant 1.280000e+02 : f32
      %18 = vector.broadcast %cst_13 : f32 to vector<64x1xf32>
      %19 = arith.divf %17, %18 : vector<64x1xf32>
      %20 = vector.broadcast %19 : vector<64x1xf32> to vector<64x128xf32>
      %21 = arith.subf %15, %20 : vector<64x128xf32>
      %22 = arith.mulf %21, %21 : vector<64x128xf32>
      %cst_14 = arith.constant dense<0.000000e+00> : vector<64xf32>
      %23 = vector.multi_reduction <add>, %22, %cst_14 [1] : vector<64x128xf32> to vector<64xf32>
      %24 = vector.shape_cast %23 : vector<64xf32> to vector<64x1xf32>
      %cst_15 = arith.constant 1.280000e+02 : f32
      %25 = vector.broadcast %cst_15 : f32 to vector<64x1xf32>
      %26 = arith.divf %24, %25 : vector<64x1xf32>
      %cst_16 = arith.constant 9.99999997E-7 : f32
      %27 = vector.broadcast %cst_16 : f32 to vector<64x1xf32>
      %28 = arith.addf %26, %27 : vector<64x1xf32>
      %29 = math.rsqrt %28 : vector<64x1xf32>
      %30 = vector.broadcast %29 : vector<64x1xf32> to vector<64x128xf32>
      %31 = arith.mulf %21, %30 : vector<64x128xf32>
      %c0_17 = arith.constant 0 : index
      %c0_18 = arith.constant 0 : index
      %c0_19 = arith.constant 0 : index
      %32 = vector.load %arg5[%c0_17, %c0_18, %c0_19] : memref<1x1x128xf32, #tpu.memory_space<vmem>>, vector<1x1x128xf32>
      %33 = vector.shape_cast %32 : vector<1x1x128xf32> to vector<1x128xf32>
      %cst_20 = arith.constant 1.000000e+00 : f32
      %34 = vector.broadcast %cst_20 : f32 to vector<1x128xf32>
      %35 = arith.addf %34, %33 : vector<1x128xf32>
      %36 = vector.broadcast %35 : vector<1x128xf32> to vector<64x128xf32>
      %37 = arith.mulf %31, %36 : vector<64x128xf32>
      %c0_21 = arith.constant 0 : index
      %c0_22 = arith.constant 0 : index
      %c0_23 = arith.constant 0 : index
      %38 = vector.load %arg4[%c0_21, %c0_22, %c0_23] : memref<1x1x128xf32, #tpu.memory_space<vmem>>, vector<1x1x128xf32>
      %39 = vector.shape_cast %38 : vector<1x1x128xf32> to vector<1x128xf32>
      %40 = vector.broadcast %39 : vector<1x128xf32> to vector<64x128xf32>
      %41 = arith.addf %37, %40 : vector<64x128xf32>
      %42 = arith.truncf %41 : vector<64x128xf32> to vector<64x128xbf16>
      %c0_24 = arith.constant 0 : index
      %c0_25 = arith.constant 0 : index
      %43 = vector.load %arg9[%c0_24, %c0_25] : memref<64x128xbf16, #tpu.memory_space<vmem>>, vector<64x128xbf16>
      tpu.vector_store %arg9[%c0_24, %c0_25], %42 {strides = array<i32>} : memref<64x128xbf16, #tpu.memory_space<vmem>>, vector<64x128xbf16>,
    } else {
    }
    %c0 = arith.constant 0 : index
    %c0_1 = arith.constant 0 : index
    %3 = vector.load %arg9[%c0, %c0_1] : memref<64x128xbf16, #tpu.memory_space<vmem>>, vector<64x128xbf16>
    %c0_2 = arith.constant 0 : index
    %c0_3 = arith.constant 0 : index
    %4 = vector.load %arg6[%c0_2, %c0_3] : memref<128x128xbf16, #tpu.memory_space<vmem>>, vector<128x128xbf16>
    %cst = arith.constant dense<0.000000e+00> : vector<64x128xf32>
    %5 = tpu.matmul %3, %4, %cst {dimension_numbers = #tpu.dot_dimension_numbers<[1], [0], [0], [1], [0, 0, 1, 1], [], []>} : vector<64x128xbf16>, vector<128x128xbf16>, vector<64x128xf32> -> vector<64x128xf32>
    %c0_4 = arith.constant 0 : index
    %c0_5 = arith.constant 0 : index
    %6 = vector.load %arg7[%c0_4, %c0_5] : memref<1x128xf32, #tpu.memory_space<vmem>>, vector<1x128xf32>
    %7 = vector.broadcast %6 : vector<1x128xf32> to vector<64x128xf32>
    %8 = arith.addf %5, %7 : vector<64x128xf32>
    %9 = arith.truncf %8 : vector<64x128xf32> to vector<64x128xbf16>
    %c0_6 = arith.constant 0 : index
    %c0_7 = arith.constant 0 : index
    %c0_8 = arith.constant 0 : index
    %10 = vector.load %arg8[%c0_6, %c0_7, %c0_8] : memref<1x64x128xbf16, #tpu.memory_space<vmem>>, vector<1x64x128xbf16>
    %11 = vector.shape_cast %10 : vector<1x64x128xbf16> to vector<64x128xbf16>
    %12 = vector.shape_cast %9 : vector<64x128xbf16> to vector<1x64x128xbf16>
    tpu.vector_store %arg8[%c0_6, %c0_7, %c0_8], %12 {strides = array<i32>} : memref<1x64x128xbf16, #tpu.memory_space<vmem>>, vector<1x64x128xbf16>,
    return
  }
  func.func @transform_0(%arg0: i32, %arg1: i32, %arg2: i32) -> (i32, i32, i32) {
    %c0_i32 = arith.constant 0 : i32
    %c0_i32_0 = arith.constant 0 : i32
    return %arg0, %arg1, %c0_i32 : i32, i32, i32
  }
  func.func @transform_1(%arg0: i32, %arg1: i32, %arg2: i32) -> (i32, i32, i32) {
    %c0_i32 = arith.constant 0 : i32
    %c0_i32_0 = arith.constant 0 : i32
    %c0_i32_1 = arith.constant 0 : i32
    return %arg0, %c0_i32, %c0_i32_0 : i32, i32, i32
  }
  func.func @transform_2(%arg0: i32, %arg1: i32, %arg2: i32) -> (i32, i32, i32) {
    %c0_i32 = arith.constant 0 : i32
    %c0_i32_0 = arith.constant 0 : i32
    %c0_i32_1 = arith.constant 0 : i32
    return %arg0, %c0_i32, %c0_i32_0 : i32, i32, i32
  }
  func.func @transform_3(%arg0: i32, %arg1: i32, %arg2: i32) -> (i32, i32) {
    %c0_i32 = arith.constant 0 : i32
    %c0_i32_0 = arith.constant 0 : i32
    return %c0_i32, %arg2 : i32, i32
  }
  func.func @transform_4(%arg0: i32, %arg1: i32, %arg2: i32) -> (i32, i32) {
    %c0_i32 = arith.constant 0 : i32
    %c0_i32_0 = arith.constant 0 : i32
    return %c0_i32, %arg2 : i32, i32
  }
  func.func @transform_5(%arg0: i32, %arg1: i32, %arg2: i32) -> (i32, i32, i32) {
    %c0_i32 = arith.constant 0 : i32
    return %arg0, %arg1, %arg2 : i32, i32, i32
  }
}

module attributes {stable_mosaic.version = 11 : i64} {
  func.func @_flash_attn_kernel(%arg0: i32, %arg1: i32, %arg2: i32, %arg3: memref<1x64x128xbf16, #tpu.memory_space<vmem>>, %arg4: memref<1x16x128xbf16, #tpu.memory_space<vmem>>, %arg5: memref<1x16x128xbf16, #tpu.memory_space<vmem>>, %arg6: memref<1x64x128xbf16, #tpu.memory_space<vmem>>, %arg7: memref<4x64x1xf32, #tpu.memory_space<vmem>>, %arg8: memref<4x64x1xf32, #tpu.memory_space<vmem>>, %arg9: memref<4x64x32xf32, #tpu.memory_space<vmem>>) attributes {dimension_semantics = [#tpu.dimension_semantics<parallel>, #tpu.dimension_semantics<parallel>, #tpu.dimension_semantics<arbitrary>], iteration_bounds = array<i64: 2, 1, 1>, scalar_prefetch = 0 : i64, scratch_operands = 3 : i64, tpu.core_type = #tpu.core_type<tc>, window_params = [{transform_indices = @transform_0, window_bounds = array<i64: 1, 64, 128>}, {transform_indices = @transform_1, window_bounds = array<i64: 1, 16, 128>}, {transform_indices = @transform_2, window_bounds = array<i64: 1, 16, 128>}, {transform_indices = @transform_3, window_bounds = array<i64: 1, 64, 128>}]} {
    %c0_i32 = arith.constant 0 : i32
    %0 = arith.cmpi eq, %arg2, %c0_i32 : i32
    %1 = arith.extui %0 : i1 to i32
    %c0_i32_0 = arith.constant 0 : i32
    %2 = arith.cmpi ne, %1, %c0_i32_0 : i32
    scf.if %2 {
      %cst_95 = arith.constant -1.000000e+30 : f32
      %156 = vector.broadcast %cst_95 : f32 to vector<4x64x1xf32>
      %c0_96 = arith.constant 0 : index
      %c0_97 = arith.constant 0 : index
      %c0_98 = arith.constant 0 : index
      %157 = vector.load %arg7[%c0_96, %c0_97, %c0_98] : memref<4x64x1xf32, #tpu.memory_space<vmem>>, vector<4x64x1xf32>
      tpu.vector_store %arg7[%c0_96, %c0_97, %c0_98], %156 {strides = array<i32>} : memref<4x64x1xf32, #tpu.memory_space<vmem>>, vector<4x64x1xf32>,
      %cst_99 = arith.constant 0.000000e+00 : f32
      %158 = vector.broadcast %cst_99 : f32 to vector<4x64x1xf32>
      %c0_100 = arith.constant 0 : index
      %c0_101 = arith.constant 0 : index
      %c0_102 = arith.constant 0 : index
      %159 = vector.load %arg8[%c0_100, %c0_101, %c0_102] : memref<4x64x1xf32, #tpu.memory_space<vmem>>, vector<4x64x1xf32>
      tpu.vector_store %arg8[%c0_100, %c0_101, %c0_102], %158 {strides = array<i32>} : memref<4x64x1xf32, #tpu.memory_space<vmem>>, vector<4x64x1xf32>,
      %cst_103 = arith.constant 0.000000e+00 : f32
      %160 = vector.broadcast %cst_103 : f32 to vector<4x64x32xf32>
      %c0_104 = arith.constant 0 : index
      %c0_105 = arith.constant 0 : index
      %c0_106 = arith.constant 0 : index
      %161 = vector.load %arg9[%c0_104, %c0_105, %c0_106] : memref<4x64x32xf32, #tpu.memory_space<vmem>>, vector<4x64x32xf32>
      tpu.vector_store %arg9[%c0_104, %c0_105, %c0_106], %160 {strides = array<i32>} : memref<4x64x32xf32, #tpu.memory_space<vmem>>, vector<4x64x32xf32>,
    } else {
    }
    %c0 = arith.constant 0 : index
    %c0_1 = arith.constant 0 : index
    %c0_2 = arith.constant 0 : index
    %3 = vector.load %arg3[%c0, %c0_1, %c0_2] : memref<1x64x128xbf16, #tpu.memory_space<vmem>>, vector<1x64x128xbf16>
    %4 = vector.shape_cast %3 : vector<1x64x128xbf16> to vector<64x128xbf16>
    %c0_3 = arith.constant 0 : index
    %c0_4 = arith.constant 0 : index
    %c0_5 = arith.constant 0 : index
    %5 = vector.load %arg4[%c0_3, %c0_4, %c0_5] : memref<1x16x128xbf16, #tpu.memory_space<vmem>>, vector<1x16x128xbf16>
    %6 = vector.shape_cast %5 : vector<1x16x128xbf16> to vector<16x128xbf16>
    %c0_6 = arith.constant 0 : index
    %c0_7 = arith.constant 0 : index
    %c0_8 = arith.constant 0 : index
    %7 = vector.load %arg5[%c0_6, %c0_7, %c0_8] : memref<1x16x128xbf16, #tpu.memory_space<vmem>>, vector<1x16x128xbf16>
    %8 = vector.shape_cast %7 : vector<1x16x128xbf16> to vector<16x128xbf16>
    %9 = vector.extract_strided_slice %4 {offsets = [0, 0], sizes = [64, 32], strides = [1, 1]} : vector<64x128xbf16> to vector<64x32xbf16>
    %10 = vector.extract_strided_slice %6 {offsets = [0, 0], sizes = [16, 32], strides = [1, 1]} : vector<16x128xbf16> to vector<16x32xbf16>
    %cst = arith.constant dense<0.000000e+00> : vector<64x16xf32>
    %11 = tpu.matmul %9, %10, %cst {dimension_numbers = #tpu.dot_dimension_numbers<[1], [1], [0], [0], [0, 0, 1, 0], [], []>} : vector<64x32xbf16>, vector<16x32xbf16>, vector<64x16xf32> -> vector<64x16xf32>
    %c0_9 = arith.constant 0 : index
    %c0_10 = arith.constant 0 : index
    %c0_11 = arith.constant 0 : index
    %12 = vector.load %arg7[%c0_9, %c0_10, %c0_11] : memref<4x64x1xf32, #tpu.memory_space<vmem>>, vector<1x64x1xf32>
    %13 = vector.shape_cast %12 : vector<1x64x1xf32> to vector<64x1xf32>
    %c0_12 = arith.constant 0 : index
    %c0_13 = arith.constant 0 : index
    %c0_14 = arith.constant 0 : index
    %14 = vector.load %arg8[%c0_12, %c0_13, %c0_14] : memref<4x64x1xf32, #tpu.memory_space<vmem>>, vector<1x64x1xf32>
    %15 = vector.shape_cast %14 : vector<1x64x1xf32> to vector<64x1xf32>
    %cst_15 = arith.constant dense<0xFF800000> : vector<64xf32>
    %16 = vector.multi_reduction <maximumf>, %11, %cst_15 [1] : vector<64x16xf32> to vector<64xf32>
    %17 = vector.shape_cast %16 : vector<64xf32> to vector<64x1xf32>
    %18 = arith.maximumf %13, %17 : vector<64x1xf32>
    %19 = arith.subf %13, %18 : vector<64x1xf32>
    %20 = math.exp %19 : vector<64x1xf32>
    %21 = vector.broadcast %18 : vector<64x1xf32> to vector<64x16xf32>
    %22 = arith.subf %11, %21 : vector<64x16xf32>
    %23 = math.exp %22 : vector<64x16xf32>
    %24 = arith.mulf %20, %15 : vector<64x1xf32>
    %cst_16 = arith.constant dense<0.000000e+00> : vector<64xf32>
    %25 = vector.multi_reduction <add>, %23, %cst_16 [1] : vector<64x16xf32> to vector<64xf32>
    %26 = vector.shape_cast %25 : vector<64xf32> to vector<64x1xf32>
    %27 = arith.addf %24, %26 : vector<64x1xf32>
    %c0_17 = arith.constant 0 : index
    %c0_18 = arith.constant 0 : index
    %c0_19 = arith.constant 0 : index
    %28 = vector.load %arg8[%c0_17, %c0_18, %c0_19] : memref<4x64x1xf32, #tpu.memory_space<vmem>>, vector<1x64x1xf32>
    %29 = vector.shape_cast %28 : vector<1x64x1xf32> to vector<64x1xf32>
    %30 = vector.shape_cast %27 : vector<64x1xf32> to vector<1x64x1xf32>
    tpu.vector_store %arg8[%c0_17, %c0_18, %c0_19], %30 {strides = array<i32>} : memref<4x64x1xf32, #tpu.memory_space<vmem>>, vector<1x64x1xf32>,
    %31 = arith.truncf %23 : vector<64x16xf32> to vector<64x16xbf16>
    %32 = vector.extract_strided_slice %8 {offsets = [0, 0], sizes = [16, 32], strides = [1, 1]} : vector<16x128xbf16> to vector<16x32xbf16>
    %cst_20 = arith.constant dense<0.000000e+00> : vector<64x32xf32>
    %33 = tpu.matmul %31, %32, %cst_20 {dimension_numbers = #tpu.dot_dimension_numbers<[1], [0], [0], [1], [0, 0, 1, 1], [], []>} : vector<64x16xbf16>, vector<16x32xbf16>, vector<64x32xf32> -> vector<64x32xf32>
    %c0_21 = arith.constant 0 : index
    %c0_22 = arith.constant 0 : index
    %c0_23 = arith.constant 0 : index
    %34 = vector.load %arg9[%c0_21, %c0_22, %c0_23] : memref<4x64x32xf32, #tpu.memory_space<vmem>>, vector<1x64x32xf32>
    %35 = vector.shape_cast %34 : vector<1x64x32xf32> to vector<64x32xf32>
    %36 = vector.broadcast %20 : vector<64x1xf32> to vector<64x32xf32>
    %37 = arith.mulf %36, %35 : vector<64x32xf32>
    %38 = arith.addf %37, %33 : vector<64x32xf32>
    %c0_24 = arith.constant 0 : index
    %c0_25 = arith.constant 0 : index
    %c0_26 = arith.constant 0 : index
    %39 = vector.load %arg9[%c0_24, %c0_25, %c0_26] : memref<4x64x32xf32, #tpu.memory_space<vmem>>, vector<1x64x32xf32>
    %40 = vector.shape_cast %39 : vector<1x64x32xf32> to vector<64x32xf32>
    %41 = vector.shape_cast %38 : vector<64x32xf32> to vector<1x64x32xf32>
    tpu.vector_store %arg9[%c0_24, %c0_25, %c0_26], %41 {strides = array<i32>} : memref<4x64x32xf32, #tpu.memory_space<vmem>>, vector<1x64x32xf32>,
    %c0_27 = arith.constant 0 : index
    %c0_28 = arith.constant 0 : index
    %c0_29 = arith.constant 0 : index
    %42 = vector.load %arg7[%c0_27, %c0_28, %c0_29] : memref<4x64x1xf32, #tpu.memory_space<vmem>>, vector<1x64x1xf32>
    %43 = vector.shape_cast %42 : vector<1x64x1xf32> to vector<64x1xf32>
    %44 = vector.shape_cast %18 : vector<64x1xf32> to vector<1x64x1xf32>
    tpu.vector_store %arg7[%c0_27, %c0_28, %c0_29], %44 {strides = array<i32>} : memref<4x64x1xf32, #tpu.memory_space<vmem>>, vector<1x64x1xf32>,
    %45 = vector.extract_strided_slice %4 {offsets = [0, 32], sizes = [64, 32], strides = [1, 1]} : vector<64x128xbf16> to vector<64x32xbf16>
    %46 = vector.extract_strided_slice %6 {offsets = [0, 32], sizes = [16, 32], strides = [1, 1]} : vector<16x128xbf16> to vector<16x32xbf16>
    %cst_30 = arith.constant dense<0.000000e+00> : vector<64x16xf32>
    %47 = tpu.matmul %45, %46, %cst_30 {dimension_numbers = #tpu.dot_dimension_numbers<[1], [1], [0], [0], [0, 0, 1, 0], [], []>} : vector<64x32xbf16>, vector<16x32xbf16>, vector<64x16xf32> -> vector<64x16xf32>
    %c1 = arith.constant 1 : index
    %c0_31 = arith.constant 0 : index
    %c0_32 = arith.constant 0 : index
    %48 = vector.load %arg7[%c1, %c0_31, %c0_32] : memref<4x64x1xf32, #tpu.memory_space<vmem>>, vector<1x64x1xf32>
    %49 = vector.shape_cast %48 : vector<1x64x1xf32> to vector<64x1xf32>
    %c1_33 = arith.constant 1 : index
    %c0_34 = arith.constant 0 : index
    %c0_35 = arith.constant 0 : index
    %50 = vector.load %arg8[%c1_33, %c0_34, %c0_35] : memref<4x64x1xf32, #tpu.memory_space<vmem>>, vector<1x64x1xf32>
    %51 = vector.shape_cast %50 : vector<1x64x1xf32> to vector<64x1xf32>
    %cst_36 = arith.constant dense<0xFF800000> : vector<64xf32>
    %52 = vector.multi_reduction <maximumf>, %47, %cst_36 [1] : vector<64x16xf32> to vector<64xf32>
    %53 = vector.shape_cast %52 : vector<64xf32> to vector<64x1xf32>
    %54 = arith.maximumf %49, %53 : vector<64x1xf32>
    %55 = arith.subf %49, %54 : vector<64x1xf32>
    %56 = math.exp %55 : vector<64x1xf32>
    %57 = vector.broadcast %54 : vector<64x1xf32> to vector<64x16xf32>
    %58 = arith.subf %47, %57 : vector<64x16xf32>
    %59 = math.exp %58 : vector<64x16xf32>
    %60 = arith.mulf %56, %51 : vector<64x1xf32>
    %cst_37 = arith.constant dense<0.000000e+00> : vector<64xf32>
    %61 = vector.multi_reduction <add>, %59, %cst_37 [1] : vector<64x16xf32> to vector<64xf32>
    %62 = vector.shape_cast %61 : vector<64xf32> to vector<64x1xf32>
    %63 = arith.addf %60, %62 : vector<64x1xf32>
    %c1_38 = arith.constant 1 : index
    %c0_39 = arith.constant 0 : index
    %c0_40 = arith.constant 0 : index
    %64 = vector.load %arg8[%c1_38, %c0_39, %c0_40] : memref<4x64x1xf32, #tpu.memory_space<vmem>>, vector<1x64x1xf32>
    %65 = vector.shape_cast %64 : vector<1x64x1xf32> to vector<64x1xf32>
    %66 = vector.shape_cast %63 : vector<64x1xf32> to vector<1x64x1xf32>
    tpu.vector_store %arg8[%c1_38, %c0_39, %c0_40], %66 {strides = array<i32>} : memref<4x64x1xf32, #tpu.memory_space<vmem>>, vector<1x64x1xf32>,
    %67 = arith.truncf %59 : vector<64x16xf32> to vector<64x16xbf16>
    %68 = vector.extract_strided_slice %8 {offsets = [0, 32], sizes = [16, 32], strides = [1, 1]} : vector<16x128xbf16> to vector<16x32xbf16>
    %cst_41 = arith.constant dense<0.000000e+00> : vector<64x32xf32>
    %69 = tpu.matmul %67, %68, %cst_41 {dimension_numbers = #tpu.dot_dimension_numbers<[1], [0], [0], [1], [0, 0, 1, 1], [], []>} : vector<64x16xbf16>, vector<16x32xbf16>, vector<64x32xf32> -> vector<64x32xf32>
    %c1_42 = arith.constant 1 : index
    %c0_43 = arith.constant 0 : index
    %c0_44 = arith.constant 0 : index
    %70 = vector.load %arg9[%c1_42, %c0_43, %c0_44] : memref<4x64x32xf32, #tpu.memory_space<vmem>>, vector<1x64x32xf32>
    %71 = vector.shape_cast %70 : vector<1x64x32xf32> to vector<64x32xf32>
    %72 = vector.broadcast %56 : vector<64x1xf32> to vector<64x32xf32>
    %73 = arith.mulf %72, %71 : vector<64x32xf32>
    %74 = arith.addf %73, %69 : vector<64x32xf32>
    %c1_45 = arith.constant 1 : index
    %c0_46 = arith.constant 0 : index
    %c0_47 = arith.constant 0 : index
    %75 = vector.load %arg9[%c1_45, %c0_46, %c0_47] : memref<4x64x32xf32, #tpu.memory_space<vmem>>, vector<1x64x32xf32>
    %76 = vector.shape_cast %75 : vector<1x64x32xf32> to vector<64x32xf32>
    %77 = vector.shape_cast %74 : vector<64x32xf32> to vector<1x64x32xf32>
    tpu.vector_store %arg9[%c1_45, %c0_46, %c0_47], %77 {strides = array<i32>} : memref<4x64x32xf32, #tpu.memory_space<vmem>>, vector<1x64x32xf32>,
    %c1_48 = arith.constant 1 : index
    %c0_49 = arith.constant 0 : index
    %c0_50 = arith.constant 0 : index
    %78 = vector.load %arg7[%c1_48, %c0_49, %c0_50] : memref<4x64x1xf32, #tpu.memory_space<vmem>>, vector<1x64x1xf32>
    %79 = vector.shape_cast %78 : vector<1x64x1xf32> to vector<64x1xf32>
    %80 = vector.shape_cast %54 : vector<64x1xf32> to vector<1x64x1xf32>
    tpu.vector_store %arg7[%c1_48, %c0_49, %c0_50], %80 {strides = array<i32>} : memref<4x64x1xf32, #tpu.memory_space<vmem>>, vector<1x64x1xf32>,
    %81 = vector.extract_strided_slice %4 {offsets = [0, 64], sizes = [64, 32], strides = [1, 1]} : vector<64x128xbf16> to vector<64x32xbf16>
    %82 = vector.extract_strided_slice %6 {offsets = [0, 64], sizes = [16, 32], strides = [1, 1]} : vector<16x128xbf16> to vector<16x32xbf16>
    %cst_51 = arith.constant dense<0.000000e+00> : vector<64x16xf32>
    %83 = tpu.matmul %81, %82, %cst_51 {dimension_numbers = #tpu.dot_dimension_numbers<[1], [1], [0], [0], [0, 0, 1, 0], [], []>} : vector<64x32xbf16>, vector<16x32xbf16>, vector<64x16xf32> -> vector<64x16xf32>
    %c2 = arith.constant 2 : index
    %c0_52 = arith.constant 0 : index
    %c0_53 = arith.constant 0 : index
    %84 = vector.load %arg7[%c2, %c0_52, %c0_53] : memref<4x64x1xf32, #tpu.memory_space<vmem>>, vector<1x64x1xf32>
    %85 = vector.shape_cast %84 : vector<1x64x1xf32> to vector<64x1xf32>
    %c2_54 = arith.constant 2 : index
    %c0_55 = arith.constant 0 : index
    %c0_56 = arith.constant 0 : index
    %86 = vector.load %arg8[%c2_54, %c0_55, %c0_56] : memref<4x64x1xf32, #tpu.memory_space<vmem>>, vector<1x64x1xf32>
    %87 = vector.shape_cast %86 : vector<1x64x1xf32> to vector<64x1xf32>
    %cst_57 = arith.constant dense<0xFF800000> : vector<64xf32>
    %88 = vector.multi_reduction <maximumf>, %83, %cst_57 [1] : vector<64x16xf32> to vector<64xf32>
    %89 = vector.shape_cast %88 : vector<64xf32> to vector<64x1xf32>
    %90 = arith.maximumf %85, %89 : vector<64x1xf32>
    %91 = arith.subf %85, %90 : vector<64x1xf32>
    %92 = math.exp %91 : vector<64x1xf32>
    %93 = vector.broadcast %90 : vector<64x1xf32> to vector<64x16xf32>
    %94 = arith.subf %83, %93 : vector<64x16xf32>
    %95 = math.exp %94 : vector<64x16xf32>
    %96 = arith.mulf %92, %87 : vector<64x1xf32>
    %cst_58 = arith.constant dense<0.000000e+00> : vector<64xf32>
    %97 = vector.multi_reduction <add>, %95, %cst_58 [1] : vector<64x16xf32> to vector<64xf32>
    %98 = vector.shape_cast %97 : vector<64xf32> to vector<64x1xf32>
    %99 = arith.addf %96, %98 : vector<64x1xf32>
    %c2_59 = arith.constant 2 : index
    %c0_60 = arith.constant 0 : index
    %c0_61 = arith.constant 0 : index
    %100 = vector.load %arg8[%c2_59, %c0_60, %c0_61] : memref<4x64x1xf32, #tpu.memory_space<vmem>>, vector<1x64x1xf32>
    %101 = vector.shape_cast %100 : vector<1x64x1xf32> to vector<64x1xf32>
    %102 = vector.shape_cast %99 : vector<64x1xf32> to vector<1x64x1xf32>
    tpu.vector_store %arg8[%c2_59, %c0_60, %c0_61], %102 {strides = array<i32>} : memref<4x64x1xf32, #tpu.memory_space<vmem>>, vector<1x64x1xf32>,
    %103 = arith.truncf %95 : vector<64x16xf32> to vector<64x16xbf16>
    %104 = vector.extract_strided_slice %8 {offsets = [0, 64], sizes = [16, 32], strides = [1, 1]} : vector<16x128xbf16> to vector<16x32xbf16>
    %cst_62 = arith.constant dense<0.000000e+00> : vector<64x32xf32>
    %105 = tpu.matmul %103, %104, %cst_62 {dimension_numbers = #tpu.dot_dimension_numbers<[1], [0], [0], [1], [0, 0, 1, 1], [], []>} : vector<64x16xbf16>, vector<16x32xbf16>, vector<64x32xf32> -> vector<64x32xf32>
    %c2_63 = arith.constant 2 : index
    %c0_64 = arith.constant 0 : index
    %c0_65 = arith.constant 0 : index
    %106 = vector.load %arg9[%c2_63, %c0_64, %c0_65] : memref<4x64x32xf32, #tpu.memory_space<vmem>>, vector<1x64x32xf32>
    %107 = vector.shape_cast %106 : vector<1x64x32xf32> to vector<64x32xf32>
    %108 = vector.broadcast %92 : vector<64x1xf32> to vector<64x32xf32>
    %109 = arith.mulf %108, %107 : vector<64x32xf32>
    %110 = arith.addf %109, %105 : vector<64x32xf32>
    %c2_66 = arith.constant 2 : index
    %c0_67 = arith.constant 0 : index
    %c0_68 = arith.constant 0 : index
    %111 = vector.load %arg9[%c2_66, %c0_67, %c0_68] : memref<4x64x32xf32, #tpu.memory_space<vmem>>, vector<1x64x32xf32>
    %112 = vector.shape_cast %111 : vector<1x64x32xf32> to vector<64x32xf32>
    %113 = vector.shape_cast %110 : vector<64x32xf32> to vector<1x64x32xf32>
    tpu.vector_store %arg9[%c2_66, %c0_67, %c0_68], %113 {strides = array<i32>} : memref<4x64x32xf32, #tpu.memory_space<vmem>>, vector<1x64x32xf32>,
    %c2_69 = arith.constant 2 : index
    %c0_70 = arith.constant 0 : index
    %c0_71 = arith.constant 0 : index
    %114 = vector.load %arg7[%c2_69, %c0_70, %c0_71] : memref<4x64x1xf32, #tpu.memory_space<vmem>>, vector<1x64x1xf32>
    %115 = vector.shape_cast %114 : vector<1x64x1xf32> to vector<64x1xf32>
    %116 = vector.shape_cast %90 : vector<64x1xf32> to vector<1x64x1xf32>
    tpu.vector_store %arg7[%c2_69, %c0_70, %c0_71], %116 {strides = array<i32>} : memref<4x64x1xf32, #tpu.memory_space<vmem>>, vector<1x64x1xf32>,
    %117 = vector.extract_strided_slice %4 {offsets = [0, 96], sizes = [64, 32], strides = [1, 1]} : vector<64x128xbf16> to vector<64x32xbf16>
    %118 = vector.extract_strided_slice %6 {offsets = [0, 96], sizes = [16, 32], strides = [1, 1]} : vector<16x128xbf16> to vector<16x32xbf16>
    %cst_72 = arith.constant dense<0.000000e+00> : vector<64x16xf32>
    %119 = tpu.matmul %117, %118, %cst_72 {dimension_numbers = #tpu.dot_dimension_numbers<[1], [1], [0], [0], [0, 0, 1, 0], [], []>} : vector<64x32xbf16>, vector<16x32xbf16>, vector<64x16xf32> -> vector<64x16xf32>
    %c3 = arith.constant 3 : index
    %c0_73 = arith.constant 0 : index
    %c0_74 = arith.constant 0 : index
    %120 = vector.load %arg7[%c3, %c0_73, %c0_74] : memref<4x64x1xf32, #tpu.memory_space<vmem>>, vector<1x64x1xf32>
    %121 = vector.shape_cast %120 : vector<1x64x1xf32> to vector<64x1xf32>
    %c3_75 = arith.constant 3 : index
    %c0_76 = arith.constant 0 : index
    %c0_77 = arith.constant 0 : index
    %122 = vector.load %arg8[%c3_75, %c0_76, %c0_77] : memref<4x64x1xf32, #tpu.memory_space<vmem>>, vector<1x64x1xf32>
    %123 = vector.shape_cast %122 : vector<1x64x1xf32> to vector<64x1xf32>
    %cst_78 = arith.constant dense<0xFF800000> : vector<64xf32>
    %124 = vector.multi_reduction <maximumf>, %119, %cst_78 [1] : vector<64x16xf32> to vector<64xf32>
    %125 = vector.shape_cast %124 : vector<64xf32> to vector<64x1xf32>
    %126 = arith.maximumf %121, %125 : vector<64x1xf32>
    %127 = arith.subf %121, %126 : vector<64x1xf32>
    %128 = math.exp %127 : vector<64x1xf32>
    %129 = vector.broadcast %126 : vector<64x1xf32> to vector<64x16xf32>
    %130 = arith.subf %119, %129 : vector<64x16xf32>
    %131 = math.exp %130 : vector<64x16xf32>
    %132 = arith.mulf %128, %123 : vector<64x1xf32>
    %cst_79 = arith.constant dense<0.000000e+00> : vector<64xf32>
    %133 = vector.multi_reduction <add>, %131, %cst_79 [1] : vector<64x16xf32> to vector<64xf32>
    %134 = vector.shape_cast %133 : vector<64xf32> to vector<64x1xf32>
    %135 = arith.addf %132, %134 : vector<64x1xf32>
    %c3_80 = arith.constant 3 : index
    %c0_81 = arith.constant 0 : index
    %c0_82 = arith.constant 0 : index
    %136 = vector.load %arg8[%c3_80, %c0_81, %c0_82] : memref<4x64x1xf32, #tpu.memory_space<vmem>>, vector<1x64x1xf32>
    %137 = vector.shape_cast %136 : vector<1x64x1xf32> to vector<64x1xf32>
    %138 = vector.shape_cast %135 : vector<64x1xf32> to vector<1x64x1xf32>
    tpu.vector_store %arg8[%c3_80, %c0_81, %c0_82], %138 {strides = array<i32>} : memref<4x64x1xf32, #tpu.memory_space<vmem>>, vector<1x64x1xf32>,
    %139 = arith.truncf %131 : vector<64x16xf32> to vector<64x16xbf16>
    %140 = vector.extract_strided_slice %8 {offsets = [0, 96], sizes = [16, 32], strides = [1, 1]} : vector<16x128xbf16> to vector<16x32xbf16>
    %cst_83 = arith.constant dense<0.000000e+00> : vector<64x32xf32>
    %141 = tpu.matmul %139, %140, %cst_83 {dimension_numbers = #tpu.dot_dimension_numbers<[1], [0], [0], [1], [0, 0, 1, 1], [], []>} : vector<64x16xbf16>, vector<16x32xbf16>, vector<64x32xf32> -> vector<64x32xf32>
    %c3_84 = arith.constant 3 : index
    %c0_85 = arith.constant 0 : index
    %c0_86 = arith.constant 0 : index
    %142 = vector.load %arg9[%c3_84, %c0_85, %c0_86] : memref<4x64x32xf32, #tpu.memory_space<vmem>>, vector<1x64x32xf32>
    %143 = vector.shape_cast %142 : vector<1x64x32xf32> to vector<64x32xf32>
    %144 = vector.broadcast %128 : vector<64x1xf32> to vector<64x32xf32>
    %145 = arith.mulf %144, %143 : vector<64x32xf32>
    %146 = arith.addf %145, %141 : vector<64x32xf32>
    %c3_87 = arith.constant 3 : index
    %c0_88 = arith.constant 0 : index
    %c0_89 = arith.constant 0 : index
    %147 = vector.load %arg9[%c3_87, %c0_88, %c0_89] : memref<4x64x32xf32, #tpu.memory_space<vmem>>, vector<1x64x32xf32>
    %148 = vector.shape_cast %147 : vector<1x64x32xf32> to vector<64x32xf32>
    %149 = vector.shape_cast %146 : vector<64x32xf32> to vector<1x64x32xf32>
    tpu.vector_store %arg9[%c3_87, %c0_88, %c0_89], %149 {strides = array<i32>} : memref<4x64x32xf32, #tpu.memory_space<vmem>>, vector<1x64x32xf32>,
    %c3_90 = arith.constant 3 : index
    %c0_91 = arith.constant 0 : index
    %c0_92 = arith.constant 0 : index
    %150 = vector.load %arg7[%c3_90, %c0_91, %c0_92] : memref<4x64x1xf32, #tpu.memory_space<vmem>>, vector<1x64x1xf32>
    %151 = vector.shape_cast %150 : vector<1x64x1xf32> to vector<64x1xf32>
    %152 = vector.shape_cast %126 : vector<64x1xf32> to vector<1x64x1xf32>
    tpu.vector_store %arg7[%c3_90, %c0_91, %c0_92], %152 {strides = array<i32>} : memref<4x64x1xf32, #tpu.memory_space<vmem>>, vector<1x64x1xf32>,
    %c0_i32_93 = arith.constant 0 : i32
    %153 = arith.cmpi eq, %arg2, %c0_i32_93 : i32
    %154 = arith.extui %153 : i1 to i32
    %c0_i32_94 = arith.constant 0 : i32
    %155 = arith.cmpi ne, %154, %c0_i32_94 : i32
    scf.if %155 {
      %c0_95 = arith.constant 0 : index
      %c0_96 = arith.constant 0 : index
      %c0_97 = arith.constant 0 : index
      %156 = vector.load %arg8[%c0_95, %c0_96, %c0_97] : memref<4x64x1xf32, #tpu.memory_space<vmem>>, vector<1x64x1xf32>
      %157 = vector.shape_cast %156 : vector<1x64x1xf32> to vector<64x1xf32>
      %158 = tpu.reciprocal %157 {approx = true} : vector<64x1xf32> -> vector<64x1xf32>
      %c0_98 = arith.constant 0 : index
      %c0_99 = arith.constant 0 : index
      %c0_100 = arith.constant 0 : index
      %159 = vector.load %arg9[%c0_98, %c0_99, %c0_100] : memref<4x64x32xf32, #tpu.memory_space<vmem>>, vector<1x64x32xf32>
      %160 = vector.shape_cast %159 : vector<1x64x32xf32> to vector<64x32xf32>
      %161 = vector.broadcast %158 : vector<64x1xf32> to vector<64x32xf32>
      %162 = arith.mulf %160, %161 : vector<64x32xf32>
      %c1_101 = arith.constant 1 : index
      %c0_102 = arith.constant 0 : index
      %c0_103 = arith.constant 0 : index
      %163 = vector.load %arg8[%c1_101, %c0_102, %c0_103] : memref<4x64x1xf32, #tpu.memory_space<vmem>>, vector<1x64x1xf32>
      %164 = vector.shape_cast %163 : vector<1x64x1xf32> to vector<64x1xf32>
      %165 = tpu.reciprocal %164 {approx = true} : vector<64x1xf32> -> vector<64x1xf32>
      %c1_104 = arith.constant 1 : index
      %c0_105 = arith.constant 0 : index
      %c0_106 = arith.constant 0 : index
      %166 = vector.load %arg9[%c1_104, %c0_105, %c0_106] : memref<4x64x32xf32, #tpu.memory_space<vmem>>, vector<1x64x32xf32>
      %167 = vector.shape_cast %166 : vector<1x64x32xf32> to vector<64x32xf32>
      %168 = vector.broadcast %165 : vector<64x1xf32> to vector<64x32xf32>
      %169 = arith.mulf %167, %168 : vector<64x32xf32>
      %c2_107 = arith.constant 2 : index
      %c0_108 = arith.constant 0 : index
      %c0_109 = arith.constant 0 : index
      %170 = vector.load %arg8[%c2_107, %c0_108, %c0_109] : memref<4x64x1xf32, #tpu.memory_space<vmem>>, vector<1x64x1xf32>
      %171 = vector.shape_cast %170 : vector<1x64x1xf32> to vector<64x1xf32>
      %172 = tpu.reciprocal %171 {approx = true} : vector<64x1xf32> -> vector<64x1xf32>
      %c2_110 = arith.constant 2 : index
      %c0_111 = arith.constant 0 : index
      %c0_112 = arith.constant 0 : index
      %173 = vector.load %arg9[%c2_110, %c0_111, %c0_112] : memref<4x64x32xf32, #tpu.memory_space<vmem>>, vector<1x64x32xf32>
      %174 = vector.shape_cast %173 : vector<1x64x32xf32> to vector<64x32xf32>
      %175 = vector.broadcast %172 : vector<64x1xf32> to vector<64x32xf32>
      %176 = arith.mulf %174, %175 : vector<64x32xf32>
      %c3_113 = arith.constant 3 : index
      %c0_114 = arith.constant 0 : index
      %c0_115 = arith.constant 0 : index
      %177 = vector.load %arg8[%c3_113, %c0_114, %c0_115] : memref<4x64x1xf32, #tpu.memory_space<vmem>>, vector<1x64x1xf32>
      %178 = vector.shape_cast %177 : vector<1x64x1xf32> to vector<64x1xf32>
      %179 = tpu.reciprocal %178 {approx = true} : vector<64x1xf32> -> vector<64x1xf32>
      %c3_116 = arith.constant 3 : index
      %c0_117 = arith.constant 0 : index
      %c0_118 = arith.constant 0 : index
      %180 = vector.load %arg9[%c3_116, %c0_117, %c0_118] : memref<4x64x32xf32, #tpu.memory_space<vmem>>, vector<1x64x32xf32>
      %181 = vector.shape_cast %180 : vector<1x64x32xf32> to vector<64x32xf32>
      %182 = vector.broadcast %179 : vector<64x1xf32> to vector<64x32xf32>
      %183 = arith.mulf %181, %182 : vector<64x32xf32>
      %184 = tpu.concatenate %162, %169, %176, %183 in 1 : vector<64x32xf32>, vector<64x32xf32>, vector<64x32xf32>, vector<64x32xf32> -> vector<64x128xf32>
      %185 = arith.truncf %184 : vector<64x128xf32> to vector<64x128xbf16>
      %c0_119 = arith.constant 0 : index
      %c0_120 = arith.constant 0 : index
      %c0_121 = arith.constant 0 : index
      %186 = vector.load %arg6[%c0_119, %c0_120, %c0_121] : memref<1x64x128xbf16, #tpu.memory_space<vmem>>, vector<1x64x128xbf16>
      %187 = vector.shape_cast %186 : vector<1x64x128xbf16> to vector<64x128xbf16>
      %188 = vector.shape_cast %185 : vector<64x128xbf16> to vector<1x64x128xbf16>
      tpu.vector_store %arg6[%c0_119, %c0_120, %c0_121], %188 {strides = array<i32>} : memref<1x64x128xbf16, #tpu.memory_space<vmem>>, vector<1x64x128xbf16>,
    } else {
    }
    return
  }
  func.func @transform_0(%arg0: i32, %arg1: i32, %arg2: i32) -> (i32, i32, i32) {
    %c0_i32 = arith.constant 0 : i32
    %c0_i32_0 = arith.constant 0 : i32
    return %arg0, %arg1, %c0_i32 : i32, i32, i32
  }
  func.func @transform_1(%arg0: i32, %arg1: i32, %arg2: i32) -> (i32, i32, i32) {
    %c0_i32 = arith.constant 0 : i32
    %c0_i32_0 = arith.constant 0 : i32
    return %arg0, %arg2, %c0_i32 : i32, i32, i32
  }
  func.func @transform_2(%arg0: i32, %arg1: i32, %arg2: i32) -> (i32, i32, i32) {
    %c1_i32 = arith.constant 1 : i32
    %c0_i32 = arith.constant 0 : i32
    return %arg0, %arg2, %c1_i32 : i32, i32, i32
  }
  func.func @transform_3(%arg0: i32, %arg1: i32, %arg2: i32) -> (i32, i32, i32) {
    %c0_i32 = arith.constant 0 : i32
    %c0_i32_0 = arith.constant 0 : i32
    return %arg0, %arg1, %c0_i32 : i32, i32, i32
  }
}

module attributes {stable_mosaic.version = 11 : i64} {
  func.func @_token_linear_kernel(%arg0: i32, %arg1: i32, %arg2: i32, %arg3: i32, %arg4: memref<1x64x128xbf16, #tpu.memory_space<vmem>>, %arg5: memref<128x128xbf16, #tpu.memory_space<vmem>>, %arg6: memref<1x128xf32, #tpu.memory_space<vmem>>, %arg7: memref<1x64x128xbf16, #tpu.memory_space<vmem>>, %arg8: memref<1x64x128xbf16, #tpu.memory_space<vmem>>, %arg9: memref<64x128xf32, #tpu.memory_space<vmem>>) attributes {dimension_semantics = [#tpu.dimension_semantics<parallel>, #tpu.dimension_semantics<parallel>, #tpu.dimension_semantics<parallel>, #tpu.dimension_semantics<arbitrary>], iteration_bounds = array<i64: 2, 1, 1, 1>, scalar_prefetch = 0 : i64, scratch_operands = 1 : i64, tpu.core_type = #tpu.core_type<tc>, window_params = [{transform_indices = @transform_0, window_bounds = array<i64: 1, 64, 128>}, {transform_indices = @transform_1, window_bounds = array<i64: 128, 128>}, {transform_indices = @transform_2, window_bounds = array<i64: 1, 128>}, {transform_indices = @transform_3, window_bounds = array<i64: 1, 64, 128>}, {transform_indices = @transform_4, window_bounds = array<i64: 1, 64, 128>}]} {
    %c0_i32 = arith.constant 0 : i32
    %0 = arith.cmpi eq, %arg3, %c0_i32 : i32
    %1 = arith.extui %0 : i1 to i32
    %c0_i32_0 = arith.constant 0 : i32
    %2 = arith.cmpi ne, %1, %c0_i32_0 : i32
    scf.if %2 {
      %cst_11 = arith.constant 0.000000e+00 : f32
      %13 = vector.broadcast %cst_11 : f32 to vector<64x128xf32>
      %c0_12 = arith.constant 0 : index
      %c0_13 = arith.constant 0 : index
      %14 = vector.load %arg9[%c0_12, %c0_13] : memref<64x128xf32, #tpu.memory_space<vmem>>, vector<64x128xf32>
      tpu.vector_store %arg9[%c0_12, %c0_13], %13 {strides = array<i32>} : memref<64x128xf32, #tpu.memory_space<vmem>>, vector<64x128xf32>,
    } else {
    }
    %c0 = arith.constant 0 : index
    %c0_1 = arith.constant 0 : index
    %3 = vector.load %arg9[%c0, %c0_1] : memref<64x128xf32, #tpu.memory_space<vmem>>, vector<64x128xf32>
    %c0_2 = arith.constant 0 : index
    %c0_3 = arith.constant 0 : index
    %c0_4 = arith.constant 0 : index
    %4 = vector.load %arg4[%c0_2, %c0_3, %c0_4] : memref<1x64x128xbf16, #tpu.memory_space<vmem>>, vector<1x64x128xbf16>
    %5 = vector.shape_cast %4 : vector<1x64x128xbf16> to vector<64x128xbf16>
    %c0_5 = arith.constant 0 : index
    %c0_6 = arith.constant 0 : index
    %6 = vector.load %arg5[%c0_5, %c0_6] : memref<128x128xbf16, #tpu.memory_space<vmem>>, vector<128x128xbf16>
    %cst = arith.constant dense<0.000000e+00> : vector<64x128xf32>
    %7 = tpu.matmul %5, %6, %cst {dimension_numbers = #tpu.dot_dimension_numbers<[1], [0], [0], [1], [0, 0, 1, 1], [], []>} : vector<64x128xbf16>, vector<128x128xbf16>, vector<64x128xf32> -> vector<64x128xf32>
    %8 = arith.addf %3, %7 : vector<64x128xf32>
    %c0_7 = arith.constant 0 : index
    %c0_8 = arith.constant 0 : index
    %9 = vector.load %arg9[%c0_7, %c0_8] : memref<64x128xf32, #tpu.memory_space<vmem>>, vector<64x128xf32>
    tpu.vector_store %arg9[%c0_7, %c0_8], %8 {strides = array<i32>} : memref<64x128xf32, #tpu.memory_space<vmem>>, vector<64x128xf32>,
    %c0_i32_9 = arith.constant 0 : i32
    %10 = arith.cmpi eq, %arg3, %c0_i32_9 : i32
    %11 = arith.extui %10 : i1 to i32
    %c0_i32_10 = arith.constant 0 : i32
    %12 = arith.cmpi ne, %11, %c0_i32_10 : i32
    scf.if %12 {
      %c0_11 = arith.constant 0 : index
      %c0_12 = arith.constant 0 : index
      %13 = vector.load %arg9[%c0_11, %c0_12] : memref<64x128xf32, #tpu.memory_space<vmem>>, vector<64x128xf32>
      %c0_13 = arith.constant 0 : index
      %c0_14 = arith.constant 0 : index
      %14 = vector.load %arg6[%c0_13, %c0_14] : memref<1x128xf32, #tpu.memory_space<vmem>>, vector<1x128xf32>
      %15 = vector.broadcast %14 : vector<1x128xf32> to vector<64x128xf32>
      %16 = arith.addf %13, %15 : vector<64x128xf32>
      %c0_15 = arith.constant 0 : index
      %c0_16 = arith.constant 0 : index
      %c0_17 = arith.constant 0 : index
      %17 = vector.load %arg7[%c0_15, %c0_16, %c0_17] : memref<1x64x128xbf16, #tpu.memory_space<vmem>>, vector<1x64x128xbf16>
      %18 = vector.shape_cast %17 : vector<1x64x128xbf16> to vector<64x128xbf16>
      %19 = arith.extf %18 : vector<64x128xbf16> to vector<64x128xf32>
      %20 = arith.addf %19, %16 : vector<64x128xf32>
      %21 = arith.truncf %20 : vector<64x128xf32> to vector<64x128xbf16>
      %c0_18 = arith.constant 0 : index
      %c0_19 = arith.constant 0 : index
      %c0_20 = arith.constant 0 : index
      %22 = vector.load %arg8[%c0_18, %c0_19, %c0_20] : memref<1x64x128xbf16, #tpu.memory_space<vmem>>, vector<1x64x128xbf16>
      %23 = vector.shape_cast %22 : vector<1x64x128xbf16> to vector<64x128xbf16>
      %24 = vector.shape_cast %21 : vector<64x128xbf16> to vector<1x64x128xbf16>
      tpu.vector_store %arg8[%c0_18, %c0_19, %c0_20], %24 {strides = array<i32>} : memref<1x64x128xbf16, #tpu.memory_space<vmem>>, vector<1x64x128xbf16>,
    } else {
    }
    return
  }
  func.func @transform_0(%arg0: i32, %arg1: i32, %arg2: i32, %arg3: i32) -> (i32, i32, i32) {
    %c0_i32 = arith.constant 0 : i32
    return %arg0, %arg1, %arg3 : i32, i32, i32
  }
  func.func @transform_1(%arg0: i32, %arg1: i32, %arg2: i32, %arg3: i32) -> (i32, i32) {
    %c0_i32 = arith.constant 0 : i32
    return %arg3, %arg2 : i32, i32
  }
  func.func @transform_2(%arg0: i32, %arg1: i32, %arg2: i32, %arg3: i32) -> (i32, i32) {
    %c0_i32 = arith.constant 0 : i32
    %c0_i32_0 = arith.constant 0 : i32
    return %c0_i32, %arg2 : i32, i32
  }
  func.func @transform_3(%arg0: i32, %arg1: i32, %arg2: i32, %arg3: i32) -> (i32, i32, i32) {
    %c0_i32 = arith.constant 0 : i32
    return %arg0, %arg1, %arg2 : i32, i32, i32
  }
  func.func @transform_4(%arg0: i32, %arg1: i32, %arg2: i32, %arg3: i32) -> (i32, i32, i32) {
    %c0_i32 = arith.constant 0 : i32
    return %arg0, %arg1, %arg2 : i32, i32, i32
  }
}

module attributes {stable_mosaic.version = 11 : i64} {
  func.func @_ln_mod_linear_kernel(%arg0: i32, %arg1: i32, %arg2: i32, %arg3: memref<1x64x128xbf16, #tpu.memory_space<vmem>>, %arg4: memref<1x1x128xf32, #tpu.memory_space<vmem>>, %arg5: memref<1x1x128xf32, #tpu.memory_space<vmem>>, %arg6: memref<128x256xbf16, #tpu.memory_space<vmem>>, %arg7: memref<1x256xf32, #tpu.memory_space<vmem>>, %arg8: memref<1x64x256xbf16, #tpu.memory_space<vmem>>, %arg9: memref<64x128xbf16, #tpu.memory_space<vmem>>) attributes {dimension_semantics = [#tpu.dimension_semantics<parallel>, #tpu.dimension_semantics<parallel>, #tpu.dimension_semantics<arbitrary>], iteration_bounds = array<i64: 2, 1, 2>, scalar_prefetch = 0 : i64, scratch_operands = 1 : i64, tpu.core_type = #tpu.core_type<tc>, window_params = [{transform_indices = @transform_0, window_bounds = array<i64: 1, 64, 128>}, {transform_indices = @transform_1, window_bounds = array<i64: 1, 1, 128>}, {transform_indices = @transform_2, window_bounds = array<i64: 1, 1, 128>}, {transform_indices = @transform_3, window_bounds = array<i64: 128, 256>}, {transform_indices = @transform_4, window_bounds = array<i64: 1, 256>}, {transform_indices = @transform_5, window_bounds = array<i64: 1, 64, 256>}]} {
    %c0_i32 = arith.constant 0 : i32
    %0 = arith.cmpi eq, %arg2, %c0_i32 : i32
    %1 = arith.extui %0 : i1 to i32
    %c0_i32_0 = arith.constant 0 : i32
    %2 = arith.cmpi ne, %1, %c0_i32_0 : i32
    scf.if %2 {
      %c0_13 = arith.constant 0 : index
      %c0_14 = arith.constant 0 : index
      %c0_15 = arith.constant 0 : index
      %26 = vector.load %arg3[%c0_13, %c0_14, %c0_15] : memref<1x64x128xbf16, #tpu.memory_space<vmem>>, vector<1x64x128xbf16>
      %27 = vector.shape_cast %26 : vector<1x64x128xbf16> to vector<64x128xbf16>
      %28 = arith.extf %27 : vector<64x128xbf16> to vector<64x128xf32>
      %cst_16 = arith.constant dense<0.000000e+00> : vector<64xf32>
      %29 = vector.multi_reduction <add>, %28, %cst_16 [1] : vector<64x128xf32> to vector<64xf32>
      %30 = vector.shape_cast %29 : vector<64xf32> to vector<64x1xf32>
      %cst_17 = arith.constant 1.280000e+02 : f32
      %31 = vector.broadcast %cst_17 : f32 to vector<64x1xf32>
      %32 = arith.divf %30, %31 : vector<64x1xf32>
      %33 = vector.broadcast %32 : vector<64x1xf32> to vector<64x128xf32>
      %34 = arith.subf %28, %33 : vector<64x128xf32>
      %35 = arith.mulf %34, %34 : vector<64x128xf32>
      %cst_18 = arith.constant dense<0.000000e+00> : vector<64xf32>
      %36 = vector.multi_reduction <add>, %35, %cst_18 [1] : vector<64x128xf32> to vector<64xf32>
      %37 = vector.shape_cast %36 : vector<64xf32> to vector<64x1xf32>
      %cst_19 = arith.constant 1.280000e+02 : f32
      %38 = vector.broadcast %cst_19 : f32 to vector<64x1xf32>
      %39 = arith.divf %37, %38 : vector<64x1xf32>
      %cst_20 = arith.constant 9.99999997E-7 : f32
      %40 = vector.broadcast %cst_20 : f32 to vector<64x1xf32>
      %41 = arith.addf %39, %40 : vector<64x1xf32>
      %42 = math.rsqrt %41 : vector<64x1xf32>
      %43 = vector.broadcast %42 : vector<64x1xf32> to vector<64x128xf32>
      %44 = arith.mulf %34, %43 : vector<64x128xf32>
      %c0_21 = arith.constant 0 : index
      %c0_22 = arith.constant 0 : index
      %c0_23 = arith.constant 0 : index
      %45 = vector.load %arg5[%c0_21, %c0_22, %c0_23] : memref<1x1x128xf32, #tpu.memory_space<vmem>>, vector<1x1x128xf32>
      %46 = vector.shape_cast %45 : vector<1x1x128xf32> to vector<1x128xf32>
      %cst_24 = arith.constant 1.000000e+00 : f32
      %47 = vector.broadcast %cst_24 : f32 to vector<1x128xf32>
      %48 = arith.addf %47, %46 : vector<1x128xf32>
      %49 = vector.broadcast %48 : vector<1x128xf32> to vector<64x128xf32>
      %50 = arith.mulf %44, %49 : vector<64x128xf32>
      %c0_25 = arith.constant 0 : index
      %c0_26 = arith.constant 0 : index
      %c0_27 = arith.constant 0 : index
      %51 = vector.load %arg4[%c0_25, %c0_26, %c0_27] : memref<1x1x128xf32, #tpu.memory_space<vmem>>, vector<1x1x128xf32>
      %52 = vector.shape_cast %51 : vector<1x1x128xf32> to vector<1x128xf32>
      %53 = vector.broadcast %52 : vector<1x128xf32> to vector<64x128xf32>
      %54 = arith.addf %50, %53 : vector<64x128xf32>
      %55 = arith.truncf %54 : vector<64x128xf32> to vector<64x128xbf16>
      %c0_28 = arith.constant 0 : index
      %c0_29 = arith.constant 0 : index
      %56 = vector.load %arg9[%c0_28, %c0_29] : memref<64x128xbf16, #tpu.memory_space<vmem>>, vector<64x128xbf16>
      tpu.vector_store %arg9[%c0_28, %c0_29], %55 {strides = array<i32>} : memref<64x128xbf16, #tpu.memory_space<vmem>>, vector<64x128xbf16>,
    } else {
    }
    %c0 = arith.constant 0 : index
    %c0_1 = arith.constant 0 : index
    %3 = vector.load %arg9[%c0, %c0_1] : memref<64x128xbf16, #tpu.memory_space<vmem>>, vector<64x128xbf16>
    %c0_2 = arith.constant 0 : index
    %c0_3 = arith.constant 0 : index
    %4 = vector.load %arg6[%c0_2, %c0_3] : memref<128x256xbf16, #tpu.memory_space<vmem>>, vector<128x256xbf16>
    %cst = arith.constant dense<0.000000e+00> : vector<64x256xf32>
    %5 = tpu.matmul %3, %4, %cst {dimension_numbers = #tpu.dot_dimension_numbers<[1], [0], [0], [1], [0, 0, 1, 1], [], []>} : vector<64x128xbf16>, vector<128x256xbf16>, vector<64x256xf32> -> vector<64x256xf32>
    %c0_4 = arith.constant 0 : index
    %c0_5 = arith.constant 0 : index
    %6 = vector.load %arg7[%c0_4, %c0_5] : memref<1x256xf32, #tpu.memory_space<vmem>>, vector<1x256xf32>
    %7 = vector.broadcast %6 : vector<1x256xf32> to vector<64x256xf32>
    %8 = arith.addf %5, %7 : vector<64x256xf32>
    %9 = arith.mulf %8, %8 : vector<64x256xf32>
    %10 = arith.mulf %8, %9 : vector<64x256xf32>
    %cst_6 = arith.constant 4.471500e-02 : f32
    %11 = vector.broadcast %cst_6 : f32 to vector<64x256xf32>
    %12 = arith.mulf %11, %10 : vector<64x256xf32>
    %13 = arith.addf %8, %12 : vector<64x256xf32>
    %cst_7 = arith.constant 0.797884583 : f32
    %14 = vector.broadcast %cst_7 : f32 to vector<64x256xf32>
    %15 = arith.mulf %14, %13 : vector<64x256xf32>
    %16 = math.tanh %15 : vector<64x256xf32>
    %cst_8 = arith.constant 1.000000e+00 : f32
    %17 = vector.broadcast %cst_8 : f32 to vector<64x256xf32>
    %18 = arith.addf %17, %16 : vector<64x256xf32>
    %cst_9 = arith.constant 5.000000e-01 : f32
    %19 = vector.broadcast %cst_9 : f32 to vector<64x256xf32>
    %20 = arith.mulf %19, %18 : vector<64x256xf32>
    %21 = arith.mulf %8, %20 : vector<64x256xf32>
    %22 = arith.truncf %21 : vector<64x256xf32> to vector<64x256xbf16>
    %c0_10 = arith.constant 0 : index
    %c0_11 = arith.constant 0 : index
    %c0_12 = arith.constant 0 : index
    %23 = vector.load %arg8[%c0_10, %c0_11, %c0_12] : memref<1x64x256xbf16, #tpu.memory_space<vmem>>, vector<1x64x256xbf16>
    %24 = vector.shape_cast %23 : vector<1x64x256xbf16> to vector<64x256xbf16>
    %25 = vector.shape_cast %22 : vector<64x256xbf16> to vector<1x64x256xbf16>
    tpu.vector_store %arg8[%c0_10, %c0_11, %c0_12], %25 {strides = array<i32>} : memref<1x64x256xbf16, #tpu.memory_space<vmem>>, vector<1x64x256xbf16>,
    return
  }
  func.func @transform_0(%arg0: i32, %arg1: i32, %arg2: i32) -> (i32, i32, i32) {
    %c0_i32 = arith.constant 0 : i32
    %c0_i32_0 = arith.constant 0 : i32
    return %arg0, %arg1, %c0_i32 : i32, i32, i32
  }
  func.func @transform_1(%arg0: i32, %arg1: i32, %arg2: i32) -> (i32, i32, i32) {
    %c0_i32 = arith.constant 0 : i32
    %c0_i32_0 = arith.constant 0 : i32
    %c0_i32_1 = arith.constant 0 : i32
    return %arg0, %c0_i32, %c0_i32_0 : i32, i32, i32
  }
  func.func @transform_2(%arg0: i32, %arg1: i32, %arg2: i32) -> (i32, i32, i32) {
    %c0_i32 = arith.constant 0 : i32
    %c0_i32_0 = arith.constant 0 : i32
    %c0_i32_1 = arith.constant 0 : i32
    return %arg0, %c0_i32, %c0_i32_0 : i32, i32, i32
  }
  func.func @transform_3(%arg0: i32, %arg1: i32, %arg2: i32) -> (i32, i32) {
    %c0_i32 = arith.constant 0 : i32
    %c0_i32_0 = arith.constant 0 : i32
    return %c0_i32, %arg2 : i32, i32
  }
  func.func @transform_4(%arg0: i32, %arg1: i32, %arg2: i32) -> (i32, i32) {
    %c0_i32 = arith.constant 0 : i32
    %c0_i32_0 = arith.constant 0 : i32
    return %c0_i32, %arg2 : i32, i32
  }
  func.func @transform_5(%arg0: i32, %arg1: i32, %arg2: i32) -> (i32, i32, i32) {
    %c0_i32 = arith.constant 0 : i32
    return %arg0, %arg1, %arg2 : i32, i32, i32
  }
}

module attributes {stable_mosaic.version = 11 : i64} {
  func.func @_token_linear_kernel(%arg0: i32, %arg1: i32, %arg2: i32, %arg3: i32, %arg4: memref<1x64x512xbf16, #tpu.memory_space<vmem>>, %arg5: memref<512x128xbf16, #tpu.memory_space<vmem>>, %arg6: memref<1x128xf32, #tpu.memory_space<vmem>>, %arg7: memref<1x64x128xbf16, #tpu.memory_space<vmem>>, %arg8: memref<1x1x128xf32, #tpu.memory_space<vmem>>, %arg9: memref<1x64x128xbf16, #tpu.memory_space<vmem>>, %arg10: memref<64x128xf32, #tpu.memory_space<vmem>>) attributes {dimension_semantics = [#tpu.dimension_semantics<parallel>, #tpu.dimension_semantics<parallel>, #tpu.dimension_semantics<parallel>, #tpu.dimension_semantics<arbitrary>], iteration_bounds = array<i64: 2, 1, 1, 1>, scalar_prefetch = 0 : i64, scratch_operands = 1 : i64, tpu.core_type = #tpu.core_type<tc>, window_params = [{transform_indices = @transform_0, window_bounds = array<i64: 1, 64, 512>}, {transform_indices = @transform_1, window_bounds = array<i64: 512, 128>}, {transform_indices = @transform_2, window_bounds = array<i64: 1, 128>}, {transform_indices = @transform_3, window_bounds = array<i64: 1, 64, 128>}, {transform_indices = @transform_4, window_bounds = array<i64: 1, 1, 128>}, {transform_indices = @transform_5, window_bounds = array<i64: 1, 64, 128>}]} {
    %c0_i32 = arith.constant 0 : i32
    %0 = arith.cmpi eq, %arg3, %c0_i32 : i32
    %1 = arith.extui %0 : i1 to i32
    %c0_i32_0 = arith.constant 0 : i32
    %2 = arith.cmpi ne, %1, %c0_i32_0 : i32
    scf.if %2 {
      %cst_11 = arith.constant 0.000000e+00 : f32
      %13 = vector.broadcast %cst_11 : f32 to vector<64x128xf32>
      %c0_12 = arith.constant 0 : index
      %c0_13 = arith.constant 0 : index
      %14 = vector.load %arg10[%c0_12, %c0_13] : memref<64x128xf32, #tpu.memory_space<vmem>>, vector<64x128xf32>
      tpu.vector_store %arg10[%c0_12, %c0_13], %13 {strides = array<i32>} : memref<64x128xf32, #tpu.memory_space<vmem>>, vector<64x128xf32>,
    } else {
    }
    %c0 = arith.constant 0 : index
    %c0_1 = arith.constant 0 : index
    %3 = vector.load %arg10[%c0, %c0_1] : memref<64x128xf32, #tpu.memory_space<vmem>>, vector<64x128xf32>
    %c0_2 = arith.constant 0 : index
    %c0_3 = arith.constant 0 : index
    %c0_4 = arith.constant 0 : index
    %4 = vector.load %arg4[%c0_2, %c0_3, %c0_4] : memref<1x64x512xbf16, #tpu.memory_space<vmem>>, vector<1x64x512xbf16>
    %5 = vector.shape_cast %4 : vector<1x64x512xbf16> to vector<64x512xbf16>
    %c0_5 = arith.constant 0 : index
    %c0_6 = arith.constant 0 : index
    %6 = vector.load %arg5[%c0_5, %c0_6] : memref<512x128xbf16, #tpu.memory_space<vmem>>, vector<512x128xbf16>
    %cst = arith.constant dense<0.000000e+00> : vector<64x128xf32>
    %7 = tpu.matmul %5, %6, %cst {dimension_numbers = #tpu.dot_dimension_numbers<[1], [0], [0], [1], [0, 0, 1, 1], [], []>} : vector<64x512xbf16>, vector<512x128xbf16>, vector<64x128xf32> -> vector<64x128xf32>
    %8 = arith.addf %3, %7 : vector<64x128xf32>
    %c0_7 = arith.constant 0 : index
    %c0_8 = arith.constant 0 : index
    %9 = vector.load %arg10[%c0_7, %c0_8] : memref<64x128xf32, #tpu.memory_space<vmem>>, vector<64x128xf32>
    tpu.vector_store %arg10[%c0_7, %c0_8], %8 {strides = array<i32>} : memref<64x128xf32, #tpu.memory_space<vmem>>, vector<64x128xf32>,
    %c0_i32_9 = arith.constant 0 : i32
    %10 = arith.cmpi eq, %arg3, %c0_i32_9 : i32
    %11 = arith.extui %10 : i1 to i32
    %c0_i32_10 = arith.constant 0 : i32
    %12 = arith.cmpi ne, %11, %c0_i32_10 : i32
    scf.if %12 {
      %c0_11 = arith.constant 0 : index
      %c0_12 = arith.constant 0 : index
      %13 = vector.load %arg10[%c0_11, %c0_12] : memref<64x128xf32, #tpu.memory_space<vmem>>, vector<64x128xf32>
      %c0_13 = arith.constant 0 : index
      %c0_14 = arith.constant 0 : index
      %14 = vector.load %arg6[%c0_13, %c0_14] : memref<1x128xf32, #tpu.memory_space<vmem>>, vector<1x128xf32>
      %15 = vector.broadcast %14 : vector<1x128xf32> to vector<64x128xf32>
      %16 = arith.addf %13, %15 : vector<64x128xf32>
      %c0_15 = arith.constant 0 : index
      %c0_16 = arith.constant 0 : index
      %c0_17 = arith.constant 0 : index
      %17 = vector.load %arg8[%c0_15, %c0_16, %c0_17] : memref<1x1x128xf32, #tpu.memory_space<vmem>>, vector<1x1x128xf32>
      %18 = vector.shape_cast %17 : vector<1x1x128xf32> to vector<1x128xf32>
      %19 = vector.broadcast %18 : vector<1x128xf32> to vector<64x128xf32>
      %20 = arith.mulf %16, %19 : vector<64x128xf32>
      %c0_18 = arith.constant 0 : index
      %c0_19 = arith.constant 0 : index
      %c0_20 = arith.constant 0 : index
      %21 = vector.load %arg7[%c0_18, %c0_19, %c0_20] : memref<1x64x128xbf16, #tpu.memory_space<vmem>>, vector<1x64x128xbf16>
      %22 = vector.shape_cast %21 : vector<1x64x128xbf16> to vector<64x128xbf16>
      %23 = arith.extf %22 : vector<64x128xbf16> to vector<64x128xf32>
      %24 = arith.addf %23, %20 : vector<64x128xf32>
      %25 = arith.truncf %24 : vector<64x128xf32> to vector<64x128xbf16>
      %c0_21 = arith.constant 0 : index
      %c0_22 = arith.constant 0 : index
      %c0_23 = arith.constant 0 : index
      %26 = vector.load %arg9[%c0_21, %c0_22, %c0_23] : memref<1x64x128xbf16, #tpu.memory_space<vmem>>, vector<1x64x128xbf16>
      %27 = vector.shape_cast %26 : vector<1x64x128xbf16> to vector<64x128xbf16>
      %28 = vector.shape_cast %25 : vector<64x128xbf16> to vector<1x64x128xbf16>
      tpu.vector_store %arg9[%c0_21, %c0_22, %c0_23], %28 {strides = array<i32>} : memref<1x64x128xbf16, #tpu.memory_space<vmem>>, vector<1x64x128xbf16>,
    } else {
    }
    return
  }
  func.func @transform_0(%arg0: i32, %arg1: i32, %arg2: i32, %arg3: i32) -> (i32, i32, i32) {
    %c0_i32 = arith.constant 0 : i32
    return %arg0, %arg1, %arg3 : i32, i32, i32
  }
  func.func @transform_1(%arg0: i32, %arg1: i32, %arg2: i32, %arg3: i32) -> (i32, i32) {
    %c0_i32 = arith.constant 0 : i32
    return %arg3, %arg2 : i32, i32
  }
  func.func @transform_2(%arg0: i32, %arg1: i32, %arg2: i32, %arg3: i32) -> (i32, i32) {
    %c0_i32 = arith.constant 0 : i32
    %c0_i32_0 = arith.constant 0 : i32
    return %c0_i32, %arg2 : i32, i32
  }
  func.func @transform_3(%arg0: i32, %arg1: i32, %arg2: i32, %arg3: i32) -> (i32, i32, i32) {
    %c0_i32 = arith.constant 0 : i32
    return %arg0, %arg1, %arg2 : i32, i32, i32
  }
  func.func @transform_4(%arg0: i32, %arg1: i32, %arg2: i32, %arg3: i32) -> (i32, i32, i32) {
    %c0_i32 = arith.constant 0 : i32
    %c0_i32_0 = arith.constant 0 : i32
    return %arg0, %c0_i32, %arg2 : i32, i32, i32
  }
  func.func @transform_5(%arg0: i32, %arg1: i32, %arg2: i32, %arg3: i32) -> (i32, i32, i32) {
    %c0_i32 = arith.constant 0 : i32
    return %arg0, %arg1, %arg2 : i32, i32, i32
  }
}

module attributes {stable_mosaic.version = 11 : i64} {
  func.func @_ln_mod_linear_kernel(%arg0: i32, %arg1: i32, %arg2: i32, %arg3: memref<1x64x128xbf16, #tpu.memory_space<vmem>>, %arg4: memref<1x1x128xf32, #tpu.memory_space<vmem>>, %arg5: memref<1x1x128xf32, #tpu.memory_space<vmem>>, %arg6: memref<128x32xbf16, #tpu.memory_space<vmem>>, %arg7: memref<1x32xf32, #tpu.memory_space<vmem>>, %arg8: memref<1x64x32xf32, #tpu.memory_space<vmem>>, %arg9: memref<64x128xbf16, #tpu.memory_space<vmem>>) attributes {dimension_semantics = [#tpu.dimension_semantics<parallel>, #tpu.dimension_semantics<parallel>, #tpu.dimension_semantics<arbitrary>], iteration_bounds = array<i64: 2, 1, 1>, scalar_prefetch = 0 : i64, scratch_operands = 1 : i64, tpu.core_type = #tpu.core_type<tc>, window_params = [{transform_indices = @transform_0, window_bounds = array<i64: 1, 64, 128>}, {transform_indices = @transform_1, window_bounds = array<i64: 1, 1, 128>}, {transform_indices = @transform_2, window_bounds = array<i64: 1, 1, 128>}, {transform_indices = @transform_3, window_bounds = array<i64: 128, 32>}, {transform_indices = @transform_4, window_bounds = array<i64: 1, 32>}, {transform_indices = @transform_5, window_bounds = array<i64: 1, 64, 32>}]} {
    %c0_i32 = arith.constant 0 : i32
    %0 = arith.cmpi eq, %arg2, %c0_i32 : i32
    %1 = arith.extui %0 : i1 to i32
    %c0_i32_0 = arith.constant 0 : i32
    %2 = arith.cmpi ne, %1, %c0_i32_0 : i32
    scf.if %2 {
      %c0_9 = arith.constant 0 : index
      %c0_10 = arith.constant 0 : index
      %c0_11 = arith.constant 0 : index
      %12 = vector.load %arg3[%c0_9, %c0_10, %c0_11] : memref<1x64x128xbf16, #tpu.memory_space<vmem>>, vector<1x64x128xbf16>
      %13 = vector.shape_cast %12 : vector<1x64x128xbf16> to vector<64x128xbf16>
      %14 = arith.extf %13 : vector<64x128xbf16> to vector<64x128xf32>
      %cst_12 = arith.constant dense<0.000000e+00> : vector<64xf32>
      %15 = vector.multi_reduction <add>, %14, %cst_12 [1] : vector<64x128xf32> to vector<64xf32>
      %16 = vector.shape_cast %15 : vector<64xf32> to vector<64x1xf32>
      %cst_13 = arith.constant 1.280000e+02 : f32
      %17 = vector.broadcast %cst_13 : f32 to vector<64x1xf32>
      %18 = arith.divf %16, %17 : vector<64x1xf32>
      %19 = vector.broadcast %18 : vector<64x1xf32> to vector<64x128xf32>
      %20 = arith.subf %14, %19 : vector<64x128xf32>
      %21 = arith.mulf %20, %20 : vector<64x128xf32>
      %cst_14 = arith.constant dense<0.000000e+00> : vector<64xf32>
      %22 = vector.multi_reduction <add>, %21, %cst_14 [1] : vector<64x128xf32> to vector<64xf32>
      %23 = vector.shape_cast %22 : vector<64xf32> to vector<64x1xf32>
      %cst_15 = arith.constant 1.280000e+02 : f32
      %24 = vector.broadcast %cst_15 : f32 to vector<64x1xf32>
      %25 = arith.divf %23, %24 : vector<64x1xf32>
      %cst_16 = arith.constant 9.99999997E-7 : f32
      %26 = vector.broadcast %cst_16 : f32 to vector<64x1xf32>
      %27 = arith.addf %25, %26 : vector<64x1xf32>
      %28 = math.rsqrt %27 : vector<64x1xf32>
      %29 = vector.broadcast %28 : vector<64x1xf32> to vector<64x128xf32>
      %30 = arith.mulf %20, %29 : vector<64x128xf32>
      %c0_17 = arith.constant 0 : index
      %c0_18 = arith.constant 0 : index
      %c0_19 = arith.constant 0 : index
      %31 = vector.load %arg5[%c0_17, %c0_18, %c0_19] : memref<1x1x128xf32, #tpu.memory_space<vmem>>, vector<1x1x128xf32>
      %32 = vector.shape_cast %31 : vector<1x1x128xf32> to vector<1x128xf32>
      %cst_20 = arith.constant 1.000000e+00 : f32
      %33 = vector.broadcast %cst_20 : f32 to vector<1x128xf32>
      %34 = arith.addf %33, %32 : vector<1x128xf32>
      %35 = vector.broadcast %34 : vector<1x128xf32> to vector<64x128xf32>
      %36 = arith.mulf %30, %35 : vector<64x128xf32>
      %c0_21 = arith.constant 0 : index
      %c0_22 = arith.constant 0 : index
      %c0_23 = arith.constant 0 : index
      %37 = vector.load %arg4[%c0_21, %c0_22, %c0_23] : memref<1x1x128xf32, #tpu.memory_space<vmem>>, vector<1x1x128xf32>
      %38 = vector.shape_cast %37 : vector<1x1x128xf32> to vector<1x128xf32>
      %39 = vector.broadcast %38 : vector<1x128xf32> to vector<64x128xf32>
      %40 = arith.addf %36, %39 : vector<64x128xf32>
      %41 = arith.truncf %40 : vector<64x128xf32> to vector<64x128xbf16>
      %c0_24 = arith.constant 0 : index
      %c0_25 = arith.constant 0 : index
      %42 = vector.load %arg9[%c0_24, %c0_25] : memref<64x128xbf16, #tpu.memory_space<vmem>>, vector<64x128xbf16>
      tpu.vector_store %arg9[%c0_24, %c0_25], %41 {strides = array<i32>} : memref<64x128xbf16, #tpu.memory_space<vmem>>, vector<64x128xbf16>,
    } else {
    }
    %c0 = arith.constant 0 : index
    %c0_1 = arith.constant 0 : index
    %3 = vector.load %arg9[%c0, %c0_1] : memref<64x128xbf16, #tpu.memory_space<vmem>>, vector<64x128xbf16>
    %c0_2 = arith.constant 0 : index
    %c0_3 = arith.constant 0 : index
    %4 = vector.load %arg6[%c0_2, %c0_3] : memref<128x32xbf16, #tpu.memory_space<vmem>>, vector<128x32xbf16>
    %cst = arith.constant dense<0.000000e+00> : vector<64x32xf32>
    %5 = tpu.matmul %3, %4, %cst {dimension_numbers = #tpu.dot_dimension_numbers<[1], [0], [0], [1], [0, 0, 1, 1], [], []>} : vector<64x128xbf16>, vector<128x32xbf16>, vector<64x32xf32> -> vector<64x32xf32>
    %c0_4 = arith.constant 0 : index
    %c0_5 = arith.constant 0 : index
    %6 = vector.load %arg7[%c0_4, %c0_5] : memref<1x32xf32, #tpu.memory_space<vmem>>, vector<1x32xf32>
    %7 = vector.broadcast %6 : vector<1x32xf32> to vector<64x32xf32>
    %8 = arith.addf %5, %7 : vector<64x32xf32>
    %c0_6 = arith.constant 0 : index
    %c0_7 = arith.constant 0 : index
    %c0_8 = arith.constant 0 : index
    %9 = vector.load %arg8[%c0_6, %c0_7, %c0_8] : memref<1x64x32xf32, #tpu.memory_space<vmem>>, vector<1x64x32xf32>
    %10 = vector.shape_cast %9 : vector<1x64x32xf32> to vector<64x32xf32>
    %11 = vector.shape_cast %8 : vector<64x32xf32> to vector<1x64x32xf32>
    tpu.vector_store %arg8[%c0_6, %c0_7, %c0_8], %11 {strides = array<i32>} : memref<1x64x32xf32, #tpu.memory_space<vmem>>, vector<1x64x32xf32>,
    return
  }
  func.func @transform_0(%arg0: i32, %arg1: i32, %arg2: i32) -> (i32, i32, i32) {
    %c0_i32 = arith.constant 0 : i32
    %c0_i32_0 = arith.constant 0 : i32
    return %arg0, %arg1, %c0_i32 : i32, i32, i32
  }
  func.func @transform_1(%arg0: i32, %arg1: i32, %arg2: i32) -> (i32, i32, i32) {
    %c0_i32 = arith.constant 0 : i32
    %c0_i32_0 = arith.constant 0 : i32
    %c0_i32_1 = arith.constant 0 : i32
    return %arg0, %c0_i32, %c0_i32_0 : i32, i32, i32
  }
  func.func @transform_2(%arg0: i32, %arg1: i32, %arg2: i32) -> (i32, i32, i32) {
    %c0_i32 = arith.constant 0 : i32
    %c0_i32_0 = arith.constant 0 : i32
    %c0_i32_1 = arith.constant 0 : i32
    return %arg0, %c0_i32, %c0_i32_0 : i32, i32, i32
  }
  func.func @transform_3(%arg0: i32, %arg1: i32, %arg2: i32) -> (i32, i32) {
    %c0_i32 = arith.constant 0 : i32
    %c0_i32_0 = arith.constant 0 : i32
    return %c0_i32, %arg2 : i32, i32
  }
  func.func @transform_4(%arg0: i32, %arg1: i32, %arg2: i32) -> (i32, i32) {
    %c0_i32 = arith.constant 0 : i32
    %c0_i32_0 = arith.constant 0 : i32
    return %c0_i32, %arg2 : i32, i32
  }
  func.func @transform_5(%arg0: i32, %arg1: i32, %arg2: i32) -> (i32, i32, i32) {
    %c0_i32 = arith.constant 0 : i32
    return %arg0, %arg1, %arg2 : i32, i32, i32
  }
}

</mosaic_0001>

<bundles_post_ra>
// kernel: dit_forward.34
= control target key start
LH: loop header
LB: loop body
LE: loop exit
PB: predicated region body
PF: predicated region fallthrough
CT: control target
= control target key end

     0   :  { %s728_s12 = smov 0   ;;  %s730_s13 = smov 0   ;;  %s792_s0 = inlined_call_operand.vmem [shape: bf16[2,16,64], index: 0, kind: input, shape index: {}]   ;;  %s793_s1 = inlined_call_operand.vmem [shape: bf16[64,256], index: 1, kind: input, shape index: {}]   ;;  %s794_s2 = inlined_call_operand.vmem [shape: f32[1,256], index: 2, kind: input, shape index: {}]   ;;  %s795_s3 = inlined_call_operand.vmem [shape: bf16[2,16,256], index: 3, kind: output, shape index: {}]  }
   0x1   :  { %s732_s14 = smov 0  }
   0x2 LB: > { %s39_s15 = sadd.s32 1, %s701_s13  ;;  %p622_p0 = scmp.ge.s32.totalorder %s705_s14, 1  ;;  %s705_s14 = sphi %s732_s14, %s13_s14   ;;  %s701_s13 = sphi %s730_s13, %s797_s13   ;;  %s697_s12 = sphi %s728_s12, %s796_s12  }
   0x3   : > { %p41_p1 = scmp.ge.s32.totalorder %s39_s15, 2  ;;  %p208_p2 = scmp.lt.s32.totalorder %s705_s14, 3 }
   0x5   : > { %s799_s15 = smov (%p41_p1, %s39_s15), 0  ;;  %p209_p3 = pnand %p622_p0, %p208_p2 }
   0x6   : > { %v670_v0 = vld [vmem:[%s793_s1 + $0x4] ss:$8 sps:$4 sm:$0xff] (!%p209_p3)   ;;  %p263_p4 = scmp.lt.s32.totalorder (!%p209_p3), %s697_s12, 1  ;;  %v672_v1 = vld [vmem:[%s793_s1] ss:$8 sps:$4 sm:$0xff] (!%p209_p3)   ;;  %v707_v2 = vmov (!%p209_p3), 0   ;;  %v440_v10 = vlaneseq (!%p209_p3) }
   0x7   : > { %212 = sbr.rel (%p209_p3) target bundleno = 243 (0xf3), region = 32  ;;  %412 = vmatprep.mubr.bf16.mxu0 (!%p209_p3), %v707_v2  ;;  %380 = vmatprep.subr.bf16.mxu0 (!%p209_p3), %v670_v0  ;;  %v673_v3 = vld [vmem:[%s793_s1 + $0x14] ss:$8 sps:$4 sm:$0xff] (!%p209_p3)   ;;  %v675_v4 = vld [vmem:[%s793_s1 + $0x10] ss:$8 sps:$4 sm:$0xff] (!%p209_p3)   ;;  %vm376_vm0 = vcmask (!%p209_p3), 523264  }
   0x8   : > { %381 = vmatpush1.bf16.msra.mxu0 (!%p209_p3), %v672_v1  ;;  %v676_v5 = vld [vmem:[%s793_s1 + $0x24] ss:$8 sps:$4 sm:$0xff] (!%p209_p3)   ;;  %v678_v6 = vld [vmem:[%s793_s1 + $0x20] ss:$8 sps:$4 sm:$0xff] (!%p209_p3)   ;;  %v679_v7 = vld [vmem:[%s793_s1 + $0x34] ss:$8 sps:$4 sm:$0xff] (!%p209_p3)  }
   0x9   : > { %382 = vmatprep.subr.bf16.mxu0 (!%p209_p3), %v673_v3  ;;  %v681_v8 = vld [vmem:[%s793_s1 + $0x30] ss:$8 sps:$4 sm:$0xff] (!%p209_p3)   ;;  %v441_v11 = vshrl.u32 (!%p209_p3), %v440_v10, 7  ;;  %v438_v13 = vld [vmem:[%s794_s2] sm:$0x3] (!%p209_p3) }
   0xb   : > { %v442_v12 = vsub.s32 (!%p209_p3), 0, %v441_v11  ;;  %v446_v14 = vsub.s32 (!%p209_p3), 1, %v441_v11 }
   0xc   : > { %383 = vmatpush1.bf16.msra.mxu0 (!%p209_p3), %v675_v4 }
   0xd   : > { %384 = vmatprep.subr.bf16.mxu0 (!%p209_p3), %v676_v5  ;;  %v443_v15 = vrot.slane (!%p209_p3), %v438_v13, %v442_v12  ;;  %v447_v16 = vrot.slane (!%p209_p3), %v438_v13, %v446_v14 }
   0xe   : > { %s801_s12 = smov (!%p263_p4, %s697_s12), 1 }
   0xf   : > { %s641_s26 = sshll.u32 %s801_s12, 3  ;;  %s642_s11 = sshll.u32 %s801_s12, 4 }
  0x10   : > { %s273_s29 = scalar_lea.vmem %s792_s0, %s641_s26  ;;  %385 = vmatpush1.bf16.msra.mxu0 %v678_v6  ;;  %s305_s18 = scalar_lea.vmem %s795_s3, %s642_s11 }
  0x11   : > { %386 = vmatprep.subr.bf16.mxu0 %v679_v7  ;;  %v682_v9 = vld [vmem:[%s273_s29] sm:$0xff]  }
  0x14   : > { %387 = vmatpush1.bf16.msra.mxu0 %v681_v8 }
  0x17   : > { %636 = vmatmul.mubr.msk.bf16.vlgmr.msra.gmra.mrb[0].mxu0 %vm376_vm0, %v682_v9 }
  0xea   : > { %v414_v17 = vpop.f32.mrb[0].mxu0 }
  0xeb   : > { %v450_v18 = vadd.f32 %v443_v15, %v414_v17  ;;  %v416_v19 = vpop.f32.mrb[1].mxu0 }
  0xec   : > { %v451_v20 = vadd.f32 %v447_v16, %v416_v19  ;;  %v418_v21 = vpop.f32.mrb[2].mxu0 }
  0xed   : > { %v452_v22 = vadd.f32 %v443_v15, %v418_v21  ;;  %v420_v23 = vpop.f32.mrb[3].mxu0 }
  0xee   : > { %v643_v24 = vpack.c.bf16 %v451_v20, %v450_v18  ;;  %v453_v25 = vadd.f32 %v447_v16, %v420_v23 }
  0xf0   : > { %466 = vst [vmem:[%s305_s18] sm:$0xff] %v643_v24  ;;  %v644_v26 = vpack.c.bf16 %v453_v25, %v452_v22 }
  0xf2   : > { %467 = vst [vmem:[%s305_s18 + $0x8] sm:$0xff] %v644_v26 }
  0xf3 PF: > { %s13_s14 = sadd.s32 1, %s705_s14   ;;  %s796_s12 = smov %s701_s13 }
  0xf4   : > { %p10_p5 = scmp.ge.s32.totalorder %s13_s14, 4   ;;  %s797_s13 = smov %s799_s15 }
  0xf6   :  { %12 = sbr.rel (!%p10_p5) target bundleno = 2 (0x2), region = 76 }

// kernel: dit_forward.20
= control target key start
LH: loop header
LB: loop body
LE: loop exit
PB: predicated region body
PF: predicated region fallthrough
CT: control target
= control target key end

     0   :  { %s912_s15 = smov 0   ;;  %s914_s16 = smov 0   ;;  %s985_s0 = inlined_call_operand.vmem [shape: bf16[2,64,32], index: 0, kind: input, shape index: {}]   ;;  %s986_s1 = inlined_call_operand.vmem [shape: bf16[32,128], index: 1, kind: input, shape index: {}]   ;;  %s987_s2 = inlined_call_operand.vmem [shape: f32[1,128], index: 2, kind: input, shape index: {}]   ;;  %s988_s3 = inlined_call_operand.vmem [shape: f32[1,64,128], index: 3, kind: input, shape index: {}]   ;;  %s989_s4 = inlined_call_operand.vmem [shape: bf16[2,64,128], index: 4, kind: output, shape index: {}]  }
   0x1   :  { %s916_s17 = smov 0  }
   0x2 LB: > { %s40_s18 = sadd.s32 1, %s881_s16  ;;  %p752_p0 = scmp.ge.s32.totalorder %s885_s17, 1  ;;  %s885_s17 = sphi %s916_s17, %s14_s17   ;;  %s881_s16 = sphi %s914_s16, %s991_s16   ;;  %s877_s15 = sphi %s912_s15, %s990_s15  }
   0x3   : > { %p42_p1 = scmp.ge.s32.totalorder %s40_s18, 2  ;;  %p244_p2 = scmp.lt.s32.totalorder %s885_s17, 3 }
   0x5   : > { %s993_s18 = smov (%p42_p1, %s40_s18), 0  ;;  %p245_p3 = pnand %p752_p0, %p244_p2 }
   0x6   : > { %v857_v0 = vld [vmem:[%s986_s1] sm:$0xff] (!%p245_p3)   ;;  %p304_p4 = scmp.lt.s32.totalorder (!%p245_p3), %s877_s15, 1  ;;  %v858_v1 = vld [vmem:[%s986_s1 + $0x8] sm:$0xff] (!%p245_p3)   ;;  %vm415_vm0 = vcmask (!%p245_p3), 261120   ;;  %v537_v11 = vld [vmem:[%s988_s3 + $0x10] sm:$0xff] (!%p245_p3) }
   0x7   : > { %248 = sbr.rel (%p245_p3) target bundleno = 241 (0xf1), region = 36  ;;  %817 = vmatprep.subr.bf16.mxu0 (!%p245_p3), %v857_v0  ;;  %829 = vmatprep.subr.bf16.mxu1 (!%p245_p3), %v857_v0  ;;  %v767_v6 = vld [vmem:[%s987_s2] ss:$0 sm:$0xff] (!%p245_p3)  ;;  %v541_v13 = vld [vmem:[%s988_s3 + $0x30] sm:$0xff] (!%p245_p3)  ;;  %v538_v17 = vld [vmem:[%s988_s3 + $0x18] sm:$0xff] (!%p245_p3) }
   0x8   : > { %818 = vmatpush3.bf16.msra.mxu0 (!%p245_p3), %v857_v0  ;;  %831 = vmatpush3.bf16.msra.mxu1 (!%p245_p3), %v857_v0  ;;  %v535_v18 = vld [vmem:[%s988_s3] sm:$0xff] (!%p245_p3)  ;;  %v542_v22 = vld [vmem:[%s988_s3 + $0x38] sm:$0xff] (!%p245_p3)  ;;  %v536_v24 = vld [vmem:[%s988_s3 + $0x8] sm:$0xff] (!%p245_p3) }
   0x9   : > { %819 = vmatprep.subr.bf16.mxu0 (!%p245_p3), %v858_v1  ;;  %830 = vmatprep.subr.bf16.mxu1 (!%p245_p3), %v858_v1  ;;  %v539_v25 = vld [vmem:[%s988_s3 + $0x20] sm:$0xff] (!%p245_p3)  ;;  %v540_v29 = vld [vmem:[%s988_s3 + $0x28] sm:$0xff] (!%p245_p3) }
   0xc   : > { %820 = vmatpush3.bf16.msra.mxu0 (!%p245_p3), %v858_v1  ;;  %832 = vmatpush3.bf16.msra.mxu1 (!%p245_p3), %v858_v1 }
   0xe   : > { %s995_s15 = smov (!%p304_p4, %s877_s15), 1 }
   0xf   : > { %s778_s23 = sshll.u32 %s995_s15, 5 }
  0x10   : > { %s314_s26 = scalar_lea.vmem %s985_s0, %s778_s23 }
  0x11   : > { %v859_v2 = vld [vmem:[%s314_s26] sm:$0xff]   ;;  %v860_v3 = vld [vmem:[%s314_s26 + $0x10] sm:$0xff]   ;;  %v861_v4 = vld [vmem:[%s314_s26 + $0x8] sm:$0xff]  }
  0x12   : > { %821 = vmatprep.mubr.msk.bf16.mxu0 %vm415_vm0, %v859_v2  ;;  %825 = vmatprep.mubr.msk.bf16.mxu1 %vm415_vm0, %v860_v3  ;;  %v862_v5 = vld [vmem:[%s314_s26 + $0x18] sm:$0xff]   ;;  %s348_s26 = scalar_lea.vmem %s989_s4, %s778_s23 }
  0x13   : > { %822 = vmatmul.mubr.msk.bf16.vlgmr.msra.gmra.mrb[0].mxu0 %vm415_vm0, %v861_v4  ;;  %826 = vmatmul.mubr.msk.bf16.vlgmr.msra.gmra.mrb[0].mxu1 %vm415_vm0, %v862_v5 }
  0xe6   : > { %v823_v7 = vpop.f32.mrb[0].mxu0  ;;  %v827_v9 = vpop.f32.mrb[0].mxu1 }
  0xe7   : > { %v529_v8 = vadd.f32 %v823_v7, %v767_v6  ;;  %v462_v10 = vpop.f32.mrb[1].mxu0  ;;  %v533_v12 = vadd.f32 %v827_v9, %v767_v6  ;;  %v478_v15 = vpop.f32.mrb[1].mxu1 }
  0xe8   : > { %v527_v14 = vadd.f32 %v767_v6, %v462_v10  ;;  %v824_v16 = vpop.f32.mrb[2].mxu0  ;;  %v531_v19 = vadd.f32 %v767_v6, %v478_v15  ;;  %v828_v21 = vpop.f32.mrb[2].mxu1 }
  0xe9   : > { %v530_v20 = vadd.f32 %v824_v16, %v767_v6  ;;  %v465_v23 = vpop.f32.mrb[3].mxu0  ;;  %v534_v26 = vadd.f32 %v828_v21, %v767_v6  ;;  %v481_v28 = vpop.f32.mrb[3].mxu1  ;;  %v545_v30 = vadd.f32 %v537_v11, %v529_v8  ;;  %v549_v33 = vadd.f32 %v541_v13, %v533_v12 }
  0xea   : > { %v528_v27 = vadd.f32 %v767_v6, %v465_v23  ;;  %v532_v32 = vadd.f32 %v767_v6, %v481_v28  ;;  %v543_v34 = vadd.f32 %v535_v18, %v527_v14  ;;  %v547_v37 = vadd.f32 %v539_v25, %v531_v19 }
  0xeb   : > { %v546_v31 = vadd.f32 %v538_v17, %v530_v20  ;;  %v550_v35 = vadd.f32 %v542_v22, %v534_v26 }
  0xec   : > { %v544_v36 = vadd.f32 %v536_v24, %v528_v27  ;;  %v548_v39 = vadd.f32 %v540_v29, %v532_v32 }
  0xed   : > { %v796_v38 = vpack.c.bf16 %v546_v31, %v545_v30  ;;  %v806_v40 = vpack.c.bf16 %v550_v35, %v549_v33 }
  0xee   : > { %v791_v41 = vpack.c.bf16 %v544_v36, %v543_v34  ;;  %v801_v42 = vpack.c.bf16 %v548_v39, %v547_v37 }
  0xef   : > { %808 = vst [vmem:[%s348_s26 + $0x8] sm:$0xff] %v796_v38   ;;  %810 = vst [vmem:[%s348_s26 + $0x18] sm:$0xff] %v806_v40  }
  0xf0   : > { %792 = vst [vmem:[%s348_s26] sm:$0xff] %v791_v41   ;;  %809 = vst [vmem:[%s348_s26 + $0x10] sm:$0xff] %v801_v42  }
  0xf1 PF: > { %s14_s17 = sadd.s32 1, %s885_s17   ;;  %s990_s15 = smov %s881_s16 }
  0xf2   : > { %p11_p5 = scmp.ge.s32.totalorder %s14_s17, 4   ;;  %s991_s16 = smov %s993_s18 }
  0xf4   :  { %13 = sbr.rel (!%p11_p5) target bundleno = 2 (0x2), region = 83 }

// kernel: dit_forward.21
= control target key start
LH: loop header
LB: loop body
LE: loop exit
PB: predicated region body
PF: predicated region fallthrough
CT: control target
= control target key end

     0   :  { %s1528_s0 = inlined_call_operand.vmem [shape: bf16[2,64,128], index: 0, kind: input, shape index: {}]   ;;  %s1529_s1 = inlined_call_operand.vmem [shape: f32[2,1,128], index: 1, kind: input, shape index: {}]   ;;  %s1530_s2 = inlined_call_operand.vmem [shape: f32[2,1,128], index: 2, kind: input, shape index: {}]   ;;  %s1531_s3 = inlined_call_operand.vmem [shape: bf16[128,384], index: 3, kind: input, shape index: {}]   ;;  %s1532_s4 = inlined_call_operand.vmem [shape: f32[1,384], index: 4, kind: input, shape index: {}]   ;;  %s1533_s5 = inlined_call_operand.vmem [shape: bf16[2,64,384], index: 5, kind: output, shape index: {}]  }
   0x1   :  { %1538 = sst [smem:[#allocation10_spill]] %s1531_s3 }
   0x2   :  { %s1288_s18 = smov 0   ;;  %s1290_s19 = smov 0  }
   0x3   :  { %s1292_s20 = smov 0   ;;  %s1294_s21 = smov 0  }
   0x4   :  { %s1296_s22 = smov 0   ;;  %s1298_s23 = smov 0  }
   0x5   :  { %s1300_s24 = smov 0   ;;  %s1302_s25 = smov 0  }
   0x6   :  { %s1304_s26 = smov 0  }
   0x7 LB: > { %1539 = sst [smem:[#allocation5_spill]] %s1248_s24  ;;  %s952_s27 = sadd.s32 4294967295, %s1256_s26   ;;  %s1256_s26 = sphi %s1304_s26, %s15_s26   ;;  %s1252_s25 = sphi %s1302_s25, %s1550_s25   ;;  %s1248_s24 = sphi %s1300_s24, %s1549_s24   ;;  %s1244_s23 = sphi %s1298_s23, %s1556_s23   ;;  %s1240_s22 = sphi %s1296_s22, %s1555_s22   ;;  %s1236_s21 = sphi %s1294_s21, %s1554_s21   ;;  %s1232_s20 = sphi %s1292_s20, %s1553_s20   ;;  %s1228_s19 = sphi %s1290_s19, %s1552_s19   ;;  %s1224_s18 = sphi %s1288_s18, %s1551_s18  }
   0x8   : > { %1540 = sst [smem:[#allocation6_spill]] %s1252_s25  ;;  %s27_s28 = sadd.s32 1, %s1248_s24 }
   0x9   : > { %p28_p0 = scmp.ge.s32.totalorder %s27_s28, 3  ;;  %s34_s29 = sadd.s32 1, %s1252_s25 }
   0xa   : > { %s121_s30 = sadd.s32 1, %s1236_s21  ;;  %p128_p1 = scmp.ne.s32.totalorder %s1236_s21, %s1232_s20 }
   0xb   : > { %s1558_s28 = smov (%p28_p0, %s27_s28), 0  ;;  %s1560_s29 = smov (!%p28_p0, %s34_s29), %s1252_s25 }
   0xc   : > { %1541 = sst [smem:[#allocation7_spill]] %s1558_s28  ;;  %s118_s6 = ssub.s32 %s1248_s24, %s1558_s28 }
   0xd   : > { %p129_p2 = scmp.eq.s32.totalorder %s1256_s26, 0  ;;  %p36_p3 = scmp.ge.s32.totalorder %s1560_s29, 2 }
   0xe   : > { %p119_p4 = scmp.eq.s32.totalorder %s118_s6, 0  ;;  %s177_s7 = sadd.s32 1, %s1228_s19 }
   0xf   : > { %p130_p5 = por %p129_p2, %p128_p1  ;;  %s1562_s29 = smov (%p36_p3, %s1560_s29), 0 }
  0x10   : > { %1542 = sst [smem:[#allocation8_spill]] %s1562_s29  ;;  %s170_s9 = ssub.s32 %s1252_s25, %s1562_s29 }
  0x11   : > { %s1349_s8 = scalar_select %p119_p4, %s1236_s21, %s121_s30  }
  0x12   : > { %p187_p6 = scmp.ne.s32.totalorder %s1228_s19, %s1224_s18  ;;  %s174_s10 = sor.u32 %s170_s9, %s118_s6 }
  0x13   : > { %1543 = sst [smem:[#allocation9_spill]] %s1349_s8  ;;  %p188_p7 = scmp.eq.s32.totalorder %s952_s27, 5 }
  0x14   : > { %p175_p8 = scmp.eq.s32.totalorder %s174_s10, 0  ;;  %p955_p10 = scmp.ge.s32.totalorder %s1256_s26, 6 }
  0x15   : > { %p1355_p9 = por %p188_p7, %p187_p6 }
  0x16   : > { %s1360_s12 = scalar_select %p175_p8, %s1228_s19, %s177_s7  }
  0x17   : > { %210 = sbr.rel (%p955_p10) target bundleno = 50 (0x32), region = 16 }
  0x1e   : > { %238 = sbr.rel (!%p130_p5) target bundleno = 50 (0x32), region = 32  ;;  %s240_s13 = sand.u32 (%p130_p5), 1, %s1236_s21  }
  0x1f   : > { %s957_s14 = sshll.u32 (%p130_p5), %s1248_s24, 2  ;;  %s956_s15 = sshll.u32 (%p130_p5), %s240_s13, 6 }
  0x20   : > { %s1545_s3 = sld [smem:[#allocation10_spill]] (%p130_p5)  ;;  %s242_s30 = scalar_lea.vmem (%p130_p5), [#allocation3], %s956_s15 }
  0x26   : > { %s1368_s27 = scalar_lea.vmem %s1545_s3, %s957_s14 }
  0x27   : > { %v260_v0 = vld [vmem:[%s1368_s27] sm:$0xf]  ;;  %v262_v1 = vld [vmem:[%s1368_s27 + $0xc] sm:$0xf]  ;;  %v264_v2 = vld [vmem:[%s1368_s27 + $0x18] sm:$0xf] }
  0x28   : > { %261 = vst [vmem:[%s242_s30] sm:$0xf] %v260_v0  ;;  %263 = vst [vmem:[%s242_s30 + $0x4] sm:$0xf] %v262_v1  ;;  %v266_v3 = vld [vmem:[%s1368_s27 + $0x24] sm:$0xf] }
  0x29   : > { %v268_v4 = vld [vmem:[%s1368_s27 + $0x30] sm:$0xf]  ;;  %265 = vst [vmem:[%s242_s30 + $0x8] sm:$0xf] %v264_v2  ;;  %267 = vst [vmem:[%s242_s30 + $0xc] sm:$0xf] %v266_v3 }
  0x2a   : > { %269 = vst [vmem:[%s242_s30 + $0x10] sm:$0xf] %v268_v4  ;;  %v270_v5 = vld [vmem:[%s1368_s27 + $0x3c] sm:$0xf]  ;;  %v272_v6 = vld [vmem:[%s1368_s27 + $0x48] sm:$0xf] }
  0x2b   : > { %v274_v7 = vld [vmem:[%s1368_s27 + $0x54] sm:$0xf]  ;;  %271 = vst [vmem:[%s242_s30 + $0x14] sm:$0xf] %v270_v5  ;;  %273 = vst [vmem:[%s242_s30 + $0x18] sm:$0xf] %v272_v6 }
  0x2c   : > { %275 = vst [vmem:[%s242_s30 + $0x1c] sm:$0xf] %v274_v7  ;;  %v276_v8 = vld [vmem:[%s1368_s27 + $0x60] sm:$0xf]  ;;  %v278_v9 = vld [vmem:[%s1368_s27 + $0x6c] sm:$0xf] }
  0x2d   : > { %v280_v10 = vld [vmem:[%s1368_s27 + $0x78] sm:$0xf]  ;;  %277 = vst [vmem:[%s242_s30 + $0x20] sm:$0xf] %v276_v8  ;;  %279 = vst [vmem:[%s242_s30 + $0x24] sm:$0xf] %v278_v9 }
  0x2e   : > { %281 = vst [vmem:[%s242_s30 + $0x28] sm:$0xf] %v280_v10  ;;  %v282_v11 = vld [vmem:[%s1368_s27 + $0x84] sm:$0xf]  ;;  %v284_v12 = vld [vmem:[%s1368_s27 + $0x90] sm:$0xf] }
  0x2f   : > { %v286_v13 = vld [vmem:[%s1368_s27 + $0x9c] sm:$0xf]  ;;  %283 = vst [vmem:[%s242_s30 + $0x2c] sm:$0xf] %v282_v11  ;;  %285 = vst [vmem:[%s242_s30 + $0x30] sm:$0xf] %v284_v12 }
  0x30   : > { %287 = vst [vmem:[%s242_s30 + $0x34] sm:$0xf] %v286_v13  ;;  %v288_v14 = vld [vmem:[%s1368_s27 + $0xa8] sm:$0xf]  ;;  %v290_v15 = vld [vmem:[%s1368_s27 + $0xb4] sm:$0xf] }
  0x31   : > { %289 = vst [vmem:[%s242_s30 + $0x38] sm:$0xf] %v288_v14  ;;  %291 = vst [vmem:[%s242_s30 + $0x3c] sm:$0xf] %v290_v15 }
  0x32 PF: > { %p958_p11 = scmp.ge.s32.totalorder %s1256_s26, 1  ;;  %p351_p12 = scmp.lt.s32.totalorder %s1256_s26, 7 }
  0x34   : > { %p352_p13 = pnand %p958_p11, %p351_p12 }
  0x35   : > { %s358_s6 = sand.u32 (!%p352_p13), 1, %s1232_s20   ;;  %s399_s7 = sand.u32 (!%p352_p13), 1, %s1224_s18  }
  0x36   : > { %355 = sbr.rel (%p352_p13) target bundleno = 663 (0x297), region = 77  ;;  %s959_s9 = sshll.u32 (!%p352_p13), %s358_s6, 6 }
  0x37   : > { %s960_s10 = sshll.u32 (!%p352_p13), %s399_s7, 5  ;;  %p403_p0 = scmp.lt.s32.totalorder (!%p352_p13), %s1244_s23, 1 }
  0x38   : > { %p418_p1 = scmp.lt.s32.totalorder (!%p352_p13), %s1240_s22, 2  ;;  %s1414_s24 = scalar_lea.vmem (!%p352_p13), [#allocation3], %s959_s9 }
  0x39   : > { %s1416_s8 = scalar_lea.vmem (!%p352_p13), [#allocation4], %s960_s10  ;;  %p963_p2 = scmp.ne.s32.totalorder (!%p352_p13), %s1240_s22, 0 }
  0x3d   : > { %s1393_s13 = scalar_select %p403_p0, %s1244_s23, 1 }
  0x3e   : > { %s1396_s14 = scalar_select %p418_p1, %s1240_s22, 2 }
  0x3f   : > { %s986_s15 = sshll.u32 %s1393_s13, 5  ;;  %s414_s27 = scalar_lea.vmem %s1529_s1, %s1393_s13  ;;  %v535_v63 = vlaneseq (!%p963_p2) }
  0x40   : > { %s410_s18 = scalar_lea.vmem %s1528_s0, %s986_s15  ;;  %s417_s3 = scalar_lea.vmem %s1530_s2, %s1393_s13 }
  0x41   : > { %s420_s25 = scalar_lea.vmem %s1532_s4, %s1396_s14  ;;  %426 = sbr.rel (%p963_p2) target bundleno = 398 (0x18e), region = 85  ;;  %v996_v16 = vld [vmem:[%s410_s18] sm:$0xff] (!%p963_p2)   ;;  %v1031_v17 = vld [vmem:[%s410_s18 + $0x8] sm:$0xff] (!%p963_p2)   ;;  %v1032_v22 = vld [vmem:[%s410_s18 + $0x10] sm:$0xff] (!%p963_p2)   ;;  %v536_v6 = vshrl.u32 (!%p963_p2), %v535_v63, 7 }
  0x42   : > { %v997_v18 = vunpack.c.l.bf16 (!%p963_p2), %v996_v16  ;;  %v1001_v19 = vunpack.c.l.bf16 (!%p963_p2), %v1031_v17  ;;  %v998_v20 = vunpack.c.h.bf16 (!%p963_p2), %v996_v16  ;;  %v1002_v21 = vunpack.c.h.bf16 (!%p963_p2), %v1031_v17  ;;  %v1033_v25 = vld [vmem:[%s410_s18 + $0x18] sm:$0xff] (!%p963_p2)   ;;  %v532_v9 = vld [vmem:[%s417_s3] sm:$0x1] (!%p963_p2) }
  0x43   : > { %v1005_v23 = vunpack.c.l.bf16 (!%p963_p2), %v1032_v22  ;;  %v1006_v24 = vunpack.c.h.bf16 (!%p963_p2), %v1032_v22  ;;  %v1009_v26 = vunpack.c.l.bf16 (!%p963_p2), %v1033_v25  ;;  %v1010_v27 = vunpack.c.h.bf16 (!%p963_p2), %v1033_v25 }
  0x44   : > { %443 = vadd.xlane.f32.xlu0 (!%p963_p2), %v997_v18  ;;  %447 = vadd.xlane.f32.xlu1 (!%p963_p2), %v1001_v19  ;;  %v533_v14 = vadd.f32 (!%p963_p2), 1.0, %v532_v9  ;;  %v537_v15 = vsub.s32 (!%p963_p2), 0, %v536_v6 }
  0x48   : > { %445 = vadd.xlane.f32.xlu0 %v998_v20  ;;  %449 = vadd.xlane.f32.xlu1 %v1002_v21 }
  0x4c   : > { %451 = vadd.xlane.f32.xlu0 %v1005_v23  ;;  %453 = vadd.xlane.f32.xlu1 %v1006_v24 }
  0x50   : > { %455 = vadd.xlane.f32.xlu0 %v1009_v26  ;;  %457 = vadd.xlane.f32.xlu1 %v1010_v27 }
  0xd1   : > { %v444_v28 = vpop.xlane.xlu0 %443  ;;  %v448_v29 = vpop.xlane.xlu1 %447 }
  0xd2   : > { %v460_v30 = vmul.f32 0.0078125, %v444_v28  ;;  %v462_v31 = vmul.f32 0.0078125, %v448_v29 }
  0xd4   : > { %v1419_v32 = vsub.f32 %v997_v18, %v460_v30  ;;  %v1421_v33 = vsub.f32 %v1001_v19, %v462_v31 }
  0xd5   : > { %v446_v34 = vpop.xlane.xlu0 %445  ;;  %v450_v35 = vpop.xlane.xlu1 %449 }
  0xd6   : > { %v461_v36 = vmul.f32 0.0078125, %v446_v34  ;;  %v476_v37 = vmul.f32 %v1419_v32, %v1419_v32  ;;  %v463_v38 = vmul.f32 0.0078125, %v450_v35  ;;  %v478_v41 = vmul.f32 %v1421_v33, %v1421_v33  ;;  %v964_v34 = vld [vmem:[%s414_s27] ss:$0 sm:$0xff] }
  0xd8   : > { %v1425_v39 = vsub.f32 %v998_v20, %v461_v36  ;;  %484 = vadd.xlane.f32.xlu0 %v476_v37  ;;  %v1427_v40 = vsub.f32 %v1002_v21, %v463_v38 }
  0xd9   : > { %v452_v42 = vpop.xlane.xlu0 %451  ;;  %v454_v43 = vpop.xlane.xlu1 %453 }
  0xda   : > { %v464_v44 = vmul.f32 0.0078125, %v452_v42  ;;  %v477_v45 = vmul.f32 %v1425_v39, %v1425_v39  ;;  %v465_v46 = vmul.f32 0.0078125, %v454_v43  ;;  %v479_v49 = vmul.f32 %v1427_v40, %v1427_v40 }
  0xdc   : > { %v1433_v47 = vsub.f32 %v1005_v23, %v464_v44  ;;  %488 = vadd.xlane.f32.xlu0 %v478_v41  ;;  %486 = vadd.xlane.f32.xlu1 %v477_v45  ;;  %v1435_v48 = vsub.f32 %v1006_v24, %v465_v46  ;;  %v538_v23 = vrot.slane %v533_v14, %v537_v15 }
  0xdd   : > { %v456_v50 = vpop.xlane.xlu0 %455  ;;  %v458_v51 = vpop.xlane.xlu1 %457 }
  0xde   : > { %v466_v52 = vmul.f32 0.0078125, %v456_v50  ;;  %v480_v53 = vmul.f32 %v1433_v47, %v1433_v47  ;;  %v467_v54 = vmul.f32 0.0078125, %v458_v51  ;;  %v481_v57 = vmul.f32 %v1435_v48, %v1435_v48 }
  0xe0   : > { %v1441_v55 = vsub.f32 %v1009_v26, %v466_v52  ;;  %490 = vadd.xlane.f32.xlu1 %v479_v49  ;;  %492 = vadd.xlane.f32.xlu0 %v480_v53  ;;  %v1443_v56 = vsub.f32 %v1010_v27, %v467_v54 }
  0xe2   : > { %v482_v58 = vmul.f32 %v1441_v55, %v1441_v55  ;;  %v483_v59 = vmul.f32 %v1443_v56, %v1443_v56 }
  0xe4   : > { %494 = vadd.xlane.f32.xlu1 %v481_v57  ;;  %496 = vadd.xlane.f32.xlu0 %v482_v58 }
  0xe8   : > { %498 = vadd.xlane.f32.xlu1 %v483_v59 }
 0x165   : > { %v485_v60 = vpop.xlane.xlu0 %484 }
 0x166   : > { %v500_v61 = vmul.f32 0.0078125, %v485_v60 }
 0x168   : > { %v508_v62 = vadd.f32 1e-06, %v500_v61 }
 0x169   : > { %v487_v0 = vpop.xlane.xlu1 %486  ;;  %v489_v1 = vpop.xlane.xlu0 %488 }
 0x16a   : > { %1162 = vrsqrt.f32 %v508_v62  ;;  %v501_v2 = vmul.f32 0.0078125, %v487_v0  ;;  %v502_v3 = vmul.f32 0.0078125, %v489_v1 }
 0x16c   : > { %v509_v4 = vadd.f32 1e-06, %v501_v2  ;;  %v510_v5 = vadd.f32 1e-06, %v502_v3 }
 0x16d   : > { %v491_v7 = vpop.xlane.xlu1 %490  ;;  %v493_v8 = vpop.xlane.xlu0 %492 }
 0x16e   : > { %1164 = vrsqrt.f32 %v509_v4  ;;  %v503_v10 = vmul.f32 0.0078125, %v491_v7  ;;  %v504_v11 = vmul.f32 0.0078125, %v493_v8 }
 0x16f   : > { %1166 = vrsqrt.f32 %v510_v5 }
 0x170   : > { %v511_v12 = vadd.f32 1e-06, %v503_v10  ;;  %v512_v13 = vadd.f32 1e-06, %v504_v11 }
 0x171   : > { %v495_v16 = vpop.xlane.xlu1 %494  ;;  %v497_v17 = vpop.xlane.xlu0 %496 }
 0x172   : > { %1168 = vrsqrt.f32 %v511_v12  ;;  %v505_v18 = vmul.f32 0.0078125, %v495_v16  ;;  %v506_v19 = vmul.f32 0.0078125, %v497_v17 }
 0x173   : > { %1170 = vrsqrt.f32 %v512_v13 }
 0x174   : > { %v1163_v20 = vpop.eup %1162  ;;  %v513_v21 = vadd.f32 1e-06, %v505_v18  ;;  %v514_v22 = vadd.f32 1e-06, %v506_v19 }
 0x175   : > { %v524_v24 = vmul.f32 %v1163_v20, %v1419_v32  ;;  %v499_v25 = vpop.xlane.xlu1 %498 }
 0x176   : > { %1172 = vrsqrt.f32 %v513_v21  ;;  %v507_v26 = vmul.f32 0.0078125, %v499_v25 }
 0x177   : > { %1174 = vrsqrt.f32 %v514_v22  ;;  %v540_v30 = vmul.f32 %v538_v23, %v524_v24 }
 0x178   : > { %v1165_v27 = vpop.eup %1164  ;;  %v515_v28 = vadd.f32 1e-06, %v507_v26 }
 0x179   : > { %v1167_v29 = vpop.eup %1166  ;;  %v525_v31 = vmul.f32 %v1165_v27, %v1425_v39  ;;  %v555_v38 = vadd.f32 %v964_v34, %v540_v30 }
 0x17a   : > { %v526_v35 = vmul.f32 %v1167_v29, %v1421_v33  ;;  %1176 = vrsqrt.f32 %v515_v28 }
 0x17b   : > { %v541_v36 = vmul.f32 %v538_v23, %v525_v31 }
 0x17c   : > { %v1169_v32 = vpop.eup %1168  ;;  %v542_v42 = vmul.f32 %v538_v23, %v526_v35 }
 0x17d   : > { %v1171_v37 = vpop.eup %1170  ;;  %v556_v41 = vadd.f32 %v964_v34, %v541_v36  ;;  %v527_v43 = vmul.f32 %v1169_v32, %v1427_v40 }
 0x17e   : > { %v528_v44 = vmul.f32 %v1171_v37, %v1433_v47  ;;  %v557_v50 = vadd.f32 %v964_v34, %v542_v42 }
 0x17f   : > { %v563_v45 = vpack.c.bf16 %v556_v41, %v555_v38  ;;  %v543_v39 = vmul.f32 %v538_v23, %v527_v43 }
 0x180   : > { %v1173_v46 = vpop.eup %1172  ;;  %v544_v52 = vmul.f32 %v538_v23, %v528_v44 }
 0x181   : > { %v1175_v49 = vpop.eup %1174  ;;  %567 = vst [vmem:[#allocation2] sm:$0xff] %v563_v45  ;;  %v558_v51 = vadd.f32 %v964_v34, %v543_v39  ;;  %v529_v33 = vmul.f32 %v1173_v46, %v1435_v48 }
 0x182   : > { %v530_v53 = vmul.f32 %v1175_v49, %v1441_v55  ;;  %v559_v59 = vadd.f32 %v964_v34, %v544_v52 }
 0x183   : > { %v564_v54 = vpack.c.bf16 %v558_v51, %v557_v50  ;;  %v545_v57 = vmul.f32 %v538_v23, %v529_v33 }
 0x184   : > { %v1177_v58 = vpop.eup %1176  ;;  %v546_v60 = vmul.f32 %v538_v23, %v530_v53 }
 0x185   : > { %568 = vst [vmem:[#allocation2 + $0x8] sm:$0xff] %v564_v54  ;;  %v560_v40 = vadd.f32 %v964_v34, %v545_v57  ;;  %v531_v47 = vmul.f32 %v1177_v58, %v1443_v56 }
 0x186   : > { %v561_v63 = vadd.f32 %v964_v34, %v546_v60 }
 0x187   : > { %v565_v61 = vpack.c.bf16 %v560_v40, %v559_v59  ;;  %v547_v62 = vmul.f32 %v538_v23, %v531_v47 }
 0x189   : > { %569 = vst [vmem:[#allocation2 + $0x10] sm:$0xff] %v565_v61  ;;  %v562_v0 = vadd.f32 %v964_v34, %v547_v62 }
 0x18b   : > { %v566_v1 = vpack.c.bf16 %v562_v0, %v561_v63 }
 0x18d   : > { %570 = vst [vmem:[#allocation2 + $0x18] sm:$0xff] %v566_v1 }
 0x18e PF: > { %v1178_v48 = vld [vmem:[%s1414_s24] sm:$0xff]   ;;  %v1179_v55 = vld [vmem:[%s1414_s24 + $0x8] sm:$0xff]   ;;  %v1180_v56 = vld [vmem:[%s1414_s24 + $0x10] sm:$0xff]  }
 0x18f   : > { %1049 = vmatprep.subr.bf16.mxu0 %v1178_v48  ;;  %1073 = vmatprep.subr.bf16.mxu1 %v1178_v48  ;;  %v1181_v2 = vld [vmem:[%s1414_s24 + $0x18] sm:$0xff]   ;;  %v571_v3 = vld [vmem:[#allocation2] sm:$0xff]  ;;  %v1183_v6 = vld [vmem:[%s1414_s24 + $0x28] sm:$0xff]  }
 0x190   : > { %1050 = vmatpush3.bf16.msra.mxu0 %v1178_v48  ;;  %1081 = vmatpush3.bf16.msra.mxu1 %v1178_v48  ;;  %v573_v4 = vld [vmem:[#allocation2 + $0x10] sm:$0xff]  ;;  %v1182_v5 = vld [vmem:[%s1414_s24 + $0x20] sm:$0xff]   ;;  %v1185_v8 = vld [vmem:[%s1414_s24 + $0x38] sm:$0xff]  }
 0x191   : > { %1051 = vmatprep.subr.bf16.mxu0 %v1179_v55  ;;  %1074 = vmatprep.subr.bf16.mxu1 %v1179_v55  ;;  %v1184_v7 = vld [vmem:[%s1414_s24 + $0x30] sm:$0xff]   ;;  %v572_v9 = vld [vmem:[#allocation2 + $0x8] sm:$0xff]  ;;  %v965_v12 = vld [vmem:[%s420_s25] ss:$0 sm:$0xff]  ;;  %s1089_s24 = smul.u32 (%p1355_p9), 24, %s1244_s23 }
 0x192   : > { %1065 = vmatprep.mubr.bf16.mxu0 %v571_v3  ;;  %1069 = vmatprep.mubr.bf16.mxu1 %v573_v4 }
 0x193   : > { %s762_s25 = sadd.s32 (%p1355_p9), %s1240_s22, %s1089_s24 }
 0x194   : > { %1052 = vmatpush3.bf16.msra.mxu0 %v1179_v55  ;;  %1082 = vmatpush3.bf16.msra.mxu1 %v1179_v55  ;;  %v574_v10 = vld [vmem:[#allocation2 + $0x18] sm:$0xff]  ;;  %s983_s11 = sshll.u32 (%p1355_p9), %s762_s25, 2 }
 0x195   : > { %1053 = vmatprep.subr.bf16.mxu0 %v1180_v56  ;;  %1075 = vmatprep.subr.bf16.mxu1 %v1180_v56  ;;  %s764_s16 = scalar_lea.vmem (%p1355_p9), %s1533_s5, %s983_s11 }
 0x198   : > { %1054 = vmatpush3.bf16.msra.mxu0 %v1180_v56  ;;  %1083 = vmatpush3.bf16.msra.mxu1 %v1180_v56 }
 0x199   : > { %1055 = vmatprep.subr.bf16.mxu0 %v1181_v2  ;;  %1076 = vmatprep.subr.bf16.mxu1 %v1181_v2 }
 0x19c   : > { %1056 = vmatpush3.bf16.msra.mxu0 %v1181_v2  ;;  %1084 = vmatpush3.bf16.msra.mxu1 %v1181_v2 }
 0x19d   : > { %1057 = vmatprep.subr.bf16.mxu0 %v1182_v5  ;;  %1077 = vmatprep.subr.bf16.mxu1 %v1182_v5 }
 0x1a0   : > { %1058 = vmatpush3.bf16.msra.mxu0 %v1182_v5  ;;  %1085 = vmatpush3.bf16.msra.mxu1 %v1182_v5 }
 0x1a1   : > { %1059 = vmatprep.subr.bf16.mxu0 %v1183_v6  ;;  %1078 = vmatprep.subr.bf16.mxu1 %v1183_v6 }
 0x1a4   : > { %1060 = vmatpush3.bf16.msra.mxu0 %v1183_v6  ;;  %1086 = vmatpush3.bf16.msra.mxu1 %v1183_v6 }
 0x1a5   : > { %1061 = vmatprep.subr.bf16.mxu0 %v1184_v7  ;;  %1079 = vmatprep.subr.bf16.mxu1 %v1184_v7 }
 0x1a8   : > { %1062 = vmatpush3.bf16.msra.mxu0 %v1184_v7  ;;  %1087 = vmatpush3.bf16.msra.mxu1 %v1184_v7 }
 0x1a9   : > { %1063 = vmatprep.subr.bf16.mxu0 %v1185_v8  ;;  %1080 = vmatprep.subr.bf16.mxu1 %v1185_v8 }
 0x1ac   : > { %1064 = vmatpush3.bf16.msra.mxu0 %v1185_v8  ;;  %1088 = vmatpush3.bf16.msra.mxu1 %v1185_v8 }
 0x1af   : > { %1066 = vmatmul.mubr.bf16.vlgmr.msra.gmra.mrb[0].mxu0 %v572_v9  ;;  %1070 = vmatmul.mubr.bf16.vlgmr.msra.gmra.mrb[0].mxu1 %v574_v10 }
 0x282   : > { %v1067_v11 = vpop.f32.mrb[0].mxu0  ;;  %v1071_v13 = vpop.f32.mrb[0].mxu1 }
 0x283   : > { %v680_v14 = vpop.f32.mrb[1].mxu0  ;;  %v696_v15 = vpop.f32.mrb[1].mxu1  ;;  %v689_v18 = vadd.f32 %v1067_v11, %v965_v12  ;;  %v705_v19 = vadd.f32 %v1071_v13, %v965_v12 }
 0x284   : > { %v1068_v16 = vpop.f32.mrb[2].mxu0  ;;  %v1072_v17 = vpop.f32.mrb[2].mxu1  ;;  %v681_v24 = vadd.f32 %v965_v12, %v680_v14  ;;  %v697_v25 = vadd.f32 %v965_v12, %v696_v15  ;;  %757 = sbr.rel (!%p1355_p9) target bundleno = 663 (0x297), region = 89 }
 0x285   : > { %v692_v20 = vadd.f32 %v1068_v16, %v965_v12  ;;  %v708_v21 = vadd.f32 %v1072_v17, %v965_v12  ;;  %v683_v22 = vpop.f32.mrb[3].mxu0  ;;  %v699_v23 = vpop.f32.mrb[3].mxu1 }
 0x286   : > { %v684_v26 = vadd.f32 %v965_v12, %v683_v22  ;;  %v700_v27 = vadd.f32 %v965_v12, %v699_v23 }
 0x287   : > { %v1019_v28 = vpack.c.bf16 %v692_v20, %v689_v18  ;;  %v1029_v29 = vpack.c.bf16 %v708_v21, %v705_v19 }
 0x288   : > { %v1014_v30 = vpack.c.bf16 %v684_v26, %v681_v24  ;;  %v1024_v31 = vpack.c.bf16 %v700_v27, %v697_v25 }
 0x289   : > { %1034 = vst [vmem:[%s1416_s8 + $0x8] sm:$0xff] %v1019_v28   ;;  %1036 = vst [vmem:[%s1416_s8 + $0x18] sm:$0xff] %v1029_v29  }
 0x28a   : > { %1015 = vst [vmem:[%s1416_s8] sm:$0xff] %v1014_v30   ;;  %1035 = vst [vmem:[%s1416_s8 + $0x10] sm:$0xff] %v1024_v31  }
 0x290   : > { %v784_v36 = vld [vmem:[%s1416_s8 + $0x8] sm:$0xf]  ;;  %v786_v32 = vld [vmem:[%s1416_s8 + $0xc] sm:$0xf]  ;;  %v792_v41 = vld [vmem:[%s1416_s8 + $0x18] sm:$0xf] }
 0x291   : > { %v780_v34 = vld [vmem:[%s1416_s8] sm:$0xf]  ;;  %v782_v35 = vld [vmem:[%s1416_s8 + $0x4] sm:$0xf]  ;;  %v788_v37 = vld [vmem:[%s1416_s8 + $0x10] sm:$0xf] }
 0x292   : > { %v790_v38 = vld [vmem:[%s1416_s8 + $0x14] sm:$0xf]  ;;  %v794_v42 = vld [vmem:[%s1416_s8 + $0x1c] sm:$0xf]  ;;  %781 = vst [vmem:[%s764_s16] sm:$0xf] %v780_v34 }
 0x293   : > { %783 = vst [vmem:[%s764_s16 + $0xc] sm:$0xf] %v782_v35  ;;  %785 = vst [vmem:[%s764_s16 + $0x18] sm:$0xf] %v784_v36 }
 0x294   : > { %787 = vst [vmem:[%s764_s16 + $0x24] sm:$0xf] %v786_v32  ;;  %789 = vst [vmem:[%s764_s16 + $0x30] sm:$0xf] %v788_v37 }
 0x295   : > { %791 = vst [vmem:[%s764_s16 + $0x3c] sm:$0xf] %v790_v38  ;;  %793 = vst [vmem:[%s764_s16 + $0x48] sm:$0xf] %v792_v41 }
 0x296   : > { %795 = vst [vmem:[%s764_s16 + $0x54] sm:$0xf] %v794_v42 }
 0x297 PF: > { %s15_s26 = sadd.s32 1, %s1256_s26   ;;  %s1546_s22 = sld [smem:[#allocation9_spill]] }
 0x298   : > { %p12_p3 = scmp.ge.s32.totalorder %s15_s26, 8   ;;  %s1547_s23 = sld [smem:[#allocation5_spill]] }
 0x299   : > { %s1548_s8 = sld [smem:[#allocation6_spill]]  ;;  %s1549_s24 = sld [smem:[#allocation7_spill]] }
 0x29a   : > { %s1550_s25 = sld [smem:[#allocation8_spill]]  ;;  %s1551_s18 = smov %s1228_s19 }
 0x29b   : > { %s1552_s19 = smov %s1360_s12  ;;  %s1553_s20 = smov %s1236_s21 }
 0x29c   :  { %14 = sbr.rel (!%p12_p3) target bundleno = 7 (0x7), region = 173 }
 0x29d   : > { %s1554_s21 = smov %s1546_s22 }
 0x29e   : > { %s1555_s22 = smov %s1547_s23 }
 0x29f   : > { %s1556_s23 = smov %s1548_s8 }

// kernel: dit_forward.23
= control target key start
LH: loop header
LB: loop body
LE: loop exit
PB: predicated region body
PF: predicated region fallthrough
CT: control target
= control target key end

     0   :  { %s1120_s18 = smov 0   ;;  %s1122_s19 = smov 0   ;;  %s1201_s0 = inlined_call_operand.vmem [shape: bf16[2,64,128], index: 0, kind: input, shape index: {}]   ;;  %s1202_s1 = inlined_call_operand.vmem [shape: bf16[128,128], index: 1, kind: input, shape index: {}]   ;;  %s1203_s2 = inlined_call_operand.vmem [shape: f32[1,128], index: 2, kind: input, shape index: {}]   ;;  %s1204_s3 = inlined_call_operand.vmem [shape: bf16[2,64,128], index: 3, kind: input, shape index: {}]   ;;  %s1205_s4 = inlined_call_operand.vmem [shape: f32[2,1,128], index: 4, kind: input, shape index: {}]   ;;  %s1206_s5 = inlined_call_operand.vmem [shape: bf16[2,64,128], index: 5, kind: output, shape index: {}]  }
   0x1   :  { %s1124_s20 = smov 0  }
   0x2 LB: > { %s41_s21 = sadd.s32 1, %s1084_s19  ;;  %p894_p0 = scmp.ge.s32.totalorder %s1088_s20, 1  ;;  %s1088_s20 = sphi %s1124_s20, %s15_s20   ;;  %s1084_s19 = sphi %s1122_s19, %s1208_s19   ;;  %s1080_s18 = sphi %s1120_s18, %s1207_s18  }
   0x3   : > { %p43_p1 = scmp.ge.s32.totalorder %s41_s21, 2  ;;  %p288_p2 = scmp.lt.s32.totalorder %s1088_s20, 3 }
   0x5   : > { %s1210_s21 = smov (%p43_p1, %s41_s21), 0  ;;  %p289_p3 = pnand %p894_p0, %p288_p2 }
   0x6   : > { %v1054_v0 = vld [vmem:[%s1202_s1] sm:$0xff] (!%p289_p3)   ;;  %p360_p4 = scmp.lt.s32.totalorder (!%p289_p3), %s1080_s18, 1  ;;  %v1055_v1 = vld [vmem:[%s1202_s1 + $0x8] sm:$0xff] (!%p289_p3)   ;;  %v1056_v2 = vld [vmem:[%s1202_s1 + $0x10] sm:$0xff] (!%p289_p3)  }
   0x7   : > { %292 = sbr.rel (%p289_p3) target bundleno = 263 (0x107), region = 40  ;;  %990 = vmatprep.subr.bf16.mxu0 (!%p289_p3), %v1054_v0  ;;  %1014 = vmatprep.subr.bf16.mxu1 (!%p289_p3), %v1054_v0  ;;  %v1057_v3 = vld [vmem:[%s1202_s1 + $0x18] sm:$0xff] (!%p289_p3)   ;;  %v1058_v6 = vld [vmem:[%s1202_s1 + $0x20] sm:$0xff] (!%p289_p3)   ;;  %v1059_v7 = vld [vmem:[%s1202_s1 + $0x28] sm:$0xff] (!%p289_p3)  }
   0x8   : > { %991 = vmatpush3.bf16.msra.mxu0 (!%p289_p3), %v1054_v0  ;;  %1022 = vmatpush3.bf16.msra.mxu1 (!%p289_p3), %v1054_v0  ;;  %v1060_v8 = vld [vmem:[%s1202_s1 + $0x30] sm:$0xff] (!%p289_p3)   ;;  %v1061_v9 = vld [vmem:[%s1202_s1 + $0x38] sm:$0xff] (!%p289_p3)   ;;  %v913_v16 = vld [vmem:[%s1203_s2] ss:$0 sm:$0xff] (!%p289_p3) }
   0x9   : > { %992 = vmatprep.subr.bf16.mxu0 (!%p289_p3), %v1055_v1  ;;  %1015 = vmatprep.subr.bf16.mxu1 (!%p289_p3), %v1055_v1 }
   0xc   : > { %993 = vmatpush3.bf16.msra.mxu0 (!%p289_p3), %v1055_v1  ;;  %1023 = vmatpush3.bf16.msra.mxu1 (!%p289_p3), %v1055_v1 }
   0xd   : > { %994 = vmatprep.subr.bf16.mxu0 (!%p289_p3), %v1056_v2  ;;  %1016 = vmatprep.subr.bf16.mxu1 (!%p289_p3), %v1056_v2 }
   0xe   : > { %s1212_s18 = smov (!%p360_p4, %s1080_s18), 1 }
   0xf   : > { %s1150_s28 = sshll.u32 %s1212_s18, 5  ;;  %s402_s26 = scalar_lea.vmem %s1205_s4, %s1212_s18 }
  0x10   : > { %s1156_s6 = scalar_lea.vmem %s1201_s0, %s1150_s28  ;;  %995 = vmatpush3.bf16.msra.mxu0 %v1056_v2  ;;  %1024 = vmatpush3.bf16.msra.mxu1 %v1056_v2  ;;  %s395_s23 = scalar_lea.vmem %s1204_s3, %s1150_s28  ;;  %v914_v18 = vld [vmem:[%s402_s26] ss:$0 sm:$0xff] }
  0x11   : > { %v1062_v4 = vld [vmem:[%s1156_s6] sm:$0xff]   ;;  %v1063_v5 = vld [vmem:[%s1156_s6 + $0x10] sm:$0xff]   ;;  %996 = vmatprep.subr.bf16.mxu0 %v1057_v3  ;;  %1017 = vmatprep.subr.bf16.mxu1 %v1057_v3  ;;  %v1064_v10 = vld [vmem:[%s1156_s6 + $0x8] sm:$0xff]  }
  0x12   : > { %1006 = vmatprep.mubr.bf16.mxu0 %v1062_v4  ;;  %1010 = vmatprep.mubr.bf16.mxu1 %v1063_v5  ;;  %v1065_v11 = vld [vmem:[%s1156_s6 + $0x18] sm:$0xff]   ;;  %v972_v12 = vld [vmem:[%s395_s23 + $0x8] sm:$0xff]   ;;  %v937_v14 = vld [vmem:[%s395_s23] sm:$0xff]   ;;  %s414_s6 = scalar_lea.vmem %s1206_s5, %s1150_s28 }
  0x13   : > { %v974_v13 = vld [vmem:[%s395_s23 + $0x18] sm:$0xff]   ;;  %v973_v15 = vld [vmem:[%s395_s23 + $0x10] sm:$0xff]   ;;  %v942_v19 = vunpack.c.l.bf16 %v972_v12  ;;  %v938_v22 = vunpack.c.l.bf16 %v937_v14  ;;  %v943_v28 = vunpack.c.h.bf16 %v972_v12  ;;  %v939_v34 = vunpack.c.h.bf16 %v937_v14 }
  0x14   : > { %997 = vmatpush3.bf16.msra.mxu0 %v1057_v3  ;;  %1025 = vmatpush3.bf16.msra.mxu1 %v1057_v3  ;;  %v950_v21 = vunpack.c.l.bf16 %v974_v13  ;;  %v946_v23 = vunpack.c.l.bf16 %v973_v15  ;;  %v951_v29 = vunpack.c.h.bf16 %v974_v13  ;;  %v947_v35 = vunpack.c.h.bf16 %v973_v15 }
  0x15   : > { %998 = vmatprep.subr.bf16.mxu0 %v1058_v6  ;;  %1018 = vmatprep.subr.bf16.mxu1 %v1058_v6 }
  0x18   : > { %999 = vmatpush3.bf16.msra.mxu0 %v1058_v6  ;;  %1026 = vmatpush3.bf16.msra.mxu1 %v1058_v6 }
  0x19   : > { %1000 = vmatprep.subr.bf16.mxu0 %v1059_v7  ;;  %1019 = vmatprep.subr.bf16.mxu1 %v1059_v7 }
  0x1c   : > { %1001 = vmatpush3.bf16.msra.mxu0 %v1059_v7  ;;  %1027 = vmatpush3.bf16.msra.mxu1 %v1059_v7 }
  0x1d   : > { %1002 = vmatprep.subr.bf16.mxu0 %v1060_v8  ;;  %1020 = vmatprep.subr.bf16.mxu1 %v1060_v8 }
  0x20   : > { %1003 = vmatpush3.bf16.msra.mxu0 %v1060_v8  ;;  %1028 = vmatpush3.bf16.msra.mxu1 %v1060_v8 }
  0x21   : > { %1004 = vmatprep.subr.bf16.mxu0 %v1061_v9  ;;  %1021 = vmatprep.subr.bf16.mxu1 %v1061_v9 }
  0x24   : > { %1005 = vmatpush3.bf16.msra.mxu0 %v1061_v9  ;;  %1029 = vmatpush3.bf16.msra.mxu1 %v1061_v9 }
  0x27   : > { %1007 = vmatmul.mubr.bf16.vlgmr.msra.gmra.mrb[0].mxu0 %v1064_v10  ;;  %1011 = vmatmul.mubr.bf16.vlgmr.msra.gmra.mrb[0].mxu1 %v1065_v11 }
  0xfa   : > { %v1008_v17 = vpop.f32.mrb[0].mxu0  ;;  %v1012_v20 = vpop.f32.mrb[0].mxu1 }
  0xfb   : > { %v634_v24 = vadd.f32 %v1008_v17, %v913_v16  ;;  %v638_v25 = vadd.f32 %v1012_v20, %v913_v16  ;;  %v567_v26 = vpop.f32.mrb[1].mxu0  ;;  %v583_v27 = vpop.f32.mrb[1].mxu1 }
  0xfc   : > { %v632_v30 = vadd.f32 %v913_v16, %v567_v26  ;;  %v636_v31 = vadd.f32 %v913_v16, %v583_v27  ;;  %v1009_v32 = vpop.f32.mrb[2].mxu0  ;;  %v1013_v33 = vpop.f32.mrb[2].mxu1 }
  0xfd   : > { %v649_v36 = vmul.f32 %v914_v18, %v634_v24  ;;  %v653_v37 = vmul.f32 %v914_v18, %v638_v25  ;;  %v635_v38 = vadd.f32 %v1009_v32, %v913_v16  ;;  %v639_v39 = vadd.f32 %v1013_v33, %v913_v16  ;;  %v570_v40 = vpop.f32.mrb[3].mxu0  ;;  %v586_v41 = vpop.f32.mrb[3].mxu1 }
  0xfe   : > { %v647_v42 = vmul.f32 %v914_v18, %v632_v30  ;;  %v651_v43 = vmul.f32 %v914_v18, %v636_v31  ;;  %v633_v44 = vadd.f32 %v913_v16, %v570_v40  ;;  %v637_v45 = vadd.f32 %v913_v16, %v586_v41 }
  0xff   : > { %v650_v46 = vmul.f32 %v914_v18, %v635_v38  ;;  %v654_v47 = vmul.f32 %v914_v18, %v639_v39  ;;  %v673_v50 = vadd.f32 %v942_v19, %v649_v36  ;;  %v677_v51 = vadd.f32 %v950_v21, %v653_v37 }
 0x100   : > { %v648_v48 = vmul.f32 %v914_v18, %v633_v44  ;;  %v652_v49 = vmul.f32 %v914_v18, %v637_v45  ;;  %v671_v54 = vadd.f32 %v938_v22, %v647_v42  ;;  %v675_v55 = vadd.f32 %v946_v23, %v651_v43 }
 0x101   : > { %v674_v52 = vadd.f32 %v943_v28, %v650_v46  ;;  %v678_v53 = vadd.f32 %v951_v29, %v654_v47 }
 0x102   : > { %v672_v56 = vadd.f32 %v939_v34, %v648_v48  ;;  %v676_v57 = vadd.f32 %v947_v35, %v652_v49 }
 0x103   : > { %v960_v58 = vpack.c.bf16 %v674_v52, %v673_v50  ;;  %v970_v59 = vpack.c.bf16 %v678_v53, %v677_v51 }
 0x104   : > { %v955_v60 = vpack.c.bf16 %v672_v56, %v671_v54  ;;  %v965_v61 = vpack.c.bf16 %v676_v57, %v675_v55 }
 0x105   : > { %975 = vst [vmem:[%s414_s6 + $0x8] sm:$0xff] %v960_v58   ;;  %977 = vst [vmem:[%s414_s6 + $0x18] sm:$0xff] %v970_v59  }
 0x106   : > { %956 = vst [vmem:[%s414_s6] sm:$0xff] %v955_v60   ;;  %976 = vst [vmem:[%s414_s6 + $0x10] sm:$0xff] %v965_v61  }
 0x107 PF: > { %s15_s20 = sadd.s32 1, %s1088_s20   ;;  %s1207_s18 = smov %s1084_s19 }
 0x108   : > { %p12_p5 = scmp.ge.s32.totalorder %s15_s20, 4   ;;  %s1208_s19 = smov %s1210_s21 }
 0x10a   :  { %14 = sbr.rel (!%p12_p5) target bundleno = 2 (0x2), region = 90 }

// kernel: dit_forward.22
= control target key start
LH: loop header
LB: loop body
LE: loop exit
PB: predicated region body
PF: predicated region fallthrough
CT: control target
= control target key end

     0   :  { %s3800_s12 = smov 0   ;;  %s3802_s13 = smov 0   ;;  %s5291_s0 = inlined_call_operand.vmem [shape: bf16[2,64,384], index: 0, kind: input, shape index: {}, may-alias: {0,1,2}]   ;;  %s5292_s1 = inlined_call_operand.vmem [shape: bf16[2,64,384], index: 1, kind: input, shape index: {}, may-alias: {0,1,2}]   ;;  %s5293_s2 = inlined_call_operand.vmem [shape: bf16[2,64,384], index: 2, kind: input, shape index: {}, may-alias: {0,1,2}]   ;;  %s5294_s3 = inlined_call_operand.vmem [shape: bf16[2,64,128], index: 3, kind: output, shape index: {}]  }
   0x1   :  { %s3804_s14 = smov 0   ;;  %s3806_s15 = smov 0  }
   0x2   :  { %s3808_s16 = smov 0  }
   0x3 LB: > { %s32_s17 = sadd.s32 1, %s3768_s15  ;;  %p48_p1 = scmp.ne.s32.totalorder %s3760_s13, %s3756_s12  ;;  %s3772_s16 = sphi %s3808_s16, %s13_s16   ;;  %s3768_s15 = sphi %s3806_s15, %s5400_s15   ;;  %s3764_s14 = sphi %s3804_s14, %s5399_s14   ;;  %s3760_s13 = sphi %s3802_s13, %s5398_s13   ;;  %s3756_s12 = sphi %s3800_s12, %s5397_s12  }
   0x4   : > { %p34_p0 = scmp.ge.s32.totalorder %s32_s17, 2  ;;  %p49_p2 = scmp.eq.s32.totalorder %s3772_s16, 0 }
   0x5   : > { %s41_s20 = sadd.s32 1, %s3760_s13  ;;  %p3086_p5 = scmp.ge.s32.totalorder %s3772_s16, 2 }
   0x6   : > { %s5402_s17 = smov (%p34_p0, %s32_s17), 0  ;;  %p3831_p3 = por %p49_p2, %p48_p1 }
   0x7   : > { %s36_s19 = ssub.s32 %s3768_s15, %s5402_s17  ;;  %158 = sbr.rel (%p3086_p5) target bundleno = 44 (0x2c), region = 16 }
   0x8   : > { %p39_p4 = scmp.eq.s32.totalorder %s36_s19, 0 }
   0xa   : > { %s3839_s21 = scalar_select %p39_p4, %s3760_s13, %s41_s20  }
   0xe   : > { %161 = sbr.rel (!%p3831_p3) target bundleno = 24 (0x18), region = 20  ;;  %s163_s22 = sand.u32 (%p3831_p3), 1, %s3760_s13  }
   0xf   : > { %s3409_s23 = smul.u32 (%p3831_p3), 96, %s3768_s15  ;;  %s3087_s24 = sshll.u32 (%p3831_p3), %s163_s22, 5 }
  0x10   : > { %s165_s28 = scalar_lea.vmem (%p3831_p3), [#allocation5], %s3087_s24 }
  0x11   : > { %s171_s27 = scalar_lea.vmem (%p3831_p3), %s5291_s0, %s3409_s23 }
  0x12   : > { %v187_v0 = vld [vmem:[%s171_s27] sm:$0xf] (%p3831_p3)  ;;  %v189_v1 = vld [vmem:[%s171_s27 + $0xc] sm:$0xf] (%p3831_p3)  ;;  %v191_v2 = vld [vmem:[%s171_s27 + $0x18] sm:$0xf] (%p3831_p3) }
  0x13   : > { %188 = vst [vmem:[%s165_s28] sm:$0xf] (%p3831_p3), %v187_v0  ;;  %190 = vst [vmem:[%s165_s28 + $0x4] sm:$0xf] (%p3831_p3), %v189_v1  ;;  %v193_v3 = vld [vmem:[%s171_s27 + $0x24] sm:$0xf] (%p3831_p3) }
  0x14   : > { %192 = vst [vmem:[%s165_s28 + $0x8] sm:$0xf] (%p3831_p3), %v191_v2  ;;  %v195_v4 = vld [vmem:[%s171_s27 + $0x30] sm:$0xf] (%p3831_p3)  ;;  %v197_v5 = vld [vmem:[%s171_s27 + $0x3c] sm:$0xf] (%p3831_p3) }
  0x15   : > { %194 = vst [vmem:[%s165_s28 + $0xc] sm:$0xf] %v193_v3  ;;  %196 = vst [vmem:[%s165_s28 + $0x10] sm:$0xf] %v195_v4  ;;  %v199_v6 = vld [vmem:[%s171_s27 + $0x48] sm:$0xf] }
  0x16   : > { %198 = vst [vmem:[%s165_s28 + $0x14] sm:$0xf] %v197_v5  ;;  %v201_v7 = vld [vmem:[%s171_s27 + $0x54] sm:$0xf]  ;;  %200 = vst [vmem:[%s165_s28 + $0x18] sm:$0xf] %v199_v6 }
  0x17   : > { %202 = vst [vmem:[%s165_s28 + $0x1c] sm:$0xf] %v201_v7 }
  0x18 PF: > { %241 = sbr.rel (!%p3831_p3) target bundleno = 34 (0x22), region = 61  ;;  %s243_s29 = sand.u32 (%p3831_p3), 1, %s3760_s13  }
  0x19   : > { %s3090_s30 = smul.u32 (%p3831_p3), 96, %s3768_s15  ;;  %s3089_s4 = sshll.u32 (%p3831_p3), %s243_s29, 5 }
  0x1a   : > { %s245_s8 = scalar_lea.vmem (%p3831_p3), [#allocation6], %s3089_s4 }
  0x1b   : > { %s2989_s7 = scalar_lea.vmem (%p3831_p3), %s5292_s1, %s3090_s30 }
  0x1c   : > { %v3091_v8 = vld [vmem:[%s2989_s7 + $0x4] sm:$0xf] (%p3831_p3)  ;;  %v3092_v9 = vld [vmem:[%s2989_s7 + $0x10] sm:$0xf] (%p3831_p3)  ;;  %v3093_v10 = vld [vmem:[%s2989_s7 + $0x1c] sm:$0xf] (%p3831_p3) }
  0x1d   : > { %269 = vst [vmem:[%s245_s8] sm:$0xf] (%p3831_p3), %v3091_v8  ;;  %271 = vst [vmem:[%s245_s8 + $0x4] sm:$0xf] (%p3831_p3), %v3092_v9  ;;  %v3094_v11 = vld [vmem:[%s2989_s7 + $0x28] sm:$0xf] (%p3831_p3) }
  0x1e   : > { %273 = vst [vmem:[%s245_s8 + $0x8] sm:$0xf] (%p3831_p3), %v3093_v10  ;;  %v3095_v12 = vld [vmem:[%s2989_s7 + $0x34] sm:$0xf] (%p3831_p3)  ;;  %v3096_v13 = vld [vmem:[%s2989_s7 + $0x40] sm:$0xf] (%p3831_p3) }
  0x1f   : > { %275 = vst [vmem:[%s245_s8 + $0xc] sm:$0xf] %v3094_v11  ;;  %277 = vst [vmem:[%s245_s8 + $0x10] sm:$0xf] %v3095_v12  ;;  %v3097_v14 = vld [vmem:[%s2989_s7 + $0x4c] sm:$0xf] }
  0x20   : > { %279 = vst [vmem:[%s245_s8 + $0x14] sm:$0xf] %v3096_v13  ;;  %v3098_v15 = vld [vmem:[%s2989_s7 + $0x58] sm:$0xf]  ;;  %281 = vst [vmem:[%s245_s8 + $0x18] sm:$0xf] %v3097_v14 }
  0x21   : > { %283 = vst [vmem:[%s245_s8 + $0x1c] sm:$0xf] %v3098_v15 }
  0x22 PF: > { %322 = sbr.rel (!%p3831_p3) target bundleno = 44 (0x2c), region = 102  ;;  %s324_s9 = sand.u32 (%p3831_p3), 1, %s3760_s13  }
  0x23   : > { %s3100_s10 = smul.u32 (%p3831_p3), 96, %s3768_s15  ;;  %s3099_s11 = sshll.u32 (%p3831_p3), %s324_s9, 5 }
  0x24   : > { %s326_s23 = scalar_lea.vmem (%p3831_p3), [#allocation7], %s3099_s11 }
  0x25   : > { %s2997_s22 = scalar_lea.vmem (%p3831_p3), %s5293_s2, %s3100_s10 }
  0x26   : > { %v3101_v16 = vld [vmem:[%s2997_s22 + $0x8] sm:$0xf] (%p3831_p3)  ;;  %v3102_v17 = vld [vmem:[%s2997_s22 + $0x14] sm:$0xf] (%p3831_p3)  ;;  %v3103_v18 = vld [vmem:[%s2997_s22 + $0x20] sm:$0xf] (%p3831_p3) }
  0x27   : > { %350 = vst [vmem:[%s326_s23] sm:$0xf] (%p3831_p3), %v3101_v16  ;;  %352 = vst [vmem:[%s326_s23 + $0x4] sm:$0xf] (%p3831_p3), %v3102_v17  ;;  %v3104_v19 = vld [vmem:[%s2997_s22 + $0x2c] sm:$0xf] (%p3831_p3) }
  0x28   : > { %354 = vst [vmem:[%s326_s23 + $0x8] sm:$0xf] (%p3831_p3), %v3103_v18  ;;  %v3105_v20 = vld [vmem:[%s2997_s22 + $0x38] sm:$0xf] (%p3831_p3)  ;;  %v3106_v21 = vld [vmem:[%s2997_s22 + $0x44] sm:$0xf] (%p3831_p3) }
  0x29   : > { %356 = vst [vmem:[%s326_s23 + $0xc] sm:$0xf] %v3104_v19  ;;  %358 = vst [vmem:[%s326_s23 + $0x10] sm:$0xf] %v3105_v20  ;;  %v3107_v22 = vld [vmem:[%s2997_s22 + $0x50] sm:$0xf] }
  0x2a   : > { %360 = vst [vmem:[%s326_s23 + $0x14] sm:$0xf] %v3106_v21  ;;  %v3108_v23 = vld [vmem:[%s2997_s22 + $0x5c] sm:$0xf]  ;;  %362 = vst [vmem:[%s326_s23 + $0x18] sm:$0xf] %v3107_v22 }
  0x2b   : > { %364 = vst [vmem:[%s326_s23 + $0x1c] sm:$0xf] %v3108_v23 }
  0x2c PF: > { %p3109_p6 = scmp.ge.s32.totalorder %s3772_s16, 1  ;;  %p402_p7 = scmp.lt.s32.totalorder %s3772_s16, 3 }
  0x2e   : > { %p403_p8 = pnand %p3109_p6, %p402_p7 }
  0x30   : > { %406 = sbr.rel (%p403_p8) target bundleno = 2749 (0xabd), region = 143 }
  0x37   : > { %s409_s18 = sand.u32 1, %s3756_s12   ;;  %vm541_vm0 = vcmask 261120   ;;  %vm476_vm1 = vcmask 7168   ;;  %v3774_v36 = vmov -1e+30   ;;  %vm744_vm2 = vcmask 523264  }
  0x38   : > { %s3866_s24 = sshll.u32 %s409_s18, 5  ;;  %479 = vst.msk [vmem:[#allocation2 + $0x10] sm:$0xff] %vm476_vm1, %v3774_v36  ;;  %477 = vst.msk [vmem:[#allocation2] sm:$0xff] %vm476_vm1, %v3774_v36  ;;  %v3775_v53 = vmov 0   ;;  %v3776_v54 = vmov 0.0   ;;  %s3777_s26 = smov 96  }
  0x39   : > { %s3869_s25 = scalar_lea.vmem [#allocation6], %s3866_s24  ;;  %s3884_s12 = scalar_lea.vmem [#allocation5], %s3866_s24  ;;  %478 = vst.msk [vmem:[#allocation2 + $0x8] sm:$0xff] %vm476_vm1, %v3774_v36  ;;  %480 = vst.msk [vmem:[#allocation2 + $0x18] sm:$0xff] %vm476_vm1, %v3774_v36  ;;  %3456 = vset.pattern.permute.xlu0 %v3775_v53  ;;  %3457 = vset.pattern.permute.xlu1 %v3775_v53  ;;  %vm2897_vm3 = vcmask 785408  }
  0x3a   : > { %v3872_v24 = vld [vmem:[%s3869_s25] sm:$0xff]   ;;  %v3875_v25 = vld [vmem:[%s3869_s25 + $0x8] sm:$0xff]   ;;  %v3894_v29 = vld [vmem:[%s3869_s25 + $0x10] sm:$0xff]   ;;  %481 = vst.msk [vmem:[#allocation2 + $0x20] sm:$0xff] %vm476_vm1, %v3774_v36  ;;  %s4160_s27 = scalar_lea.vmem [#allocation7], %s3866_s24  ;;  %s3778_s28 = smov 64  }
  0x3b   : > { %3393 = vmatprep.subr.msk.bf16.mxu0 %vm541_vm0, %v3872_v24  ;;  %v652_v26 = vsel %vm541_vm0, %v3872_v24, 0  ;;  %v3887_v27 = vld [vmem:[%s3884_s12] sm:$0xff]   ;;  %v655_v28 = vsel %vm541_vm0, %v3875_v25, 0  ;;  %v658_v30 = vsel %vm541_vm0, %v3894_v29, 0  ;;  %v3901_v31 = vld [vmem:[%s3869_s25 + $0x18] sm:$0xff]   ;;  %v3908_v33 = vld [vmem:[%s3884_s12 + $0x8] sm:$0xff]  }
  0x3c   : > { %3266 = vmatpush3.bf16.xpose.msra.mxu0 %v652_v26  ;;  %3273 = vmatprep.mubr.msk.bf16.mxu0 %vm541_vm0, %v3887_v27  ;;  %v661_v32 = vsel %vm541_vm0, %v3901_v31, 0  ;;  %v3911_v34 = vld [vmem:[%s3884_s12 + $0x10] sm:$0xff]   ;;  %v3918_v35 = vld [vmem:[%s3884_s12 + $0x18] sm:$0xff]   ;;  %482 = vst.msk [vmem:[#allocation2 + $0x28] sm:$0xff] %vm476_vm1, %v3774_v36  ;;  %483 = vst.msk [vmem:[#allocation2 + $0x30] sm:$0xff] %vm476_vm1, %v3774_v36  ;;  %s3779_s29 = smov 32  }
  0x3d   : > { %3394 = vmatprep.subr.msk.bf16.mxu0 %vm541_vm0, %v3875_v25  ;;  %484 = vst.msk [vmem:[#allocation2 + $0x38] sm:$0xff] %vm476_vm1, %v3774_v36  ;;  %485 = vst.msk [vmem:[#allocation2 + $0x40] sm:$0xff] %vm476_vm1, %v3774_v36  ;;  %v4168_v12 = vld [vmem:[%s4160_s27] sm:$0xff]   ;;  %v4184_v18 = vld [vmem:[%s4160_s27 + $0x8] sm:$0xff]   ;;  %p462_p9 = scmp.lt.s32.totalorder %s3764_s14, 1 }
  0x3e   : > { %486 = vst.msk [vmem:[#allocation2 + $0x48] sm:$0xff] %vm476_vm1, %v3774_v36  ;;  %487 = vst.msk [vmem:[#allocation2 + $0x50] sm:$0xff] %vm476_vm1, %v3774_v36  ;;  %3281 = vmatprep.subr.bf16.mxu1 %v4168_v12  ;;  %v4206_v26 = vld [vmem:[%s4160_s27 + $0x10] sm:$0xff]  }
  0x3f   : > { %488 = vst.msk [vmem:[#allocation2 + $0x58] sm:$0xff] %vm476_vm1, %v3774_v36  ;;  %489 = vst.msk [vmem:[#allocation2 + $0x60] sm:$0xff] %vm476_vm1, %v3774_v36  ;;  %v4114_v55 = vld [vmem:[#allocation2 + $0x10] sm:$0xff]  ;;  %v4116_v56 = vld [vmem:[#allocation2] sm:$0xff]  ;;  %3282 = vmatpush3.bf16.msra.mxu1 %v4168_v12  ;;  %s5404_s14 = smov (!%p462_p9, %s3764_s14), 1 }
  0x40   : > { %490 = vst.msk [vmem:[#allocation2 + $0x68] sm:$0xff] %vm476_vm1, %v3774_v36  ;;  %491 = vst.msk [vmem:[#allocation2 + $0x70] sm:$0xff] %vm476_vm1, %v3774_v36  ;;  %v4124_v61 = vld [vmem:[#allocation2 + $0x18] sm:$0xff]  ;;  %v4131_v63 = vld [vmem:[#allocation2 + $0x8] sm:$0xff]  ;;  %3283 = vmatprep.subr.bf16.mxu1 %v4184_v18  ;;  %s3169_s30 = sshll.u32 %s5404_s14, 5 }
  0x41   : > { %492 = vst.msk [vmem:[#allocation2 + $0x78] sm:$0xff] %vm476_vm1, %v3774_v36  ;;  %493 = vst.msk [vmem:[#allocation2 + $0x80] sm:$0xff] %vm476_vm1, %v3774_v36  ;;  %v4148_v6 = vld [vmem:[#allocation2 + $0x20] sm:$0xff]  ;;  %s5243_s5 = scalar_lea.vmem %s5294_s3, %s3169_s30 }
  0x42   : > { %494 = vst.msk [vmem:[#allocation2 + $0x88] sm:$0xff] %vm476_vm1, %v3774_v36  ;;  %495 = vst.msk [vmem:[#allocation2 + $0x90] sm:$0xff] %vm476_vm1, %v3774_v36 }
  0x43   : > { %496 = vst.msk [vmem:[#allocation2 + $0x98] sm:$0xff] %vm476_vm1, %v3774_v36  ;;  %497 = vst.msk [vmem:[#allocation2 + $0xa0] sm:$0xff] %vm476_vm1, %v3774_v36  ;;  %v4157_v9 = vld [vmem:[#allocation2 + $0x28] sm:$0xff]  ;;  %v4165_v11 = vld [vmem:[#allocation2 + $0x30] sm:$0xff]  ;;  %3284 = vmatpush3.bf16.msra.mxu1 %v4184_v18 }
  0x44   : > { %3268 = vmatpush3.bf16.xpose.msra.mxu0 %v655_v28  ;;  %498 = vst.msk [vmem:[#allocation2 + $0xa8] sm:$0xff] %vm476_vm1, %v3774_v36  ;;  %499 = vst.msk [vmem:[#allocation2 + $0xb0] sm:$0xff] %vm476_vm1, %v3774_v36  ;;  %v4180_v17 = vld [vmem:[#allocation2 + $0x38] sm:$0xff]  ;;  %3285 = vmatprep.subr.bf16.mxu1 %v4206_v26  ;;  %v4329_v28 = vld [vmem:[#allocation2 + $0x40] sm:$0xff] }
  0x45   : > { %3395 = vmatprep.subr.msk.bf16.mxu0 %vm541_vm0, %v3894_v29  ;;  %500 = vst.msk [vmem:[#allocation2 + $0xb8] sm:$0xff] %vm476_vm1, %v3774_v36  ;;  %501 = vst.msk [vmem:[#allocation2 + $0xc0] sm:$0xff] %vm476_vm1, %v3774_v36  ;;  %v4331_v5 = vld [vmem:[#allocation2 + $0x48] sm:$0xff] }
  0x46   : > { %502 = vst.msk [vmem:[#allocation2 + $0xc8] sm:$0xff] %vm476_vm1, %v3774_v36  ;;  %503 = vst.msk [vmem:[#allocation2 + $0xd0] sm:$0xff] %vm476_vm1, %v3774_v36  ;;  %v4336_v14 = vld [vmem:[#allocation2 + $0x58] sm:$0xff] }
  0x47   : > { %504 = vst.msk [vmem:[#allocation2 + $0xd8] sm:$0xff] %vm476_vm1, %v3774_v36  ;;  %505 = vst.msk [vmem:[#allocation2 + $0xe0] sm:$0xff] %vm476_vm1, %v3774_v36  ;;  %3286 = vmatpush3.bf16.msra.mxu1 %v4206_v26 }
  0x48   : > { %506 = vst.msk [vmem:[#allocation2 + $0xe8] sm:$0xff] %vm476_vm1, %v3774_v36  ;;  %507 = vst.msk [vmem:[#allocation2 + $0xf0] sm:$0xff] %vm476_vm1, %v3774_v36 }
  0x49   : > { %508 = vst.msk [vmem:[#allocation2 + $0xf8] sm:$0xff] %vm476_vm1, %v3774_v36  ;;  %510 = vst.msk [vmem:[#allocation3 + $0x8] sm:$0xff] %vm476_vm1, %v3776_v54 }
  0x4a   : > { %509 = vst.msk [vmem:[#allocation3] sm:$0xff] %vm476_vm1, %v3776_v54  ;;  %511 = vst.msk [vmem:[#allocation3 + $0x10] sm:$0xff] %vm476_vm1, %v3776_v54 }
  0x4b   : > { %512 = vst.msk [vmem:[#allocation3 + $0x18] sm:$0xff] %vm476_vm1, %v3776_v54  ;;  %513 = vst.msk [vmem:[#allocation3 + $0x20] sm:$0xff] %vm476_vm1, %v3776_v54 }
  0x4c   : > { %3270 = vmatpush3.bf16.xpose.msra.mxu0 %v658_v30  ;;  %514 = vst.msk [vmem:[#allocation3 + $0x28] sm:$0xff] %vm476_vm1, %v3776_v54  ;;  %515 = vst.msk [vmem:[#allocation3 + $0x30] sm:$0xff] %vm476_vm1, %v3776_v54  ;;  %v4218_v30 = vld [vmem:[%s4160_s27 + $0x18] sm:$0xff]  }
  0x4d   : > { %3396 = vmatprep.subr.msk.bf16.mxu0 %vm541_vm0, %v3901_v31  ;;  %516 = vst.msk [vmem:[#allocation3 + $0x38] sm:$0xff] %vm476_vm1, %v3776_v54  ;;  %517 = vst.msk [vmem:[#allocation3 + $0x40] sm:$0xff] %vm476_vm1, %v3776_v54  ;;  %3287 = vmatprep.subr.bf16.mxu1 %v4218_v30 }
  0x4e   : > { %518 = vst.msk [vmem:[#allocation3 + $0x48] sm:$0xff] %vm476_vm1, %v3776_v54  ;;  %519 = vst.msk [vmem:[#allocation3 + $0x50] sm:$0xff] %vm476_vm1, %v3776_v54  ;;  %3288 = vmatpush3.bf16.msra.mxu1 %v4218_v30 }
  0x4f   : > { %520 = vst.msk [vmem:[#allocation3 + $0x58] sm:$0xff] %vm476_vm1, %v3776_v54  ;;  %521 = vst.msk [vmem:[#allocation3 + $0x60] sm:$0xff] %vm476_vm1, %v3776_v54 }
  0x50   : > { %522 = vst.msk [vmem:[#allocation3 + $0x68] sm:$0xff] %vm476_vm1, %v3776_v54  ;;  %523 = vst.msk [vmem:[#allocation3 + $0x70] sm:$0xff] %vm476_vm1, %v3776_v54 }
  0x51   : > { %524 = vst.msk [vmem:[#allocation3 + $0x78] sm:$0xff] %vm476_vm1, %v3776_v54  ;;  %525 = vst.msk [vmem:[#allocation3 + $0x80] sm:$0xff] %vm476_vm1, %v3776_v54 }
  0x52   : > { %526 = vst.msk [vmem:[#allocation3 + $0x88] sm:$0xff] %vm476_vm1, %v3776_v54  ;;  %527 = vst.msk [vmem:[#allocation3 + $0x90] sm:$0xff] %vm476_vm1, %v3776_v54 }
  0x53   : > { %528 = vst.msk [vmem:[#allocation3 + $0x98] sm:$0xff] %vm476_vm1, %v3776_v54  ;;  %529 = vst.msk [vmem:[#allocation3 + $0xa0] sm:$0xff] %vm476_vm1, %v3776_v54 }
  0x54   : > { %3272 = vmatpush3.bf16.xpose.msra.mxu0 %v661_v32  ;;  %530 = vst.msk [vmem:[#allocation3 + $0xa8] sm:$0xff] %vm476_vm1, %v3776_v54  ;;  %531 = vst.msk [vmem:[#allocation3 + $0xb0] sm:$0xff] %vm476_vm1, %v3776_v54 }
  0x55   : > { %532 = vst.msk [vmem:[#allocation3 + $0xb8] sm:$0xff] %vm476_vm1, %v3776_v54  ;;  %533 = vst.msk [vmem:[#allocation3 + $0xc0] sm:$0xff] %vm476_vm1, %v3776_v54 }
  0x56   : > { %534 = vst.msk [vmem:[#allocation3 + $0xc8] sm:$0xff] %vm476_vm1, %v3776_v54  ;;  %535 = vst.msk [vmem:[#allocation3 + $0xd0] sm:$0xff] %vm476_vm1, %v3776_v54 }
  0x57   : > { %536 = vst.msk [vmem:[#allocation3 + $0xd8] sm:$0xff] %vm476_vm1, %v3776_v54  ;;  %537 = vst.msk [vmem:[#allocation3 + $0xe0] sm:$0xff] %vm476_vm1, %v3776_v54 }
  0x58   : > { %538 = vst.msk [vmem:[#allocation3 + $0xe8] sm:$0xff] %vm476_vm1, %v3776_v54  ;;  %539 = vst.msk [vmem:[#allocation3 + $0xf0] sm:$0xff] %vm476_vm1, %v3776_v54 }
  0x59   : > { %540 = vst.msk [vmem:[#allocation3 + $0xf8] sm:$0xff] %vm476_vm1, %v3776_v54 }
  0x5a   : > { %542 = vst.msk [vmem:[#allocation4] sm:$0xff] %vm541_vm0, %v3776_v54  ;;  %543 = vst.msk [vmem:[#allocation4 + $0x8] sm:$0xff] %vm541_vm0, %v3776_v54 }
  0x5b   : > { %3274 = vmatmul.mubr.msk.bf16.vlgmr.msra.gmra.mrb[0].mxu0 %vm541_vm0, %v3908_v33  ;;  %544 = vst.msk [vmem:[#allocation4 + $0x10] sm:$0xff] %vm541_vm0, %v3776_v54  ;;  %545 = vst.msk [vmem:[#allocation4 + $0x18] sm:$0xff] %vm541_vm0, %v3776_v54 }
  0x5c   : > { %3277 = vmatprep.mubr.msk.bf16.mxu0 %vm541_vm0, %v3911_v34  ;;  %546 = vst.msk [vmem:[#allocation4 + $0x20] sm:$0xff] %vm541_vm0, %v3776_v54  ;;  %547 = vst.msk [vmem:[#allocation4 + $0x28] sm:$0xff] %vm541_vm0, %v3776_v54 }
  0x5d   : > { %548 = vst.msk [vmem:[#allocation4 + $0x30] sm:$0xff] %vm541_vm0, %v3776_v54  ;;  %549 = vst.msk [vmem:[#allocation4 + $0x38] sm:$0xff] %vm541_vm0, %v3776_v54 }
  0x5e   : > { %550 = vst.msk [vmem:[#allocation4 + $0x40] sm:$0xff] %vm541_vm0, %v3776_v54  ;;  %551 = vst.msk [vmem:[#allocation4 + $0x48] sm:$0xff] %vm541_vm0, %v3776_v54 }
  0x5f   : > { %552 = vst.msk [vmem:[#allocation4 + $0x50] sm:$0xff] %vm541_vm0, %v3776_v54  ;;  %553 = vst.msk [vmem:[#allocation4 + $0x58] sm:$0xff] %vm541_vm0, %v3776_v54 }
  0x60   : > { %554 = vst.msk [vmem:[#allocation4 + $0x60] sm:$0xff] %vm541_vm0, %v3776_v54  ;;  %555 = vst.msk [vmem:[#allocation4 + $0x68] sm:$0xff] %vm541_vm0, %v3776_v54 }
  0x61   : > { %556 = vst.msk [vmem:[#allocation4 + $0x70] sm:$0xff] %vm541_vm0, %v3776_v54  ;;  %557 = vst.msk [vmem:[#allocation4 + $0x78] sm:$0xff] %vm541_vm0, %v3776_v54 }
  0x62   : > { %558 = vst.msk [vmem:[#allocation4 + $0x80] sm:$0xff] %vm541_vm0, %v3776_v54  ;;  %559 = vst.msk [vmem:[#allocation4 + $0x88] sm:$0xff] %vm541_vm0, %v3776_v54 }
  0x63   : > { %3278 = vmatmul.mubr.msk.bf16.gmra.mrb[4].mxu0 %vm541_vm0, %v3918_v35  ;;  %560 = vst.msk [vmem:[#allocation4 + $0x90] sm:$0xff] %vm541_vm0, %v3776_v54  ;;  %561 = vst.msk [vmem:[#allocation4 + $0x98] sm:$0xff] %vm541_vm0, %v3776_v54 }
  0x64   : > { %562 = vst.msk [vmem:[#allocation4 + $0xa0] sm:$0xff] %vm541_vm0, %v3776_v54  ;;  %563 = vst.msk [vmem:[#allocation4 + $0xa8] sm:$0xff] %vm541_vm0, %v3776_v54 }
  0x65   : > { %564 = vst.msk [vmem:[#allocation4 + $0xb0] sm:$0xff] %vm541_vm0, %v3776_v54  ;;  %565 = vst.msk [vmem:[#allocation4 + $0xb8] sm:$0xff] %vm541_vm0, %v3776_v54 }
  0x66   : > { %566 = vst.msk [vmem:[#allocation4 + $0xc0] sm:$0xff] %vm541_vm0, %v3776_v54  ;;  %567 = vst.msk [vmem:[#allocation4 + $0xc8] sm:$0xff] %vm541_vm0, %v3776_v54 }
  0x67   : > { %568 = vst.msk [vmem:[#allocation4 + $0xd0] sm:$0xff] %vm541_vm0, %v3776_v54  ;;  %569 = vst.msk [vmem:[#allocation4 + $0xd8] sm:$0xff] %vm541_vm0, %v3776_v54 }
  0x68   : > { %570 = vst.msk [vmem:[#allocation4 + $0xe0] sm:$0xff] %vm541_vm0, %v3776_v54  ;;  %571 = vst.msk [vmem:[#allocation4 + $0xe8] sm:$0xff] %vm541_vm0, %v3776_v54 }
  0x69   : > { %572 = vst.msk [vmem:[#allocation4 + $0xf0] sm:$0xff] %vm541_vm0, %v3776_v54  ;;  %573 = vst.msk [vmem:[#allocation4 + $0xf8] sm:$0xff] %vm541_vm0, %v3776_v54 }
 0x12e   : > { %v3954_v37 = vpop.f32.mrb[0].mxu0 }
 0x12f   : > { %v3956_v38 = vpop.f32.mrb[1].mxu0  ;;  %v751_v39 = vsel %vm744_vm2, %v3954_v37, -inf }
 0x130   : > { %752 = vmax.xlane.f32.xlu1 %v751_v39  ;;  %v3960_v40 = vpop.f32.mrb[2].mxu0  ;;  %v745_v41 = vsel %vm744_vm2, %v3956_v38, -inf }
 0x131   : > { %746 = vmax.xlane.f32.xlu0 %v745_v41  ;;  %v3964_v42 = vpop.f32.mrb[3].mxu0  ;;  %v754_v43 = vsel %vm744_vm2, %v3960_v40, -inf }
 0x132   : > { %v748_v44 = vsel %vm744_vm2, %v3964_v42, -inf }
 0x134   : > { %755 = vmax.xlane.f32.xlu1 %v754_v43 }
 0x135   : > { %749 = vmax.xlane.f32.xlu0 %v748_v44 }
 0x136   : > { %v3970_v45 = vpop.f32.mrb[4].mxu0 }
 0x137   : > { %v3972_v46 = vpop.f32.mrb[5].mxu0  ;;  %v763_v51 = vsel %vm744_vm2, %v3970_v45, -inf }
 0x138   : > { %v3974_v47 = vpop.f32.mrb[6].mxu0  ;;  %v757_v48 = vsel %vm744_vm2, %v3972_v46, -inf }
 0x139   : > { %758 = vmax.xlane.f32.xlu0 %v757_v48  ;;  %v3978_v49 = vpop.f32.mrb[7].mxu0  ;;  %v766_v52 = vsel %vm744_vm2, %v3974_v47, -inf }
 0x13a   : > { %v760_v50 = vsel %vm744_vm2, %v3978_v49, -inf }
 0x13b   : > { %761 = vmax.xlane.f32.xlu1 %v760_v50 }
 0x13d   : > { %764 = vmax.xlane.f32.xlu0 %v763_v51 }
 0x13f   : > { %767 = vmax.xlane.f32.xlu1 %v766_v52 }
 0x1bd   : > { %v753_v57 = vpop.xlane.xlu1 %752 }
 0x1be   : > { %v4119_v58 = vmax.f32 %v4114_v55, %v753_v57  ;;  %v747_v59 = vpop.xlane.xlu0 %746 }
 0x1bf   : > { %v4122_v60 = vmax.f32 %v4116_v56, %v747_v59 }
 0x1c0   : > { %1093 = vst.msk [vmem:[#allocation2 + $0x10] sm:$0xff] %vm476_vm1, %v4119_v58  ;;  %813 = vperm.xlu1 %3457, %v4119_v58  }
 0x1c1   : > { %1091 = vst.msk [vmem:[#allocation2] sm:$0xff] %vm476_vm1, %v4122_v60  ;;  %v756_v1 = vpop.xlane.xlu1 %755  ;;  %803 = vperm.xlu0 %3456, %v4122_v60  }
 0x1c2   : > { %v4139_v2 = vmax.f32 %v4124_v61, %v756_v1  ;;  %v750_v3 = vpop.xlane.xlu0 %749 }
 0x1c3   : > { %v4142_v4 = vmax.f32 %v4131_v63, %v750_v3 }
 0x1c4   : > { %1094 = vst.msk [vmem:[#allocation2 + $0x18] sm:$0xff] %vm476_vm1, %v4139_v2 }
 0x1c5   : > { %1092 = vst.msk [vmem:[#allocation2 + $0x8] sm:$0xff] %vm476_vm1, %v4142_v4  ;;  %808 = vperm.xlu1 %3457, %v4142_v4   ;;  %1109 = vrot.lane.b32.xlu0 %v3875_v25, %s3777_s26 }
 0x1c6   : > { %v759_v8 = vpop.xlane.xlu0 %758 }
 0x1c7   : > { %v4163_v10 = vmax.f32 %v4148_v6, %v759_v8 }
 0x1c8   : > { %v762_v13 = vpop.xlane.xlu1 %761 }
 0x1c9   : > { %1095 = vst.msk [vmem:[#allocation2 + $0x20] sm:$0xff] %vm476_vm1, %v4163_v10  ;;  %v4175_v15 = vmax.f32 %v4157_v9, %v762_v13  ;;  %818 = vperm.xlu1 %3457, %v4139_v2   ;;  %1113 = vrot.lane.b32.xlu0 %v3901_v31, %s3777_s26 }
 0x1ca   : > { %v765_v16 = vpop.xlane.xlu0 %764 }
 0x1cb   : > { %1096 = vst.msk [vmem:[#allocation2 + $0x28] sm:$0xff] %vm476_vm1, %v4175_v15  ;;  %v4191_v20 = vmax.f32 %v4165_v11, %v765_v16 }
 0x1cc   : > { %v768_v21 = vpop.xlane.xlu1 %767 }
 0x1cd   : > { %1097 = vst.msk [vmem:[#allocation2 + $0x30] sm:$0xff] %vm476_vm1, %v4191_v20  ;;  %v4200_v23 = vmax.f32 %v4180_v17, %v768_v21  ;;  %833 = vperm.xlu1 %3457, %v4191_v20   ;;  %1101 = vrot.lane.b32.xlu0 %v3908_v33, %s3777_s26 }
 0x1cf   : > { %1098 = vst.msk [vmem:[#allocation2 + $0x38] sm:$0xff] %vm476_vm1, %v4200_v23 }
 0x1d1   : > { %823 = vperm.xlu1 %3457, %v4163_v10   ;;  %1105 = vrot.lane.b32.xlu0 %v3918_v35, %s3777_s26 }
 0x1d5   : > { %838 = vperm.xlu1 %3457, %v4200_v23  }
 0x1d9   : > { %828 = vperm.xlu1 %3457, %v4175_v15  }
 0x1dd   : > { %1107 = vrot.lane.b32.xlu1 %v3872_v24, %s3777_s26 }
 0x1e1   : > { %1111 = vrot.lane.b32.xlu1 %v3894_v29, %s3777_s26 }
 0x1e5   : > { %1099 = vrot.lane.b32.xlu1 %v3887_v27, %s3777_s26 }
 0x1e9   : > { %1103 = vrot.lane.b32.xlu1 %v3911_v34, %s3777_s26 }
 0x23f   : > { %v814_v32 = vpop.permute.xlu1 %813 }
 0x240   : > { %v804_v36 = vpop.permute.xlu0 %803  ;;  %v843_v41 = vsub.f32 %v3954_v37, %v814_v32 }
 0x241   : > { %v841_v39 = vsub.f32 %v3956_v38, %v804_v36 }
 0x242   : > { %v853_v51 = vmul.f32 1.442695, %v843_v41 }
 0x243   : > { %v849_v43 = vmul.f32 1.442695, %v841_v39 }
 0x244   : > { %v809_v44 = vpop.permute.xlu1 %808 }
 0x245   : > { %v842_v48 = vsub.f32 %v3964_v42, %v809_v44  ;;  %3530 = vpow2.f32 %v849_v43  ;;  %v1110_v43 = vpop.permute.xlu0 %1109 }
 0x247   : > { %v851_v50 = vmul.f32 1.442695, %v842_v48 }
 0x248   : > { %v819_v52 = vpop.permute.xlu1 %818 }
 0x249   : > { %3532 = vpow2.f32 %v851_v50  ;;  %v844_v53 = vsub.f32 %v3960_v40, %v819_v52 }
 0x24a   : > { %3534 = vpow2.f32 %v853_v51 }
 0x24b   : > { %v855_v54 = vmul.f32 1.442695, %v844_v53 }
 0x24c   : > { %v834_v57 = vpop.permute.xlu1 %833 }
 0x24d   : > { %3536 = vpow2.f32 %v855_v54  ;;  %v847_v59 = vsub.f32 %v3970_v45, %v834_v57 }
 0x24f   : > { %v4238_v1 = vpop.eup %3530  ;;  %v861_v3 = vmul.f32 1.442695, %v847_v59 }
 0x250   : > { %v824_v38 = vpop.permute.xlu1 %823 }
 0x251   : > { %v845_v42 = vsub.f32 %v3972_v46, %v824_v38  ;;  %3538 = vpow2.f32 %v861_v3  ;;  %v1114_v3 = vpop.permute.xlu0 %1113 }
 0x253   : > { %v4240_v37 = vpop.eup %3532  ;;  %v857_v32 = vmul.f32 1.442695, %v845_v42  ;;  %v1137_v42 = vsel %vm541_vm0, %v1114_v3, 0 }
 0x254   : > { %v839_v8 = vpop.permute.xlu1 %838  ;;  %v914_v13 = vpack.c.bf16 %v4240_v37, %v4238_v1  ;;  %v4246_v16 = vpop.eup %3534 }
 0x255   : > { %v848_v40 = vsub.f32 %v3974_v47, %v839_v8  ;;  %v1102_v8 = vpop.permute.xlu0 %1101 }
 0x256   : > { %3289 = vmatprep.mubr.msk.bf16.mxu1 %vm744_vm2, %v914_v13 }
 0x257   : > { %v4249_v21 = vpop.eup %3536  ;;  %v863_v45 = vmul.f32 1.442695, %v848_v40 }
 0x258   : > { %v829_v36 = vpop.permute.xlu1 %828  ;;  %v915_v39 = vpack.c.bf16 %v4249_v21, %v4246_v16 }
 0x259   : > { %3540 = vpow2.f32 %v863_v45  ;;  %v846_v46 = vsub.f32 %v3978_v49, %v829_v36  ;;  %v1131_v49 = vsel %vm541_vm0, %v1110_v43, 0  ;;  %v1106_v40 = vpop.permute.xlu0 %1105 }
 0x25a   : > { %3290 = vmatmul.mubr.msk.bf16.vlgmr.msra.gmra.mrb[0].mxu1 %vm744_vm2, %v915_v39  ;;  %3542 = vpow2.f32 %v857_v32 }
 0x25b   : > { %v859_v41 = vmul.f32 1.442695, %v846_v46  ;;  %v4258_v48 = vpop.eup %3538 }
 0x25c   : > { %v1108_v47 = vpop.permute.xlu1 %1107 }
 0x25d   : > { %3544 = vpow2.f32 %v859_v41  ;;  %3397 = vmatprep.subr.msk.bf16.mxu1 %vm541_vm0, %v1108_v47  ;;  %v1128_v44 = vsel %vm541_vm0, %v1108_v47, 0 }
 0x25e   : > { %3298 = vmatpush3.bf16.xpose.msra.mxu1 %v1128_v44 }
 0x25f   : > { %3398 = vmatprep.subr.msk.bf16.mxu1 %vm541_vm0, %v1110_v43 }
 0x260   : > { %v1112_v52 = vpop.permute.xlu1 %1111 }
 0x261   : > { %v1134_v38 = vsel %vm541_vm0, %v1112_v52, 0 }
 0x263   : > { %v4260_v50 = vpop.eup %3540 }
 0x264   : > { %v917_v51 = vpack.c.bf16 %v4260_v50, %v4258_v48  ;;  %v4265_v53 = vpop.eup %3542  ;;  %v1100_v59 = vpop.permute.xlu1 %1099 }
 0x266   : > { %3300 = vmatpush3.bf16.xpose.msra.mxu1 %v1131_v49 }
 0x267   : > { %v4267_v54 = vpop.eup %3544  ;;  %3399 = vmatprep.subr.msk.bf16.mxu1 %vm541_vm0, %v1112_v52 }
 0x268   : > { %v916_v57 = vpack.c.bf16 %v4267_v54, %v4265_v53  ;;  %v1104_v13 = vpop.permute.xlu1 %1103 }
 0x26a   : > { %3293 = vmatprep.mubr.msk.bf16.mxu1 %vm744_vm2, %v916_v57 }
 0x26b   : > { %3294 = vmatmul.mubr.msk.bf16.gmra.mrb[4].mxu1 %vm744_vm2, %v917_v51 }
 0x26c   : > { %3305 = vmatprep.mubr.msk.bf16.mxu1 %vm541_vm0, %v1100_v59 }
 0x26e   : > { %3302 = vmatpush3.bf16.xpose.msra.mxu1 %v1134_v38 }
 0x26f   : > { %3400 = vmatprep.subr.msk.bf16.mxu1 %vm541_vm0, %v1114_v3 }
 0x276   : > { %3304 = vmatpush3.bf16.xpose.msra.mxu1 %v1137_v42 }
 0x27d   : > { %3306 = vmatmul.mubr.msk.bf16.vlgmr.msra.gmra.mrb[8].mxu1 %vm541_vm0, %v1102_v8 }
 0x27e   : > { %3309 = vmatprep.mubr.msk.bf16.mxu1 %vm541_vm0, %v1104_v13 }
 0x285   : > { %3310 = vmatmul.mubr.msk.bf16.gmra.mrb[12].mxu1 %vm541_vm0, %v1106_v40 }
 0x32d   : > { %v4281_v45 = vpop.f32.mrb[0].mxu1 }
 0x32e   : > { %5311 = vst [vmem:[#allocation8_spill] sm:$0xff] %v4281_v45  ;;  %v4283_v32 = vpop.f32.mrb[1].mxu1 }
 0x32f   : > { %5312 = vst [vmem:[#allocation9_spill] sm:$0xff] %v4283_v32  ;;  %v4285_v36 = vpop.f32.mrb[2].mxu1 }
 0x330   : > { %5313 = vst [vmem:[#allocation10_spill] sm:$0xff] %v4285_v36  ;;  %v4287_v39 = vpop.f32.mrb[3].mxu1 }
 0x331   : > { %5314 = vst [vmem:[#allocation11_spill] sm:$0xff] %v4287_v39  ;;  %v4380_v39 = vld [vmem:[#allocation2 + $0x78] sm:$0xff] }
 0x332   : > { %5321 = vst [vmem:[#allocation18_spill] sm:$0xff] %v4380_v39 }
 0x33e   : > { %v4289_v46 = vpop.f32.mrb[4].mxu1 }
 0x33f   : > { %5315 = vst [vmem:[#allocation12_spill] sm:$0xff] %v4289_v46  ;;  %v4291_v41 = vpop.f32.mrb[5].mxu1  ;;  %v4363_v46 = vld [vmem:[#allocation2 + $0x68] sm:$0xff] }
 0x340   : > { %5316 = vst [vmem:[#allocation13_spill] sm:$0xff] %v4291_v41  ;;  %v4293_v47 = vpop.f32.mrb[6].mxu1  ;;  %5319 = vst [vmem:[#allocation16_spill] sm:$0xff] %v4363_v46 }
 0x341   : > { %5317 = vst [vmem:[#allocation14_spill] sm:$0xff] %v4293_v47  ;;  %v4295_v43 = vpop.f32.mrb[7].mxu1  ;;  %v4382_v47 = vld [vmem:[#allocation2 + $0x70] sm:$0xff] }
 0x342   : > { %5318 = vst [vmem:[#allocation15_spill] sm:$0xff] %v4295_v43  ;;  %5322 = vst [vmem:[#allocation19_spill] sm:$0xff] %v4382_v47 }
 0x350   : > { %v4297_v44 = vpop.f32.mrb[8].mxu1 }
 0x351   : > { %v4299_v49 = vpop.f32.mrb[9].mxu1  ;;  %v1228_v3 = vsel %vm744_vm2, %v4297_v44, -inf }
 0x352   : > { %v4301_v51 = vpop.f32.mrb[10].mxu1  ;;  %v1222_v52 = vsel %vm744_vm2, %v4299_v49, -inf }
 0x353   : > { %1223 = vmax.xlane.f32.xlu1 %v1222_v52  ;;  %v4305_v57 = vpop.f32.mrb[11].mxu1  ;;  %v1231_v38 = vsel %vm744_vm2, %v4301_v51, -inf }
 0x354   : > { %v1225_v59 = vsel %vm744_vm2, %v4305_v57, -inf }
 0x355   : > { %1226 = vmax.xlane.f32.xlu0 %v1225_v59 }
 0x357   : > { %1232 = vmax.xlane.f32.xlu1 %v1231_v38 }
 0x358   : > { %v4313_v42 = vpop.f32.mrb[12].mxu1 }
 0x359   : > { %1229 = vmax.xlane.f32.xlu0 %v1228_v3  ;;  %v4315_v8 = vpop.f32.mrb[13].mxu1  ;;  %v1240_v3 = vsel %vm744_vm2, %v4313_v42, -inf }
 0x35a   : > { %v4317_v13 = vpop.f32.mrb[14].mxu1  ;;  %v1234_v40 = vsel %vm744_vm2, %v4315_v8, -inf }
 0x35b   : > { %v4321_v52 = vpop.f32.mrb[15].mxu1  ;;  %v1243_v38 = vsel %vm744_vm2, %v4317_v13, -inf }
 0x35c   : > { %v1237_v59 = vsel %vm744_vm2, %v4321_v52, -inf }
 0x35d   : > { %1238 = vmax.xlane.f32.xlu1 %v1237_v59  ;;  %1235 = vmax.xlane.f32.xlu0 %v1234_v40 }
 0x361   : > { %1244 = vmax.xlane.f32.xlu1 %v1243_v38  ;;  %1241 = vmax.xlane.f32.xlu0 %v1240_v3  ;;  %v4346_v3 = vld [vmem:[#allocation2 + $0x50] sm:$0xff] }
 0x3e0   : > { %v1224_v19 = vpop.xlane.xlu1 %1223 }
 0x3e1   : > { %v4334_v22 = vmax.f32 %v4329_v28, %v1224_v19  ;;  %v4365_v19 = vld [vmem:[#allocation2 + $0x60] sm:$0xff] }
 0x3e2   : > { %v1227_v0 = vpop.xlane.xlu0 %1226 }
 0x3e3   : > { %1556 = vst.msk [vmem:[#allocation2 + $0x40] sm:$0xff] %vm476_vm1, %v4334_v22  ;;  %v4343_v59 = vmax.f32 %v4331_v5, %v1227_v0  ;;  %1280 = vperm.xlu0 %3456, %v4334_v22  }
 0x3e4   : > { %v1233_v38 = vpop.xlane.xlu1 %1232 }
 0x3e5   : > { %1557 = vst.msk [vmem:[#allocation2 + $0x48] sm:$0xff] %vm476_vm1, %v4343_v59  ;;  %v4353_v62 = vmax.f32 %v4336_v14, %v1233_v38 }
 0x3e6   : > { %v1230_v40 = vpop.xlane.xlu0 %1229 }
 0x3e7   : > { %1559 = vst.msk [vmem:[#allocation2 + $0x58] sm:$0xff] %vm476_vm1, %v4353_v62  ;;  %v4360_v0 = vmax.f32 %v4346_v3, %v1230_v40  ;;  %1295 = vperm.xlu0 %3456, %v4353_v62  }
 0x3e9   : > { %1558 = vst.msk [vmem:[#allocation2 + $0x50] sm:$0xff] %vm476_vm1, %v4360_v0  ;;  %1290 = vperm.xlu1 %3457, %v4360_v0  }
 0x3ea   : > { %v1239_v7 = vpop.xlane.xlu1 %1238  ;;  %v1236_v41 = vpop.xlane.xlu0 %1235 }
 0x3eb   : > { %1396 = vrot.lane.b32.xlu0 %v4184_v18, %s3777_s26  ;;  %v4375_v40 = vmax.f32 %v4363_v46, %v1239_v7  ;;  %v4378_v45 = vmax.f32 %v4365_v19, %v1236_v41  ;;  %v4536_v46 = vld [vmem:[#allocation2 + $0x98] sm:$0xff] }
 0x3ec   : > { %5338 = vst [vmem:[#allocation35_spill] sm:$0xff] %v4536_v46 }
 0x3ed   : > { %5320 = vst [vmem:[#allocation17_spill] sm:$0xff] %v4375_v40  ;;  %1285 = vperm.xlu1 %3457, %v4343_v59   ;;  %1561 = vst.msk [vmem:[#allocation2 + $0x68] sm:$0xff] %vm476_vm1, %v4375_v40 }
 0x3ee   : > { %1560 = vst.msk [vmem:[#allocation2 + $0x60] sm:$0xff] %vm476_vm1, %v4378_v45  ;;  %v1245_v7 = vpop.xlane.xlu1 %1244  ;;  %v1242_v41 = vpop.xlane.xlu0 %1241 }
 0x3ef   : > { %1400 = vrot.lane.b32.xlu0 %v4218_v30, %s3777_s26  ;;  %v4396_v36 = vmax.f32 %v4380_v39, %v1245_v7  ;;  %v4399_v32 = vmax.f32 %v4382_v47, %v1242_v41 }
 0x3f1   : > { %5323 = vst [vmem:[#allocation20_spill] sm:$0xff] %v4396_v36  ;;  %5324 = vst [vmem:[#allocation21_spill] sm:$0xff] %v4399_v32  ;;  %1394 = vrot.lane.b32.xlu1 %v4168_v12, %s3777_s26 }
 0x3f2   : > { %1563 = vst.msk [vmem:[#allocation2 + $0x78] sm:$0xff] %vm476_vm1, %v4396_v36  ;;  %1562 = vst.msk [vmem:[#allocation2 + $0x70] sm:$0xff] %vm476_vm1, %v4399_v32 }
 0x3f3   : > { %1305 = vperm.xlu0 %3456, %v4375_v40  }
 0x3f5   : > { %1398 = vrot.lane.b32.xlu1 %v4206_v26, %s3777_s26 }
 0x3f7   : > { %1315 = vperm.xlu0 %3456, %v4396_v36  }
 0x3f9   : > { %1310 = vperm.xlu1 %3457, %v4399_v32  }
 0x3fb   : > { %1574 = vrot.lane.b32.xlu0 %v3875_v25, %s3778_s28 }
 0x3fd   : > { %1300 = vperm.xlu1 %3457, %v4378_v45  }
 0x3ff   : > { %1578 = vrot.lane.b32.xlu0 %v3901_v31, %s3778_s28 }
 0x401   : > { %1572 = vrot.lane.b32.xlu1 %v3872_v24, %s3778_s28 }
 0x403   : > { %1566 = vrot.lane.b32.xlu0 %v3908_v33, %s3778_s28 }
 0x405   : > { %1576 = vrot.lane.b32.xlu1 %v3894_v29, %s3778_s28 }
 0x407   : > { %1570 = vrot.lane.b32.xlu0 %v3918_v35, %s3778_s28 }
 0x409   : > { %1564 = vrot.lane.b32.xlu1 %v3887_v27, %s3778_s28 }
 0x40d   : > { %1568 = vrot.lane.b32.xlu1 %v3911_v34, %s3778_s28 }
 0x462   : > { %v1281_v25 = vpop.permute.xlu0 %1280 }
 0x463   : > { %v1318_v24 = vsub.f32 %v4299_v49, %v1281_v25 }
 0x465   : > { %v1326_v32 = vmul.f32 1.442695, %v1318_v24 }
 0x466   : > { %v1296_v31 = vpop.permute.xlu0 %1295 }
 0x467   : > { %v1321_v7 = vsub.f32 %v4301_v51, %v1296_v31 }
 0x468   : > { %v1291_v41 = vpop.permute.xlu1 %1290 }
 0x469   : > { %v1332_v33 = vmul.f32 1.442695, %v1321_v7  ;;  %v1320_v43 = vsub.f32 %v4297_v44, %v1291_v41 }
 0x46a   : > { %v1397_v29 = vpop.permute.xlu0 %1396 }
 0x46b   : > { %v1330_v38 = vmul.f32 1.442695, %v1320_v43  ;;  %3546 = vpow2.f32 %v1332_v33 }
 0x46c   : > { %v1286_v35 = vpop.permute.xlu1 %1285 }
 0x46d   : > { %3548 = vpow2.f32 %v1330_v38  ;;  %v1319_v27 = vsub.f32 %v4305_v57, %v1286_v35 }
 0x46e   : > { %v1401_v47 = vpop.permute.xlu0 %1400  ;;  %3550 = vpow2.f32 %v1326_v32 }
 0x46f   : > { %v1328_v34 = vmul.f32 1.442695, %v1319_v27 }
 0x470   : > { %v1395_v36 = vpop.permute.xlu1 %1394 }
 0x471   : > { %3552 = vpow2.f32 %v1328_v34  ;;  %3313 = vmatprep.subr.bf16.mxu0 %v1395_v36 }
 0x472   : > { %v1306_v51 = vpop.permute.xlu0 %1305  ;;  %3314 = vmatpush3.bf16.msra.mxu0 %v1395_v36 }
 0x473   : > { %3315 = vmatprep.subr.bf16.mxu0 %v1397_v29  ;;  %v1323_v32 = vsub.f32 %v4321_v52, %v1306_v51 }
 0x474   : > { %v1399_v49 = vpop.permute.xlu1 %1398 }
 0x475   : > { %v4437_v25 = vpop.eup %3546 }
 0x476   : > { %v1316_v44 = vpop.permute.xlu0 %1315  ;;  %3316 = vmatpush3.bf16.msra.mxu0 %v1397_v29  ;;  %v1336_v29 = vmul.f32 1.442695, %v1323_v32 }
 0x477   : > { %v4439_v43 = vpop.eup %3548  ;;  %v1325_v38 = vsub.f32 %v4317_v13, %v1316_v44  ;;  %3317 = vmatprep.subr.bf16.mxu0 %v1399_v49 }
 0x478   : > { %v1391_v57 = vpack.c.bf16 %v4437_v25, %v4439_v43  ;;  %v1311_v31 = vpop.permute.xlu1 %1310  ;;  %v4446_v24 = vpop.eup %3550 }
 0x479   : > { %v1340_v7 = vmul.f32 1.442695, %v1325_v38  ;;  %v1324_v36 = vsub.f32 %v4313_v42, %v1311_v31 }
 0x47a   : > { %3318 = vmatpush3.bf16.msra.mxu0 %v1399_v49  ;;  %v1575_v51 = vpop.permute.xlu0 %1574 }
 0x47b   : > { %v4448_v41 = vpop.eup %3552  ;;  %v1338_v33 = vmul.f32 1.442695, %v1324_v36  ;;  %3319 = vmatprep.subr.bf16.mxu0 %v1401_v47  ;;  %3554 = vpow2.f32 %v1340_v7  ;;  %v1596_v31 = vsel %vm541_vm0, %v1575_v51, 0 }
 0x47c   : > { %v1301_v13 = vpop.permute.xlu1 %1300  ;;  %v1390_v35 = vpack.c.bf16 %v4448_v41, %v4446_v24 }
 0x47d   : > { %3556 = vpow2.f32 %v1338_v33  ;;  %v1322_v52 = vsub.f32 %v4315_v8, %v1301_v13 }
 0x47e   : > { %3320 = vmatpush3.bf16.msra.mxu0 %v1401_v47  ;;  %3321 = vmatprep.mubr.msk.bf16.mxu0 %vm744_vm2, %v1390_v35  ;;  %3558 = vpow2.f32 %v1336_v29  ;;  %v1579_v33 = vpop.permute.xlu0 %1578 }
 0x47f   : > { %v1334_v42 = vmul.f32 1.442695, %v1322_v52  ;;  %v1602_v29 = vsel %vm541_vm0, %v1579_v33, 0 }
 0x480   : > { %v1573_v27 = vpop.permute.xlu1 %1572 }
 0x481   : > { %3560 = vpow2.f32 %v1334_v42  ;;  %3322 = vmatmul.mubr.msk.bf16.vlgmr.msra.gmra.mrb[8].mxu0 %vm744_vm2, %v1391_v57  ;;  %3401 = vmatprep.subr.msk.bf16.mxu0 %vm541_vm0, %v1573_v27  ;;  %v1593_v34 = vsel %vm541_vm0, %v1573_v27, 0 }
 0x482   : > { %v1567_v13 = vpop.permute.xlu0 %1566 }
 0x484   : > { %v1577_v8 = vpop.permute.xlu1 %1576 }
 0x485   : > { %v4457_v49 = vpop.eup %3554  ;;  %v1599_v36 = vsel %vm541_vm0, %v1577_v8, 0 }
 0x486   : > { %5325 = vst [vmem:[#allocation22_spill] sm:$0xff] %v4457_v49  ;;  %v1571_v52 = vpop.permute.xlu0 %1570 }
 0x487   : > { %v4459_v44 = vpop.eup %3556  ;;  %3330 = vmatpush3.bf16.xpose.msra.mxu0 %v1593_v34 }
 0x488   : > { %3402 = vmatprep.subr.msk.bf16.mxu0 %vm541_vm0, %v1575_v51  ;;  %v1393_v47 = vpack.c.bf16 %v4457_v49, %v4459_v44  ;;  %v4464_v38 = vpop.eup %3558  ;;  %v1565_v7 = vpop.permute.xlu1 %1564 }
 0x489   : > { %5326 = vst [vmem:[#allocation23_spill] sm:$0xff] %v4464_v38 }
 0x48b   : > { %v4466_v32 = vpop.eup %3560 }
 0x48c   : > { %v1392_v57 = vpack.c.bf16 %v4464_v38, %v4466_v32  ;;  %v1569_v35 = vpop.permute.xlu1 %1568  ;;  %v4582_v38 = vld [vmem:[#allocation2 + $0xb0] sm:$0xff] }
 0x48e   : > { %3325 = vmatprep.mubr.msk.bf16.mxu0 %vm744_vm2, %v1392_v57 }
 0x48f   : > { %3326 = vmatmul.mubr.msk.bf16.gmra.mrb[12].mxu0 %vm744_vm2, %v1393_v47 }
 0x490   : > { %3332 = vmatpush3.bf16.xpose.msra.mxu0 %v1596_v31  ;;  %3337 = vmatprep.mubr.msk.bf16.mxu0 %vm541_vm0, %v1565_v7 }
 0x491   : > { %3403 = vmatprep.subr.msk.bf16.mxu0 %vm541_vm0, %v1577_v8 }
 0x498   : > { %3334 = vmatpush3.bf16.xpose.msra.mxu0 %v1599_v36 }
 0x499   : > { %3404 = vmatprep.subr.msk.bf16.mxu0 %vm541_vm0, %v1579_v33 }
 0x4a0   : > { %3336 = vmatpush3.bf16.xpose.msra.mxu0 %v1602_v29 }
 0x4a7   : > { %3338 = vmatmul.mubr.msk.bf16.vlgmr.msra.gmra.mrb[16].mxu0 %vm541_vm0, %v1567_v13 }
 0x4a8   : > { %3341 = vmatprep.mubr.msk.bf16.mxu0 %vm541_vm0, %v1569_v35 }
 0x4af   : > { %3342 = vmatmul.mubr.msk.bf16.gmra.mrb[20].mxu0 %vm541_vm0, %v1571_v52 }
 0x554   : > { %v4481_v42 = vpop.f32.mrb[8].mxu0 }
 0x555   : > { %5327 = vst [vmem:[#allocation24_spill] sm:$0xff] %v4481_v42  ;;  %v4483_v27 = vpop.f32.mrb[9].mxu0 }
 0x556   : > { %5328 = vst [vmem:[#allocation25_spill] sm:$0xff] %v4483_v27  ;;  %v4485_v34 = vpop.f32.mrb[10].mxu0  ;;  %v4531_v27 = vld [vmem:[#allocation2 + $0x88] sm:$0xff] }
 0x557   : > { %5329 = vst [vmem:[#allocation26_spill] sm:$0xff] %v4485_v34  ;;  %v4487_v51 = vpop.f32.mrb[11].mxu0  ;;  %5336 = vst [vmem:[#allocation33_spill] sm:$0xff] %v4531_v27 }
 0x558   : > { %5330 = vst [vmem:[#allocation27_spill] sm:$0xff] %v4487_v51 }
 0x562   : > { %v4489_v47 = vpop.f32.mrb[12].mxu0 }
 0x563   : > { %5331 = vst [vmem:[#allocation28_spill] sm:$0xff] %v4489_v47  ;;  %v4491_v8 = vpop.f32.mrb[13].mxu0 }
 0x564   : > { %5332 = vst [vmem:[#allocation29_spill] sm:$0xff] %v4491_v8  ;;  %v4493_v57 = vpop.f32.mrb[14].mxu0 }
 0x565   : > { %5333 = vst [vmem:[#allocation30_spill] sm:$0xff] %v4493_v57  ;;  %v4495_v31 = vpop.f32.mrb[15].mxu0 }
 0x566   : > { %5334 = vst [vmem:[#allocation31_spill] sm:$0xff] %v4495_v31  ;;  %v4529_v31 = vld [vmem:[#allocation2 + $0x80] sm:$0xff] }
 0x567   : > { %5335 = vst [vmem:[#allocation32_spill] sm:$0xff] %v4529_v31 }
 0x57a   : > { %v4497_v7 = vpop.f32.mrb[16].mxu0 }
 0x57b   : > { %v4499_v36 = vpop.f32.mrb[17].mxu0  ;;  %v1693_v47 = vsel %vm744_vm2, %v4497_v7, -inf }
 0x57c   : > { %v4501_v33 = vpop.f32.mrb[18].mxu0  ;;  %v1687_v29 = vsel %vm744_vm2, %v4499_v36, -inf }
 0x57d   : > { %1688 = vmax.xlane.f32.xlu1 %v1687_v29  ;;  %v4505_v13 = vpop.f32.mrb[19].mxu0  ;;  %v1696_v52 = vsel %vm744_vm2, %v4501_v33, -inf }
 0x57e   : > { %v1690_v35 = vsel %vm744_vm2, %v4505_v13, -inf }
 0x57f   : > { %1691 = vmax.xlane.f32.xlu0 %v1690_v35 }
 0x581   : > { %1697 = vmax.xlane.f32.xlu1 %v1696_v52 }
 0x582   : > { %v4513_v8 = vpop.f32.mrb[20].mxu0 }
 0x583   : > { %1694 = vmax.xlane.f32.xlu0 %v1693_v47  ;;  %v4515_v42 = vpop.f32.mrb[21].mxu0  ;;  %v1705_v47 = vsel %vm744_vm2, %v4513_v8, -inf }
 0x584   : > { %v4517_v51 = vpop.f32.mrb[22].mxu0  ;;  %v1699_v29 = vsel %vm744_vm2, %v4515_v42, -inf }
 0x585   : > { %v4521_v57 = vpop.f32.mrb[23].mxu0  ;;  %v1708_v52 = vsel %vm744_vm2, %v4517_v51, -inf }
 0x586   : > { %v1702_v35 = vsel %vm744_vm2, %v4521_v57, -inf }
 0x587   : > { %1703 = vmax.xlane.f32.xlu1 %v1702_v35  ;;  %1700 = vmax.xlane.f32.xlu0 %v1699_v29 }
 0x58b   : > { %1709 = vmax.xlane.f32.xlu1 %v1708_v52  ;;  %1706 = vmax.xlane.f32.xlu0 %v1705_v47  ;;  %v4546_v47 = vld [vmem:[#allocation2 + $0x90] sm:$0xff] }
 0x60a   : > { %v1689_v34 = vpop.xlane.xlu1 %1688 }
 0x60b   : > { %v4534_v39 = vmax.f32 %v4529_v31, %v1689_v34  ;;  %v4565_v34 = vld [vmem:[#allocation2 + $0xa0] sm:$0xff] }
 0x60c   : > { %v1692_v40 = vpop.xlane.xlu0 %1691  ;;  %5341 = vst [vmem:[#allocation38_spill] sm:$0xff] %v4565_v34 }
 0x60d   : > { %5337 = vst [vmem:[#allocation34_spill] sm:$0xff] %v4534_v39  ;;  %2021 = vst.msk [vmem:[#allocation2 + $0x80] sm:$0xff] %vm476_vm1, %v4534_v39  ;;  %v4543_v35 = vmax.f32 %v4531_v27, %v1692_v40  ;;  %1745 = vperm.xlu0 %3456, %v4534_v39   ;;  %v4563_v39 = vld [vmem:[#allocation2 + $0xa8] sm:$0xff] }
 0x60e   : > { %v1698_v52 = vpop.xlane.xlu1 %1697 }
 0x60f   : > { %5339 = vst [vmem:[#allocation36_spill] sm:$0xff] %v4543_v35  ;;  %2022 = vst.msk [vmem:[#allocation2 + $0x88] sm:$0xff] %vm476_vm1, %v4543_v35  ;;  %v4553_v49 = vmax.f32 %v4536_v46, %v1698_v52  ;;  %v4580_v46 = vld [vmem:[#allocation2 + $0xb8] sm:$0xff] }
 0x610   : > { %v1695_v29 = vpop.xlane.xlu0 %1694 }
 0x611   : > { %5340 = vst [vmem:[#allocation37_spill] sm:$0xff] %v4553_v49  ;;  %2024 = vst.msk [vmem:[#allocation2 + $0x98] sm:$0xff] %vm476_vm1, %v4553_v49  ;;  %v4560_v40 = vmax.f32 %v4546_v47, %v1695_v29  ;;  %1760 = vperm.xlu0 %3456, %v4553_v49  }
 0x613   : > { %2023 = vst.msk [vmem:[#allocation2 + $0x90] sm:$0xff] %vm476_vm1, %v4560_v40  ;;  %1755 = vperm.xlu1 %3457, %v4560_v40  }
 0x614   : > { %v1704_v31 = vpop.xlane.xlu1 %1703  ;;  %v1701_v27 = vpop.xlane.xlu0 %1700 }
 0x615   : > { %1861 = vrot.lane.b32.xlu0 %v4184_v18, %s3778_s28  ;;  %v4575_v29 = vmax.f32 %v4563_v39, %v1704_v31  ;;  %v4578_v49 = vmax.f32 %v4565_v34, %v1701_v27  ;;  %v3727_v18 = vld [vmem:[%s3884_s12 + $0x18] sm:$0xff]   ;;  %v3728_v34 = vld [vmem:[%s3884_s12] sm:$0xff]  }
 0x617   : > { %1750 = vperm.xlu1 %3457, %v4543_v35   ;;  %2026 = vst.msk [vmem:[#allocation2 + $0xa8] sm:$0xff] %vm476_vm1, %v4575_v29  ;;  %2025 = vst.msk [vmem:[#allocation2 + $0xa0] sm:$0xff] %vm476_vm1, %v4578_v49 }
 0x618   : > { %v1710_v27 = vpop.xlane.xlu1 %1709  ;;  %v1707_v31 = vpop.xlane.xlu0 %1706 }
 0x619   : > { %1865 = vrot.lane.b32.xlu0 %v4218_v30, %s3778_s28  ;;  %v4596_v35 = vmax.f32 %v4580_v46, %v1710_v27  ;;  %v4599_v52 = vmax.f32 %v4582_v38, %v1707_v31  ;;  %v3723_v27 = vld [vmem:[%s3869_s25 + $0x18] sm:$0xff]   ;;  %v3724_v31 = vld [vmem:[%s3869_s25] sm:$0xff]   ;;  %v3725_v30 = vld [vmem:[%s3884_s12 + $0x8] sm:$0xff]  }
 0x61b   : > { %1859 = vrot.lane.b32.xlu1 %v4168_v12, %s3778_s28  ;;  %2028 = vst.msk [vmem:[#allocation2 + $0xb8] sm:$0xff] %vm476_vm1, %v4596_v35  ;;  %2027 = vst.msk [vmem:[#allocation2 + $0xb0] sm:$0xff] %vm476_vm1, %v4599_v52  ;;  %v3722_v12 = vld [vmem:[%s3869_s25 + $0x8] sm:$0xff]  }
 0x61d   : > { %1770 = vperm.xlu0 %3456, %v4575_v29  }
 0x61f   : > { %1863 = vrot.lane.b32.xlu1 %v4206_v26, %s3778_s28  ;;  %v3726_v26 = vld [vmem:[%s3869_s25 + $0x10] sm:$0xff]  }
 0x621   : > { %1780 = vperm.xlu0 %3456, %v4596_v35  }
 0x623   : > { %1775 = vperm.xlu1 %3457, %v4599_v52  }
 0x625   : > { %2039 = vrot.lane.b32.xlu0 %v3722_v12, %s3779_s29  ;;  %v3729_v12 = vld [vmem:[%s3884_s12 + $0x10] sm:$0xff]  }
 0x627   : > { %1765 = vperm.xlu1 %3457, %v4578_v49  }
 0x629   : > { %2043 = vrot.lane.b32.xlu0 %v3723_v27, %s3779_s29  ;;  %v876_v27 = vsel %vm744_vm2, %v4240_v37, 0.0  ;;  %v882_v37 = vsel %vm744_vm2, %v4249_v21, 0.0  ;;  %v1362_v21 = vsel %vm744_vm2, %v4466_v32, 0.0 }
 0x62b   : > { %2037 = vrot.lane.b32.xlu1 %v3724_v31, %s3779_s29  ;;  %v879_v31 = vsel %vm744_vm2, %v4246_v16, 0.0  ;;  %v1353_v16 = vsel %vm744_vm2, %v4448_v41, 0.0  ;;  %v1350_v41 = vsel %vm744_vm2, %v4446_v24, 0.0 }
 0x62d   : > { %2031 = vrot.lane.b32.xlu0 %v3725_v30, %s3779_s29  ;;  %v885_v30 = vsel %vm744_vm2, %v4265_v53, 0.0  ;;  %v888_v53 = vsel %vm744_vm2, %v4267_v54, 0.0  ;;  %v1359_v54 = vsel %vm744_vm2, %v4437_v25, 0.0 }
 0x62f   : > { %2041 = vrot.lane.b32.xlu1 %v3726_v26, %s3779_s29 }
 0x631   : > { %2035 = vrot.lane.b32.xlu0 %v3727_v18, %s3779_s29  ;;  %v873_v18 = vsel %vm744_vm2, %v4238_v1, 0.0  ;;  %v1356_v1 = vsel %vm744_vm2, %v4439_v43, 0.0 }
 0x633   : > { %2029 = vrot.lane.b32.xlu1 %v3728_v34, %s3779_s29  ;;  %v891_v34 = vsel %vm744_vm2, %v4258_v48, 0.0  ;;  %v894_v48 = vsel %vm744_vm2, %v4260_v50, 0.0 }
 0x637   : > { %2033 = vrot.lane.b32.xlu1 %v3729_v12, %s3779_s29 }
 0x650   : > { %877 = vadd.xlane.f32.xlu0 %v876_v27 }
 0x654   : > { %880 = vadd.xlane.f32.xlu0 %v879_v31 }
 0x658   : > { %886 = vadd.xlane.f32.xlu0 %v885_v30 }
 0x65b   : > { %874 = vadd.xlane.f32.xlu1 %v873_v18 }
 0x65c   : > { %892 = vadd.xlane.f32.xlu0 %v891_v34 }
 0x65f   : > { %883 = vadd.xlane.f32.xlu1 %v882_v37 }
 0x660   : > { %1354 = vadd.xlane.f32.xlu0 %v1353_v16 }
 0x663   : > { %889 = vadd.xlane.f32.xlu1 %v888_v53 }
 0x664   : > { %1357 = vadd.xlane.f32.xlu0 %v1356_v1 }
 0x667   : > { %895 = vadd.xlane.f32.xlu1 %v894_v48 }
 0x668   : > { %1363 = vadd.xlane.f32.xlu0 %v1362_v21 }
 0x66b   : > { %1351 = vadd.xlane.f32.xlu1 %v1350_v41 }
 0x66f   : > { %1360 = vadd.xlane.f32.xlu1 %v1359_v54 }
 0x68c   : > { %v1746_v26 = vpop.permute.xlu0 %1745 }
 0x68d   : > { %v1783_v27 = vsub.f32 %v4499_v36, %v1746_v26 }
 0x68f   : > { %v1791_v34 = vmul.f32 1.442695, %v1783_v27 }
 0x690   : > { %v1761_v12 = vpop.permute.xlu0 %1760 }
 0x691   : > { %v1786_v43 = vsub.f32 %v4501_v33, %v1761_v12 }
 0x692   : > { %v1756_v50 = vpop.permute.xlu1 %1755 }
 0x693   : > { %v1797_v31 = vmul.f32 1.442695, %v1786_v43  ;;  %v1785_v30 = vsub.f32 %v4497_v7, %v1756_v50 }
 0x694   : > { %v1862_v32 = vpop.permute.xlu0 %1861 }
 0x695   : > { %v1795_v18 = vmul.f32 1.442695, %v1785_v30  ;;  %3562 = vpow2.f32 %v1797_v31 }
 0x696   : > { %v1751_v24 = vpop.permute.xlu1 %1750 }
 0x697   : > { %3564 = vpow2.f32 %v1795_v18  ;;  %v1784_v37 = vsub.f32 %v4505_v13, %v1751_v24 }
 0x698   : > { %v1866_v25 = vpop.permute.xlu0 %1865  ;;  %3566 = vpow2.f32 %v1791_v34 }
 0x699   : > { %v1793_v16 = vmul.f32 1.442695, %v1784_v37 }
 0x69a   : > { %v1860_v53 = vpop.permute.xlu1 %1859 }
 0x69b   : > { %3568 = vpow2.f32 %v1793_v16  ;;  %3345 = vmatprep.subr.bf16.mxu1 %v1860_v53 }
 0x69c   : > { %v1771_v33 = vpop.permute.xlu0 %1770  ;;  %3346 = vmatpush3.bf16.msra.mxu1 %v1860_v53 }
 0x69d   : > { %3347 = vmatprep.subr.bf16.mxu1 %v1862_v32  ;;  %v1788_v41 = vsub.f32 %v4521_v57, %v1771_v33 }
 0x69e   : > { %v1864_v36 = vpop.permute.xlu1 %1863 }
 0x69f   : > { %v4663_v1 = vpop.eup %3562  ;;  %v1801_v31 = vmul.f32 1.442695, %v1788_v41 }
 0x6a0   : > { %v1781_v7 = vpop.permute.xlu0 %1780  ;;  %3348 = vmatpush3.bf16.msra.mxu1 %v1862_v32 }
 0x6a1   : > { %v4665_v48 = vpop.eup %3564  ;;  %v1790_v21 = vsub.f32 %v4517_v51, %v1781_v7  ;;  %3349 = vmatprep.subr.bf16.mxu1 %v1864_v36 }
 0x6a2   : > { %v1856_v13 = vpack.c.bf16 %v4663_v1, %v4665_v48  ;;  %v1776_v54 = vpop.permute.xlu1 %1775  ;;  %v4672_v43 = vpop.eup %3566 }
 0x6a3   : > { %v1805_v26 = vmul.f32 1.442695, %v1790_v21  ;;  %v1789_v12 = vsub.f32 %v4513_v8, %v1776_v54  ;;  %v5342_v54 = vsub.f32 %v4131_v63, %v4142_v4  ;;  %v5345_v63 = vsub.f32 %v4116_v56, %v4122_v60 }
 0x6a4   : > { %3350 = vmatpush3.bf16.msra.mxu1 %v1864_v36  ;;  %v2040_v34 = vpop.permute.xlu0 %2039  ;;  %v5348_v56 = vsub.f32 %v4331_v5, %v4343_v59 }
 0x6a5   : > { %v4674_v27 = vpop.eup %3568  ;;  %v1803_v50 = vmul.f32 1.442695, %v1789_v12  ;;  %3351 = vmatprep.subr.bf16.mxu1 %v1866_v25  ;;  %3570 = vpow2.f32 %v1805_v26  ;;  %v2061_v36 = vsel %vm541_vm0, %v2040_v34, 0  ;;  %v787_v26 = vmul.f32 1.442695, %v5342_v54 }
 0x6a6   : > { %v1766_v51 = vpop.permute.xlu1 %1765  ;;  %v1855_v30 = vpack.c.bf16 %v4674_v27, %v4672_v43  ;;  %v785_v4 = vmul.f32 1.442695, %v5345_v63  ;;  %v1264_v60 = vmul.f32 1.442695, %v5348_v56  ;;  %v739_v63 = vld [vmem:[#allocation3 + $0x18] sm:$0xff] }
 0x6a7   : > { %3572 = vpow2.f32 %v1803_v50  ;;  %v1787_v57 = vsub.f32 %v4515_v42, %v1766_v51  ;;  %v5343_v50 = vsub.f32 %v4114_v55, %v4119_v58  ;;  %v5346_v55 = vsub.f32 %v4165_v11, %v4191_v20  ;;  %v738_v20 = vld [vmem:[#allocation3 + $0x10] sm:$0xff] }
 0x6a8   : > { %3352 = vmatpush3.bf16.msra.mxu1 %v1866_v25  ;;  %3353 = vmatprep.mubr.msk.bf16.mxu1 %vm744_vm2, %v1855_v30  ;;  %3574 = vpow2.f32 %v1801_v31  ;;  %v5344_v30 = vsub.f32 %v4148_v6, %v4163_v10  ;;  %v5347_v6 = vsub.f32 %v4124_v61, %v4139_v2  ;;  %v5350_v61 = vsub.f32 %v4346_v3, %v4360_v0 }
 0x6a9   : > { %v1799_v8 = vmul.f32 1.442695, %v1787_v57  ;;  %v789_v31 = vmul.f32 1.442695, %v5343_v50  ;;  %v797_v58 = vmul.f32 1.442695, %v5346_v55 }
 0x6aa   : > { %v2038_v32 = vpop.permute.xlu1 %2037  ;;  %v793_v57 = vmul.f32 1.442695, %v5344_v30  ;;  %v791_v10 = vmul.f32 1.442695, %v5347_v6  ;;  %v1266_v2 = vmul.f32 1.442695, %v5350_v61 }
 0x6ab   : > { %3576 = vpow2.f32 %v1799_v8  ;;  %3354 = vmatmul.mubr.msk.bf16.vlgmr.msra.gmra.mrb[16].mxu1 %vm744_vm2, %v1856_v13  ;;  %3405 = vmatprep.subr.msk.bf16.mxu1 %vm541_vm0, %v2038_v32  ;;  %v2058_v18 = vsel %vm541_vm0, %v2038_v32, 0  ;;  %v2044_v13 = vpop.permute.xlu0 %2043 }
 0x6ac   : > { %v2067_v41 = vsel %vm541_vm0, %v2044_v13, 0  ;;  %3578 = vpow2.f32 %v787_v26  ;;  %v736_v26 = vld [vmem:[#allocation3] sm:$0xff] }
 0x6ad   : > { %3580 = vpow2.f32 %v789_v31  ;;  %v742_v31 = vld [vmem:[#allocation3 + $0x30] sm:$0xff] }
 0x6ae   : > { %v2042_v25 = vpop.permute.xlu1 %2041  ;;  %3582 = vpow2.f32 %v793_v57 }
 0x6af   : > { %v4683_v24 = vpop.eup %3570  ;;  %v2064_v21 = vsel %vm541_vm0, %v2042_v25, 0  ;;  %v2032_v12 = vpop.permute.xlu0 %2031  ;;  %3584 = vpow2.f32 %v785_v4 }
 0x6b0   : > { %3586 = vpow2.f32 %v797_v58  ;;  %v1215_v58 = vld [vmem:[#allocation3 + $0x48] sm:$0xff] }
 0x6b1   : > { %v4685_v37 = vpop.eup %3572  ;;  %3362 = vmatpush3.bf16.xpose.msra.mxu1 %v2058_v18  ;;  %v737_v18 = vld [vmem:[#allocation3 + $0x8] sm:$0xff]  ;;  %3588 = vpow2.f32 %v791_v10 }
 0x6b2   : > { %3406 = vmatprep.subr.msk.bf16.mxu1 %vm541_vm0, %v2040_v34  ;;  %v1858_v42 = vpack.c.bf16 %v4683_v24, %v4685_v37  ;;  %v4690_v16 = vpop.eup %3574  ;;  %v2030_v7 = vpop.permute.xlu1 %2029  ;;  %3590 = vpow2.f32 %v1264_v60 }
 0x6b3   : > { %v2036_v8 = vpop.permute.xlu0 %2035 }
 0x6b5   : > { %v4692_v53 = vpop.eup %3576 }
 0x6b6   : > { %v1857_v33 = vpack.c.bf16 %v4690_v16, %v4692_v53  ;;  %v2034_v51 = vpop.permute.xlu1 %2033  ;;  %v4721_v32 = vpop.eup %3578 }
 0x6b7   : > { %v866_v34 = vmul.f32 %v4721_v32, %v737_v18 }
 0x6b8   : > { %3357 = vmatprep.mubr.msk.bf16.mxu1 %vm744_vm2, %v1857_v33 }
 0x6b9   : > { %3358 = vmatmul.mubr.msk.bf16.gmra.mrb[20].mxu1 %vm744_vm2, %v1858_v42  ;;  %v4731_v42 = vpop.eup %3580 }
 0x6ba   : > { %3364 = vmatpush3.bf16.xpose.msra.mxu1 %v2061_v36  ;;  %3369 = vmatprep.mubr.msk.bf16.mxu1 %vm541_vm0, %v2030_v7  ;;  %v867_v5 = vmul.f32 %v4731_v42, %v738_v20  ;;  %v4741_v59 = vpop.eup %3582 }
 0x6bb   : > { %3407 = vmatprep.subr.msk.bf16.mxu1 %vm541_vm0, %v2042_v25  ;;  %v5349_v25 = vsub.f32 %v4157_v9, %v4175_v15  ;;  %v4749_v0 = vpop.eup %3584 }
 0x6bd   : > { %v795_v33 = vmul.f32 1.442695, %v5349_v25 }
 0x6bf   : > { %3592 = vpow2.f32 %v795_v33  ;;  %v1216_v33 = vld [vmem:[#allocation3 + $0x50] sm:$0xff] }
 0x6c0   : > { %3594 = vpow2.f32 %v1266_v2 }
 0x6c2   : > { %3366 = vmatpush3.bf16.xpose.msra.mxu1 %v2064_v21  ;;  %v740_v21 = vld [vmem:[#allocation3 + $0x20] sm:$0xff] }
 0x6c3   : > { %3408 = vmatprep.subr.msk.bf16.mxu1 %vm541_vm0, %v2044_v13  ;;  %v5351_v13 = vsub.f32 %v4180_v17, %v4200_v23  ;;  %v869_v54 = vmul.f32 %v4741_v59, %v740_v21  ;;  %v5353_v17 = vsub.f32 %v4329_v28, %v4334_v22  ;;  %v5354_v22 = vsub.f32 %v4336_v14, %v4353_v62 }
 0x6c5   : > { %v799_v9 = vmul.f32 1.442695, %v5351_v13  ;;  %v1262_v23 = vmul.f32 1.442695, %v5353_v17  ;;  %v1268_v28 = vmul.f32 1.442695, %v5354_v22 }
 0x6c7   : > { %3596 = vpow2.f32 %v799_v9  ;;  %v1218_v9 = vld [vmem:[#allocation3 + $0x60] sm:$0xff] }
 0x6ca   : > { %3368 = vmatpush3.bf16.xpose.msra.mxu1 %v2067_v41  ;;  %v5352_v41 = vsub.f32 %v4365_v19, %v4378_v45  ;;  %v865_v45 = vmul.f32 %v4749_v0, %v736_v26 }
 0x6cc   : > { %v1270_v3 = vmul.f32 1.442695, %v5352_v41 }
 0x6ce   : > { %3598 = vpow2.f32 %v1270_v3 }
 0x6cf   : > { %3600 = vpow2.f32 %v1262_v23 }
 0x6d0   : > { %3602 = vpow2.f32 %v1268_v28 }
 0x6d1   : > { %3370 = vmatmul.mubr.msk.bf16.vlgmr.msra.gmra.mrb[24].mxu1 %vm541_vm0, %v2032_v12  ;;  %v4753_v12 = vpop.eup %3586 }
 0x6d2   : > { %3373 = vmatprep.mubr.msk.bf16.mxu1 %vm541_vm0, %v2034_v51  ;;  %v4759_v19 = vpop.eup %3588  ;;  %v871_v57 = vmul.f32 %v4753_v12, %v742_v31 }
 0x6d3   : > { %v4763_v4 = vpop.eup %3590  ;;  %v868_v6 = vmul.f32 %v4759_v19, %v739_v63 }
 0x6d4   : > { %v4770_v10 = vpop.eup %3592  ;;  %v1343_v60 = vmul.f32 %v4763_v4, %v1215_v58 }
 0x6d9   : > { %3374 = vmatmul.mubr.msk.bf16.gmra.mrb[28].mxu1 %vm541_vm0, %v2036_v8 }
 0x6dd   : > { %v878_v11 = vpop.xlane.xlu0 %877 }
 0x6de   : > { %v898_v36 = vadd.f32 %v878_v11, %v866_v34  ;;  %v741_v34 = vld [vmem:[#allocation3 + $0x28] sm:$0xff]  ;;  %v4774_v11 = vpop.eup %3594 }
 0x6df   : > { %v870_v14 = vmul.f32 %v4770_v10, %v741_v34  ;;  %v1344_v2 = vmul.f32 %v4774_v11, %v1216_v33 }
 0x6e0   : > { %907 = vst.msk [vmem:[#allocation3 + $0x8] sm:$0xff] %vm476_vm1, %v898_v36  ;;  %v4778_v36 = vpop.eup %3596 }
 0x6e1   : > { %v881_v7 = vpop.xlane.xlu0 %880 }
 0x6e2   : > { %v899_v15 = vadd.f32 %v881_v7, %v867_v5  ;;  %v743_v5 = vld [vmem:[#allocation3 + $0x38] sm:$0xff]  ;;  %v4782_v7 = vpop.eup %3598 }
 0x6e3   : > { %v872_v41 = vmul.f32 %v4778_v36, %v743_v5  ;;  %v3601_v3 = vpop.eup %3600  ;;  %v1346_v26 = vmul.f32 %v4782_v7, %v1218_v9 }
 0x6e4   : > { %908 = vst.msk [vmem:[#allocation3 + $0x10] sm:$0xff] %vm476_vm1, %v899_v15 }
 0x6e5   : > { %v887_v50 = vpop.xlane.xlu0 %886 }
 0x6e6   : > { %v901_v51 = vadd.f32 %v887_v50, %v869_v54  ;;  %v1214_v50 = vld [vmem:[#allocation3 + $0x40] sm:$0xff] }
 0x6e8   : > { %910 = vst.msk [vmem:[#allocation3 + $0x20] sm:$0xff] %vm476_vm1, %v901_v51  ;;  %v875_v30 = vpop.xlane.xlu1 %874  ;;  %v1342_v51 = vmul.f32 %v3601_v3, %v1214_v50 }
 0x6e9   : > { %v897_v8 = vadd.f32 %v875_v30, %v865_v45  ;;  %v893_v55 = vpop.xlane.xlu0 %892  ;;  %v4789_v45 = vpop.eup %3602 }
 0x6ea   : > { %v903_v18 = vadd.f32 %v893_v55, %v871_v57  ;;  %v1217_v57 = vld [vmem:[#allocation3 + $0x58] sm:$0xff] }
 0x6eb   : > { %906 = vst.msk [vmem:[#allocation3] sm:$0xff] %vm476_vm1, %v897_v8  ;;  %v1345_v8 = vmul.f32 %v4789_v45, %v1217_v57  ;;  %v1821_v57 = vsel %vm744_vm2, %v4665_v48, 0.0  ;;  %v5361_v48 = vld [vmem:[#allocation20_spill] sm:$0xff] }
 0x6ec   : > { %912 = vst.msk [vmem:[#allocation3 + $0x30] sm:$0xff] %vm476_vm1, %v903_v18  ;;  %v884_v56 = vpop.xlane.xlu1 %883 }
 0x6ed   : > { %v900_v20 = vadd.f32 %v884_v56, %v868_v6  ;;  %v1355_v25 = vpop.xlane.xlu0 %1354 }
 0x6ee   : > { %v1375_v62 = vadd.f32 %v1355_v25, %v1343_v60 }
 0x6ef   : > { %909 = vst.msk [vmem:[#allocation3 + $0x18] sm:$0xff] %vm476_vm1, %v900_v20 }
 0x6f0   : > { %1383 = vst.msk [vmem:[#allocation3 + $0x48] sm:$0xff] %vm476_vm1, %v1375_v62  ;;  %v890_v61 = vpop.xlane.xlu1 %889 }
 0x6f1   : > { %v902_v21 = vadd.f32 %v890_v61, %v870_v14  ;;  %v1358_v13 = vpop.xlane.xlu0 %1357 }
 0x6f2   : > { %v1376_v15 = vadd.f32 %v1358_v13, %v1344_v2 }
 0x6f3   : > { %911 = vst.msk [vmem:[#allocation3 + $0x28] sm:$0xff] %vm476_vm1, %v902_v21 }
 0x6f4   : > { %1384 = vst.msk [vmem:[#allocation3 + $0x50] sm:$0xff] %vm476_vm1, %v1376_v15  ;;  %v896_v54 = vpop.xlane.xlu1 %895 }
 0x6f5   : > { %v904_v31 = vadd.f32 %v896_v54, %v872_v41  ;;  %v1364_v17 = vpop.xlane.xlu0 %1363  ;;  %v1368_v54 = vsel %vm744_vm2, %v4459_v44, 0.0  ;;  %v3730_v44 = vld [vmem:[%s4160_s27 + $0x8] sm:$0xff]  }
 0x6f6   : > { %v1378_v23 = vadd.f32 %v1364_v17, %v1346_v26 }
 0x6f7   : > { %913 = vst.msk [vmem:[#allocation3 + $0x38] sm:$0xff] %vm476_vm1, %v904_v31  ;;  %v5355_v31 = vld [vmem:[#allocation23_spill] sm:$0xff] }
 0x6f8   : > { %1386 = vst.msk [vmem:[#allocation3 + $0x60] sm:$0xff] %vm476_vm1, %v1378_v23  ;;  %v1352_v30 = vpop.xlane.xlu1 %1351  ;;  %v1365_v17 = vsel %vm744_vm2, %v5355_v31, 0.0  ;;  %v5356_v23 = vld [vmem:[#allocation22_spill] sm:$0xff]  ;;  %v5371_v31 = vld [vmem:[#allocation37_spill] sm:$0xff] }
 0x6f9   : > { %v1374_v63 = vadd.f32 %v1352_v30, %v1342_v51  ;;  %v1371_v51 = vsel %vm744_vm2, %v5356_v23, 0.0  ;;  %v1815_v30 = vsel %vm744_vm2, %v4672_v43, 0.0 }
 0x6fb   : > { %1382 = vst.msk [vmem:[#allocation3 + $0x40] sm:$0xff] %vm476_vm1, %v1374_v63  ;;  %v5358_v63 = vld [vmem:[#allocation17_spill] sm:$0xff] }
 0x6fc   : > { %v1361_v55 = vpop.xlane.xlu1 %1360 }
 0x6fd   : > { %v1377_v58 = vadd.f32 %v1361_v55, %v1345_v8  ;;  %v5360_v8 = vld [vmem:[#allocation18_spill] sm:$0xff] }
 0x6fe   : > { %v5362_v55 = vsub.f32 %v5360_v8, %v5361_v48  ;;  %v1220_v48 = vld [vmem:[#allocation3 + $0x70] sm:$0xff] }
 0x6ff   : > { %1385 = vst.msk [vmem:[#allocation3 + $0x58] sm:$0xff] %vm476_vm1, %v1377_v58 }
 0x700   : > { %v1276_v58 = vmul.f32 1.442695, %v5362_v55 }
 0x77e   : > { %v4795_v22 = vpop.f32.mrb[16].mxu1 }
 0x77f   : > { %v4797_v28 = vpop.f32.mrb[17].mxu1 }
 0x780   : > { %v4799_v18 = vpop.f32.mrb[18].mxu1 }
 0x781   : > { %v4801_v6 = vpop.f32.mrb[19].mxu1 }
 0x78c   : > { %v4803_v56 = vpop.f32.mrb[20].mxu1 }
 0x78d   : > { %v4805_v60 = vpop.f32.mrb[21].mxu1 }
 0x78e   : > { %v4807_v34 = vpop.f32.mrb[22].mxu1 }
 0x78f   : > { %v4809_v20 = vpop.f32.mrb[23].mxu1 }
 0x7a4   : > { %v4811_v25 = vpop.f32.mrb[24].mxu1 }
 0x7a5   : > { %v4813_v33 = vpop.f32.mrb[25].mxu1  ;;  %v2158_v5 = vsel %vm744_vm2, %v4811_v25, -inf }
 0x7a6   : > { %v4815_v62 = vpop.f32.mrb[26].mxu1  ;;  %v2152_v14 = vsel %vm744_vm2, %v4813_v33, -inf }
 0x7a7   : > { %2153 = vmax.xlane.f32.xlu1 %v2152_v14  ;;  %v4819_v61 = vpop.f32.mrb[27].mxu1  ;;  %v2161_v2 = vsel %vm744_vm2, %v4815_v62, -inf }
 0x7a8   : > { %2162 = vmax.xlane.f32.xlu0 %v2161_v2  ;;  %v2155_v21 = vsel %vm744_vm2, %v4819_v61, -inf  ;;  %v5363_v2 = vld [vmem:[#allocation19_spill] sm:$0xff] }
 0x7ab   : > { %2159 = vmax.xlane.f32.xlu1 %v2158_v5  ;;  %v5364_v5 = vld [vmem:[#allocation21_spill] sm:$0xff] }
 0x7ac   : > { %2156 = vmax.xlane.f32.xlu0 %v2155_v21  ;;  %v4827_v13 = vpop.f32.mrb[28].mxu1  ;;  %v5365_v21 = vsub.f32 %v5363_v2, %v5364_v5 }
 0x7ad   : > { %v4829_v9 = vpop.f32.mrb[29].mxu1  ;;  %v2170_v50 = vsel %vm744_vm2, %v4827_v13, -inf }
 0x7ae   : > { %v2164_v15 = vsel %vm744_vm2, %v4829_v9, -inf  ;;  %v4833_v41 = vpop.f32.mrb[30].mxu1 }
 0x7af   : > { %2165 = vmax.xlane.f32.xlu1 %v2164_v15  ;;  %v4837_v26 = vpop.f32.mrb[31].mxu1  ;;  %v2173_v43 = vsel %vm744_vm2, %v4833_v41, -inf  ;;  %v1274_v15 = vmul.f32 1.442695, %v5365_v21 }
 0x7b0   : > { %1369 = vadd.xlane.f32.xlu0 %v1368_v54 }
 0x7b3   : > { %2171 = vmax.xlane.f32.xlu1 %v2170_v50  ;;  %v5370_v50 = vld [vmem:[#allocation35_spill] sm:$0xff] }
 0x7b7   : > { %1366 = vadd.xlane.f32.xlu1 %v1365_v17  ;;  %v5372_v17 = vsub.f32 %v5370_v50, %v5371_v31 }
 0x7b9   : > { %v1733_v23 = vmul.f32 1.442695, %v5372_v17 }
 0x7bb   : > { %1372 = vadd.xlane.f32.xlu1 %v1371_v51  ;;  %v5373_v51 = vsub.f32 %v4563_v39, %v4575_v29  ;;  %v2135_v39 = vld [vmem:[#allocation2 + $0xc0] sm:$0xff]  ;;  %v2138_v29 = vld [vmem:[#allocation2 + $0xd8] sm:$0xff] }
 0x7bf   : > { %1816 = vadd.xlane.f32.xlu1 %v1815_v30  ;;  %v1737_v30 = vmul.f32 1.442695, %v5373_v51 }
 0x7c6   : > { %1029 = vperm.xlu0 %3456, %v4749_v0   ;;  %v1833_v0 = vsel %vm744_vm2, %v4685_v37, 0.0 }
 0x7ca   : > { %1044 = vperm.xlu0 %3456, %v4759_v19   ;;  %v2167_v19 = vsel %vm744_vm2, %v4837_v26, -inf }
 0x7ce   : > { %1054 = vperm.xlu0 %3456, %v4770_v10   ;;  %v5357_v10 = vld [vmem:[#allocation16_spill] sm:$0xff] }
 0x7d0   : > { %2326 = vrot.lane.b32.xlu1 %v3730_v44, %s3779_s29 }
 0x7d2   : > { %1064 = vperm.xlu0 %3456, %v4778_v36   ;;  %v5359_v36 = vsub.f32 %v5357_v10, %v5358_v63  ;;  %v4912_v10 = vld [vmem:[#allocation2 + $0xc8] sm:$0xff] }
 0x7d6   : > { %1494 = vperm.xlu0 %3456, %v3601_v3   ;;  %v1272_v3 = vmul.f32 1.442695, %v5359_v36 }
 0x7d8   : > { %3604 = vpow2.f32 %v1272_v3 }
 0x7d9   : > { %3606 = vpow2.f32 %v1276_v58  ;;  %v4921_v58 = vld [vmem:[#allocation2 + $0xe0] sm:$0xff] }
 0x7da   : > { %3608 = vpow2.f32 %v1274_v15 }
 0x7e2   : > { %v4871_v37 = vpop.eup %3604 }
 0x7e3   : > { %v4875_v14 = vpop.eup %3606 }
 0x7f4   : > { %1822 = vadd.xlane.f32.xlu1 %v1821_v57 }
 0x7f5   : > { %2174 = vmax.xlane.f32.xlu0 %v2173_v43 }
 0x7f8   : > { %1834 = vadd.xlane.f32.xlu1 %v1833_v0 }
 0x7f9   : > { %2168 = vmax.xlane.f32.xlu0 %v2167_v19 }
 0x809   : > { %1034 = vperm.xlu1 %3457, %v4721_v32   ;;  %v5366_v32 = vld [vmem:[#allocation32_spill] sm:$0xff] }
 0x80d   : > { %1039 = vperm.xlu1 %3457, %v4731_v42   ;;  %v5367_v42 = vld [vmem:[#allocation34_spill] sm:$0xff] }
 0x80f   : > { %1509 = vperm.xlu0 %3456, %v4789_v45  }
 0x811   : > { %1049 = vperm.xlu1 %3457, %v4741_v59   ;;  %v5368_v59 = vsub.f32 %v5366_v32, %v5367_v42 }
 0x813   : > { %1519 = vperm.xlu0 %3456, %v4871_v37   ;;  %v1727_v45 = vmul.f32 1.442695, %v5368_v59 }
 0x815   : > { %1059 = vperm.xlu1 %3457, %v4753_v12   ;;  %3610 = vpow2.f32 %v1727_v45  ;;  %v5369_v12 = vsub.f32 %v4546_v47, %v4560_v40  ;;  %v5374_v47 = vsub.f32 %v4580_v46, %v4596_v35  ;;  %v2137_v35 = vld [vmem:[#allocation2 + $0xd0] sm:$0xff] }
 0x817   : > { %1529 = vperm.xlu0 %3456, %v4875_v14   ;;  %v1731_v54 = vmul.f32 1.442695, %v5369_v12  ;;  %v1741_v40 = vmul.f32 1.442695, %v5374_v47 }
 0x819   : > { %1499 = vperm.xlu1 %3457, %v4763_v4   ;;  %3612 = vpow2.f32 %v1731_v54  ;;  %v3609_v4 = vpop.eup %3608  ;;  %v4931_v54 = vld [vmem:[#allocation2 + $0xf0] sm:$0xff] }
 0x81a   : > { %3614 = vpow2.f32 %v1733_v23  ;;  %v1348_v32 = vmul.f32 %v3609_v4, %v1220_v48 }
 0x81b   : > { %3616 = vpow2.f32 %v1737_v30 }
 0x81c   : > { %3618 = vpow2.f32 %v1741_v40 }
 0x81d   : > { %1504 = vperm.xlu1 %3457, %v4774_v11  }
 0x81f   : > { %v4896_v11 = vpop.eup %3610 }
 0x821   : > { %1514 = vperm.xlu1 %3457, %v4782_v7  }
 0x823   : > { %v4902_v7 = vpop.eup %3612 }
 0x824   : > { %v4905_v44 = vpop.eup %3614 }
 0x825   : > { %1524 = vperm.xlu1 %3457, %v3609_v4   ;;  %v4908_v57 = vpop.eup %3616  ;;  %v1219_v4 = vld [vmem:[#allocation3 + $0x68] sm:$0xff] }
 0x826   : > { %v4914_v63 = vpop.eup %3618  ;;  %v1347_v40 = vmul.f32 %v4871_v37, %v1219_v4 }
 0x829   : > { %1959 = vperm.xlu1 %3457, %v4896_v11  }
 0x82d   : > { %1969 = vperm.xlu1 %3457, %v4902_v7  }
 0x831   : > { %1974 = vperm.xlu1 %3457, %v4905_v44  }
 0x834   : > { %v2154_v43 = vpop.xlane.xlu1 %2153 }
 0x835   : > { %v2176_v0 = vmax.f32 %v2135_v39, %v2154_v43  ;;  %v2163_v19 = vpop.xlane.xlu0 %2162  ;;  %1984 = vperm.xlu1 %3457, %v4908_v57   ;;  %v1221_v43 = vld [vmem:[#allocation3 + $0x78] sm:$0xff] }
 0x836   : > { %v2179_v46 = vmax.f32 %v2138_v29, %v2163_v19 }
 0x837   : > { %2486 = vst.msk [vmem:[#allocation2 + $0xc0] sm:$0xff] %vm476_vm1, %v2176_v0  ;;  %v2184_v2 = vsub.f32 %v2135_v39, %v2176_v0  ;;  %v1019_v39 = vld [vmem:[#allocation4] sm:$0xff] }
 0x838   : > { %2489 = vst.msk [vmem:[#allocation2 + $0xd8] sm:$0xff] %vm476_vm1, %v2179_v46  ;;  %v2160_v36 = vpop.xlane.xlu1 %2159  ;;  %v2187_v31 = vsub.f32 %v2138_v29, %v2179_v46 }
 0x839   : > { %v2178_v3 = vmax.f32 %v2137_v35, %v2160_v36  ;;  %v2157_v8 = vpop.xlane.xlu0 %2156  ;;  %1994 = vperm.xlu1 %3457, %v4914_v63   ;;  %v2192_v50 = vmul.f32 1.442695, %v2184_v2  ;;  %v1349_v36 = vmul.f32 %v4875_v14, %v1221_v43 }
 0x83a   : > { %v4919_v55 = vmax.f32 %v4912_v10, %v2157_v8  ;;  %v2198_v30 = vmul.f32 1.442695, %v2187_v31  ;;  %v5375_v8 = vld [vmem:[#allocation9_spill] sm:$0xff] }
 0x83b   : > { %v2186_v5 = vsub.f32 %v2137_v35, %v2178_v3  ;;  %2488 = vst.msk [vmem:[#allocation2 + $0xd0] sm:$0xff] %vm476_vm1, %v2178_v3  ;;  %2220 = vperm.xlu0 %3456, %v2178_v3   ;;  %v1022_v3 = vld [vmem:[#allocation4 + $0x18] sm:$0xff] }
 0x83c   : > { %v2185_v21 = vsub.f32 %v4912_v10, %v4919_v55  ;;  %2487 = vst.msk [vmem:[#allocation2 + $0xc8] sm:$0xff] %vm476_vm1, %v4919_v55  ;;  %v2166_v15 = vpop.xlane.xlu1 %2165 }
 0x83d   : > { %v2196_v42 = vmul.f32 1.442695, %v2186_v5  ;;  %v4929_v59 = vmax.f32 %v4921_v58, %v2166_v15  ;;  %v1370_v45 = vpop.xlane.xlu0 %1369 }
 0x83e   : > { %v1380_v12 = vadd.f32 %v1370_v45, %v1348_v32  ;;  %v5376_v45 = vld [vmem:[#allocation10_spill] sm:$0xff] }
 0x83f   : > { %3620 = vpow2.f32 %v2196_v42  ;;  %v2188_v17 = vsub.f32 %v4921_v58, %v4929_v59  ;;  %2490 = vst.msk [vmem:[#allocation2 + $0xe0] sm:$0xff] %vm476_vm1, %v4929_v59  ;;  %2210 = vperm.xlu0 %3456, %v2176_v0   ;;  %v1024_v42 = vld [vmem:[#allocation4 + $0x28] sm:$0xff] }
 0x840   : > { %1388 = vst.msk [vmem:[#allocation3 + $0x70] sm:$0xff] %vm476_vm1, %v1380_v12  ;;  %v2172_v23 = vpop.xlane.xlu1 %2171  ;;  %3622 = vpow2.f32 %v2192_v50  ;;  %v2570_v58 = vld [vmem:[#allocation3 + $0x48] sm:$0xff] }
 0x841   : > { %v4939_v51 = vmax.f32 %v4931_v54, %v2172_v23  ;;  %3624 = vpow2.f32 %v2198_v30 }
 0x843   : > { %v2190_v47 = vsub.f32 %v4931_v54, %v4939_v51  ;;  %2492 = vst.msk [vmem:[#allocation2 + $0xf0] sm:$0xff] %vm476_vm1, %v4939_v51  ;;  %2225 = vperm.xlu0 %3456, %v2179_v46   ;;  %v1679_v46 = vld [vmem:[#allocation3 + $0x80] sm:$0xff]  ;;  %v2572_v54 = vld [vmem:[#allocation3 + $0x58] sm:$0xff] }
 0x844   : > { %v1367_v29 = vpop.xlane.xlu1 %1366  ;;  %v1807_v14 = vmul.f32 %v4896_v11, %v1679_v46  ;;  %v5380_v46 = vsub.f32 %v4582_v38, %v4599_v52  ;;  %v4988_v52 = vld [vmem:[#allocation2 + $0xe8] sm:$0xff] }
 0x845   : > { %v1379_v0 = vadd.f32 %v1367_v29, %v1347_v40  ;;  %v1030_v19 = vpop.permute.xlu0 %1029  ;;  %v1026_v40 = vld [vmem:[#allocation4 + $0x38] sm:$0xff] }
 0x846   : > { %v1067_v35 = vmul.f32 %v1030_v19, %v1019_v39  ;;  %v5377_v39 = vld [vmem:[#allocation15_spill] sm:$0xff]  ;;  %v1484_v19 = vld [vmem:[#allocation4 + $0x40] sm:$0xff] }
 0x847   : > { %1387 = vst.msk [vmem:[#allocation3 + $0x68] sm:$0xff] %vm476_vm1, %v1379_v0  ;;  %2215 = vperm.xlu0 %3456, %v4919_v55  }
 0x848   : > { %v1075_v48 = vadd.f32 %v1067_v35, %v5375_v8  ;;  %v1373_v2 = vpop.xlane.xlu1 %1372  ;;  %v5378_v35 = vld [vmem:[#allocation14_spill] sm:$0xff] }
 0x849   : > { %v4950_v5 = vpop.eup %3620  ;;  %v1381_v37 = vadd.f32 %v1373_v2, %v1349_v36  ;;  %v1045_v15 = vpop.permute.xlu0 %1044 }
 0x84a   : > { %1083 = vst.msk [vmem:[#allocation4] sm:$0xff] %vm541_vm0, %v1075_v48  ;;  %v1070_v32 = vmul.f32 %v1045_v15, %v1022_v3  ;;  %2434 = vperm.xlu1 %3457, %v4950_v5   ;;  %v4958_v31 = vpop.eup %3622  ;;  %v5379_v48 = vld [vmem:[#allocation25_spill] sm:$0xff] }
 0x84b   : > { %1389 = vst.msk [vmem:[#allocation3 + $0x78] sm:$0xff] %vm476_vm1, %v1381_v37  ;;  %2240 = vperm.xlu0 %3456, %v4939_v51   ;;  %v4965_v29 = vpop.eup %3624  ;;  %v1739_v37 = vmul.f32 1.442695, %v5380_v46  ;;  %v3731_v46 = vld [vmem:[%s4160_s27] sm:$0xff]  }
 0x84c   : > { %v1078_v12 = vadd.f32 %v5376_v45, %v1070_v32  ;;  %v1817_v50 = vpop.xlane.xlu1 %1816  ;;  %v1681_v32 = vld [vmem:[#allocation3 + $0x90] sm:$0xff] }
 0x84d   : > { %v1839_v23 = vadd.f32 %v1817_v50, %v1807_v14  ;;  %v1055_v4 = vpop.permute.xlu0 %1054  ;;  %3626 = vpow2.f32 %v1739_v37  ;;  %v1809_v14 = vmul.f32 %v4902_v7, %v1681_v32  ;;  %v1685_v50 = vld [vmem:[#allocation3 + $0xb0] sm:$0xff] }
 0x84e   : > { %1086 = vst.msk [vmem:[#allocation4 + $0x18] sm:$0xff] %vm541_vm0, %v1078_v12  ;;  %v1072_v30 = vmul.f32 %v1055_v4, %v1024_v42  ;;  %2424 = vperm.xlu1 %3457, %v4958_v31   ;;  %v4979_v42 = vld [vmem:[#allocation2 + $0xf8] sm:$0xff]  ;;  %v2574_v51 = vld [vmem:[#allocation3 + $0x68] sm:$0xff] }
 0x84f   : > { %1847 = vst.msk [vmem:[#allocation3 + $0x80] sm:$0xff] %vm476_vm1, %v1839_v23  ;;  %2230 = vperm.xlu0 %3456, %v4929_v59  }
 0x850   : > { %v1080_v11 = vadd.f32 %v1072_v30, %v5377_v39  ;;  %v4976_v15 = vpop.permute.xlu1 %2326 }
 0x851   : > { %v1065_v43 = vpop.permute.xlu0 %1064 }
 0x852   : > { %1088 = vst.msk [vmem:[#allocation4 + $0x28] sm:$0xff] %vm541_vm0, %v1080_v11  ;;  %v1074_v0 = vmul.f32 %v1065_v43, %v1026_v40  ;;  %2439 = vperm.xlu1 %3457, %v4965_v29  }
 0x854   : > { %v1082_v36 = vadd.f32 %v5378_v35, %v1074_v0  ;;  %v1020_v0 = vld [vmem:[#allocation4 + $0x8] sm:$0xff] }
 0x855   : > { %v1495_v3 = vpop.permute.xlu0 %1494 }
 0x856   : > { %1090 = vst.msk [vmem:[#allocation4 + $0x38] sm:$0xff] %vm541_vm0, %v1082_v36  ;;  %v1532_v8 = vmul.f32 %v1495_v3, %v1484_v19  ;;  %v1021_v3 = vld [vmem:[#allocation4 + $0x10] sm:$0xff] }
 0x857   : > { %v4981_v45 = vpop.eup %3626 }
 0x858   : > { %v1540_v2 = vadd.f32 %v1532_v8, %v5379_v48  ;;  %v1813_v38 = vmul.f32 %v4981_v45, %v1685_v50  ;;  %v5381_v8 = vld [vmem:[#allocation11_spill] sm:$0xff]  ;;  %v1023_v50 = vld [vmem:[#allocation4 + $0x20] sm:$0xff] }
 0x85a   : > { %1548 = vst.msk [vmem:[#allocation4 + $0x40] sm:$0xff] %vm541_vm0, %v1540_v2  ;;  %v1487_v2 = vld [vmem:[#allocation4 + $0x58] sm:$0xff] }
 0x881   : > { %v1823_v12 = vpop.xlane.xlu1 %1822 }
 0x882   : > { %v1841_v23 = vadd.f32 %v1823_v12, %v1809_v14  ;;  %v2175_v4 = vpop.xlane.xlu0 %2174 }
 0x883   : > { %v4984_v30 = vmax.f32 %v4979_v42, %v2175_v4 }
 0x884   : > { %1849 = vst.msk [vmem:[#allocation3 + $0x90] sm:$0xff] %vm476_vm1, %v1841_v23  ;;  %v5382_v23 = vld [vmem:[#allocation8_spill] sm:$0xff] }
 0x885   : > { %v2191_v7 = vsub.f32 %v4979_v42, %v4984_v30  ;;  %2493 = vst.msk [vmem:[#allocation2 + $0xf8] sm:$0xff] %vm476_vm1, %v4984_v30  ;;  %2245 = vperm.xlu0 %3456, %v4984_v30   ;;  %v1835_v40 = vpop.xlane.xlu1 %1834  ;;  %v2571_v42 = vld [vmem:[#allocation3 + $0x50] sm:$0xff] }
 0x886   : > { %v1845_v39 = vadd.f32 %v1835_v40, %v1813_v38  ;;  %v2169_v11 = vpop.xlane.xlu0 %2168  ;;  %v1489_v38 = vld [vmem:[#allocation4 + $0x68] sm:$0xff]  ;;  %v5383_v40 = vld [vmem:[#allocation26_spill] sm:$0xff] }
 0x887   : > { %v4996_v43 = vmax.f32 %v4988_v52, %v2169_v11  ;;  %v3732_v11 = vld [vmem:[%s4160_s27 + $0x10] sm:$0xff]  }
 0x888   : > { %1853 = vst.msk [vmem:[#allocation3 + $0xb0] sm:$0xff] %vm476_vm1, %v1845_v39 }
 0x889   : > { %v2189_v19 = vsub.f32 %v4988_v52, %v4996_v43  ;;  %2491 = vst.msk [vmem:[#allocation2 + $0xe8] sm:$0xff] %vm476_vm1, %v4996_v43  ;;  %2235 = vperm.xlu0 %3456, %v4996_v43   ;;  %v1035_v35 = vpop.permute.xlu1 %1034  ;;  %v2569_v52 = vld [vmem:[#allocation3 + $0x40] sm:$0xff] }
 0x88a   : > { %v1068_v36 = vmul.f32 %v1035_v35, %v1020_v0 }
 0x88b   : > { %v2202_v55 = vmul.f32 1.442695, %v2189_v19  ;;  %v2575_v19 = vld [vmem:[#allocation3 + $0x70] sm:$0xff] }
 0x88c   : > { %v1076_v48 = vadd.f32 %v1068_v36, %v5381_v8  ;;  %v1025_v8 = vld [vmem:[#allocation4 + $0x30] sm:$0xff] }
 0x88d   : > { %2324 = vrot.lane.b32.xlu0 %v3731_v46, %s3779_s29  ;;  %v1040_v37 = vpop.permute.xlu1 %1039  ;;  %v1491_v46 = vld [vmem:[#allocation4 + $0x78] sm:$0xff] }
 0x88e   : > { %1084 = vst.msk [vmem:[#allocation4 + $0x8] sm:$0xff] %vm541_vm0, %v1076_v48  ;;  %v1069_v32 = vmul.f32 %v1040_v37, %v1021_v3  ;;  %v1510_v14 = vpop.permute.xlu0 %1509  ;;  %v5384_v48 = vld [vmem:[#allocation13_spill] sm:$0xff]  ;;  %v5385_v37 = vld [vmem:[#allocation31_spill] sm:$0xff] }
 0x88f   : > { %v1535_v12 = vmul.f32 %v1510_v14, %v1487_v2  ;;  %v3733_v14 = vld [vmem:[%s4160_s27 + $0x18] sm:$0xff]  }
 0x890   : > { %v1077_v4 = vadd.f32 %v5382_v23, %v1069_v32 }
 0x891   : > { %v1543_v39 = vadd.f32 %v5383_v40, %v1535_v12  ;;  %2328 = vrot.lane.b32.xlu0 %v3732_v11, %s3779_s29  ;;  %v1050_v0 = vpop.permute.xlu1 %1049  ;;  %v5387_v11 = vld [vmem:[#allocation30_spill] sm:$0xff] }
 0x892   : > { %1085 = vst.msk [vmem:[#allocation4 + $0x10] sm:$0xff] %vm541_vm0, %v1077_v4  ;;  %v1071_v35 = vmul.f32 %v1050_v0, %v1023_v50  ;;  %v1520_v36 = vpop.permute.xlu0 %1519  ;;  %v1485_v4 = vld [vmem:[#allocation4 + $0x48] sm:$0xff] }
 0x893   : > { %1551 = vst.msk [vmem:[#allocation4 + $0x58] sm:$0xff] %vm541_vm0, %v1543_v39  ;;  %v1537_v3 = vmul.f32 %v1520_v36, %v1489_v38  ;;  %v5386_v39 = vld [vmem:[#allocation12_spill] sm:$0xff] }
 0x894   : > { %v1079_v2 = vadd.f32 %v1071_v35, %v5384_v48  ;;  %v5388_v48 = vld [vmem:[#allocation27_spill] sm:$0xff] }
 0x895   : > { %v1545_v32 = vadd.f32 %v1537_v3, %v5385_v37  ;;  %2330 = vrot.lane.b32.xlu0 %v3733_v14, %s3779_s29  ;;  %v1060_v12 = vpop.permute.xlu1 %1059  ;;  %v1486_v3 = vld [vmem:[#allocation4 + $0x50] sm:$0xff] }
 0x896   : > { %1087 = vst.msk [vmem:[#allocation4 + $0x20] sm:$0xff] %vm541_vm0, %v1079_v2  ;;  %v1073_v23 = vmul.f32 %v1060_v12, %v1025_v8  ;;  %v1530_v40 = vpop.permute.xlu0 %1529 }
 0x897   : > { %1553 = vst.msk [vmem:[#allocation4 + $0x68] sm:$0xff] %vm541_vm0, %v1545_v32  ;;  %v1539_v50 = vmul.f32 %v1530_v40, %v1491_v46  ;;  %v1488_v32 = vld [vmem:[#allocation4 + $0x60] sm:$0xff]  ;;  %v1490_v40 = vld [vmem:[#allocation4 + $0x70] sm:$0xff] }
 0x898   : > { %v1081_v38 = vadd.f32 %v5386_v39, %v1073_v23  ;;  %v5389_v46 = vld [vmem:[#allocation24_spill] sm:$0xff] }
 0x899   : > { %v1547_v0 = vadd.f32 %v5387_v11, %v1539_v50  ;;  %v1500_v35 = vpop.permute.xlu1 %1499  ;;  %v5390_v50 = vld [vmem:[#allocation29_spill] sm:$0xff]  ;;  %v1949_v11 = vld [vmem:[#allocation4 + $0x80] sm:$0xff] }
 0x89a   : > { %1089 = vst.msk [vmem:[#allocation4 + $0x30] sm:$0xff] %vm541_vm0, %v1081_v38  ;;  %v1533_v36 = vmul.f32 %v1500_v35, %v1485_v4 }
 0x89b   : > { %1555 = vst.msk [vmem:[#allocation4 + $0x78] sm:$0xff] %vm541_vm0, %v1547_v0  ;;  %v5391_v0 = vld [vmem:[#allocation28_spill] sm:$0xff] }
 0x89c   : > { %v1541_v37 = vadd.f32 %v1533_v36, %v5388_v48  ;;  %v1951_v48 = vld [vmem:[#allocation4 + $0x90] sm:$0xff] }
 0x89d   : > { %v1505_v2 = vpop.permute.xlu1 %1504 }
 0x89e   : > { %1549 = vst.msk [vmem:[#allocation4 + $0x48] sm:$0xff] %vm541_vm0, %v1541_v37  ;;  %v1534_v8 = vmul.f32 %v1505_v2, %v1486_v3 }
 0x8a0   : > { %v1542_v14 = vadd.f32 %v5389_v46, %v1534_v8 }
 0x8a1   : > { %v1515_v12 = vpop.permute.xlu1 %1514 }
 0x8a2   : > { %1550 = vst.msk [vmem:[#allocation4 + $0x50] sm:$0xff] %vm541_vm0, %v1542_v14  ;;  %v1536_v23 = vmul.f32 %v1515_v12, %v1488_v32  ;;  %v1952_v32 = vld [vmem:[#allocation4 + $0x98] sm:$0xff] }
 0x8a4   : > { %v1544_v39 = vadd.f32 %v1536_v23, %v5390_v50  ;;  %v1818_v23 = vsel %vm744_vm2, %v4674_v27, 0.0 }
 0x8a5   : > { %v1525_v4 = vpop.permute.xlu1 %1524 }
 0x8a6   : > { %1552 = vst.msk [vmem:[#allocation4 + $0x60] sm:$0xff] %vm541_vm0, %v1544_v39  ;;  %v1538_v38 = vmul.f32 %v1525_v4, %v1490_v40  ;;  %v1954_v40 = vld [vmem:[#allocation4 + $0xa8] sm:$0xff]  ;;  %v1824_v4 = vsel %vm744_vm2, %v4663_v1, 0.0 }
 0x8a8   : > { %v1546_v35 = vadd.f32 %v5391_v0, %v1538_v38  ;;  %v1956_v38 = vld [vmem:[#allocation4 + $0xb8] sm:$0xff] }
 0x8a9   : > { %v1960_v36 = vpop.permute.xlu1 %1959 }
 0x8aa   : > { %1554 = vst.msk [vmem:[#allocation4 + $0x70] sm:$0xff] %vm541_vm0, %v1546_v35  ;;  %v1997_v3 = vmul.f32 %v1960_v36, %v1949_v11 }
 0x8ac   : > { %v2005_v37 = vadd.f32 %v1997_v3, %v4797_v28 }
 0x8ad   : > { %v1970_v2 = vpop.permute.xlu1 %1969 }
 0x8ae   : > { %2013 = vst.msk [vmem:[#allocation4 + $0x80] sm:$0xff] %vm541_vm0, %v2005_v37  ;;  %v1999_v8 = vmul.f32 %v1970_v2, %v1951_v48 }
 0x8b0   : > { %v2007_v46 = vadd.f32 %v4795_v22, %v1999_v8 }
 0x8b1   : > { %v1975_v14 = vpop.permute.xlu1 %1974 }
 0x8b2   : > { %2015 = vst.msk [vmem:[#allocation4 + $0x90] sm:$0xff] %vm541_vm0, %v2007_v46  ;;  %v2000_v12 = vmul.f32 %v1975_v14, %v1952_v32  ;;  %v5393_v14 = vld [vmem:[#allocation36_spill] sm:$0xff] }
 0x8b4   : > { %v2008_v50 = vadd.f32 %v4799_v18, %v2000_v12  ;;  %1819 = vadd.xlane.f32.xlu0 %v1818_v23  ;;  %v1827_v18 = vsel %vm744_vm2, %v4692_v53, 0.0  ;;  %v1836_v53 = vsel %vm744_vm2, %v4683_v24, 0.0  ;;  %v5395_v24 = vld [vmem:[#allocation38_spill] sm:$0xff] }
 0x8b5   : > { %v1985_v39 = vpop.permute.xlu1 %1984 }
 0x8b6   : > { %2016 = vst.msk [vmem:[#allocation4 + $0x98] sm:$0xff] %vm541_vm0, %v2008_v50  ;;  %v2002_v28 = vmul.f32 %v1985_v39, %v1954_v40  ;;  %v5396_v50 = vsub.f32 %v5395_v24, %v4578_v49 }
 0x8b8   : > { %v2010_v22 = vadd.f32 %v2002_v28, %v4809_v20  ;;  %1825 = vadd.xlane.f32.xlu0 %v1824_v4  ;;  %v1830_v20 = vsel %vm744_vm2, %v4690_v16, 0.0  ;;  %v5392_v16 = vld [vmem:[#allocation33_spill] sm:$0xff]  ;;  %v1735_v39 = vmul.f32 1.442695, %v5396_v50 }
 0x8b9   : > { %v1995_v11 = vpop.permute.xlu1 %1994  ;;  %v5394_v12 = vsub.f32 %v5392_v16, %v5393_v14 }
 0x8ba   : > { %2018 = vst.msk [vmem:[#allocation4 + $0xa8] sm:$0xff] %vm541_vm0, %v2010_v22  ;;  %v2004_v0 = vmul.f32 %v1995_v11, %v1956_v38  ;;  %v2221_v27 = vpop.permute.xlu0 %2220 }
 0x8bb   : > { %v2250_v36 = vsub.f32 %v4811_v25, %v2221_v27  ;;  %v1729_v23 = vmul.f32 1.442695, %v5394_v12 }
 0x8bc   : > { %v2012_v35 = vadd.f32 %v4807_v34, %v2004_v0  ;;  %1828 = vadd.xlane.f32.xlu0 %v1827_v18  ;;  %v2194_v18 = vmul.f32 1.442695, %v2185_v21 }
 0x8bd   : > { %v2260_v3 = vmul.f32 1.442695, %v2250_v36 }
 0x8be   : > { %2020 = vst.msk [vmem:[#allocation4 + $0xb8] sm:$0xff] %vm541_vm0, %v2012_v35  ;;  %v2211_v1 = vpop.permute.xlu0 %2210 }
 0x8bf   : > { %v2248_v48 = vsub.f32 %v4813_v33, %v2211_v1  ;;  %3628 = vpow2.f32 %v2260_v3  ;;  %v2206_v3 = vmul.f32 1.442695, %v2191_v7  ;;  %v2573_v7 = vld [vmem:[#allocation3 + $0x60] sm:$0xff] }
 0x8c0   : > { %1831 = vadd.xlane.f32.xlu0 %v1830_v20 }
 0x8c1   : > { %v2256_v8 = vmul.f32 1.442695, %v2248_v48  ;;  %v2498_v48 = vld [vmem:[#allocation3 + $0x8] sm:$0xff] }
 0x8c2   : > { %v2226_v37 = vpop.permute.xlu0 %2225 }
 0x8c3   : > { %v2251_v2 = vsub.f32 %v4815_v62, %v2226_v37  ;;  %v2500_v37 = vld [vmem:[#allocation3 + $0x18] sm:$0xff] }
 0x8c4   : > { %1837 = vadd.xlane.f32.xlu0 %v1836_v53 }
 0x8c5   : > { %v2262_v34 = vmul.f32 1.442695, %v2251_v2 }
 0x8c6   : > { %v2216_v32 = vpop.permute.xlu0 %2215 }
 0x8c7   : > { %3630 = vpow2.f32 %v2262_v34  ;;  %v2249_v25 = vsub.f32 %v4819_v61, %v2216_v32  ;;  %v2641_v34 = vld [vmem:[#allocation3 + $0x80] sm:$0xff] }
 0x8c8   : > { %3632 = vpow2.f32 %v2256_v8 }
 0x8c9   : > { %v2258_v46 = vmul.f32 1.442695, %v2249_v25  ;;  %v5064_v4 = vpop.eup %3628 }
 0x8ca   : > { %v2241_v33 = vpop.permute.xlu0 %2240  ;;  %v2286_v25 = vsel %vm744_vm2, %v5064_v4, 0.0 }
 0x8cb   : > { %3634 = vpow2.f32 %v2258_v46  ;;  %v2254_v62 = vsub.f32 %v4827_v13, %v2241_v33  ;;  %v2643_v46 = vld [vmem:[#allocation3 + $0x90] sm:$0xff] }
 0x8cc   : > { %3636 = vpow2.f32 %v1729_v23 }
 0x8cd   : > { %v2268_v40 = vmul.f32 1.442695, %v2254_v62 }
 0x8ce   : > { %v2231_v28 = vpop.permute.xlu0 %2230 }
 0x8cf   : > { %3638 = vpow2.f32 %v2268_v40  ;;  %v2252_v61 = vsub.f32 %v4829_v9, %v2231_v28 }
 0x8d0   : > { %3640 = vpow2.f32 %v1735_v39 }
 0x8d1   : > { %v5066_v38 = vpop.eup %3630  ;;  %v2264_v22 = vmul.f32 1.442695, %v2252_v61 }
 0x8d2   : > { %v2321_v11 = vpack.c.bf16 %v5066_v38, %v5064_v4  ;;  %v3633_v13 = vpop.eup %3632  ;;  %v2289_v39 = vsel %vm744_vm2, %v5066_v38, 0.0  ;;  %v2501_v38 = vld [vmem:[#allocation3 + $0x20] sm:$0xff] }
 0x8d3   : > { %3642 = vpow2.f32 %v2264_v22  ;;  %v2280_v33 = vsel %vm744_vm2, %v3633_v13, 0.0 }
 0x8d4   : > { %3644 = vpow2.f32 %v2194_v18 }
 0x8d5   : > { %v3635_v0 = vpop.eup %3634  ;;  %3646 = vpow2.f32 %v2202_v55 }
 0x8d6   : > { %v2283_v27 = vsel %vm744_vm2, %v3635_v0, 0.0  ;;  %v2320_v49 = vpack.c.bf16 %v3635_v0, %v3633_v13  ;;  %v5074_v9 = vpop.eup %3636  ;;  %3648 = vpow2.f32 %v2206_v3  ;;  %v2576_v3 = vld [vmem:[#allocation3 + $0x78] sm:$0xff] }
 0x8d7   : > { %2284 = vadd.xlane.f32.xlu1 %v2283_v27  ;;  %3650 = vrcp.f32 %v2498_v48 }
 0x8d8   : > { %3385 = vmatprep.mubr.msk.bf16.mxu0 %vm744_vm2, %v2320_v49  ;;  %3652 = vrcp.f32 %v2500_v37  ;;  %v1682_v37 = vld [vmem:[#allocation3 + $0x98] sm:$0xff] }
 0x8d9   : > { %v5077_v35 = vpop.eup %3638  ;;  %3654 = vrcp.f32 %v2569_v52 }
 0x8da   : > { %1964 = vperm.xlu0 %3456, %v5074_v9   ;;  %v2298_v36 = vsel %vm744_vm2, %v5077_v35, 0.0  ;;  %v5082_v1 = vpop.eup %3640  ;;  %3656 = vrcp.f32 %v2571_v42 }
 0x8db   : > { %2299 = vadd.xlane.f32.xlu1 %v2298_v36  ;;  %3658 = vrcp.f32 %v2573_v7  ;;  %v2497_v36 = vld [vmem:[#allocation3] sm:$0xff] }
 0x8dc   : > { %3660 = vrcp.f32 %v2575_v19 }
 0x8dd   : > { %v5084_v20 = vpop.eup %3642  ;;  %3662 = vrcp.f32 %v2641_v34 }
 0x8de   : > { %1979 = vperm.xlu0 %3456, %v5082_v1   ;;  %v2292_v10 = vsel %vm744_vm2, %v5084_v20, 0.0  ;;  %v5093_v21 = vpop.eup %3644  ;;  %3664 = vrcp.f32 %v2643_v46 }
 0x8df   : > { %2293 = vadd.xlane.f32.xlu1 %v2292_v10  ;;  %v5099_v2 = vpop.eup %3646 }
 0x8e2   : > { %1989 = vperm.xlu0 %3456, %v4981_v45   ;;  %v5102_v45 = vpop.eup %3648 }
 0x8e3   : > { %v3651_v30 = vpop.eup %3650 }
 0x8e4   : > { %v3653_v43 = vpop.eup %3652 }
 0x8e5   : > { %v3655_v53 = vpop.eup %3654 }
 0x8e6   : > { %2429 = vperm.xlu0 %3456, %v5093_v21   ;;  %v3657_v8 = vpop.eup %3656 }
 0x8e7   : > { %v3659_v14 = vpop.eup %3658 }
 0x8e8   : > { %v3661_v40 = vpop.eup %3660 }
 0x8f0   : > { %2449 = vperm.xlu1 %3457, %v5099_v2  }
 0x8f4   : > { %2459 = vperm.xlu1 %3457, %v5102_v45  }
 0x8f8   : > { %2528 = vperm.xlu1 %3457, %v3651_v30   ;;  %v1810_v30 = vmul.f32 %v4905_v44, %v1682_v37  ;;  %v2148_v37 = vld [vmem:[#allocation3 + $0xe0] sm:$0xff] }
 0x8fc   : > { %2538 = vperm.xlu1 %3457, %v3653_v43   ;;  %v1683_v43 = vld [vmem:[#allocation3 + $0xa0] sm:$0xff] }
 0x900   : > { %2595 = vperm.xlu1 %3457, %v3655_v53  }
 0x904   : > { %2605 = vperm.xlu1 %3457, %v3657_v8   ;;  %v2246_v32 = vpop.permute.xlu0 %2245  ;;  %v1684_v8 = vld [vmem:[#allocation3 + $0xa8] sm:$0xff] }
 0x905   : > { %v2255_v16 = vsub.f32 %v4833_v41, %v2246_v32  ;;  %2287 = vadd.xlane.f32.xlu0 %v2286_v25  ;;  %v3663_v41 = vpop.eup %3662  ;;  %v1812_v44 = vmul.f32 %v4908_v57, %v1684_v8  ;;  %v2147_v8 = vld [vmem:[#allocation3 + $0xd8] sm:$0xff] }
 0x906   : > { %v3665_v61 = vpop.eup %3664 }
 0x907   : > { %v2270_v12 = vmul.f32 1.442695, %v2255_v16 }
 0x908   : > { %2615 = vperm.xlu1 %3457, %v3659_v14   ;;  %v2236_v23 = vpop.permute.xlu0 %2235  ;;  %v1686_v14 = vld [vmem:[#allocation3 + $0xb8] sm:$0xff] }
 0x909   : > { %3666 = vpow2.f32 %v2270_v12  ;;  %v2253_v62 = vsub.f32 %v4837_v26, %v2236_v23  ;;  %2281 = vadd.xlane.f32.xlu0 %v2280_v33 }
 0x90b   : > { %v2266_v24 = vmul.f32 1.442695, %v2253_v62 }
 0x90c   : > { %2625 = vperm.xlu1 %3457, %v3661_v40   ;;  %v2325_v50 = vpop.permute.xlu0 %2324 }
 0x90d   : > { %3668 = vpow2.f32 %v2266_v24  ;;  %2290 = vadd.xlane.f32.xlu0 %v2289_v39  ;;  %3377 = vmatprep.subr.bf16.mxu0 %v2325_v50  ;;  %v5145_v39 = vpop.permute.xlu1 %2434 }
 0x90e   : > { %3378 = vmatpush3.bf16.msra.mxu0 %v2325_v50  ;;  %v2647_v50 = vld [vmem:[#allocation3 + $0xb0] sm:$0xff] }
 0x90f   : > { %3379 = vmatprep.subr.bf16.mxu0 %v4976_v15 }
 0x910   : > { %v2329_v28 = vpop.permute.xlu0 %2328  ;;  %2667 = vperm.xlu1 %3457, %v3663_v41  }
 0x912   : > { %3380 = vmatpush3.bf16.msra.mxu0 %v4976_v15  ;;  %v2200_v15 = vmul.f32 1.442695, %v2188_v17 }
 0x913   : > { %v3667_v26 = vpop.eup %3666  ;;  %3381 = vmatprep.subr.bf16.mxu0 %v2329_v28 }
 0x914   : > { %2677 = vperm.xlu1 %3457, %v3665_v61   ;;  %v2301_v22 = vsel %vm744_vm2, %v3667_v26, 0.0  ;;  %v2323_v13 = vpack.c.bf16 %v3667_v26, %v5077_v35  ;;  %v2331_v0 = vpop.permute.xlu0 %2330  ;;  %3670 = vpow2.f32 %v2200_v15  ;;  %v2204_v35 = vmul.f32 1.442695, %v2190_v47  ;;  %v1680_v47 = vld [vmem:[#allocation3 + $0x88] sm:$0xff] }
 0x915   : > { %2302 = vadd.xlane.f32.xlu0 %v2301_v22  ;;  %v1808_v55 = vmul.f32 %v5074_v9, %v1680_v47  ;;  %v1811_v9 = vmul.f32 %v5082_v1, %v1683_v43  ;;  %v1814_v1 = vmul.f32 %v4914_v63, %v1686_v14  ;;  %v5148_v22 = vpop.permute.xlu1 %2424 }
 0x916   : > { %3382 = vmatpush3.bf16.msra.mxu0 %v2329_v28  ;;  %3672 = vpow2.f32 %v2204_v35  ;;  %v1950_v28 = vld [vmem:[#allocation4 + $0x88] sm:$0xff]  ;;  %v1955_v35 = vld [vmem:[#allocation4 + $0xb0] sm:$0xff] }
 0x917   : > { %v3669_v27 = vpop.eup %3668  ;;  %3383 = vmatprep.subr.bf16.mxu0 %v2331_v0  ;;  %3674 = vrcp.f32 %v2497_v36 }
 0x918   : > { %v2295_v49 = vsel %vm744_vm2, %v3669_v27, 0.0  ;;  %v2322_v18 = vpack.c.bf16 %v3669_v27, %v5084_v20  ;;  %v2499_v20 = vld [vmem:[#allocation3 + $0x10] sm:$0xff] }
 0x919   : > { %2296 = vadd.xlane.f32.xlu0 %v2295_v49  ;;  %3676 = vrcp.f32 %v2499_v20  ;;  %v5152_v36 = vpop.permute.xlu1 %2439 }
 0x91a   : > { %3384 = vmatpush3.bf16.msra.mxu0 %v2331_v0  ;;  %3678 = vrcp.f32 %v2501_v38  ;;  %v1953_v0 = vld [vmem:[#allocation4 + $0xa0] sm:$0xff]  ;;  %v2145_v38 = vld [vmem:[#allocation3 + $0xc8] sm:$0xff] }
 0x91b   : > { %3680 = vrcp.f32 %v2570_v58 }
 0x91c   : > { %3682 = vrcp.f32 %v2572_v54 }
 0x91d   : > { %3386 = vmatmul.mubr.msk.bf16.vlgmr.msra.gmra.mrb[24].mxu0 %vm744_vm2, %v2321_v11  ;;  %3684 = vrcp.f32 %v2574_v51 }
 0x91e   : > { %3389 = vmatprep.mubr.msk.bf16.mxu0 %vm744_vm2, %v2322_v18  ;;  %v5130_v4 = vpop.eup %3670  ;;  %3686 = vrcp.f32 %v2576_v3 }
 0x920   : > { %v5133_v11 = vpop.eup %3672 }
 0x921   : > { %v3675_v59 = vpop.eup %3674 }
 0x923   : > { %v3677_v17 = vpop.eup %3676 }
 0x924   : > { %v3679_v10 = vpop.eup %3678 }
 0x925   : > { %3390 = vmatmul.mubr.msk.bf16.gmra.mrb[28].mxu0 %vm744_vm2, %v2323_v13  ;;  %v3681_v52 = vpop.eup %3680 }
 0x926   : > { %v3683_v19 = vpop.eup %3682 }
 0x927   : > { %v3685_v32 = vpop.eup %3684 }
 0x928   : > { %v3687_v12 = vpop.eup %3686 }
 0x92f   : > { %2444 = vperm.xlu0 %3456, %v5130_v4  }
 0x933   : > { %2454 = vperm.xlu0 %3456, %v5133_v11  }
 0x937   : > { %2523 = vperm.xlu0 %3456, %v3675_v59  }
 0x93b   : > { %2533 = vperm.xlu0 %3456, %v3677_v17  }
 0x93f   : > { %2543 = vperm.xlu0 %3456, %v3679_v10   ;;  %v2150_v10 = vld [vmem:[#allocation3 + $0xf0] sm:$0xff] }
 0x941   : > { %v1820_v48 = vpop.xlane.xlu0 %1819 }
 0x942   : > { %v1840_v42 = vadd.f32 %v1820_v48, %v1808_v55 }
 0x943   : > { %2600 = vperm.xlu0 %3456, %v3681_v52  }
 0x944   : > { %1848 = vst.msk [vmem:[#allocation3 + $0x88] sm:$0xff] %vm476_vm1, %v1840_v42 }
 0x945   : > { %v1826_v7 = vpop.xlane.xlu0 %1825 }
 0x946   : > { %v1842_v53 = vadd.f32 %v1826_v7, %v1810_v30  ;;  %v2146_v7 = vld [vmem:[#allocation3 + $0xd0] sm:$0xff] }
 0x947   : > { %2610 = vperm.xlu0 %3456, %v3683_v19   ;;  %v2274_v43 = vmul.f32 %v4950_v5, %v2146_v7  ;;  %v2151_v5 = vld [vmem:[#allocation3 + $0xf8] sm:$0xff] }
 0x948   : > { %1850 = vst.msk [vmem:[#allocation3 + $0x98] sm:$0xff] %vm476_vm1, %v1842_v53  ;;  %v2144_v53 = vld [vmem:[#allocation3 + $0xc0] sm:$0xff] }
 0x949   : > { %v1829_v34 = vpop.xlane.xlu0 %1828 }
 0x94a   : > { %v1843_v25 = vadd.f32 %v1829_v34, %v1811_v9 }
 0x94b   : > { %v2642_v46 = vld [vmem:[#allocation3 + $0x88] sm:$0xff]  ;;  %2620 = vperm.xlu0 %3456, %v3685_v32  }
 0x94c   : > { %3688 = vrcp.f32 %v2642_v46  ;;  %1851 = vst.msk [vmem:[#allocation3 + $0xa0] sm:$0xff] %vm476_vm1, %v1843_v25 }
 0x94d   : > { %v1832_v16 = vpop.xlane.xlu0 %1831 }
 0x94e   : > { %v1844_v23 = vadd.f32 %v1832_v16, %v1812_v44 }
 0x94f   : > { %v2644_v33 = vld [vmem:[#allocation3 + $0x98] sm:$0xff]  ;;  %2630 = vperm.xlu0 %3456, %v3687_v12   ;;  %v2279_v12 = vmul.f32 %v5102_v45, %v2151_v5  ;;  %v2502_v45 = vld [vmem:[#allocation3 + $0x28] sm:$0xff]  ;;  %v2591_v5 = vld [vmem:[#allocation4 + $0x70] sm:$0xff] }
 0x950   : > { %3690 = vrcp.f32 %v2644_v33  ;;  %1852 = vst.msk [vmem:[#allocation3 + $0xa8] sm:$0xff] %vm476_vm1, %v1844_v23  ;;  %v2149_v33 = vld [vmem:[#allocation3 + $0xe8] sm:$0xff] }
 0x951   : > { %v1838_v62 = vpop.xlane.xlu0 %1837 }
 0x952   : > { %v1846_v40 = vadd.f32 %v1838_v62, %v1814_v1 }
 0x953   : > { %v2645_v24 = vld [vmem:[#allocation3 + $0xa0] sm:$0xff] }
 0x954   : > { %3692 = vrcp.f32 %v2645_v24  ;;  %1854 = vst.msk [vmem:[#allocation3 + $0xb8] sm:$0xff] %vm476_vm1, %v1846_v40  ;;  %v2277_v40 = vmul.f32 %v5099_v2, %v2149_v33 }
 0x955   : > { %3694 = vrcp.f32 %v2647_v50 }
 0x956   : > { %v3689_v57 = vpop.eup %3688 }
 0x957   : > { %v2646_v41 = vld [vmem:[#allocation3 + $0xa8] sm:$0xff]  ;;  %2672 = vperm.xlu0 %3456, %v3689_v57  }
 0x958   : > { %3696 = vrcp.f32 %v2646_v41 }
 0x959   : > { %v1965_v61 = vpop.permute.xlu0 %1964 }
 0x95a   : > { %v3691_v26 = vpop.eup %3690  ;;  %v1998_v63 = vmul.f32 %v1965_v61, %v1950_v28 }
 0x95b   : > { %v2648_v13 = vld [vmem:[#allocation3 + $0xb8] sm:$0xff]  ;;  %2682 = vperm.xlu0 %3456, %v3691_v26  }
 0x95c   : > { %3698 = vrcp.f32 %v2648_v13  ;;  %v2006_v27 = vadd.f32 %v1998_v63, %v4801_v6  ;;  %v2273_v6 = vmul.f32 %v5093_v21, %v2145_v38  ;;  %v2276_v21 = vmul.f32 %v5130_v4, %v2148_v37  ;;  %v2504_v26 = vld [vmem:[#allocation3 + $0x38] sm:$0xff]  ;;  %v2503_v38 = vld [vmem:[#allocation3 + $0x30] sm:$0xff] }
 0x95d   : > { %v1980_v49 = vpop.permute.xlu0 %1979  ;;  %v2275_v4 = vmul.f32 %v4965_v29, %v2147_v8  ;;  %v2590_v8 = vld [vmem:[#allocation4 + $0x68] sm:$0xff] }
 0x95e   : > { %v3693_v18 = vpop.eup %3692  ;;  %2014 = vst.msk [vmem:[#allocation4 + $0x88] sm:$0xff] %vm541_vm0, %v2006_v27  ;;  %v2001_v15 = vmul.f32 %v1980_v49, %v1953_v0 }
 0x95f   : > { %2687 = vperm.xlu1 %3457, %v3693_v18   ;;  %v3695_v58 = vpop.eup %3694 }
 0x960   : > { %v2009_v20 = vadd.f32 %v2001_v15, %v4805_v60  ;;  %v2278_v60 = vmul.f32 %v5133_v11, %v2150_v10  ;;  %v2272_v11 = vmul.f32 %v4958_v31, %v2144_v53 }
 0x961   : > { %v1990_v59 = vpop.permute.xlu0 %1989 }
 0x962   : > { %v3697_v54 = vpop.eup %3696  ;;  %2017 = vst.msk [vmem:[#allocation4 + $0xa0] sm:$0xff] %vm541_vm0, %v2009_v20  ;;  %v2003_v17 = vmul.f32 %v1990_v59, %v1955_v35 }
 0x963   : > { %2692 = vperm.xlu0 %3456, %v3697_v54   ;;  %2697 = vperm.xlu1 %3457, %v3695_v58  }
 0x964   : > { %v2011_v51 = vadd.f32 %v4803_v56, %v2003_v17  ;;  %v2285_v47 = vpop.xlane.xlu1 %2284 }
 0x965   : > { %v2305_v55 = vadd.f32 %v2285_v47, %v2273_v6  ;;  %v5164_v30 = vpop.permute.xlu0 %2429 }
 0x966   : > { %v3699_v3 = vpop.eup %3698  ;;  %2019 = vst.msk [vmem:[#allocation4 + $0xb0] sm:$0xff] %vm541_vm0, %v2011_v51 }
 0x967   : > { %2313 = vst.msk [vmem:[#allocation3 + $0xc8] sm:$0xff] %vm476_vm1, %v2305_v55  ;;  %2702 = vperm.xlu0 %3456, %v3699_v3   ;;  %v2585_v3 = vld [vmem:[#allocation4 + $0x40] sm:$0xff] }
 0x968   : > { %v2300_v48 = vpop.xlane.xlu1 %2299 }
 0x969   : > { %v2310_v52 = vadd.f32 %v2300_v48, %v2278_v60  ;;  %v2586_v48 = vld [vmem:[#allocation4 + $0x48] sm:$0xff] }
 0x96b   : > { %2318 = vst.msk [vmem:[#allocation3 + $0xf0] sm:$0xff] %vm476_vm1, %v2310_v52 }
 0x96c   : > { %v2294_v42 = vpop.xlane.xlu1 %2293 }
 0x96d   : > { %v2308_v56 = vadd.f32 %v2294_v42, %v2276_v21 }
 0x96e   : > { %v2714_v29 = vld [vmem:[#allocation3 + $0xc8] sm:$0xff] }
 0x96f   : > { %2316 = vst.msk [vmem:[#allocation3 + $0xe0] sm:$0xff] %vm476_vm1, %v2308_v56  ;;  %v2587_v56 = vld [vmem:[#allocation4 + $0x50] sm:$0xff] }
 0x970   : > { %v5173_v31 = vpop.permute.xlu1 %2449 }
 0x972   : > { %v2719_v24 = vld [vmem:[#allocation3 + $0xf0] sm:$0xff] }
 0x974   : > { %v5177_v28 = vpop.permute.xlu1 %2459 }
 0x976   : > { %v2717_v14 = vld [vmem:[#allocation3 + $0xe0] sm:$0xff] }
 0x978   : > { %v5180_v13 = vpop.permute.xlu1 %2528 }
 0x97c   : > { %v5186_v20 = vpop.permute.xlu1 %2538 }
 0x980   : > { %v2596_v17 = vpop.permute.xlu1 %2595 }
 0x981   : > { %v2633_v52 = vmul.f32 %v2596_v17, %v2585_v3  ;;  %v2664_v3 = vld [vmem:[#allocation4 + $0xb8] sm:$0xff] }
 0x984   : > { %v2606_v55 = vpop.permute.xlu1 %2605 }
 0x985   : > { %v2635_v53 = vmul.f32 %v2606_v55, %v2587_v56 }
 0x988   : > { %v2616_v7 = vpop.permute.xlu1 %2615 }
 0x992   : > { %v2288_v19 = vpop.xlane.xlu0 %2287 }
 0x993   : > { %v2306_v9 = vadd.f32 %v2288_v19, %v2274_v43  ;;  %v2588_v43 = vld [vmem:[#allocation4 + $0x58] sm:$0xff] }
 0x995   : > { %2314 = vst.msk [vmem:[#allocation3 + $0xd0] sm:$0xff] %vm476_vm1, %v2306_v9 }
 0x996   : > { %v2282_v34 = vpop.xlane.xlu0 %2281 }
 0x997   : > { %v2304_v32 = vadd.f32 %v2282_v34, %v2272_v11  ;;  %v2589_v34 = vld [vmem:[#allocation4 + $0x60] sm:$0xff] }
 0x999   : > { %2312 = vst.msk [vmem:[#allocation3 + $0xc0] sm:$0xff] %vm476_vm1, %v2304_v32 }
 0x99a   : > { %v2291_v25 = vpop.xlane.xlu0 %2290 }
 0x99b   : > { %v2307_v46 = vadd.f32 %v2291_v25, %v2275_v4  ;;  %v2637_v4 = vmul.f32 %v2616_v7, %v2589_v34  ;;  %v2415_v7 = vld [vmem:[#allocation4 + $0xc8] sm:$0xff] }
 0x99c   : > { %v2715_v44 = vld [vmem:[#allocation3 + $0xd0] sm:$0xff]  ;;  %v2463_v34 = vmul.f32 %v5164_v30, %v2415_v7 }
 0x99d   : > { %3700 = vrcp.f32 %v2715_v44  ;;  %2315 = vst.msk [vmem:[#allocation3 + $0xd8] sm:$0xff] %vm476_vm1, %v2307_v46  ;;  %v2626_v46 = vpop.permute.xlu1 %2625 }
 0x9a0   : > { %v2713_v16 = vld [vmem:[#allocation3 + $0xc0] sm:$0xff] }
 0x9a1   : > { %3702 = vrcp.f32 %v2713_v16  ;;  %v2592_v16 = vld [vmem:[#allocation4 + $0x78] sm:$0xff] }
 0x9a2   : > { %v2303_v23 = vpop.xlane.xlu0 %2302  ;;  %3704 = vrcp.f32 %v2717_v14 }
 0x9a3   : > { %v2311_v1 = vadd.f32 %v2303_v23, %v2279_v12  ;;  %v2639_v12 = vmul.f32 %v2626_v46, %v2591_v5  ;;  %v2420_v46 = vld [vmem:[#allocation4 + $0xf0] sm:$0xff] }
 0x9a4   : > { %v2716_v62 = vld [vmem:[#allocation3 + $0xd8] sm:$0xff] }
 0x9a5   : > { %3706 = vrcp.f32 %v2716_v62  ;;  %2319 = vst.msk [vmem:[#allocation3 + $0xf8] sm:$0xff] %vm476_vm1, %v2311_v1  ;;  %v2668_v1 = vpop.permute.xlu1 %2667  ;;  %v2657_v62 = vld [vmem:[#allocation4 + $0x80] sm:$0xff] }
 0x9a6   : > { %v2297_v50 = vpop.xlane.xlu0 %2296  ;;  %3708 = vrcp.f32 %v2714_v29  ;;  %v2658_v29 = vld [vmem:[#allocation4 + $0x88] sm:$0xff] }
 0x9a7   : > { %v3701_v57 = vpop.eup %3700  ;;  %v2309_v41 = vadd.f32 %v2297_v50, %v2277_v40  ;;  %3710 = vrcp.f32 %v2719_v24  ;;  %v2705_v24 = vmul.f32 %v2668_v1, %v2657_v62 }
 0x9a8   : > { %2749 = vperm.xlu1 %3457, %v3701_v57   ;;  %3712 = vrcp.f32 %v2502_v45  ;;  %v2659_v45 = vld [vmem:[#allocation4 + $0x90] sm:$0xff] }
 0x9a9   : > { %2317 = vst.msk [vmem:[#allocation3 + $0xe8] sm:$0xff] %vm476_vm1, %v2309_v41  ;;  %3714 = vrcp.f32 %v2504_v26  ;;  %v2678_v57 = vpop.permute.xlu1 %2677  ;;  %v2660_v26 = vld [vmem:[#allocation4 + $0x98] sm:$0xff] }
 0x9ab   : > { %v3703_v61 = vpop.eup %3702 }
 0x9ac   : > { %2739 = vperm.xlu1 %3457, %v3703_v61   ;;  %v3705_v63 = vpop.eup %3704  ;;  %v2720_v18 = vld [vmem:[#allocation3 + $0xf8] sm:$0xff] }
 0x9ae   : > { %v5182_v2 = vpop.permute.xlu0 %2444 }
 0x9af   : > { %v3707_v0 = vpop.eup %3706 }
 0x9b0   : > { %v2718_v27 = vld [vmem:[#allocation3 + $0xe8] sm:$0xff]  ;;  %2754 = vperm.xlu0 %3456, %v3707_v0   ;;  %2759 = vperm.xlu1 %3457, %v3705_v63   ;;  %v3709_v49 = vpop.eup %3708  ;;  %v2707_v63 = vmul.f32 %v2678_v57, %v2659_v45 }
 0x9b1   : > { %3716 = vrcp.f32 %v2718_v27  ;;  %v3711_v35 = vpop.eup %3710 }
 0x9b2   : > { %v5184_v15 = vpop.permute.xlu0 %2454  ;;  %3718 = vrcp.f32 %v2720_v18  ;;  %v3713_v59 = vpop.eup %3712  ;;  %v2661_v18 = vld [vmem:[#allocation4 + $0xa0] sm:$0xff] }
 0x9b3   : > { %3720 = vrcp.f32 %v2503_v38  ;;  %v3715_v54 = vpop.eup %3714  ;;  %v2662_v38 = vld [vmem:[#allocation4 + $0xa8] sm:$0xff]  ;;  %v2468_v5 = vmul.f32 %v5184_v15, %v2420_v46 }
 0x9b4   : > { %2744 = vperm.xlu0 %3456, %v3709_v49   ;;  %2769 = vperm.xlu1 %3457, %v3711_v35  }
 0x9b6   : > { %v5188_v58 = vpop.permute.xlu0 %2523 }
 0x9b8   : > { %2548 = vperm.xlu1 %3457, %v3713_v59  }
 0x9ba   : > { %v5190_v6 = vpop.permute.xlu0 %2533 }
 0x9bb   : > { %v3717_v51 = vpop.eup %3716 }
 0x9bc   : > { %2764 = vperm.xlu0 %3456, %v3717_v51   ;;  %2558 = vperm.xlu1 %3457, %v3715_v54   ;;  %v3719_v10 = vpop.eup %3718 }
 0x9bd   : > { %v3721_v37 = vpop.eup %3720 }
 0x9be   : > { %v5192_v47 = vpop.permute.xlu0 %2543 }
 0x9c0   : > { %2774 = vperm.xlu0 %3456, %v3719_v10   ;;  %v2663_v10 = vld [vmem:[#allocation4 + $0xb0] sm:$0xff] }
 0x9c2   : > { %v2601_v60 = vpop.permute.xlu0 %2600 }
 0x9c3   : > { %v2634_v21 = vmul.f32 %v2601_v60, %v2586_v48 }
 0x9c4   : > { %2553 = vperm.xlu0 %3456, %v3721_v37  }
 0x9c5   : > { %v3458_v42 = vpack.i.bf16 %v2634_v21, %v2633_v52  ;;  %v2416_v52 = vld [vmem:[#allocation4 + $0xd0] sm:$0xff]  ;;  %v2414_v21 = vld [vmem:[#allocation4 + $0xc0] sm:$0xff] }
 0x9c6   : > { %v2611_v19 = vpop.permute.xlu0 %2610  ;;  %v2464_v56 = vmul.f32 %v5145_v39, %v2416_v52 }
 0x9c7   : > { %v2636_v9 = vmul.f32 %v2611_v19, %v2588_v43  ;;  %v2462_v43 = vmul.f32 %v5148_v22, %v2414_v21  ;;  %v2421_v22 = vld [vmem:[#allocation4 + $0xf8] sm:$0xff] }
 0x9c8   : > { %3459 = vrot.lane.b32.xlu0 %v3458_v42, %s3779_s29  ;;  %v2417_v42 = vld [vmem:[#allocation4 + $0xd8] sm:$0xff] }
 0x9c9   : > { %v3463_v11 = vpack.i.bf16 %v2636_v9, %v2635_v53  ;;  %v2465_v53 = vmul.f32 %v5152_v36, %v2417_v42  ;;  %v2419_v36 = vld [vmem:[#allocation4 + $0xe8] sm:$0xff] }
 0x9ca   : > { %v2621_v32 = vpop.permute.xlu0 %2620 }
 0x9cb   : > { %v2638_v25 = vmul.f32 %v2621_v32, %v2590_v8  ;;  %3464 = vrot.lane.b32.xlu1 %v3463_v11, %s3779_s29 }
 0x9cd   : > { %v3468_v44 = vpack.i.bf16 %v2638_v25, %v2637_v4 }
 0x9ce   : > { %v2631_v14 = vpop.permute.xlu0 %2630 }
 0x9cf   : > { %v2640_v23 = vmul.f32 %v2631_v14, %v2592_v16  ;;  %3469 = vrot.lane.b32.xlu0 %v3468_v44, %s3779_s29  ;;  %v2418_v44 = vld [vmem:[#allocation4 + $0xe0] sm:$0xff]  ;;  %v2469_v14 = vmul.f32 %v5177_v28, %v2421_v22 }
 0x9d0   : > { %v2466_v30 = vmul.f32 %v5182_v2, %v2418_v44 }
 0x9d1   : > { %v3473_v33 = vpack.i.bf16 %v2640_v23, %v2639_v12 }
 0x9d3   : > { %3474 = vrot.lane.b32.xlu1 %v3473_v33, %s3779_s29  ;;  %v2467_v33 = vmul.f32 %v5173_v31, %v2419_v36 }
 0x9d6   : > { %v2673_v40 = vpop.permute.xlu0 %2672 }
 0x9d7   : > { %v2706_v50 = vmul.f32 %v2673_v40, %v2658_v29 }
 0x9d9   : > { %v3478_v41 = vpack.i.bf16 %v2706_v50, %v2705_v24 }
 0x9da   : > { %v2683_v61 = vpop.permute.xlu0 %2682 }
 0x9db   : > { %v2708_v0 = vmul.f32 %v2683_v61, %v2660_v26  ;;  %3479 = vrot.lane.b32.xlu0 %v3478_v41, %s3778_s28 }
 0x9dd   : > { %v3483_v27 = vpack.i.bf16 %v2708_v0, %v2707_v63 }
 0x9de   : > { %v2688_v49 = vpop.permute.xlu1 %2687 }
 0x9df   : > { %3484 = vrot.lane.b32.xlu1 %v3483_v27, %s3778_s28  ;;  %v2709_v59 = vmul.f32 %v2688_v49, %v2661_v18 }
 0x9e2   : > { %v2693_v35 = vpop.permute.xlu0 %2692  ;;  %v2698_v17 = vpop.permute.xlu1 %2697 }
 0x9e3   : > { %v2710_v54 = vmul.f32 %v2693_v35, %v2662_v38  ;;  %v2711_v60 = vmul.f32 %v2698_v17, %v2663_v10 }
 0x9e5   : > { %v3488_v51 = vpack.i.bf16 %v2710_v54, %v2709_v59 }
 0x9e6   : > { %v2703_v55 = vpop.permute.xlu0 %2702 }
 0x9e7   : > { %v2712_v48 = vmul.f32 %v2703_v55, %v2664_v3  ;;  %3489 = vrot.lane.b32.xlu0 %v3488_v51, %s3778_s28 }
 0x9e9   : > { %v3493_v37 = vpack.i.bf16 %v2712_v48, %v2711_v60 }
 0x9eb   : > { %3494 = vrot.lane.b32.xlu1 %v3493_v37, %s3778_s28 }
 0x9f0   : > { %v3387_v19 = vpop.f32.mrb[24].mxu0 }
 0x9f1   : > { %v2472_v9 = vadd.f32 %v3387_v19, %v2464_v56  ;;  %v2382_v11 = vpop.f32.mrb[25].mxu0 }
 0x9f2   : > { %v2470_v8 = vadd.f32 %v2462_v43, %v2382_v11  ;;  %v3388_v32 = vpop.f32.mrb[26].mxu0 }
 0x9f3   : > { %2480 = vst.msk [vmem:[#allocation4 + $0xd0] sm:$0xff] %vm541_vm0, %v2472_v9  ;;  %v2473_v4 = vadd.f32 %v3388_v32, %v2465_v53  ;;  %v2385_v25 = vpop.f32.mrb[27].mxu0 }
 0x9f4   : > { %2478 = vst.msk [vmem:[#allocation4 + $0xc0] sm:$0xff] %vm541_vm0, %v2470_v8  ;;  %v2471_v39 = vadd.f32 %v2463_v34, %v2385_v25  ;;  %v2515_v25 = vld [vmem:[#allocation4 + $0x10] sm:$0xff] }
 0x9f5   : > { %2481 = vst.msk [vmem:[#allocation4 + $0xd8] sm:$0xff] %vm541_vm0, %v2473_v4  ;;  %v2516_v4 = vld [vmem:[#allocation4 + $0x18] sm:$0xff] }
 0x9f6   : > { %2479 = vst.msk [vmem:[#allocation4 + $0xc8] sm:$0xff] %vm541_vm0, %v2471_v39  ;;  %v2564_v46 = vmul.f32 %v5186_v20, %v2516_v4  ;;  %v2563_v39 = vmul.f32 %v5190_v6, %v2515_v25 }
 0x9f8   : > { %v3391_v16 = vpop.f32.mrb[28].mxu0 }
 0x9f9   : > { %v2476_v12 = vadd.f32 %v3391_v16, %v2468_v5  ;;  %v2398_v23 = vpop.f32.mrb[29].mxu0 }
 0x9fa   : > { %v2474_v1 = vadd.f32 %v2466_v30, %v2398_v23  ;;  %v3392_v62 = vpop.f32.mrb[30].mxu0  ;;  %v2731_v15 = vld [vmem:[#allocation4 + $0xd0] sm:$0xff] }
 0x9fb   : > { %2484 = vst.msk [vmem:[#allocation4 + $0xf0] sm:$0xff] %vm541_vm0, %v2476_v12  ;;  %v2477_v29 = vadd.f32 %v3392_v62, %v2469_v14  ;;  %v2401_v40 = vpop.f32.mrb[31].mxu0  ;;  %v2729_v61 = vld [vmem:[#allocation4 + $0xc0] sm:$0xff] }
 0x9fc   : > { %2482 = vst.msk [vmem:[#allocation4 + $0xe0] sm:$0xff] %vm541_vm0, %v2474_v1  ;;  %v2475_v24 = vadd.f32 %v2467_v33, %v2401_v40  ;;  %v2732_v50 = vld [vmem:[#allocation4 + $0xd8] sm:$0xff]  ;;  %v2514_v1 = vld [vmem:[#allocation4 + $0x8] sm:$0xff]  ;;  %v2513_v62 = vld [vmem:[#allocation4] sm:$0xff] }
 0x9fd   : > { %2485 = vst.msk [vmem:[#allocation4 + $0xf8] sm:$0xff] %vm541_vm0, %v2477_v29  ;;  %v2730_v26 = vld [vmem:[#allocation4 + $0xc8] sm:$0xff] }
 0x9fe   : > { %2483 = vst.msk [vmem:[#allocation4 + $0xe8] sm:$0xff] %vm541_vm0, %v2475_v24  ;;  %v2562_v24 = vmul.f32 %v5180_v13, %v2514_v1 }
 0xa02   : > { %v2735_v55 = vld [vmem:[#allocation4 + $0xf0] sm:$0xff] }
 0xa03   : > { %v2733_v35 = vld [vmem:[#allocation4 + $0xe0] sm:$0xff] }
 0xa04   : > { %v2736_v60 = vld [vmem:[#allocation4 + $0xf8] sm:$0xff] }
 0xa05   : > { %v2734_v59 = vld [vmem:[#allocation4 + $0xe8] sm:$0xff] }
 0xa27   : > { %v2750_v2 = vpop.permute.xlu1 %2749 }
 0xa28   : > { %v2779_v57 = vmul.f32 %v2750_v2, %v2731_v15  ;;  %v2561_v2 = vmul.f32 %v5188_v58, %v2513_v62 }
 0xa2b   : > { %v2740_v31 = vpop.permute.xlu1 %2739 }
 0xa2c   : > { %v2777_v0 = vmul.f32 %v2740_v31, %v2729_v61 }
 0xa2f   : > { %v2755_v28 = vpop.permute.xlu0 %2754  ;;  %v2760_v18 = vpop.permute.xlu1 %2759 }
 0xa30   : > { %v2780_v41 = vmul.f32 %v2755_v28, %v2732_v50  ;;  %v2781_v54 = vmul.f32 %v2760_v18, %v2733_v35  ;;  %v2517_v18 = vld [vmem:[#allocation4 + $0x20] sm:$0xff]  ;;  %v2518_v35 = vld [vmem:[#allocation4 + $0x28] sm:$0xff] }
 0xa32   : > { %v3498_v45 = vpack.i.bf16 %v2780_v41, %v2779_v57 }
 0xa33   : > { %v2745_v63 = vpop.permute.xlu0 %2744  ;;  %v2770_v51 = vpop.permute.xlu1 %2769 }
 0xa34   : > { %v2778_v27 = vmul.f32 %v2745_v63, %v2730_v26  ;;  %3499 = vrot.lane.b32.xlu1 %v3498_v45, %s3777_s26  ;;  %v2783_v48 = vmul.f32 %v2770_v51, %v2735_v55 }
 0xa36   : > { %v3503_v49 = vpack.i.bf16 %v2778_v27, %v2777_v0 }
 0xa37   : > { %v2549_v21 = vpop.permute.xlu1 %2548 }
 0xa38   : > { %3504 = vrot.lane.b32.xlu0 %v3503_v49, %s3777_s26 }
 0xa3b   : > { %v2765_v38 = vpop.permute.xlu0 %2764  ;;  %v5222_v42 = vpop.permute.xlu1 %2558 }
 0xa3c   : > { %v2782_v17 = vmul.f32 %v2765_v38, %v2734_v59 }
 0xa3e   : > { %v3508_v10 = vpack.i.bf16 %v2782_v17, %v2781_v54  ;;  %v2565_v54 = vmul.f32 %v5192_v47, %v2517_v18  ;;  %v2566_v17 = vmul.f32 %v2549_v21, %v2518_v35 }
 0xa3f   : > { %v2775_v3 = vpop.permute.xlu0 %2774  ;;  %v3465_v7 = vpop.permute.xlu1 %3464 }
 0xa40   : > { %v2784_v37 = vmul.f32 %v2775_v3, %v2736_v60  ;;  %3509 = vrot.lane.b32.xlu0 %v3508_v10, %s3777_s26  ;;  %v3467_v11 = vunpack.i.h.bf16 %v3465_v7  ;;  %v3466_v34 = vunpack.i.l.bf16 %v3465_v7  ;;  %v2519_v7 = vld [vmem:[#allocation4 + $0x30] sm:$0xff] }
 0xa42   : > { %v3513_v52 = vpack.i.bf16 %v2784_v37, %v2783_v48  ;;  %v2884_v36 = vsel %vm541_vm0, %v2564_v46, %v3467_v11  ;;  %v2883_v5 = vsel %vm541_vm0, %v2563_v39, %v3466_v34 }
 0xa43   : > { %v5224_v56 = vpop.permute.xlu0 %2553 }
 0xa44   : > { %3514 = vrot.lane.b32.xlu1 %v3513_v52, %s3777_s26  ;;  %v2520_v52 = vld [vmem:[#allocation4 + $0x38] sm:$0xff] }
 0xa45   : > { %v5226_v19 = vpop.permute.xlu1 %3474 }
 0xa46   : > { %v3477_v51 = vunpack.i.h.bf16 %v5226_v19  ;;  %v3476_v10 = vunpack.i.l.bf16 %v5226_v19  ;;  %v2568_v19 = vmul.f32 %v5222_v42, %v2520_v52 }
 0xa47   : > { %v3460_v43 = vpop.permute.xlu0 %3459 }
 0xa48   : > { %v3462_v14 = vunpack.i.h.bf16 %v3460_v43  ;;  %v3461_v12 = vunpack.i.l.bf16 %v3460_v43  ;;  %v2888_v25 = vsel %vm541_vm0, %v2568_v19, %v3477_v51 }
 0xa4a   : > { %v2882_v41 = vsel %vm541_vm0, %v2562_v24, %v3462_v14  ;;  %v2881_v31 = vsel %vm541_vm0, %v2561_v2, %v3461_v12 }
 0xa4b   : > { %v3470_v53 = vpop.permute.xlu0 %3469 }
 0xa4c   : > { %v3472_v27 = vunpack.i.h.bf16 %v3470_v53  ;;  %v3471_v49 = vunpack.i.l.bf16 %v3470_v53 }
 0xa4e   : > { %v2885_v3 = vsel %vm541_vm0, %v2565_v54, %v3471_v49  ;;  %v2886_v60 = vsel %vm541_vm0, %v2566_v17, %v3472_v27 }
 0xa4f   : > { %v3480_v8 = vpop.permute.xlu0 %3479 }
 0xa50   : > { %v3482_v29 = vunpack.i.h.bf16 %v3480_v8  ;;  %v3481_v20 = vunpack.i.l.bf16 %v3480_v8 }
 0xa51   : > { %v3485_v9 = vpop.permute.xlu1 %3484 }
 0xa52   : > { %v3487_v44 = vunpack.i.h.bf16 %v3485_v9  ;;  %v3486_v22 = vunpack.i.l.bf16 %v3485_v9  ;;  %v2890_v58 = vsel %vm744_vm2, %v2882_v41, %v3482_v29  ;;  %v2889_v61 = vsel %vm744_vm2, %v2881_v31, %v3481_v20 }
 0xa53   : > { %v2567_v9 = vmul.f32 %v5224_v56, %v2519_v7 }
 0xa54   : > { %v2891_v6 = vsel %vm744_vm2, %v2883_v5, %v3486_v22  ;;  %v2892_v40 = vsel %vm744_vm2, %v2884_v36, %v3487_v44 }
 0xa55   : > { %v2887_v46 = vsel %vm541_vm0, %v2567_v9, %v3476_v10 }
 0xa59   : > { %v3490_v30 = vpop.permute.xlu0 %3489 }
 0xa5a   : > { %v3492_v38 = vunpack.i.h.bf16 %v3490_v30  ;;  %v3491_v59 = vunpack.i.l.bf16 %v3490_v30 }
 0xa5c   : > { %v2893_v43 = vsel %vm744_vm2, %v2885_v3, %v3491_v59  ;;  %v2894_v53 = vsel %vm744_vm2, %v2886_v60, %v3492_v38 }
 0xa5d   : > { %v5229_v32 = vpop.permute.xlu1 %3494 }
 0xa5e   : > { %v3497_v47 = vunpack.i.h.bf16 %v5229_v32  ;;  %v3496_v21 = vunpack.i.l.bf16 %v5229_v32 }
 0xa60   : > { %v2895_v22 = vsel %vm744_vm2, %v2887_v46, %v3496_v21  ;;  %v2896_v32 = vsel %vm744_vm2, %v2888_v25, %v3497_v47 }
 0xaa6   : > { %v3500_v16 = vpop.permute.xlu1 %3499 }
 0xaa7   : > { %v3502_v23 = vunpack.i.h.bf16 %v3500_v16  ;;  %v3501_v33 = vunpack.i.l.bf16 %v3500_v16 }
 0xaa9   : > { %v2900_v15 = vsel %vm2897_vm3, %v2891_v6, %v3501_v33  ;;  %v2901_v28 = vsel %vm2897_vm3, %v2892_v40, %v3502_v23 }
 0xaaa   : > { %v3186_v50 = vpack.c.bf16 %v2901_v28, %v2900_v15  ;;  %v3505_v57 = vpop.permute.xlu0 %3504 }
 0xaab   : > { %v3507_v13 = vunpack.i.h.bf16 %v3505_v57  ;;  %v3506_v45 = vunpack.i.l.bf16 %v3505_v57 }
 0xaac   : > { %3198 = vst [vmem:[%s5243_s5 + $0x8] sm:$0xff] %v3186_v50  }
 0xaad   : > { %v2899_v26 = vsel %vm2897_vm3, %v2890_v58, %v3507_v13  ;;  %v2898_v63 = vsel %vm2897_vm3, %v2889_v61, %v3506_v45 }
 0xaae   : > { %v3181_v0 = vpack.c.bf16 %v2899_v26, %v2898_v63 }
 0xab0   : > { %3182 = vst [vmem:[%s5243_s5] sm:$0xff] %v3181_v0  }
 0xab2   : > { %v3510_v55 = vpop.permute.xlu0 %3509 }
 0xab3   : > { %v3512_v48 = vunpack.i.h.bf16 %v3510_v55  ;;  %v3511_v37 = vunpack.i.l.bf16 %v3510_v55 }
 0xab5   : > { %v2902_v11 = vsel %vm2897_vm3, %v2893_v43, %v3511_v37  ;;  %v2903_v34 = vsel %vm2897_vm3, %v2894_v53, %v3512_v48 }
 0xab6   : > { %v3191_v8 = vpack.c.bf16 %v2903_v34, %v2902_v11  ;;  %v3515_v4 = vpop.permute.xlu1 %3514 }
 0xab7   : > { %v3517_v39 = vunpack.i.h.bf16 %v3515_v4  ;;  %v3516_v44 = vunpack.i.l.bf16 %v3515_v4 }
 0xab8   : > { %3199 = vst [vmem:[%s5243_s5 + $0x10] sm:$0xff] %v3191_v8  }
 0xab9   : > { %v2904_v42 = vsel %vm2897_vm3, %v2895_v22, %v3516_v44  ;;  %v2905_v56 = vsel %vm2897_vm3, %v2896_v32, %v3517_v39 }
 0xaba   : > { %v3196_v36 = vpack.c.bf16 %v2905_v56, %v2904_v42 }
 0xabc   : > { %3200 = vst [vmem:[%s5243_s5 + $0x18] sm:$0xff] %v3196_v36  }
 0xabd PF: > { %s13_s16 = sadd.s32 1, %s3772_s16   ;;  %s5397_s12 = smov %s3760_s13 }
 0xabe   : > { %p10_p10 = scmp.ge.s32.totalorder %s13_s16, 4   ;;  %s5398_s13 = smov %s3839_s21 }
 0xabf   : > { %s5399_s14 = smov %s3768_s15  ;;  %s5400_s15 = smov %s5402_s17 }
 0xac0   :  { %12 = sbr.rel (!%p10_p10) target bundleno = 3 (0x3), region = 223 }

// kernel: dit_forward.24
= control target key start
LH: loop header
LB: loop body
LE: loop exit
PB: predicated region body
PF: predicated region fallthrough
CT: control target
= control target key end

     0   :  { %s1049_s18 = smov 0   ;;  %s1051_s19 = smov 0   ;;  %s1164_s0 = inlined_call_operand.vmem [shape: bf16[2,64,128], index: 0, kind: input, shape index: {}]   ;;  %s1165_s1 = inlined_call_operand.vmem [shape: f32[2,1,128], index: 1, kind: input, shape index: {}, may-alias: {1,2}]   ;;  %s1166_s2 = inlined_call_operand.vmem [shape: f32[2,1,128], index: 2, kind: input, shape index: {}, may-alias: {1,2}]   ;;  %s1167_s3 = inlined_call_operand.vmem [shape: bf16[128,128], index: 3, kind: input, shape index: {}]   ;;  %s1168_s4 = inlined_call_operand.vmem [shape: f32[1,128], index: 4, kind: input, shape index: {}]   ;;  %s1169_s5 = inlined_call_operand.vmem [shape: bf16[2,64,128], index: 5, kind: output, shape index: {}]  }
   0x1   :  { %s1053_s20 = smov 0  }
   0x2 LB: > { %s34_s21 = sadd.s32 1, %s1013_s19  ;;  %p818_p0 = scmp.ge.s32.totalorder %s1017_s20, 1  ;;  %s1017_s20 = sphi %s1053_s20, %s15_s20   ;;  %s1013_s19 = sphi %s1051_s19, %s1171_s19   ;;  %s1009_s18 = sphi %s1049_s18, %s1170_s18  }
   0x3   : > { %p36_p1 = scmp.ge.s32.totalorder %s34_s21, 2  ;;  %p250_p2 = scmp.lt.s32.totalorder %s1017_s20, 3 }
   0x5   : > { %s1173_s21 = smov (%p36_p1, %s34_s21), 0  ;;  %p251_p3 = pnand %p818_p0, %p250_p2 }
   0x6   : > { %p303_p4 = scmp.lt.s32.totalorder (!%p251_p3), %s1009_s18, 1  ;;  %v971_v44 = vld [vmem:[%s1167_s3] sm:$0xff] (!%p251_p3)   ;;  %v972_v45 = vld [vmem:[%s1167_s3 + $0x8] sm:$0xff] (!%p251_p3)   ;;  %v973_v46 = vld [vmem:[%s1167_s3 + $0x10] sm:$0xff] (!%p251_p3)   ;;  %v451_v55 = vlaneseq (!%p251_p3) }
   0x7   : > { %254 = sbr.rel (%p251_p3) target bundleno = 569 (0x239), region = 40  ;;  %907 = vmatprep.subr.bf16.mxu0 (!%p251_p3), %v971_v44  ;;  %931 = vmatprep.subr.bf16.mxu1 (!%p251_p3), %v971_v44  ;;  %v974_v47 = vld [vmem:[%s1167_s3 + $0x18] sm:$0xff] (!%p251_p3)   ;;  %v975_v48 = vld [vmem:[%s1167_s3 + $0x20] sm:$0xff] (!%p251_p3)   ;;  %v976_v49 = vld [vmem:[%s1167_s3 + $0x28] sm:$0xff] (!%p251_p3)  }
   0x8   : > { %908 = vmatpush3.bf16.msra.mxu0 (!%p251_p3), %v971_v44  ;;  %939 = vmatpush3.bf16.msra.mxu1 (!%p251_p3), %v971_v44  ;;  %v977_v50 = vld [vmem:[%s1167_s3 + $0x30] sm:$0xff] (!%p251_p3)   ;;  %v978_v51 = vld [vmem:[%s1167_s3 + $0x38] sm:$0xff] (!%p251_p3)   ;;  %v452_v62 = vshrl.u32 (!%p251_p3), %v451_v55, 7 }
   0x9   : > { %909 = vmatprep.subr.bf16.mxu0 (!%p251_p3), %v972_v45  ;;  %932 = vmatprep.subr.bf16.mxu1 (!%p251_p3), %v972_v45 }
   0xc   : > { %910 = vmatpush3.bf16.msra.mxu0 (!%p251_p3), %v972_v45  ;;  %940 = vmatpush3.bf16.msra.mxu1 (!%p251_p3), %v972_v45 }
   0xd   : > { %911 = vmatprep.subr.bf16.mxu0 (!%p251_p3), %v973_v46  ;;  %933 = vmatprep.subr.bf16.mxu1 (!%p251_p3), %v973_v46 }
   0xe   : > { %s1175_s18 = smov (!%p303_p4, %s1009_s18), 1 }
   0xf   : > { %s843_s22 = sshll.u32 %s1175_s18, 5  ;;  %s317_s24 = scalar_lea.vmem %s1166_s2, %s1175_s18 }
  0x10   : > { %s310_s25 = scalar_lea.vmem %s1164_s0, %s843_s22  ;;  %912 = vmatpush3.bf16.msra.mxu0 %v973_v46  ;;  %941 = vmatpush3.bf16.msra.mxu1 %v973_v46  ;;  %s314_s27 = scalar_lea.vmem %s1165_s1, %s1175_s18 }
  0x11   : > { %v854_v0 = vld [vmem:[%s310_s25] sm:$0xff]   ;;  %v890_v1 = vld [vmem:[%s310_s25 + $0x10] sm:$0xff]   ;;  %v889_v6 = vld [vmem:[%s310_s25 + $0x8] sm:$0xff]   ;;  %913 = vmatprep.subr.bf16.mxu0 %v974_v47  ;;  %934 = vmatprep.subr.bf16.mxu1 %v974_v47  ;;  %s336_s7 = scalar_lea.vmem %s1169_s5, %s843_s22 }
  0x12   : > { %v855_v2 = vunpack.c.l.bf16 %v854_v0  ;;  %v863_v3 = vunpack.c.l.bf16 %v890_v1  ;;  %v856_v4 = vunpack.c.h.bf16 %v854_v0  ;;  %v864_v5 = vunpack.c.h.bf16 %v890_v1  ;;  %v891_v9 = vld [vmem:[%s310_s25 + $0x18] sm:$0xff]   ;;  %v448_v1 = vld [vmem:[%s317_s24] sm:$0x1] }
  0x13   : > { %v859_v7 = vunpack.c.l.bf16 %v889_v6  ;;  %v860_v8 = vunpack.c.h.bf16 %v889_v6  ;;  %v867_v10 = vunpack.c.l.bf16 %v891_v9  ;;  %v868_v11 = vunpack.c.h.bf16 %v891_v9 }
  0x14   : > { %359 = vadd.xlane.f32.xlu0 %v855_v2  ;;  %367 = vadd.xlane.f32.xlu1 %v863_v3  ;;  %v449_v6 = vadd.f32 1.0, %v448_v1 }
  0x15   : > { %914 = vmatpush3.bf16.msra.mxu0 %v974_v47  ;;  %942 = vmatpush3.bf16.msra.mxu1 %v974_v47 }
  0x16   : > { %915 = vmatprep.subr.bf16.mxu0 %v975_v48  ;;  %935 = vmatprep.subr.bf16.mxu1 %v975_v48 }
  0x18   : > { %361 = vadd.xlane.f32.xlu0 %v856_v4  ;;  %369 = vadd.xlane.f32.xlu1 %v864_v5 }
  0x19   : > { %916 = vmatpush3.bf16.msra.mxu0 %v975_v48  ;;  %943 = vmatpush3.bf16.msra.mxu1 %v975_v48 }
  0x1a   : > { %917 = vmatprep.subr.bf16.mxu0 %v976_v49  ;;  %936 = vmatprep.subr.bf16.mxu1 %v976_v49 }
  0x1c   : > { %363 = vadd.xlane.f32.xlu0 %v859_v7  ;;  %365 = vadd.xlane.f32.xlu1 %v860_v8 }
  0x1d   : > { %918 = vmatpush3.bf16.msra.mxu0 %v976_v49  ;;  %944 = vmatpush3.bf16.msra.mxu1 %v976_v49 }
  0x1e   : > { %919 = vmatprep.subr.bf16.mxu0 %v977_v50  ;;  %937 = vmatprep.subr.bf16.mxu1 %v977_v50 }
  0x20   : > { %371 = vadd.xlane.f32.xlu0 %v867_v10  ;;  %373 = vadd.xlane.f32.xlu1 %v868_v11 }
  0x21   : > { %920 = vmatpush3.bf16.msra.mxu0 %v977_v50  ;;  %945 = vmatpush3.bf16.msra.mxu1 %v977_v50 }
  0x22   : > { %921 = vmatprep.subr.bf16.mxu0 %v978_v51  ;;  %938 = vmatprep.subr.bf16.mxu1 %v978_v51 }
  0x25   : > { %922 = vmatpush3.bf16.msra.mxu0 %v978_v51  ;;  %946 = vmatpush3.bf16.msra.mxu1 %v978_v51 }
  0xa1   : > { %v360_v12 = vpop.xlane.xlu0 %359  ;;  %v368_v13 = vpop.xlane.xlu1 %367 }
  0xa2   : > { %v376_v14 = vmul.f32 0.0078125, %v360_v12  ;;  %v380_v15 = vmul.f32 0.0078125, %v368_v13 }
  0xa4   : > { %v1075_v16 = vsub.f32 %v855_v2, %v376_v14  ;;  %v1077_v17 = vsub.f32 %v863_v3, %v380_v15 }
  0xa5   : > { %v362_v18 = vpop.xlane.xlu0 %361  ;;  %v370_v19 = vpop.xlane.xlu1 %369 }
  0xa6   : > { %v377_v20 = vmul.f32 0.0078125, %v362_v18  ;;  %v392_v21 = vmul.f32 %v1075_v16, %v1075_v16  ;;  %v381_v22 = vmul.f32 0.0078125, %v370_v19  ;;  %v396_v25 = vmul.f32 %v1077_v17, %v1077_v17 }
  0xa8   : > { %v1081_v23 = vsub.f32 %v856_v4, %v377_v20  ;;  %400 = vadd.xlane.f32.xlu0 %v392_v21  ;;  %v1083_v24 = vsub.f32 %v864_v5, %v381_v22 }
  0xa9   : > { %v364_v26 = vpop.xlane.xlu0 %363  ;;  %v366_v27 = vpop.xlane.xlu1 %365 }
  0xaa   : > { %v378_v28 = vmul.f32 0.0078125, %v364_v26  ;;  %v393_v29 = vmul.f32 %v1081_v23, %v1081_v23  ;;  %v379_v30 = vmul.f32 0.0078125, %v366_v27  ;;  %v397_v33 = vmul.f32 %v1083_v24, %v1083_v24 }
  0xac   : > { %v1089_v31 = vsub.f32 %v859_v7, %v378_v28  ;;  %408 = vadd.xlane.f32.xlu0 %v396_v25  ;;  %402 = vadd.xlane.f32.xlu1 %v393_v29  ;;  %v1091_v32 = vsub.f32 %v860_v8, %v379_v30  ;;  %v453_v7 = vsub.s32 0, %v452_v62  ;;  %v823_v28 = vld [vmem:[%s314_s27] ss:$0 sm:$0xff] }
  0xad   : > { %v372_v34 = vpop.xlane.xlu0 %371  ;;  %v374_v35 = vpop.xlane.xlu1 %373 }
  0xae   : > { %v382_v36 = vmul.f32 0.0078125, %v372_v34  ;;  %v394_v37 = vmul.f32 %v1089_v31, %v1089_v31  ;;  %v383_v38 = vmul.f32 0.0078125, %v374_v35  ;;  %v395_v41 = vmul.f32 %v1091_v32, %v1091_v32 }
  0xaf   : > { %v454_v15 = vrot.slane %v449_v6, %v453_v7 }
  0xb0   : > { %v1097_v39 = vsub.f32 %v867_v10, %v382_v36  ;;  %410 = vadd.xlane.f32.xlu1 %v397_v33  ;;  %404 = vadd.xlane.f32.xlu0 %v394_v37  ;;  %v1099_v40 = vsub.f32 %v868_v11, %v383_v38 }
  0xb2   : > { %v398_v42 = vmul.f32 %v1097_v39, %v1097_v39  ;;  %v399_v43 = vmul.f32 %v1099_v40, %v1099_v40 }
  0xb4   : > { %406 = vadd.xlane.f32.xlu1 %v395_v41  ;;  %412 = vadd.xlane.f32.xlu0 %v398_v42 }
  0xb8   : > { %414 = vadd.xlane.f32.xlu1 %v399_v43 }
 0x135   : > { %v401_v52 = vpop.xlane.xlu0 %400 }
 0x136   : > { %v416_v53 = vmul.f32 0.0078125, %v401_v52 }
 0x138   : > { %v424_v54 = vadd.f32 1e-06, %v416_v53 }
 0x139   : > { %v403_v56 = vpop.xlane.xlu1 %402  ;;  %v409_v57 = vpop.xlane.xlu0 %408 }
 0x13a   : > { %979 = vrsqrt.f32 %v424_v54  ;;  %v417_v58 = vmul.f32 0.0078125, %v403_v56  ;;  %v420_v59 = vmul.f32 0.0078125, %v409_v57 }
 0x13c   : > { %v425_v60 = vadd.f32 1e-06, %v417_v58  ;;  %v428_v61 = vadd.f32 1e-06, %v420_v59 }
 0x13d   : > { %v411_v63 = vpop.xlane.xlu1 %410  ;;  %v405_v0 = vpop.xlane.xlu0 %404 }
 0x13e   : > { %981 = vrsqrt.f32 %v425_v60  ;;  %v421_v2 = vmul.f32 0.0078125, %v411_v63  ;;  %v418_v3 = vmul.f32 0.0078125, %v405_v0 }
 0x13f   : > { %983 = vrsqrt.f32 %v428_v61 }
 0x140   : > { %v429_v4 = vadd.f32 1e-06, %v421_v2  ;;  %v426_v5 = vadd.f32 1e-06, %v418_v3 }
 0x141   : > { %v407_v8 = vpop.xlane.xlu1 %406  ;;  %v413_v9 = vpop.xlane.xlu0 %412 }
 0x142   : > { %985 = vrsqrt.f32 %v429_v4  ;;  %v419_v10 = vmul.f32 0.0078125, %v407_v8  ;;  %v422_v11 = vmul.f32 0.0078125, %v413_v9 }
 0x143   : > { %987 = vrsqrt.f32 %v426_v5 }
 0x144   : > { %v980_v12 = vpop.eup %979  ;;  %v427_v13 = vadd.f32 1e-06, %v419_v10  ;;  %v430_v14 = vadd.f32 1e-06, %v422_v11 }
 0x145   : > { %v415_v18 = vpop.xlane.xlu1 %414  ;;  %v440_v19 = vmul.f32 %v980_v12, %v1075_v16 }
 0x146   : > { %989 = vrsqrt.f32 %v427_v13  ;;  %v423_v20 = vmul.f32 0.0078125, %v415_v18 }
 0x147   : > { %991 = vrsqrt.f32 %v430_v14  ;;  %v456_v27 = vmul.f32 %v454_v15, %v440_v19 }
 0x148   : > { %v982_v21 = vpop.eup %981  ;;  %v431_v22 = vadd.f32 1e-06, %v423_v20 }
 0x149   : > { %v984_v25 = vpop.eup %983  ;;  %v441_v26 = vmul.f32 %v982_v21, %v1081_v23  ;;  %v471_v34 = vadd.f32 %v823_v28, %v456_v27 }
 0x14a   : > { %993 = vrsqrt.f32 %v431_v22  ;;  %v444_v29 = vmul.f32 %v984_v25, %v1077_v17 }
 0x14b   : > { %v457_v30 = vmul.f32 %v454_v15, %v441_v26 }
 0x14c   : > { %v986_v33 = vpop.eup %985  ;;  %v460_v37 = vmul.f32 %v454_v15, %v444_v29 }
 0x14d   : > { %v988_v16 = vpop.eup %987  ;;  %v472_v35 = vadd.f32 %v823_v28, %v457_v30  ;;  %v445_v36 = vmul.f32 %v986_v33, %v1083_v24 }
 0x14e   : > { %v442_v38 = vmul.f32 %v988_v16, %v1089_v31  ;;  %v475_v23 = vadd.f32 %v823_v28, %v460_v37 }
 0x14f   : > { %v479_v41 = vpack.c.bf16 %v472_v35, %v471_v34  ;;  %v461_v42 = vmul.f32 %v454_v15, %v445_v36 }
 0x150   : > { %v990_v43 = vpop.eup %989  ;;  %v458_v17 = vmul.f32 %v454_v15, %v442_v38 }
 0x151   : > { %v992_v44 = vpop.eup %991  ;;  %923 = vmatprep.mubr.bf16.mxu0 %v479_v41  ;;  %v476_v45 = vadd.f32 %v823_v28, %v461_v42  ;;  %v443_v46 = vmul.f32 %v990_v43, %v1091_v32 }
 0x152   : > { %v446_v47 = vmul.f32 %v992_v44, %v1097_v39  ;;  %v473_v24 = vadd.f32 %v823_v28, %v458_v17  ;;  %v824_v39 = vld [vmem:[%s1168_s4] ss:$0 sm:$0xff] }
 0x153   : > { %v481_v48 = vpack.c.bf16 %v476_v45, %v475_v23  ;;  %v459_v49 = vmul.f32 %v454_v15, %v443_v46 }
 0x154   : > { %v994_v50 = vpop.eup %993  ;;  %v462_v52 = vmul.f32 %v454_v15, %v446_v47 }
 0x155   : > { %927 = vmatprep.mubr.bf16.mxu1 %v481_v48  ;;  %v474_v51 = vadd.f32 %v823_v28, %v459_v49  ;;  %v447_v31 = vmul.f32 %v994_v50, %v1099_v40 }
 0x156   : > { %v477_v55 = vadd.f32 %v823_v28, %v462_v52 }
 0x157   : > { %v480_v53 = vpack.c.bf16 %v474_v51, %v473_v24  ;;  %v463_v54 = vmul.f32 %v454_v15, %v447_v31 }
 0x159   : > { %924 = vmatmul.mubr.bf16.vlgmr.msra.gmra.mrb[0].mxu0 %v480_v53  ;;  %v478_v56 = vadd.f32 %v823_v28, %v463_v54 }
 0x15b   : > { %v482_v57 = vpack.c.bf16 %v478_v56, %v477_v55 }
 0x15d   : > { %928 = vmatmul.mubr.bf16.vlgmr.msra.gmra.mrb[0].mxu1 %v482_v57 }
 0x22c   : > { %v925_v32 = vpop.f32.mrb[0].mxu0 }
 0x22d   : > { %v596_v58 = vpop.f32.mrb[1].mxu0  ;;  %v605_v60 = vadd.f32 %v925_v32, %v824_v39 }
 0x22e   : > { %v926_v59 = vpop.f32.mrb[2].mxu0  ;;  %v597_v40 = vadd.f32 %v824_v39, %v596_v58 }
 0x22f   : > { %v608_v61 = vadd.f32 %v926_v59, %v824_v39  ;;  %v599_v62 = vpop.f32.mrb[3].mxu0 }
 0x230   : > { %v600_v63 = vadd.f32 %v824_v39, %v599_v62  ;;  %v929_v0 = vpop.f32.mrb[0].mxu1 }
 0x231   : > { %v877_v1 = vpack.c.bf16 %v608_v61, %v605_v60  ;;  %v612_v2 = vpop.f32.mrb[1].mxu1  ;;  %v621_v5 = vadd.f32 %v929_v0, %v824_v39 }
 0x232   : > { %v872_v3 = vpack.c.bf16 %v600_v63, %v597_v40  ;;  %v930_v4 = vpop.f32.mrb[2].mxu1  ;;  %v613_v8 = vadd.f32 %v824_v39, %v612_v2 }
 0x233   : > { %892 = vst [vmem:[%s336_s7 + $0x8] sm:$0xff] %v877_v1   ;;  %v624_v6 = vadd.f32 %v930_v4, %v824_v39  ;;  %v615_v7 = vpop.f32.mrb[3].mxu1 }
 0x234   : > { %873 = vst [vmem:[%s336_s7] sm:$0xff] %v872_v3   ;;  %v616_v9 = vadd.f32 %v824_v39, %v615_v7 }
 0x235   : > { %v887_v10 = vpack.c.bf16 %v624_v6, %v621_v5 }
 0x236   : > { %v882_v11 = vpack.c.bf16 %v616_v9, %v613_v8 }
 0x237   : > { %894 = vst [vmem:[%s336_s7 + $0x18] sm:$0xff] %v887_v10  }
 0x238   : > { %893 = vst [vmem:[%s336_s7 + $0x10] sm:$0xff] %v882_v11  }
 0x239 PF: > { %s15_s20 = sadd.s32 1, %s1017_s20   ;;  %s1170_s18 = smov %s1013_s19 }
 0x23a   : > { %p12_p5 = scmp.ge.s32.totalorder %s15_s20, 4   ;;  %s1171_s19 = smov %s1173_s21 }
 0x23c   :  { %14 = sbr.rel (!%p12_p5) target bundleno = 2 (0x2), region = 86 }

// kernel: dit_forward.27
= control target key start
LH: loop header
LB: loop body
LE: loop exit
PB: predicated region body
PF: predicated region fallthrough
CT: control target
= control target key end

     0   :  { %s1035_s15 = smov 0   ;;  %s1037_s16 = smov 0   ;;  %s1109_s0 = inlined_call_operand.vmem [shape: bf16[2,64,128], index: 0, kind: input, shape index: {}]   ;;  %s1110_s1 = inlined_call_operand.vmem [shape: bf16[128,128], index: 1, kind: input, shape index: {}]   ;;  %s1111_s2 = inlined_call_operand.vmem [shape: f32[1,128], index: 2, kind: input, shape index: {}]   ;;  %s1112_s3 = inlined_call_operand.vmem [shape: bf16[2,64,128], index: 3, kind: input, shape index: {}]   ;;  %s1113_s4 = inlined_call_operand.vmem [shape: bf16[2,64,128], index: 4, kind: output, shape index: {}]  }
   0x1   :  { %s1039_s17 = smov 0  }
   0x2 LB: > { %s40_s18 = sadd.s32 1, %s1004_s16  ;;  %p815_p0 = scmp.ge.s32.totalorder %s1008_s17, 1  ;;  %s1008_s17 = sphi %s1039_s17, %s14_s17   ;;  %s1004_s16 = sphi %s1037_s16, %s1115_s16   ;;  %s1000_s15 = sphi %s1035_s15, %s1114_s15  }
   0x3   : > { %p42_p1 = scmp.ge.s32.totalorder %s40_s18, 2  ;;  %p250_p2 = scmp.lt.s32.totalorder %s1008_s17, 3 }
   0x5   : > { %s1117_s18 = smov (%p42_p1, %s40_s18), 0  ;;  %p251_p3 = pnand %p815_p0, %p250_p2 }
   0x6   : > { %v974_v0 = vld [vmem:[%s1110_s1] sm:$0xff] (!%p251_p3)   ;;  %p314_p4 = scmp.lt.s32.totalorder (!%p251_p3), %s1000_s15, 1  ;;  %v975_v1 = vld [vmem:[%s1110_s1 + $0x8] sm:$0xff] (!%p251_p3)   ;;  %v976_v2 = vld [vmem:[%s1110_s1 + $0x10] sm:$0xff] (!%p251_p3)  }
   0x7   : > { %254 = sbr.rel (%p251_p3) target bundleno = 261 (0x105), region = 36  ;;  %910 = vmatprep.subr.bf16.mxu0 (!%p251_p3), %v974_v0  ;;  %934 = vmatprep.subr.bf16.mxu1 (!%p251_p3), %v974_v0  ;;  %v977_v3 = vld [vmem:[%s1110_s1 + $0x18] sm:$0xff] (!%p251_p3)   ;;  %v978_v6 = vld [vmem:[%s1110_s1 + $0x20] sm:$0xff] (!%p251_p3)   ;;  %v979_v7 = vld [vmem:[%s1110_s1 + $0x28] sm:$0xff] (!%p251_p3)  }
   0x8   : > { %911 = vmatpush3.bf16.msra.mxu0 (!%p251_p3), %v974_v0  ;;  %942 = vmatpush3.bf16.msra.mxu1 (!%p251_p3), %v974_v0  ;;  %v980_v8 = vld [vmem:[%s1110_s1 + $0x30] sm:$0xff] (!%p251_p3)   ;;  %v981_v9 = vld [vmem:[%s1110_s1 + $0x38] sm:$0xff] (!%p251_p3)   ;;  %v834_v16 = vld [vmem:[%s1111_s2] ss:$0 sm:$0xff] (!%p251_p3) }
   0x9   : > { %912 = vmatprep.subr.bf16.mxu0 (!%p251_p3), %v975_v1  ;;  %935 = vmatprep.subr.bf16.mxu1 (!%p251_p3), %v975_v1 }
   0xc   : > { %913 = vmatpush3.bf16.msra.mxu0 (!%p251_p3), %v975_v1  ;;  %943 = vmatpush3.bf16.msra.mxu1 (!%p251_p3), %v975_v1 }
   0xd   : > { %914 = vmatprep.subr.bf16.mxu0 (!%p251_p3), %v976_v2  ;;  %936 = vmatprep.subr.bf16.mxu1 (!%p251_p3), %v976_v2 }
   0xe   : > { %s1119_s15 = smov (!%p314_p4, %s1000_s15), 1 }
   0xf   : > { %s1062_s25 = sshll.u32 %s1119_s15, 5 }
  0x10   : > { %s1068_s28 = scalar_lea.vmem %s1109_s0, %s1062_s25  ;;  %915 = vmatpush3.bf16.msra.mxu0 %v976_v2  ;;  %944 = vmatpush3.bf16.msra.mxu1 %v976_v2  ;;  %s349_s15 = scalar_lea.vmem %s1112_s3, %s1062_s25 }
  0x11   : > { %v982_v4 = vld [vmem:[%s1068_s28] sm:$0xff]   ;;  %v983_v5 = vld [vmem:[%s1068_s28 + $0x10] sm:$0xff]   ;;  %916 = vmatprep.subr.bf16.mxu0 %v977_v3  ;;  %937 = vmatprep.subr.bf16.mxu1 %v977_v3  ;;  %v984_v10 = vld [vmem:[%s1068_s28 + $0x8] sm:$0xff]   ;;  %s362_s23 = scalar_lea.vmem %s1113_s4, %s1062_s25 }
  0x12   : > { %926 = vmatprep.mubr.bf16.mxu0 %v982_v4  ;;  %930 = vmatprep.mubr.bf16.mxu1 %v983_v5  ;;  %v985_v11 = vld [vmem:[%s1068_s28 + $0x18] sm:$0xff]   ;;  %v892_v12 = vld [vmem:[%s349_s15 + $0x8] sm:$0xff]   ;;  %v857_v14 = vld [vmem:[%s349_s15] sm:$0xff]  }
  0x13   : > { %v894_v13 = vld [vmem:[%s349_s15 + $0x18] sm:$0xff]   ;;  %v893_v15 = vld [vmem:[%s349_s15 + $0x10] sm:$0xff]   ;;  %v862_v18 = vunpack.c.l.bf16 %v892_v12  ;;  %v858_v21 = vunpack.c.l.bf16 %v857_v14  ;;  %v863_v27 = vunpack.c.h.bf16 %v892_v12  ;;  %v859_v33 = vunpack.c.h.bf16 %v857_v14 }
  0x14   : > { %917 = vmatpush3.bf16.msra.mxu0 %v977_v3  ;;  %945 = vmatpush3.bf16.msra.mxu1 %v977_v3  ;;  %v870_v20 = vunpack.c.l.bf16 %v894_v13  ;;  %v866_v22 = vunpack.c.l.bf16 %v893_v15  ;;  %v871_v28 = vunpack.c.h.bf16 %v894_v13  ;;  %v867_v34 = vunpack.c.h.bf16 %v893_v15 }
  0x15   : > { %918 = vmatprep.subr.bf16.mxu0 %v978_v6  ;;  %938 = vmatprep.subr.bf16.mxu1 %v978_v6 }
  0x18   : > { %919 = vmatpush3.bf16.msra.mxu0 %v978_v6  ;;  %946 = vmatpush3.bf16.msra.mxu1 %v978_v6 }
  0x19   : > { %920 = vmatprep.subr.bf16.mxu0 %v979_v7  ;;  %939 = vmatprep.subr.bf16.mxu1 %v979_v7 }
  0x1c   : > { %921 = vmatpush3.bf16.msra.mxu0 %v979_v7  ;;  %947 = vmatpush3.bf16.msra.mxu1 %v979_v7 }
  0x1d   : > { %922 = vmatprep.subr.bf16.mxu0 %v980_v8  ;;  %940 = vmatprep.subr.bf16.mxu1 %v980_v8 }
  0x20   : > { %923 = vmatpush3.bf16.msra.mxu0 %v980_v8  ;;  %948 = vmatpush3.bf16.msra.mxu1 %v980_v8 }
  0x21   : > { %924 = vmatprep.subr.bf16.mxu0 %v981_v9  ;;  %941 = vmatprep.subr.bf16.mxu1 %v981_v9 }
  0x24   : > { %925 = vmatpush3.bf16.msra.mxu0 %v981_v9  ;;  %949 = vmatpush3.bf16.msra.mxu1 %v981_v9 }
  0x27   : > { %927 = vmatmul.mubr.bf16.vlgmr.msra.gmra.mrb[0].mxu0 %v984_v10  ;;  %931 = vmatmul.mubr.bf16.vlgmr.msra.gmra.mrb[0].mxu1 %v985_v11 }
  0xfa   : > { %v928_v17 = vpop.f32.mrb[0].mxu0  ;;  %v932_v19 = vpop.f32.mrb[0].mxu1 }
  0xfb   : > { %v582_v23 = vadd.f32 %v928_v17, %v834_v16  ;;  %v586_v24 = vadd.f32 %v932_v19, %v834_v16  ;;  %v515_v25 = vpop.f32.mrb[1].mxu0  ;;  %v531_v26 = vpop.f32.mrb[1].mxu1 }
  0xfc   : > { %v580_v29 = vadd.f32 %v834_v16, %v515_v25  ;;  %v584_v30 = vadd.f32 %v834_v16, %v531_v26  ;;  %v929_v31 = vpop.f32.mrb[2].mxu0  ;;  %v933_v32 = vpop.f32.mrb[2].mxu1 }
  0xfd   : > { %v583_v35 = vadd.f32 %v929_v31, %v834_v16  ;;  %v587_v36 = vadd.f32 %v933_v32, %v834_v16  ;;  %v518_v37 = vpop.f32.mrb[3].mxu0  ;;  %v534_v38 = vpop.f32.mrb[3].mxu1  ;;  %v606_v41 = vadd.f32 %v862_v18, %v582_v23  ;;  %v610_v42 = vadd.f32 %v870_v20, %v586_v24 }
  0xfe   : > { %v581_v39 = vadd.f32 %v834_v16, %v518_v37  ;;  %v585_v40 = vadd.f32 %v834_v16, %v534_v38  ;;  %v604_v45 = vadd.f32 %v858_v21, %v580_v29  ;;  %v608_v46 = vadd.f32 %v866_v22, %v584_v30 }
  0xff   : > { %v607_v43 = vadd.f32 %v863_v27, %v583_v35  ;;  %v611_v44 = vadd.f32 %v871_v28, %v587_v36 }
 0x100   : > { %v605_v47 = vadd.f32 %v859_v33, %v581_v39  ;;  %v609_v48 = vadd.f32 %v867_v34, %v585_v40 }
 0x101   : > { %v880_v49 = vpack.c.bf16 %v607_v43, %v606_v41  ;;  %v890_v50 = vpack.c.bf16 %v611_v44, %v610_v42 }
 0x102   : > { %v875_v51 = vpack.c.bf16 %v605_v47, %v604_v45  ;;  %v885_v52 = vpack.c.bf16 %v609_v48, %v608_v46 }
 0x103   : > { %895 = vst [vmem:[%s362_s23 + $0x8] sm:$0xff] %v880_v49   ;;  %897 = vst [vmem:[%s362_s23 + $0x18] sm:$0xff] %v890_v50  }
 0x104   : > { %876 = vst [vmem:[%s362_s23] sm:$0xff] %v875_v51   ;;  %896 = vst [vmem:[%s362_s23 + $0x10] sm:$0xff] %v885_v52  }
 0x105 PF: > { %s14_s17 = sadd.s32 1, %s1008_s17   ;;  %s1114_s15 = smov %s1004_s16 }
 0x106   : > { %p11_p5 = scmp.ge.s32.totalorder %s14_s17, 4   ;;  %s1115_s16 = smov %s1117_s18 }
 0x108   :  { %13 = sbr.rel (!%p11_p5) target bundleno = 2 (0x2), region = 83 }

// kernel: dit_forward.28
= control target key start
LH: loop header
LB: loop body
LE: loop exit
PB: predicated region body
PF: predicated region fallthrough
CT: control target
= control target key end

     0   :  { %s1878_s0 = inlined_call_operand.vmem [shape: bf16[2,64,128], index: 0, kind: input, shape index: {}]   ;;  %s1879_s1 = inlined_call_operand.vmem [shape: f32[2,1,128], index: 1, kind: input, shape index: {}]   ;;  %s1880_s2 = inlined_call_operand.vmem [shape: f32[2,1,128], index: 2, kind: input, shape index: {}]   ;;  %s1881_s3 = inlined_call_operand.vmem [shape: bf16[128,512], index: 3, kind: input, shape index: {}]   ;;  %s1882_s4 = inlined_call_operand.vmem [shape: f32[1,512], index: 4, kind: input, shape index: {}]   ;;  %s1883_s5 = inlined_call_operand.vmem [shape: bf16[2,64,512], index: 5, kind: output, shape index: {}]  }
   0x1   :  { %1889 = sst [smem:[#allocation11_spill]] %s1881_s3 }
   0x2   :  { %s1491_s18 = smov 0   ;;  %s1493_s19 = smov 0  }
   0x3   :  { %s1495_s20 = smov 0   ;;  %s1497_s21 = smov 0  }
   0x4   :  { %s1499_s22 = smov 0   ;;  %s1501_s23 = smov 0  }
   0x5   :  { %s1503_s24 = smov 0   ;;  %s1505_s25 = smov 0  }
   0x6   :  { %s1507_s26 = smov 0  }
   0x7 LB: > { %1890 = sst [smem:[#allocation5_spill]] %s1438_s21  ;;  %s1153_s27 = sadd.s32 4294967295, %s1458_s26   ;;  %s1458_s26 = sphi %s1507_s26, %s15_s26   ;;  %s1454_s25 = sphi %s1505_s25, %s1903_s25   ;;  %s1450_s24 = sphi %s1503_s24, %s1902_s24   ;;  %s1446_s23 = sphi %s1501_s23, %s1901_s23   ;;  %s1442_s22 = sphi %s1499_s22, %s1900_s22   ;;  %s1438_s21 = sphi %s1497_s21, %s1899_s21   ;;  %s1434_s20 = sphi %s1495_s20, %s1898_s20   ;;  %s1430_s19 = sphi %s1493_s19, %s1905_s19   ;;  %s1426_s18 = sphi %s1491_s18, %s1904_s18  }
   0x8   : > { %1891 = sst [smem:[#allocation6_spill]] %s1450_s24  ;;  %s27_s28 = sadd.s32 1, %s1450_s24 }
   0x9   : > { %1892 = sst [smem:[#allocation7_spill]] %s1454_s25  ;;  %p28_p0 = scmp.ge.s32.totalorder %s27_s28, 2 }
   0xa   : > { %s34_s29 = sadd.s32 1, %s1454_s25  ;;  %s121_s30 = sadd.s32 1, %s1438_s21 }
   0xb   : > { %p128_p1 = scmp.ne.s32.totalorder %s1438_s21, %s1434_s20  ;;  %s1907_s28 = smov (%p28_p0, %s27_s28), 0 }
   0xc   : > { %1893 = sst [smem:[#allocation8_spill]] %s1907_s28  ;;  %s1909_s29 = smov (!%p28_p0, %s34_s29), %s1454_s25 }
   0xd   : > { %s118_s6 = ssub.s32 %s1450_s24, %s1907_s28  ;;  %p129_p2 = scmp.eq.s32.totalorder %s1458_s26, 0 }
   0xe   : > { %p36_p3 = scmp.ge.s32.totalorder %s1909_s29, 2  ;;  %p119_p4 = scmp.eq.s32.totalorder %s118_s6, 0 }
   0xf   : > { %p130_p5 = por %p129_p2, %p128_p1  ;;  %s177_s7 = sadd.s32 1, %s1430_s19 }
  0x10   : > { %s1911_s29 = smov (%p36_p3, %s1909_s29), 0  ;;  %p187_p6 = scmp.ne.s32.totalorder %s1430_s19, %s1426_s18 }
  0x11   : > { %1894 = sst [smem:[#allocation9_spill]] %s1911_s29  ;;  %s170_s9 = ssub.s32 %s1454_s25, %s1911_s29 }
  0x12   : > { %s1552_s8 = scalar_select %p119_p4, %s1438_s21, %s121_s30  }
  0x13   : > { %s174_s10 = sor.u32 %s170_s9, %s118_s6  ;;  %p188_p7 = scmp.eq.s32.totalorder %s1153_s27, 3 }
  0x14   : > { %1895 = sst [smem:[#allocation10_spill]] %s1552_s8  ;;  %p175_p8 = scmp.eq.s32.totalorder %s174_s10, 0 }
  0x15   : > { %p1558_p9 = por %p188_p7, %p187_p6  ;;  %p1156_p10 = scmp.ge.s32.totalorder %s1458_s26, 4 }
  0x16   : > { %s1563_s12 = scalar_select %p175_p8, %s1430_s19, %s177_s7  }
  0x17   : > { %210 = sbr.rel (%p1156_p10) target bundleno = 48 (0x30), region = 16 }
  0x1e   : > { %238 = sbr.rel (!%p130_p5) target bundleno = 48 (0x30), region = 32  ;;  %s240_s13 = sand.u32 (%p130_p5), 1, %s1438_s21  }
  0x1f   : > { %s1198_s14 = sshll.u32 (%p130_p5), %s1450_s24, 3  ;;  %s1157_s15 = sshll.u32 (%p130_p5), %s240_s13, 7 }
  0x20   : > { %s1897_s3 = sld [smem:[#allocation11_spill]] (%p130_p5)  ;;  %s242_s30 = scalar_lea.vmem (%p130_p5), [#allocation3], %s1157_s15 }
  0x26   : > { %s1571_s27 = scalar_lea.vmem %s1897_s3, %s1198_s14 }
  0x27   : > { %v303_v0 = vld [vmem:[%s1571_s27] sm:$0xff]  ;;  %v305_v1 = vld [vmem:[%s1571_s27 + $0x10] sm:$0xff] }
  0x28   : > { %v307_v2 = vld [vmem:[%s1571_s27 + $0x20] sm:$0xff]  ;;  %304 = vst [vmem:[%s242_s30] sm:$0xff] %v303_v0  ;;  %306 = vst [vmem:[%s242_s30 + $0x8] sm:$0xff] %v305_v1  ;;  %v309_v3 = vld [vmem:[%s1571_s27 + $0x30] sm:$0xff] }
  0x29   : > { %308 = vst [vmem:[%s242_s30 + $0x10] sm:$0xff] %v307_v2  ;;  %v311_v4 = vld [vmem:[%s1571_s27 + $0x40] sm:$0xff]  ;;  %v313_v5 = vld [vmem:[%s1571_s27 + $0x50] sm:$0xff]  ;;  %310 = vst [vmem:[%s242_s30 + $0x18] sm:$0xff] %v309_v3 }
  0x2a   : > { %312 = vst [vmem:[%s242_s30 + $0x20] sm:$0xff] %v311_v4  ;;  %314 = vst [vmem:[%s242_s30 + $0x28] sm:$0xff] %v313_v5  ;;  %v315_v6 = vld [vmem:[%s1571_s27 + $0x60] sm:$0xff]  ;;  %v317_v7 = vld [vmem:[%s1571_s27 + $0x70] sm:$0xff] }
  0x2b   : > { %v319_v8 = vld [vmem:[%s1571_s27 + $0x80] sm:$0xff]  ;;  %316 = vst [vmem:[%s242_s30 + $0x30] sm:$0xff] %v315_v6  ;;  %318 = vst [vmem:[%s242_s30 + $0x38] sm:$0xff] %v317_v7  ;;  %v321_v9 = vld [vmem:[%s1571_s27 + $0x90] sm:$0xff] }
  0x2c   : > { %320 = vst [vmem:[%s242_s30 + $0x40] sm:$0xff] %v319_v8  ;;  %v323_v10 = vld [vmem:[%s1571_s27 + $0xa0] sm:$0xff]  ;;  %v325_v11 = vld [vmem:[%s1571_s27 + $0xb0] sm:$0xff]  ;;  %322 = vst [vmem:[%s242_s30 + $0x48] sm:$0xff] %v321_v9 }
  0x2d   : > { %324 = vst [vmem:[%s242_s30 + $0x50] sm:$0xff] %v323_v10  ;;  %326 = vst [vmem:[%s242_s30 + $0x58] sm:$0xff] %v325_v11  ;;  %v327_v12 = vld [vmem:[%s1571_s27 + $0xc0] sm:$0xff]  ;;  %v329_v13 = vld [vmem:[%s1571_s27 + $0xd0] sm:$0xff] }
  0x2e   : > { %v331_v14 = vld [vmem:[%s1571_s27 + $0xe0] sm:$0xff]  ;;  %328 = vst [vmem:[%s242_s30 + $0x60] sm:$0xff] %v327_v12  ;;  %330 = vst [vmem:[%s242_s30 + $0x68] sm:$0xff] %v329_v13  ;;  %v333_v15 = vld [vmem:[%s1571_s27 + $0xf0] sm:$0xff] }
  0x2f   : > { %332 = vst [vmem:[%s242_s30 + $0x70] sm:$0xff] %v331_v14  ;;  %334 = vst [vmem:[%s242_s30 + $0x78] sm:$0xff] %v333_v15 }
  0x30 PF: > { %p1160_p11 = scmp.ge.s32.totalorder %s1458_s26, 1  ;;  %p347_p12 = scmp.lt.s32.totalorder %s1458_s26, 5 }
  0x32   : > { %p348_p13 = pnand %p1160_p11, %p347_p12 }
  0x33   : > { %s354_s6 = sand.u32 (!%p348_p13), 1, %s1434_s20   ;;  %s396_s7 = sand.u32 (!%p348_p13), 1, %s1426_s18  }
  0x34   : > { %351 = sbr.rel (%p348_p13) target bundleno = 711 (0x2c7), region = 74  ;;  %s1161_s9 = sshll.u32 (!%p348_p13), %s354_s6, 7 }
  0x35   : > { %s1162_s10 = sshll.u32 (!%p348_p13), %s396_s7, 6  ;;  %p400_p0 = scmp.lt.s32.totalorder (!%p348_p13), %s1446_s23, 1 }
  0x36   : > { %s1595_s13 = sshll.u32 (!%p348_p13), %s1442_s22, 1  ;;  %s1620_s8 = scalar_lea.vmem (!%p348_p13), [#allocation3], %s1161_s9 }
  0x37   : > { %p417_p1 = scmp.lt.s32.totalorder (!%p348_p13), %s1595_s13, 3  ;;  %s1622_s21 = scalar_lea.vmem (!%p348_p13), [#allocation4], %s1162_s10 }
  0x38   : > { %p1166_p2 = scmp.ne.s32.totalorder (!%p348_p13), %s1442_s22, 0 }
  0x3b   : > { %s1599_s14 = scalar_select %p400_p0, %s1446_s23, 1 }
  0x3c   : > { %s1602_s15 = scalar_select %p417_p1, %s1595_s13, 3 }
  0x3d   : > { %s1199_s16 = sshll.u32 %s1599_s14, 5  ;;  %s411_s18 = scalar_lea.vmem %s1879_s1, %s1599_s14  ;;  %v536_v63 = vlaneseq (!%p1166_p2) }
  0x3e   : > { %s407_s6 = scalar_lea.vmem %s1878_s0, %s1199_s16  ;;  %s414_s29 = scalar_lea.vmem %s1880_s2, %s1599_s14 }
  0x3f   : > { %s419_s24 = scalar_lea.vmem %s1882_s4, %s1602_s15  ;;  %427 = sbr.rel (%p1166_p2) target bundleno = 396 (0x18c), region = 82  ;;  %v1209_v16 = vld [vmem:[%s407_s6] sm:$0xff] (!%p1166_p2)   ;;  %v1224_v17 = vld [vmem:[%s407_s6 + $0x8] sm:$0xff] (!%p1166_p2)   ;;  %v1225_v22 = vld [vmem:[%s407_s6 + $0x10] sm:$0xff] (!%p1166_p2)   ;;  %v537_v6 = vshrl.u32 (!%p1166_p2), %v536_v63, 7 }
  0x40   : > { %v1210_v18 = vunpack.c.l.bf16 (!%p1166_p2), %v1209_v16  ;;  %v1214_v19 = vunpack.c.l.bf16 (!%p1166_p2), %v1224_v17  ;;  %v1211_v20 = vunpack.c.h.bf16 (!%p1166_p2), %v1209_v16  ;;  %v1215_v21 = vunpack.c.h.bf16 (!%p1166_p2), %v1224_v17  ;;  %v1226_v25 = vld [vmem:[%s407_s6 + $0x18] sm:$0xff] (!%p1166_p2)   ;;  %v533_v9 = vld [vmem:[%s414_s29] sm:$0x1] (!%p1166_p2) }
  0x41   : > { %v1218_v23 = vunpack.c.l.bf16 (!%p1166_p2), %v1225_v22  ;;  %v1219_v24 = vunpack.c.h.bf16 (!%p1166_p2), %v1225_v22  ;;  %v1222_v26 = vunpack.c.l.bf16 (!%p1166_p2), %v1226_v25  ;;  %v1223_v27 = vunpack.c.h.bf16 (!%p1166_p2), %v1226_v25 }
  0x42   : > { %444 = vadd.xlane.f32.xlu0 (!%p1166_p2), %v1210_v18  ;;  %448 = vadd.xlane.f32.xlu1 (!%p1166_p2), %v1214_v19  ;;  %v534_v14 = vadd.f32 (!%p1166_p2), 1.0, %v533_v9  ;;  %v538_v15 = vsub.s32 (!%p1166_p2), 0, %v537_v6 }
  0x46   : > { %446 = vadd.xlane.f32.xlu0 %v1211_v20  ;;  %450 = vadd.xlane.f32.xlu1 %v1215_v21 }
  0x4a   : > { %452 = vadd.xlane.f32.xlu0 %v1218_v23  ;;  %454 = vadd.xlane.f32.xlu1 %v1219_v24 }
  0x4e   : > { %456 = vadd.xlane.f32.xlu0 %v1222_v26  ;;  %458 = vadd.xlane.f32.xlu1 %v1223_v27 }
  0xcf   : > { %v445_v28 = vpop.xlane.xlu0 %444  ;;  %v449_v29 = vpop.xlane.xlu1 %448 }
  0xd0   : > { %v461_v30 = vmul.f32 0.0078125, %v445_v28  ;;  %v463_v31 = vmul.f32 0.0078125, %v449_v29 }
  0xd2   : > { %v1625_v32 = vsub.f32 %v1210_v18, %v461_v30  ;;  %v1627_v33 = vsub.f32 %v1214_v19, %v463_v31 }
  0xd3   : > { %v447_v34 = vpop.xlane.xlu0 %446  ;;  %v451_v35 = vpop.xlane.xlu1 %450 }
  0xd4   : > { %v462_v36 = vmul.f32 0.0078125, %v447_v34  ;;  %v477_v37 = vmul.f32 %v1625_v32, %v1625_v32  ;;  %v464_v38 = vmul.f32 0.0078125, %v451_v35  ;;  %v479_v41 = vmul.f32 %v1627_v33, %v1627_v33  ;;  %v1167_v34 = vld [vmem:[%s411_s18] ss:$0 sm:$0xff] }
  0xd6   : > { %v1631_v39 = vsub.f32 %v1211_v20, %v462_v36  ;;  %485 = vadd.xlane.f32.xlu0 %v477_v37  ;;  %v1633_v40 = vsub.f32 %v1215_v21, %v464_v38 }
  0xd7   : > { %v453_v42 = vpop.xlane.xlu0 %452  ;;  %v455_v43 = vpop.xlane.xlu1 %454 }
  0xd8   : > { %v465_v44 = vmul.f32 0.0078125, %v453_v42  ;;  %v478_v45 = vmul.f32 %v1631_v39, %v1631_v39  ;;  %v466_v46 = vmul.f32 0.0078125, %v455_v43  ;;  %v480_v49 = vmul.f32 %v1633_v40, %v1633_v40 }
  0xda   : > { %v1639_v47 = vsub.f32 %v1218_v23, %v465_v44  ;;  %489 = vadd.xlane.f32.xlu0 %v479_v41  ;;  %487 = vadd.xlane.f32.xlu1 %v478_v45  ;;  %v1641_v48 = vsub.f32 %v1219_v24, %v466_v46  ;;  %v539_v23 = vrot.slane %v534_v14, %v538_v15 }
  0xdb   : > { %v457_v50 = vpop.xlane.xlu0 %456  ;;  %v459_v51 = vpop.xlane.xlu1 %458 }
  0xdc   : > { %v467_v52 = vmul.f32 0.0078125, %v457_v50  ;;  %v481_v53 = vmul.f32 %v1639_v47, %v1639_v47  ;;  %v468_v54 = vmul.f32 0.0078125, %v459_v51  ;;  %v482_v57 = vmul.f32 %v1641_v48, %v1641_v48 }
  0xde   : > { %v1647_v55 = vsub.f32 %v1222_v26, %v467_v52  ;;  %491 = vadd.xlane.f32.xlu1 %v480_v49  ;;  %493 = vadd.xlane.f32.xlu0 %v481_v53  ;;  %v1649_v56 = vsub.f32 %v1223_v27, %v468_v54 }
  0xe0   : > { %v483_v58 = vmul.f32 %v1647_v55, %v1647_v55  ;;  %v484_v59 = vmul.f32 %v1649_v56, %v1649_v56 }
  0xe2   : > { %495 = vadd.xlane.f32.xlu1 %v482_v57  ;;  %497 = vadd.xlane.f32.xlu0 %v483_v58 }
  0xe6   : > { %499 = vadd.xlane.f32.xlu1 %v484_v59 }
 0x163   : > { %v486_v60 = vpop.xlane.xlu0 %485 }
 0x164   : > { %v501_v61 = vmul.f32 0.0078125, %v486_v60 }
 0x166   : > { %v509_v62 = vadd.f32 1e-06, %v501_v61 }
 0x167   : > { %v488_v0 = vpop.xlane.xlu1 %487  ;;  %v490_v1 = vpop.xlane.xlu0 %489 }
 0x168   : > { %1316 = vrsqrt.f32 %v509_v62  ;;  %v502_v2 = vmul.f32 0.0078125, %v488_v0  ;;  %v503_v3 = vmul.f32 0.0078125, %v490_v1 }
 0x16a   : > { %v510_v4 = vadd.f32 1e-06, %v502_v2  ;;  %v511_v5 = vadd.f32 1e-06, %v503_v3 }
 0x16b   : > { %v492_v7 = vpop.xlane.xlu1 %491  ;;  %v494_v8 = vpop.xlane.xlu0 %493 }
 0x16c   : > { %1318 = vrsqrt.f32 %v510_v4  ;;  %v504_v10 = vmul.f32 0.0078125, %v492_v7  ;;  %v505_v11 = vmul.f32 0.0078125, %v494_v8 }
 0x16d   : > { %1320 = vrsqrt.f32 %v511_v5 }
 0x16e   : > { %v512_v12 = vadd.f32 1e-06, %v504_v10  ;;  %v513_v13 = vadd.f32 1e-06, %v505_v11 }
 0x16f   : > { %v496_v16 = vpop.xlane.xlu1 %495  ;;  %v498_v17 = vpop.xlane.xlu0 %497 }
 0x170   : > { %1322 = vrsqrt.f32 %v512_v12  ;;  %v506_v18 = vmul.f32 0.0078125, %v496_v16  ;;  %v507_v19 = vmul.f32 0.0078125, %v498_v17 }
 0x171   : > { %1324 = vrsqrt.f32 %v513_v13 }
 0x172   : > { %v1317_v20 = vpop.eup %1316  ;;  %v514_v21 = vadd.f32 1e-06, %v506_v18  ;;  %v515_v22 = vadd.f32 1e-06, %v507_v19 }
 0x173   : > { %v525_v24 = vmul.f32 %v1317_v20, %v1625_v32  ;;  %v500_v25 = vpop.xlane.xlu1 %499 }
 0x174   : > { %1326 = vrsqrt.f32 %v514_v21  ;;  %v508_v26 = vmul.f32 0.0078125, %v500_v25 }
 0x175   : > { %1328 = vrsqrt.f32 %v515_v22  ;;  %v541_v30 = vmul.f32 %v539_v23, %v525_v24 }
 0x176   : > { %v1319_v27 = vpop.eup %1318  ;;  %v516_v28 = vadd.f32 1e-06, %v508_v26 }
 0x177   : > { %v1321_v29 = vpop.eup %1320  ;;  %v526_v31 = vmul.f32 %v1319_v27, %v1631_v39  ;;  %v556_v38 = vadd.f32 %v1167_v34, %v541_v30 }
 0x178   : > { %v527_v35 = vmul.f32 %v1321_v29, %v1627_v33  ;;  %1330 = vrsqrt.f32 %v516_v28 }
 0x179   : > { %v542_v36 = vmul.f32 %v539_v23, %v526_v31 }
 0x17a   : > { %v1323_v32 = vpop.eup %1322  ;;  %v543_v42 = vmul.f32 %v539_v23, %v527_v35 }
 0x17b   : > { %v1325_v37 = vpop.eup %1324  ;;  %v557_v41 = vadd.f32 %v1167_v34, %v542_v36  ;;  %v528_v43 = vmul.f32 %v1323_v32, %v1633_v40 }
 0x17c   : > { %v529_v44 = vmul.f32 %v1325_v37, %v1639_v47  ;;  %v558_v50 = vadd.f32 %v1167_v34, %v543_v42 }
 0x17d   : > { %v564_v45 = vpack.c.bf16 %v557_v41, %v556_v38  ;;  %v544_v39 = vmul.f32 %v539_v23, %v528_v43 }
 0x17e   : > { %v1327_v46 = vpop.eup %1326  ;;  %v545_v52 = vmul.f32 %v539_v23, %v529_v44 }
 0x17f   : > { %v1329_v49 = vpop.eup %1328  ;;  %568 = vst [vmem:[#allocation2] sm:$0xff] %v564_v45  ;;  %v559_v51 = vadd.f32 %v1167_v34, %v544_v39  ;;  %v530_v33 = vmul.f32 %v1327_v46, %v1641_v48 }
 0x180   : > { %v531_v53 = vmul.f32 %v1329_v49, %v1647_v55  ;;  %v560_v59 = vadd.f32 %v1167_v34, %v545_v52 }
 0x181   : > { %v565_v54 = vpack.c.bf16 %v559_v51, %v558_v50  ;;  %v546_v57 = vmul.f32 %v539_v23, %v530_v33 }
 0x182   : > { %v1331_v58 = vpop.eup %1330  ;;  %v547_v60 = vmul.f32 %v539_v23, %v531_v53 }
 0x183   : > { %569 = vst [vmem:[#allocation2 + $0x8] sm:$0xff] %v565_v54  ;;  %v561_v40 = vadd.f32 %v1167_v34, %v546_v57  ;;  %v532_v47 = vmul.f32 %v1331_v58, %v1649_v56 }
 0x184   : > { %v562_v63 = vadd.f32 %v1167_v34, %v547_v60 }
 0x185   : > { %v566_v61 = vpack.c.bf16 %v561_v40, %v560_v59  ;;  %v548_v62 = vmul.f32 %v539_v23, %v532_v47 }
 0x187   : > { %570 = vst [vmem:[#allocation2 + $0x10] sm:$0xff] %v566_v61  ;;  %v563_v0 = vadd.f32 %v1167_v34, %v548_v62 }
 0x189   : > { %v567_v1 = vpack.c.bf16 %v563_v0, %v562_v63 }
 0x18b   : > { %571 = vst [vmem:[#allocation2 + $0x18] sm:$0xff] %v567_v1 }
 0x18c PF: > { %v1332_v48 = vld [vmem:[%s1620_s8 + $0x4] ss:$8 sps:$4 sm:$0xff]   ;;  %v1334_v55 = vld [vmem:[%s1620_s8] ss:$8 sps:$4 sm:$0xff]   ;;  %v1460_v2 = vmov 0   ;;  %v594_v20 = vlaneseq }
 0x18d   : > { %716 = vmatprep.mubr.bf16.mxu0 %v1460_v2  ;;  %736 = vmatprep.mubr.bf16.mxu1 %v1460_v2  ;;  %v1335_v56 = vld [vmem:[%s1620_s8 + $0x14] ss:$8 sps:$4 sm:$0xff]   ;;  %v1337_v3 = vld [vmem:[%s1620_s8 + $0x10] ss:$8 sps:$4 sm:$0xff]   ;;  %v1338_v4 = vld [vmem:[%s1620_s8 + $0x24] ss:$8 sps:$4 sm:$0xff]  }
 0x18e   : > { %684 = vmatprep.subr.bf16.mxu0 %v1332_v48  ;;  %1227 = vmatprep.subr.bf16.mxu1 %v1332_v48  ;;  %v1340_v5 = vld [vmem:[%s1620_s8 + $0x20] ss:$8 sps:$4 sm:$0xff]   ;;  %v1341_v6 = vld [vmem:[%s1620_s8 + $0x34] ss:$8 sps:$4 sm:$0xff]   ;;  %v1343_v7 = vld [vmem:[%s1620_s8 + $0x30] ss:$8 sps:$4 sm:$0xff]  }
 0x18f   : > { %685 = vmatpush1.bf16.msra.mxu0 %v1334_v55  ;;  %1235 = vmatpush1.bf16.msra.mxu1 %v1334_v55  ;;  %v1344_v8 = vld [vmem:[%s1620_s8 + $0x44] ss:$8 sps:$4 sm:$0xff]   ;;  %v1346_v9 = vld [vmem:[%s1620_s8 + $0x40] ss:$8 sps:$4 sm:$0xff]   ;;  %v1347_v10 = vld [vmem:[%s1620_s8 + $0x54] ss:$8 sps:$4 sm:$0xff]  }
 0x190   : > { %686 = vmatprep.subr.bf16.mxu0 %v1335_v56  ;;  %1228 = vmatprep.subr.bf16.mxu1 %v1335_v56  ;;  %v1349_v11 = vld [vmem:[%s1620_s8 + $0x50] ss:$8 sps:$4 sm:$0xff]   ;;  %v1350_v12 = vld [vmem:[%s1620_s8 + $0x64] ss:$8 sps:$4 sm:$0xff]   ;;  %v1352_v13 = vld [vmem:[%s1620_s8 + $0x60] ss:$8 sps:$4 sm:$0xff]  }
 0x191   : > { %v1353_v14 = vld [vmem:[%s1620_s8 + $0x74] ss:$8 sps:$4 sm:$0xff]   ;;  %v1355_v15 = vld [vmem:[%s1620_s8 + $0x70] ss:$8 sps:$4 sm:$0xff]   ;;  %v572_v16 = vld [vmem:[#allocation2] sm:$0xff]  ;;  %v595_v21 = vshrl.u32 %v594_v20, 7 }
 0x192   : > { %v574_v17 = vld [vmem:[#allocation2 + $0x10] sm:$0xff]  ;;  %v573_v18 = vld [vmem:[#allocation2 + $0x8] sm:$0xff]  ;;  %v575_v19 = vld [vmem:[#allocation2 + $0x18] sm:$0xff] }
 0x193   : > { %687 = vmatpush1.bf16.msra.mxu0 %v1337_v3  ;;  %1236 = vmatpush1.bf16.msra.mxu1 %v1337_v3  ;;  %v596_v22 = vsub.s32 0, %v595_v21  ;;  %v592_v23 = vld [vmem:[%s419_s24] sm:$0x3]  ;;  %v600_v24 = vsub.s32 1, %v595_v21  ;;  %s1194_s24 = sshll.u32 (%p1558_p9), %s1446_s23, 5 }
 0x194   : > { %688 = vmatprep.subr.bf16.mxu0 %v1338_v4  ;;  %1229 = vmatprep.subr.bf16.mxu1 %v1338_v4  ;;  %s969_s9 = sadd.s32 (%p1558_p9), %s1194_s24, %s1595_s13 }
 0x195   : > { %v1696_v25 = vrot.slane %v592_v23, %v596_v22  ;;  %v1698_v26 = vrot.slane %v592_v23, %v600_v24  ;;  %s1195_s11 = sshll.u32 (%p1558_p9), %s969_s9, 2 }
 0x196   : > { %s971_s15 = scalar_lea.vmem (%p1558_p9), %s1883_s5, %s1195_s11 }
 0x197   : > { %689 = vmatpush1.bf16.msra.mxu0 %v1340_v5  ;;  %1237 = vmatpush1.bf16.msra.mxu1 %v1340_v5 }
 0x198   : > { %690 = vmatprep.subr.bf16.mxu0 %v1341_v6  ;;  %1230 = vmatprep.subr.bf16.mxu1 %v1341_v6 }
 0x19b   : > { %691 = vmatpush1.bf16.msra.mxu0 %v1343_v7  ;;  %1238 = vmatpush1.bf16.msra.mxu1 %v1343_v7 }
 0x19c   : > { %692 = vmatprep.subr.bf16.mxu0 %v1344_v8  ;;  %1231 = vmatprep.subr.bf16.mxu1 %v1344_v8 }
 0x19f   : > { %693 = vmatpush1.bf16.msra.mxu0 %v1346_v9  ;;  %1239 = vmatpush1.bf16.msra.mxu1 %v1346_v9 }
 0x1a0   : > { %694 = vmatprep.subr.bf16.mxu0 %v1347_v10  ;;  %1232 = vmatprep.subr.bf16.mxu1 %v1347_v10 }
 0x1a3   : > { %695 = vmatpush1.bf16.msra.mxu0 %v1349_v11  ;;  %1240 = vmatpush1.bf16.msra.mxu1 %v1349_v11 }
 0x1a4   : > { %696 = vmatprep.subr.bf16.mxu0 %v1350_v12  ;;  %1233 = vmatprep.subr.bf16.mxu1 %v1350_v12 }
 0x1a7   : > { %697 = vmatpush1.bf16.msra.mxu0 %v1352_v13  ;;  %1241 = vmatpush1.bf16.msra.mxu1 %v1352_v13 }
 0x1a8   : > { %698 = vmatprep.subr.bf16.mxu0 %v1353_v14  ;;  %1234 = vmatprep.subr.bf16.mxu1 %v1353_v14 }
 0x1ab   : > { %699 = vmatpush1.bf16.msra.mxu0 %v1355_v15  ;;  %1242 = vmatpush1.bf16.msra.mxu1 %v1355_v15 }
 0x1ae   : > { %717 = vmatmul.mubr.bf16.vlgmr.msra.gmra.mrb[0].mxu0 %v572_v16  ;;  %737 = vmatmul.mubr.bf16.vlgmr.msra.gmra.mrb[0].mxu1 %v574_v17 }
 0x1af   : > { %726 = vmatprep.mubr.bf16.mxu0 %v1460_v2  ;;  %746 = vmatprep.mubr.bf16.mxu1 %v1460_v2 }
 0x1b6   : > { %727 = vmatmul.mubr.bf16.gmra.mrb[4].mxu0 %v573_v18  ;;  %747 = vmatmul.mubr.bf16.gmra.mrb[4].mxu1 %v575_v19 }
 0x281   : > { %v718_v27 = vpop.f32.mrb[0].mxu0  ;;  %v738_v28 = vpop.f32.mrb[0].mxu1 }
 0x282   : > { %v1701_v29 = vadd.f32 %v718_v27, %v1696_v25  ;;  %v1704_v30 = vadd.f32 %v738_v28, %v1696_v25  ;;  %v720_v31 = vpop.f32.mrb[1].mxu0  ;;  %v740_v34 = vpop.f32.mrb[1].mxu1 }
 0x283   : > { %v1707_v35 = vadd.f32 %v720_v31, %v1698_v26  ;;  %v1710_v36 = vadd.f32 %v740_v34, %v1698_v26  ;;  %v722_v32 = vpop.f32.mrb[2].mxu0  ;;  %v742_v37 = vpop.f32.mrb[2].mxu1 }
 0x284   : > { %v757_v38 = vmul.f32 %v1701_v29, %v1701_v29  ;;  %v765_v41 = vmul.f32 %v1704_v30, %v1704_v30  ;;  %v1717_v42 = vadd.f32 %v722_v32, %v1696_v25  ;;  %v1720_v43 = vadd.f32 %v742_v37, %v1696_v25  ;;  %v724_v44 = vpop.f32.mrb[3].mxu0  ;;  %v744_v45 = vpop.f32.mrb[3].mxu1 }
 0x285   : > { %v758_v39 = vmul.f32 %v1707_v35, %v1707_v35  ;;  %v766_v46 = vmul.f32 %v1710_v36, %v1710_v36  ;;  %v1727_v49 = vadd.f32 %v724_v44, %v1698_v26  ;;  %v1730_v50 = vadd.f32 %v744_v45, %v1698_v26 }
 0x286   : > { %v773_v51 = vmul.f32 %v757_v38, %v1701_v29  ;;  %v781_v52 = vmul.f32 %v765_v41, %v1704_v30  ;;  %v759_v33 = vmul.f32 %v1717_v42, %v1717_v42  ;;  %v767_v53 = vmul.f32 %v1720_v43, %v1720_v43 }
 0x287   : > { %v774_v54 = vmul.f32 %v758_v39, %v1707_v35  ;;  %v782_v57 = vmul.f32 %v766_v46, %v1710_v36  ;;  %v760_v58 = vmul.f32 %v1727_v49, %v1727_v49  ;;  %v768_v59 = vmul.f32 %v1730_v50, %v1730_v50 }
 0x288   : > { %v789_v40 = vmul.f32 0.044715, %v773_v51  ;;  %v797_v60 = vmul.f32 0.044715, %v781_v52  ;;  %v775_v47 = vmul.f32 %v759_v33, %v1717_v42  ;;  %v783_v61 = vmul.f32 %v767_v53, %v1720_v43 }
 0x289   : > { %v790_v62 = vmul.f32 0.044715, %v774_v54  ;;  %v798_v63 = vmul.f32 0.044715, %v782_v57  ;;  %v776_v0 = vmul.f32 %v760_v58, %v1727_v49  ;;  %v784_v1 = vmul.f32 %v768_v59, %v1730_v50  ;;  %v728_v48 = vpop.f32.mrb[4].mxu0  ;;  %v748_v55 = vpop.f32.mrb[4].mxu1 }
 0x28a   : > { %v805_v2 = vadd.f32 %v789_v40, %v1701_v29  ;;  %v813_v56 = vadd.f32 %v797_v60, %v1704_v30  ;;  %v791_v3 = vmul.f32 0.044715, %v775_v47  ;;  %v799_v4 = vmul.f32 0.044715, %v783_v61  ;;  %v730_v5 = vpop.f32.mrb[5].mxu0  ;;  %v750_v6 = vpop.f32.mrb[5].mxu1 }
 0x28b   : > { %v806_v7 = vadd.f32 %v790_v62, %v1707_v35  ;;  %v814_v8 = vadd.f32 %v798_v63, %v1710_v36  ;;  %v792_v9 = vmul.f32 0.044715, %v776_v0  ;;  %v800_v10 = vmul.f32 0.044715, %v784_v1  ;;  %v732_v11 = vpop.f32.mrb[6].mxu0  ;;  %v752_v12 = vpop.f32.mrb[6].mxu1 }
 0x28c   : > { %v821_v13 = vmul.f32 0.7978846, %v805_v2  ;;  %v829_v14 = vmul.f32 0.7978846, %v813_v56  ;;  %v807_v15 = vadd.f32 %v791_v3, %v1717_v42  ;;  %v815_v16 = vadd.f32 %v799_v4, %v1720_v43  ;;  %v734_v17 = vpop.f32.mrb[7].mxu0  ;;  %v754_v18 = vpop.f32.mrb[7].mxu1 }
 0x28d   : > { %v822_v19 = vmul.f32 0.7978846, %v806_v7  ;;  %v830_v20 = vmul.f32 0.7978846, %v814_v8  ;;  %v808_v21 = vadd.f32 %v792_v9, %v1727_v49  ;;  %v816_v22 = vadd.f32 %v800_v10, %v1730_v50 }
 0x28e   : > { %1356 = vtanh.f32 %v821_v13  ;;  %v823_v23 = vmul.f32 0.7978846, %v807_v15  ;;  %v831_v24 = vmul.f32 0.7978846, %v815_v16  ;;  %v1757_v27 = vadd.f32 %v728_v48, %v1696_v25 }
 0x28f   : > { %1358 = vtanh.f32 %v829_v14  ;;  %v824_v28 = vmul.f32 0.7978846, %v808_v21  ;;  %v832_v31 = vmul.f32 0.7978846, %v816_v22  ;;  %v1760_v34 = vadd.f32 %v748_v55, %v1696_v25 }
 0x290   : > { %1360 = vtanh.f32 %v822_v19  ;;  %v761_v32 = vmul.f32 %v1757_v27, %v1757_v27  ;;  %v1765_v37 = vadd.f32 %v730_v5, %v1698_v26  ;;  %v1768_v38 = vadd.f32 %v750_v6, %v1698_v26 }
 0x291   : > { %1362 = vtanh.f32 %v830_v20  ;;  %v769_v41 = vmul.f32 %v1760_v34, %v1760_v34  ;;  %v1773_v44 = vadd.f32 %v732_v11, %v1696_v25  ;;  %v1776_v45 = vadd.f32 %v752_v12, %v1696_v25 }
 0x292   : > { %1364 = vtanh.f32 %v823_v23  ;;  %v777_v39 = vmul.f32 %v761_v32, %v1757_v27  ;;  %v762_v46 = vmul.f32 %v1765_v37, %v1765_v37  ;;  %v770_v51 = vmul.f32 %v1768_v38, %v1768_v38 }
 0x293   : > { %1366 = vtanh.f32 %v831_v24  ;;  %v785_v52 = vmul.f32 %v769_v41, %v1760_v34  ;;  %v763_v33 = vmul.f32 %v1773_v44, %v1773_v44  ;;  %v771_v53 = vmul.f32 %v1776_v45, %v1776_v45 }
 0x294   : > { %1368 = vtanh.f32 %v824_v28  ;;  %v793_v25 = vmul.f32 0.044715, %v777_v39  ;;  %v778_v54 = vmul.f32 %v762_v46, %v1765_v37  ;;  %v786_v57 = vmul.f32 %v770_v51, %v1768_v38 }
 0x295   : > { %1370 = vtanh.f32 %v832_v31  ;;  %v801_v58 = vmul.f32 0.044715, %v785_v52  ;;  %v779_v59 = vmul.f32 %v763_v33, %v1773_v44  ;;  %v787_v40 = vmul.f32 %v771_v53, %v1776_v45 }
 0x296   : > { %v809_v60 = vadd.f32 %v793_v25, %v1757_v27  ;;  %v794_v47 = vmul.f32 0.044715, %v778_v54  ;;  %v802_v61 = vmul.f32 0.044715, %v786_v57  ;;  %v1795_v1 = vadd.f32 %v734_v17, %v1698_v26 }
 0x297   : > { %v817_v62 = vadd.f32 %v801_v58, %v1760_v34  ;;  %v795_v63 = vmul.f32 0.044715, %v779_v59  ;;  %v803_v0 = vmul.f32 0.044715, %v787_v40  ;;  %v1800_v3 = vadd.f32 %v754_v18, %v1698_v26 }
 0x298   : > { %v1357_v48 = vpop.eup %1356  ;;  %v825_v55 = vmul.f32 0.7978846, %v809_v60  ;;  %v810_v2 = vadd.f32 %v794_v47, %v1765_v37  ;;  %v818_v56 = vadd.f32 %v802_v61, %v1768_v38  ;;  %v764_v19 = vmul.f32 %v1795_v1, %v1795_v1 }
 0x299   : > { %v1359_v4 = vpop.eup %1358  ;;  %v853_v5 = vadd.f32 1.0, %v1357_v48  ;;  %v833_v6 = vmul.f32 0.7978846, %v817_v62  ;;  %v811_v7 = vadd.f32 %v795_v63, %v1773_v44  ;;  %v819_v8 = vadd.f32 %v803_v0, %v1776_v45 }
 0x29a   : > { %v1361_v9 = vpop.eup %1360  ;;  %v861_v10 = vadd.f32 1.0, %v1359_v4  ;;  %1372 = vtanh.f32 %v825_v55  ;;  %v826_v11 = vmul.f32 0.7978846, %v810_v2  ;;  %v834_v12 = vmul.f32 0.7978846, %v818_v56 }
 0x29b   : > { %v1363_v13 = vpop.eup %1362  ;;  %v869_v14 = vmul.f32 0.5, %v853_v5  ;;  %v854_v15 = vadd.f32 1.0, %v1361_v9  ;;  %1374 = vtanh.f32 %v833_v6  ;;  %v827_v16 = vmul.f32 0.7978846, %v811_v7 }
 0x29c   : > { %v1365_v17 = vpop.eup %1364  ;;  %v877_v26 = vmul.f32 0.5, %v861_v10  ;;  %v862_v18 = vadd.f32 1.0, %v1363_v13  ;;  %1376 = vtanh.f32 %v826_v11  ;;  %v835_v41 = vmul.f32 0.7978846, %v819_v8 }
 0x29d   : > { %v1367_v20 = vpop.eup %1366  ;;  %v885_v21 = vmul.f32 %v869_v14, %v1701_v29  ;;  %v870_v22 = vmul.f32 0.5, %v854_v15  ;;  %v855_v23 = vadd.f32 1.0, %v1365_v17  ;;  %1378 = vtanh.f32 %v834_v12 }
 0x29e   : > { %v1369_v24 = vpop.eup %1368  ;;  %v893_v28 = vmul.f32 %v877_v26, %v1704_v30  ;;  %v878_v31 = vmul.f32 0.5, %v862_v18  ;;  %v863_v32 = vadd.f32 1.0, %v1367_v20  ;;  %1380 = vtanh.f32 %v827_v16 }
 0x29f   : > { %v1371_v39 = vpop.eup %1370  ;;  %v886_v46 = vmul.f32 %v870_v22, %v1707_v35  ;;  %v871_v51 = vmul.f32 0.5, %v855_v23  ;;  %v856_v52 = vadd.f32 1.0, %v1369_v24  ;;  %v780_v25 = vmul.f32 %v764_v19, %v1795_v1 }
 0x2a0   : > { %v894_v33 = vmul.f32 %v878_v31, %v1710_v36  ;;  %v879_v53 = vmul.f32 0.5, %v863_v32  ;;  %v864_v29 = vadd.f32 1.0, %v1371_v39  ;;  %v772_v58 = vmul.f32 %v1800_v3, %v1800_v3 }
 0x2a1   : > { %v1200_v54 = vpack.c.bf16 %v886_v46, %v885_v21  ;;  %v887_v30 = vmul.f32 %v871_v51, %v1717_v42  ;;  %v872_v57 = vmul.f32 0.5, %v856_v52  ;;  %v796_v60 = vmul.f32 0.044715, %v780_v25 }
 0x2a2   : > { %v1204_v59 = vpack.c.bf16 %v894_v33, %v893_v28  ;;  %v895_v35 = vmul.f32 %v879_v53, %v1720_v43  ;;  %v880_v40 = vmul.f32 0.5, %v864_v29  ;;  %1382 = vtanh.f32 %v835_v41 }
 0x2a3   : > { %949 = vst [vmem:[%s1622_s21] sm:$0xff] %v1200_v54  ;;  %v888_v36 = vmul.f32 %v872_v57, %v1727_v49  ;;  %v788_v47 = vmul.f32 %v772_v58, %v1800_v3  ;;  %v812_v62 = vadd.f32 %v796_v60, %v1795_v1 }
 0x2a4   : > { %v1373_v61 = vpop.eup %1372  ;;  %953 = vst [vmem:[%s1622_s21 + $0x20] sm:$0xff] %v1204_v59  ;;  %v896_v42 = vmul.f32 %v880_v40, %v1730_v50 }
 0x2a5   : > { %v1375_v63 = vpop.eup %1374  ;;  %v1201_v0 = vpack.c.bf16 %v888_v36, %v887_v30  ;;  %v857_v48 = vadd.f32 1.0, %v1373_v61  ;;  %v804_v43 = vmul.f32 0.044715, %v788_v47  ;;  %v828_v4 = vmul.f32 0.7978846, %v812_v62 }
 0x2a6   : > { %v1377_v55 = vpop.eup %1376  ;;  %v1205_v2 = vpack.c.bf16 %v896_v42, %v895_v35  ;;  %v865_v56 = vadd.f32 1.0, %v1375_v63 }
 0x2a7   : > { %v1379_v49 = vpop.eup %1378  ;;  %950 = vst [vmem:[%s1622_s21 + $0x8] sm:$0xff] %v1201_v0  ;;  %v873_v5 = vmul.f32 0.5, %v857_v48  ;;  %v858_v6 = vadd.f32 1.0, %v1377_v55  ;;  %v820_v7 = vadd.f32 %v804_v43, %v1800_v3  ;;  %1384 = vtanh.f32 %v828_v4 }
 0x2a8   : > { %954 = vst [vmem:[%s1622_s21 + $0x28] sm:$0xff] %v1205_v2  ;;  %v881_v8 = vmul.f32 0.5, %v865_v56  ;;  %v866_v50 = vadd.f32 1.0, %v1379_v49  ;;  %v1381_v9 = vpop.eup %1380 }
 0x2a9   : > { %v889_v10 = vmul.f32 %v873_v5, %v1757_v27  ;;  %v874_v11 = vmul.f32 0.5, %v858_v6  ;;  %v836_v12 = vmul.f32 0.7978846, %v820_v7  ;;  %v859_v18 = vadd.f32 1.0, %v1381_v9 }
 0x2aa   : > { %v897_v13 = vmul.f32 %v881_v8, %v1760_v34  ;;  %v882_v14 = vmul.f32 0.5, %v866_v50 }
 0x2ab   : > { %v890_v15 = vmul.f32 %v874_v11, %v1765_v37  ;;  %1386 = vtanh.f32 %v836_v12  ;;  %v875_v27 = vmul.f32 0.5, %v859_v18  ;;  %v1021_v51 = vld [vmem:[%s1622_s21 + $0x20] sm:$0xff] (%p1558_p9) }
 0x2ac   : > { %v898_v16 = vmul.f32 %v882_v14, %v1768_v38  ;;  %v1383_v17 = vpop.eup %1382  ;;  %1022 = vst [vmem:[%s971_s15 + $0x40] sm:$0xff] (%p1558_p9), %v1021_v51 }
 0x2ad   : > { %v1202_v26 = vpack.c.bf16 %v890_v15, %v889_v10  ;;  %v867_v20 = vadd.f32 1.0, %v1383_v17  ;;  %v891_v24 = vmul.f32 %v875_v27, %v1773_v44  ;;  %v1013_v44 = vld [vmem:[%s1622_s21] sm:$0xff] (%p1558_p9) }
 0x2ae   : > { %v1206_v19 = vpack.c.bf16 %v898_v16, %v897_v13  ;;  %1014 = vst [vmem:[%s971_s15] sm:$0xff] (%p1558_p9), %v1013_v44 }
 0x2af   : > { %951 = vst [vmem:[%s1622_s21 + $0x10] sm:$0xff] %v1202_v26  ;;  %v883_v23 = vmul.f32 0.5, %v867_v20  ;;  %v1023_v52 = vld [vmem:[%s1622_s21 + $0x28] sm:$0xff] (%p1558_p9) }
 0x2b0   : > { %955 = vst [vmem:[%s1622_s21 + $0x30] sm:$0xff] %v1206_v19  ;;  %1024 = vst [vmem:[%s971_s15 + $0x50] sm:$0xff] (%p1558_p9), %v1023_v52 }
 0x2b1   : > { %v1385_v21 = vpop.eup %1384  ;;  %v899_v31 = vmul.f32 %v883_v23, %v1776_v45  ;;  %v1015_v45 = vld [vmem:[%s1622_s21 + $0x8] sm:$0xff] (%p1558_p9) }
 0x2b2   : > { %v860_v22 = vadd.f32 1.0, %v1385_v21  ;;  %1016 = vst [vmem:[%s971_s15 + $0x10] sm:$0xff] (%p1558_p9), %v1015_v45 }
 0x2b4   : > { %v876_v37 = vmul.f32 0.5, %v860_v22 }
 0x2b5   : > { %v1387_v34 = vpop.eup %1386 }
 0x2b6   : > { %v868_v28 = vadd.f32 1.0, %v1387_v34  ;;  %v892_v38 = vmul.f32 %v876_v37, %v1795_v1  ;;  %v1017_v1 = vld [vmem:[%s1622_s21 + $0x10] sm:$0xff] (%p1558_p9) }
 0x2b7   : > { %v1025_v33 = vld [vmem:[%s1622_s21 + $0x30] sm:$0xff] (%p1558_p9)  ;;  %1018 = vst [vmem:[%s971_s15 + $0x20] sm:$0xff] (%p1558_p9), %v1017_v1 }
 0x2b8   : > { %v884_v32 = vmul.f32 0.5, %v868_v28  ;;  %v1203_v41 = vpack.c.bf16 %v892_v38, %v891_v24  ;;  %963 = sbr.rel (!%p1558_p9) target bundleno = 711 (0x2c7), region = 86  ;;  %1026 = vst [vmem:[%s971_s15 + $0x60] sm:$0xff] (%p1558_p9), %v1025_v33 }
 0x2ba   : > { %v900_v39 = vmul.f32 %v884_v32, %v1800_v3  ;;  %952 = vst [vmem:[%s1622_s21 + $0x18] sm:$0xff] %v1203_v41 }
 0x2bc   : > { %v1207_v46 = vpack.c.bf16 %v900_v39, %v899_v31 }
 0x2be   : > { %956 = vst [vmem:[%s1622_s21 + $0x38] sm:$0xff] %v1207_v46 }
 0x2c1   : > { %v1019_v3 = vld [vmem:[%s1622_s21 + $0x18] sm:$0xff] }
 0x2c2   : > { %1020 = vst [vmem:[%s971_s15 + $0x30] sm:$0xff] %v1019_v3 }
 0x2c5   : > { %v1027_v53 = vld [vmem:[%s1622_s21 + $0x38] sm:$0xff] }
 0x2c6   : > { %1028 = vst [vmem:[%s971_s15 + $0x70] sm:$0xff] %v1027_v53 }
 0x2c7 PF: > { %s15_s26 = sadd.s32 1, %s1458_s26   ;;  %s1898_s20 = sld [smem:[#allocation5_spill]] }
 0x2c8   : > { %p12_p3 = scmp.ge.s32.totalorder %s15_s26, 6   ;;  %s1899_s21 = sld [smem:[#allocation10_spill]] }
 0x2c9   : > { %s1900_s22 = sld [smem:[#allocation6_spill]]  ;;  %s1901_s23 = sld [smem:[#allocation7_spill]] }
 0x2ca   : > { %s1902_s24 = sld [smem:[#allocation8_spill]]  ;;  %s1903_s25 = sld [smem:[#allocation9_spill]] }
 0x2cb   : > { %s1904_s18 = smov %s1430_s19  ;;  %s1905_s19 = smov %s1563_s12 }
 0x2cc   :  { %14 = sbr.rel (!%p12_p3) target bundleno = 7 (0x7), region = 167 }

// kernel: dit_forward.29
= control target key start
LH: loop header
LB: loop body
LE: loop exit
PB: predicated region body
PF: predicated region fallthrough
CT: control target
= control target key end

     0   :  { %s1560_s18 = smov 0   ;;  %s1562_s19 = smov 0   ;;  %s1761_s0 = inlined_call_operand.vmem [shape: bf16[2,64,512], index: 0, kind: input, shape index: {}]   ;;  %s1762_s1 = inlined_call_operand.vmem [shape: bf16[512,128], index: 1, kind: input, shape index: {}]   ;;  %s1763_s2 = inlined_call_operand.vmem [shape: f32[1,128], index: 2, kind: input, shape index: {}]   ;;  %s1764_s3 = inlined_call_operand.vmem [shape: bf16[2,64,128], index: 3, kind: input, shape index: {}]   ;;  %s1765_s4 = inlined_call_operand.vmem [shape: f32[2,1,128], index: 4, kind: input, shape index: {}]   ;;  %s1766_s5 = inlined_call_operand.vmem [shape: bf16[2,64,128], index: 5, kind: output, shape index: {}]  }
   0x1   :  { %s1564_s20 = smov 0  }
   0x2 LB: > { %s41_s21 = sadd.s32 1, %s1524_s19  ;;  %p1226_p0 = scmp.ge.s32.totalorder %s1528_s20, 1  ;;  %s1528_s20 = sphi %s1564_s20, %s15_s20   ;;  %s1524_s19 = sphi %s1562_s19, %s1768_s19   ;;  %s1520_s18 = sphi %s1560_s18, %s1767_s18  }
   0x3   : > { %p43_p1 = scmp.ge.s32.totalorder %s41_s21, 2  ;;  %p291_p2 = scmp.lt.s32.totalorder %s1528_s20, 3 }
   0x5   : > { %s1770_s21 = smov (%p43_p1, %s41_s21), 0  ;;  %p292_p3 = pnand %p1226_p0, %p291_p2 }
   0x6   : > { %v1450_v0 = vld [vmem:[%s1762_s1 + $0x40] sm:$0xff] (!%p292_p3)   ;;  %v1454_v4 = vld [vmem:[%s1762_s1 + $0x48] sm:$0xff] (!%p292_p3)   ;;  %v1458_v8 = vld [vmem:[%s1762_s1 + $0x50] sm:$0xff] (!%p292_p3)   ;;  %p366_p4 = scmp.lt.s32.totalorder (!%p292_p3), %s1520_s18, 1 }
   0x7   : > { %295 = sbr.rel (%p292_p3) target bundleno = 293 (0x125), region = 40  ;;  %v1451_v1 = vld [vmem:[%s1762_s1 + $0xc0] sm:$0xff] (!%p292_p3)   ;;  %1346 = vmatprep.subr.bf16.mxu0 (!%p292_p3), %v1450_v0  ;;  %v1455_v5 = vld [vmem:[%s1762_s1 + $0xc8] sm:$0xff] (!%p292_p3)   ;;  %v1459_v9 = vld [vmem:[%s1762_s1 + $0xd0] sm:$0xff] (!%p292_p3)  }
   0x8   : > { %v1452_v2 = vld [vmem:[%s1762_s1] sm:$0xff] (!%p292_p3)   ;;  %1386 = vmatprep.subr.bf16.mxu1 (!%p292_p3), %v1451_v1  ;;  %v1456_v6 = vld [vmem:[%s1762_s1 + $0x8] sm:$0xff] (!%p292_p3)   ;;  %v1460_v10 = vld [vmem:[%s1762_s1 + $0x10] sm:$0xff] (!%p292_p3)  }
   0x9   : > { %v1453_v3 = vld [vmem:[%s1762_s1 + $0x80] sm:$0xff] (!%p292_p3)   ;;  %1347 = vmatpush3.bf16.msra.mxu0 (!%p292_p3), %v1452_v2  ;;  %v1457_v7 = vld [vmem:[%s1762_s1 + $0x88] sm:$0xff] (!%p292_p3)   ;;  %v1461_v11 = vld [vmem:[%s1762_s1 + $0x90] sm:$0xff] (!%p292_p3)  }
   0xa   : > { %1387 = vmatpush3.bf16.msra.mxu1 (!%p292_p3), %v1453_v3  ;;  %1348 = vmatprep.subr.bf16.mxu0 (!%p292_p3), %v1454_v4  ;;  %v1462_v12 = vld [vmem:[%s1762_s1 + $0x58] sm:$0xff] (!%p292_p3)   ;;  %v1466_v16 = vld [vmem:[%s1762_s1 + $0x60] sm:$0xff] (!%p292_p3)   ;;  %v1470_v20 = vld [vmem:[%s1762_s1 + $0x68] sm:$0xff] (!%p292_p3)  }
   0xb   : > { %1388 = vmatprep.subr.bf16.mxu1 (!%p292_p3), %v1455_v5  ;;  %v1463_v13 = vld [vmem:[%s1762_s1 + $0xd8] sm:$0xff] (!%p292_p3)   ;;  %v1467_v17 = vld [vmem:[%s1762_s1 + $0xe0] sm:$0xff] (!%p292_p3)   ;;  %v1471_v21 = vld [vmem:[%s1762_s1 + $0xe8] sm:$0xff] (!%p292_p3)  }
   0xc   : > { %v1464_v14 = vld [vmem:[%s1762_s1 + $0x18] sm:$0xff] (!%p292_p3)   ;;  %v1468_v18 = vld [vmem:[%s1762_s1 + $0x20] sm:$0xff] (!%p292_p3)   ;;  %v1472_v22 = vld [vmem:[%s1762_s1 + $0x28] sm:$0xff] (!%p292_p3)  }
   0xd   : > { %1349 = vmatpush3.bf16.msra.mxu0 (!%p292_p3), %v1456_v6  ;;  %v1465_v15 = vld [vmem:[%s1762_s1 + $0x98] sm:$0xff] (!%p292_p3)   ;;  %v1469_v19 = vld [vmem:[%s1762_s1 + $0xa0] sm:$0xff] (!%p292_p3)   ;;  %v1473_v23 = vld [vmem:[%s1762_s1 + $0xa8] sm:$0xff] (!%p292_p3)  }
   0xe   : > { %1389 = vmatpush3.bf16.msra.mxu1 %v1457_v7  ;;  %1350 = vmatprep.subr.bf16.mxu0 %v1458_v8  ;;  %s1772_s18 = smov (!%p366_p4, %s1520_s18), 1  ;;  %v1474_v24 = vld [vmem:[%s1762_s1 + $0x70] sm:$0xff]   ;;  %v1478_v28 = vld [vmem:[%s1762_s1 + $0x78] sm:$0xff]   ;;  %v1717_v57 = vld [vmem:[%s1763_s2] ss:$0 sm:$0xff] }
   0xf   : > { %1390 = vmatprep.subr.bf16.mxu1 %v1459_v9  ;;  %v1475_v25 = vld [vmem:[%s1762_s1 + $0xf0] sm:$0xff]   ;;  %s1293_s9 = sshll.u32 %s1772_s18, 7  ;;  %v1479_v29 = vld [vmem:[%s1762_s1 + $0xf8] sm:$0xff]   ;;  %s1294_s27 = sshll.u32 %s1772_s18, 5 }
  0x10   : > { %v1476_v26 = vld [vmem:[%s1762_s1 + $0x30] sm:$0xff]   ;;  %s1678_s22 = scalar_lea.vmem %s1761_s0, %s1293_s9  ;;  %v1480_v30 = vld [vmem:[%s1762_s1 + $0x38] sm:$0xff]   ;;  %s1708_s30 = scalar_lea.vmem %s1764_s3, %s1294_s27 }
  0x11   : > { %1351 = vmatpush3.bf16.msra.mxu0 %v1460_v10  ;;  %v1477_v27 = vld [vmem:[%s1762_s1 + $0xb0] sm:$0xff]   ;;  %v1481_v31 = vld [vmem:[%s1762_s1 + $0xb8] sm:$0xff]   ;;  %s410_s8 = scalar_lea.vmem %s1765_s4, %s1772_s18  ;;  %v1305_v63 = vld [vmem:[%s1708_s30] sm:$0xff]   ;;  %s1731_s13 = scalar_lea.vmem %s1766_s5, %s1294_s27 }
  0x12   : > { %1391 = vmatpush3.bf16.msra.mxu1 %v1461_v11  ;;  %1352 = vmatprep.subr.bf16.mxu0 %v1462_v12  ;;  %v1482_v32 = vld [vmem:[%s1678_s22] ss:$16 sps:$4 sm:$0xff]   ;;  %v1484_v33 = vld [vmem:[%s1678_s22 + $0x4] ss:$16 sps:$4 sm:$0xff]   ;;  %v1485_v34 = vld [vmem:[%s1678_s22 + $0x8] ss:$16 sps:$4 sm:$0xff]   ;;  %v1306_v4 = vunpack.c.l.bf16 %v1305_v63  ;;  %v1307_v6 = vunpack.c.h.bf16 %v1305_v63 }
  0x13   : > { %1392 = vmatprep.subr.bf16.mxu1 %v1463_v13  ;;  %v1487_v35 = vld [vmem:[%s1678_s22 + $0xc] ss:$16 sps:$4 sm:$0xff]   ;;  %829 = vmatprep.mubr.bf16.mxu0 %v1484_v33  ;;  %v1488_v36 = vld [vmem:[%s1678_s22 + $0x24] ss:$16 sps:$4 sm:$0xff]   ;;  %v1492_v38 = vld [vmem:[%s1678_s22 + $0x20] ss:$16 sps:$4 sm:$0xff]  }
  0x14   : > { %894 = vmatprep.mubr.bf16.mxu1 %v1487_v35  ;;  %v1490_v37 = vld [vmem:[%s1678_s22 + $0x2c] ss:$16 sps:$4 sm:$0xff]   ;;  %v1493_v39 = vld [vmem:[%s1678_s22 + $0x28] ss:$16 sps:$4 sm:$0xff]   ;;  %v1494_v40 = vld [vmem:[%s1678_s22 + $0x44] ss:$16 sps:$4 sm:$0xff]  }
  0x15   : > { %1353 = vmatpush3.bf16.msra.mxu0 %v1464_v14  ;;  %v1496_v41 = vld [vmem:[%s1678_s22 + $0x4c] ss:$16 sps:$4 sm:$0xff]   ;;  %v1498_v42 = vld [vmem:[%s1678_s22 + $0x40] ss:$16 sps:$4 sm:$0xff]   ;;  %v1499_v43 = vld [vmem:[%s1678_s22 + $0x48] ss:$16 sps:$4 sm:$0xff]  }
  0x16   : > { %1393 = vmatpush3.bf16.msra.mxu1 %v1465_v15  ;;  %1354 = vmatprep.subr.bf16.mxu0 %v1466_v16  ;;  %v1500_v44 = vld [vmem:[%s1678_s22 + $0x64] ss:$16 sps:$4 sm:$0xff]   ;;  %v1502_v45 = vld [vmem:[%s1678_s22 + $0x6c] ss:$16 sps:$4 sm:$0xff]   ;;  %v1504_v46 = vld [vmem:[%s1678_s22 + $0x60] ss:$16 sps:$4 sm:$0xff]  }
  0x17   : > { %1394 = vmatprep.subr.bf16.mxu1 %v1467_v17  ;;  %v1505_v47 = vld [vmem:[%s1678_s22 + $0x68] ss:$16 sps:$4 sm:$0xff]   ;;  %v1719_v62 = vld [vmem:[%s410_s8] ss:$0 sm:$0xff] }
  0x19   : > { %1355 = vmatpush3.bf16.msra.mxu0 %v1468_v18 }
  0x1a   : > { %1395 = vmatpush3.bf16.msra.mxu1 %v1469_v19  ;;  %1356 = vmatprep.subr.bf16.mxu0 %v1470_v20 }
  0x1b   : > { %1396 = vmatprep.subr.bf16.mxu1 %v1471_v21 }
  0x1d   : > { %1357 = vmatpush3.bf16.msra.mxu0 %v1472_v22  ;;  %v1340_v22 = vld [vmem:[%s1708_s30 + $0x8] sm:$0xff]  }
  0x1e   : > { %1397 = vmatpush3.bf16.msra.mxu1 %v1473_v23  ;;  %1358 = vmatprep.subr.bf16.mxu0 %v1474_v24 }
  0x1f   : > { %1398 = vmatprep.subr.bf16.mxu1 %v1475_v25 }
  0x21   : > { %1359 = vmatpush3.bf16.msra.mxu0 %v1476_v26 }
  0x22   : > { %1399 = vmatpush3.bf16.msra.mxu1 %v1477_v27  ;;  %1360 = vmatprep.subr.bf16.mxu0 %v1478_v28  ;;  %v1310_v28 = vunpack.c.l.bf16 %v1340_v22 }
  0x23   : > { %1400 = vmatprep.subr.bf16.mxu1 %v1479_v29 }
  0x25   : > { %1361 = vmatpush3.bf16.msra.mxu0 %v1480_v30  ;;  %v1311_v30 = vunpack.c.h.bf16 %v1340_v22 }
  0x26   : > { %1401 = vmatpush3.bf16.msra.mxu1 %v1481_v31 }
  0x28   : > { %830 = vmatmul.mubr.bf16.vlgmr.msra.gmra.mrb[0].mxu0 %v1482_v32 }
  0x29   : > { %895 = vmatmul.mubr.bf16.vlgmr.msra.gmra.mrb[0].mxu1 %v1485_v34  ;;  %837 = vmatprep.mubr.bf16.mxu0 %v1488_v36 }
  0x2a   : > { %902 = vmatprep.mubr.bf16.mxu1 %v1490_v37 }
  0x30   : > { %838 = vmatmul.mubr.bf16.gmra.mrb[4].mxu0 %v1492_v38 }
  0x31   : > { %903 = vmatmul.mubr.bf16.gmra.mrb[4].mxu1 %v1493_v39  ;;  %845 = vmatprep.mubr.bf16.mxu0 %v1494_v40 }
  0x32   : > { %910 = vmatprep.mubr.bf16.mxu1 %v1496_v41 }
  0x38   : > { %846 = vmatmul.mubr.bf16.gmra.mrb[8].mxu0 %v1498_v42 }
  0x39   : > { %911 = vmatmul.mubr.bf16.gmra.mrb[8].mxu1 %v1499_v43  ;;  %853 = vmatprep.mubr.bf16.mxu0 %v1500_v44 }
  0x3a   : > { %918 = vmatprep.mubr.bf16.mxu1 %v1502_v45 }
  0x40   : > { %854 = vmatmul.mubr.bf16.gmra.mrb[12].mxu0 %v1504_v46  ;;  %v1341_v46 = vld [vmem:[%s1708_s30 + $0x10] sm:$0xff]  }
  0x41   : > { %919 = vmatmul.mubr.bf16.gmra.mrb[12].mxu1 %v1505_v47 }
  0xfb   : > { %v1362_v48 = vpop.f32.mrb[0].mxu0 }
  0xfc   : > { %v1402_v49 = vpop.f32.mrb[0].mxu1  ;;  %v1363_v50 = vpop.f32.mrb[1].mxu0 }
  0xfd   : > { %v1364_v51 = vadd.f32 %v1363_v50, %v1362_v48  ;;  %v1403_v52 = vpop.f32.mrb[1].mxu1  ;;  %v1365_v53 = vpop.f32.mrb[2].mxu0 }
  0xfe   : > { %v1404_v54 = vadd.f32 %v1403_v52, %v1402_v49  ;;  %v1405_v55 = vpop.f32.mrb[2].mxu1  ;;  %v1366_v56 = vpop.f32.mrb[3].mxu0  ;;  %v1314_v52 = vunpack.c.l.bf16 %v1341_v46 }
  0xff   : > { %v1367_v58 = vadd.f32 %v1366_v56, %v1365_v53  ;;  %v1406_v59 = vpop.f32.mrb[3].mxu1 }
 0x100   : > { %v897_v60 = vadd.f32 %v1404_v54, %v1364_v51  ;;  %v1407_v61 = vadd.f32 %v1406_v59, %v1405_v55  ;;  %v1315_v54 = vunpack.c.h.bf16 %v1341_v46 }
 0x102   : > { %v961_v0 = vadd.f32 %v1717_v57, %v897_v60  ;;  %v900_v1 = vadd.f32 %v1407_v61, %v1367_v58 }
 0x103   : > { %v1368_v2 = vpop.f32.mrb[4].mxu0 }
 0x104   : > { %v976_v3 = vmul.f32 %v1719_v62, %v961_v0  ;;  %v962_v5 = vadd.f32 %v1717_v57, %v900_v1  ;;  %v1408_v7 = vpop.f32.mrb[4].mxu1  ;;  %v1369_v8 = vpop.f32.mrb[5].mxu0 }
 0x105   : > { %v1370_v9 = vadd.f32 %v1369_v8, %v1368_v2  ;;  %v1409_v10 = vpop.f32.mrb[5].mxu1  ;;  %v1371_v11 = vpop.f32.mrb[6].mxu0  ;;  %v1342_v8 = vld [vmem:[%s1708_s30 + $0x18] sm:$0xff]  }
 0x106   : > { %v977_v12 = vmul.f32 %v1719_v62, %v962_v5  ;;  %v1410_v13 = vadd.f32 %v1409_v10, %v1408_v7  ;;  %v1411_v14 = vpop.f32.mrb[6].mxu1  ;;  %v1372_v15 = vpop.f32.mrb[7].mxu0  ;;  %v1000_v18 = vadd.f32 %v1306_v4, %v976_v3 }
 0x107   : > { %v1373_v16 = vadd.f32 %v1372_v15, %v1371_v11  ;;  %v1412_v17 = vpop.f32.mrb[7].mxu1  ;;  %v1319_v15 = vunpack.c.h.bf16 %v1342_v8 }
 0x108   : > { %v1001_v19 = vadd.f32 %v1307_v6, %v977_v12  ;;  %v905_v20 = vadd.f32 %v1410_v13, %v1370_v9  ;;  %v1413_v21 = vadd.f32 %v1412_v17, %v1411_v14  ;;  %v1318_v13 = vunpack.c.l.bf16 %v1342_v8 }
 0x10a   : > { %v1323_v23 = vpack.c.bf16 %v1001_v19, %v1000_v18  ;;  %v963_v24 = vadd.f32 %v1717_v57, %v905_v20  ;;  %v908_v25 = vadd.f32 %v1413_v21, %v1373_v16 }
 0x10b   : > { %v1374_v26 = vpop.f32.mrb[8].mxu0 }
 0x10c   : > { %1324 = vst [vmem:[%s1731_s13] sm:$0xff] %v1323_v23   ;;  %v978_v27 = vmul.f32 %v1719_v62, %v963_v24  ;;  %v964_v29 = vadd.f32 %v1717_v57, %v908_v25  ;;  %v1414_v31 = vpop.f32.mrb[8].mxu1  ;;  %v1375_v32 = vpop.f32.mrb[9].mxu0 }
 0x10d   : > { %v1376_v33 = vadd.f32 %v1375_v32, %v1374_v26  ;;  %v1415_v34 = vpop.f32.mrb[9].mxu1  ;;  %v1377_v35 = vpop.f32.mrb[10].mxu0 }
 0x10e   : > { %v979_v36 = vmul.f32 %v1719_v62, %v964_v29  ;;  %v1416_v37 = vadd.f32 %v1415_v34, %v1414_v31  ;;  %v1417_v38 = vpop.f32.mrb[10].mxu1  ;;  %v1378_v39 = vpop.f32.mrb[11].mxu0  ;;  %v1002_v42 = vadd.f32 %v1310_v28, %v978_v27 }
 0x10f   : > { %v1379_v40 = vadd.f32 %v1378_v39, %v1377_v35  ;;  %v1418_v41 = vpop.f32.mrb[11].mxu1 }
 0x110   : > { %v1003_v43 = vadd.f32 %v1311_v30, %v979_v36  ;;  %v913_v44 = vadd.f32 %v1416_v37, %v1376_v33  ;;  %v1419_v45 = vadd.f32 %v1418_v41, %v1417_v38 }
 0x112   : > { %v1328_v47 = vpack.c.bf16 %v1003_v43, %v1002_v42  ;;  %v965_v48 = vadd.f32 %v1717_v57, %v913_v44  ;;  %v916_v49 = vadd.f32 %v1419_v45, %v1379_v40 }
 0x113   : > { %v1380_v50 = vpop.f32.mrb[12].mxu0 }
 0x114   : > { %1343 = vst [vmem:[%s1731_s13 + $0x8] sm:$0xff] %v1328_v47   ;;  %v980_v51 = vmul.f32 %v1719_v62, %v965_v48  ;;  %v966_v53 = vadd.f32 %v1717_v57, %v916_v49  ;;  %v1420_v55 = vpop.f32.mrb[12].mxu1  ;;  %v1381_v56 = vpop.f32.mrb[13].mxu0 }
 0x115   : > { %v1382_v58 = vadd.f32 %v1381_v56, %v1380_v50  ;;  %v1421_v59 = vpop.f32.mrb[13].mxu1  ;;  %v1383_v60 = vpop.f32.mrb[14].mxu0 }
 0x116   : > { %v981_v61 = vmul.f32 %v1719_v62, %v966_v53  ;;  %v1422_v63 = vadd.f32 %v1421_v59, %v1420_v55  ;;  %v1423_v0 = vpop.f32.mrb[14].mxu1  ;;  %v1384_v1 = vpop.f32.mrb[15].mxu0  ;;  %v1004_v4 = vadd.f32 %v1314_v52, %v980_v51 }
 0x117   : > { %v1385_v2 = vadd.f32 %v1384_v1, %v1383_v60  ;;  %v1424_v3 = vpop.f32.mrb[15].mxu1 }
 0x118   : > { %v1005_v5 = vadd.f32 %v1315_v54, %v981_v61  ;;  %v921_v6 = vadd.f32 %v1422_v63, %v1382_v58  ;;  %v1425_v7 = vadd.f32 %v1424_v3, %v1423_v0 }
 0x11a   : > { %v1333_v9 = vpack.c.bf16 %v1005_v5, %v1004_v4  ;;  %v967_v10 = vadd.f32 %v1717_v57, %v921_v6  ;;  %v924_v11 = vadd.f32 %v1425_v7, %v1385_v2 }
 0x11c   : > { %1344 = vst [vmem:[%s1731_s13 + $0x10] sm:$0xff] %v1333_v9   ;;  %v982_v12 = vmul.f32 %v1719_v62, %v967_v10  ;;  %v968_v14 = vadd.f32 %v1717_v57, %v924_v11 }
 0x11e   : > { %v983_v16 = vmul.f32 %v1719_v62, %v968_v14  ;;  %v1006_v17 = vadd.f32 %v1318_v13, %v982_v12 }
 0x120   : > { %v1007_v18 = vadd.f32 %v1319_v15, %v983_v16 }
 0x122   : > { %v1338_v19 = vpack.c.bf16 %v1007_v18, %v1006_v17 }
 0x124   : > { %1345 = vst [vmem:[%s1731_s13 + $0x18] sm:$0xff] %v1338_v19  }
 0x125 PF: > { %s15_s20 = sadd.s32 1, %s1528_s20   ;;  %s1767_s18 = smov %s1524_s19 }
 0x126   : > { %p12_p5 = scmp.ge.s32.totalorder %s15_s20, 4   ;;  %s1768_s19 = smov %s1770_s21 }
 0x128   :  { %14 = sbr.rel (!%p12_p5) target bundleno = 2 (0x2), region = 90 }

// kernel: dit_forward.39
= control target key start
LH: loop header
LB: loop body
LE: loop exit
PB: predicated region body
PF: predicated region fallthrough
CT: control target
= control target key end

     0   :  { %s979_s18 = smov 0   ;;  %s981_s19 = smov 0   ;;  %s1099_s0 = inlined_call_operand.vmem [shape: bf16[2,64,128], index: 0, kind: input, shape index: {}]   ;;  %s1100_s1 = inlined_call_operand.vmem [shape: f32[2,1,128], index: 1, kind: input, shape index: {}]   ;;  %s1101_s2 = inlined_call_operand.vmem [shape: f32[2,1,128], index: 2, kind: input, shape index: {}]   ;;  %s1102_s3 = inlined_call_operand.vmem [shape: bf16[128,32], index: 3, kind: input, shape index: {}]   ;;  %s1103_s4 = inlined_call_operand.vmem [shape: f32[1,32], index: 4, kind: input, shape index: {}]   ;;  %s1104_s5 = inlined_call_operand.vmem [shape: f32[2,64,32], index: 5, kind: output, shape index: {}]  }
   0x1   :  { %s983_s20 = smov 0  }
   0x2 LB: > { %s34_s21 = sadd.s32 1, %s943_s19  ;;  %p787_p0 = scmp.ge.s32.totalorder %s947_s20, 1  ;;  %s947_s20 = sphi %s983_s20, %s15_s20   ;;  %s943_s19 = sphi %s981_s19, %s1106_s19   ;;  %s939_s18 = sphi %s979_s18, %s1105_s18  }
   0x3   : > { %p36_p1 = scmp.ge.s32.totalorder %s34_s21, 2  ;;  %p250_p2 = scmp.lt.s32.totalorder %s947_s20, 3 }
   0x5   : > { %s1108_s21 = smov (%p36_p1, %s34_s21), 0  ;;  %p251_p3 = pnand %p787_p0, %p250_p2 }
   0x6   : > { %p303_p4 = scmp.lt.s32.totalorder (!%p251_p3), %s939_s18, 1  ;;  %v901_v44 = vld [vmem:[%s1102_s3] sm:$0xff] (!%p251_p3)   ;;  %v902_v45 = vld [vmem:[%s1102_s3 + $0x8] sm:$0xff] (!%p251_p3)   ;;  %v903_v46 = vld [vmem:[%s1102_s3 + $0x10] sm:$0xff] (!%p251_p3)   ;;  %v451_v55 = vlaneseq (!%p251_p3)  ;;  %vm627_vm0 = vcmask (!%p251_p3), 261120  }
   0x7   : > { %254 = sbr.rel (%p251_p3) target bundleno = 567 (0x237), region = 40  ;;  %837 = vmatprep.subr.bf16.mxu0 (!%p251_p3), %v901_v44  ;;  %861 = vmatprep.subr.bf16.mxu1 (!%p251_p3), %v901_v44  ;;  %v904_v47 = vld [vmem:[%s1102_s3 + $0x18] sm:$0xff] (!%p251_p3)   ;;  %v905_v48 = vld [vmem:[%s1102_s3 + $0x20] sm:$0xff] (!%p251_p3)   ;;  %v906_v49 = vld [vmem:[%s1102_s3 + $0x28] sm:$0xff] (!%p251_p3)  }
   0x8   : > { %838 = vmatpush3.bf16.msra.mxu0 (!%p251_p3), %v901_v44  ;;  %869 = vmatpush3.bf16.msra.mxu1 (!%p251_p3), %v901_v44  ;;  %v907_v50 = vld [vmem:[%s1102_s3 + $0x30] sm:$0xff] (!%p251_p3)   ;;  %v908_v51 = vld [vmem:[%s1102_s3 + $0x38] sm:$0xff] (!%p251_p3)   ;;  %v452_v62 = vshrl.u32 (!%p251_p3), %v451_v55, 7 }
   0x9   : > { %839 = vmatprep.subr.bf16.mxu0 (!%p251_p3), %v902_v45  ;;  %862 = vmatprep.subr.bf16.mxu1 (!%p251_p3), %v902_v45 }
   0xc   : > { %840 = vmatpush3.bf16.msra.mxu0 (!%p251_p3), %v902_v45  ;;  %870 = vmatpush3.bf16.msra.mxu1 (!%p251_p3), %v902_v45 }
   0xd   : > { %841 = vmatprep.subr.bf16.mxu0 (!%p251_p3), %v903_v46  ;;  %863 = vmatprep.subr.bf16.mxu1 (!%p251_p3), %v903_v46 }
   0xe   : > { %s1110_s18 = smov (!%p303_p4, %s939_s18), 1 }
   0xf   : > { %s804_s22 = sshll.u32 %s1110_s18, 5  ;;  %s317_s23 = scalar_lea.vmem %s1101_s2, %s1110_s18 }
  0x10   : > { %s310_s25 = scalar_lea.vmem %s1099_s0, %s804_s22  ;;  %842 = vmatpush3.bf16.msra.mxu0 %v903_v46  ;;  %871 = vmatpush3.bf16.msra.mxu1 %v903_v46  ;;  %s314_s26 = scalar_lea.vmem %s1100_s1, %s1110_s18 }
  0x11   : > { %v807_v0 = vld [vmem:[%s310_s25] sm:$0xff]   ;;  %v823_v1 = vld [vmem:[%s310_s25 + $0x10] sm:$0xff]   ;;  %v822_v6 = vld [vmem:[%s310_s25 + $0x8] sm:$0xff]   ;;  %843 = vmatprep.subr.bf16.mxu0 %v904_v47  ;;  %864 = vmatprep.subr.bf16.mxu1 %v904_v47  ;;  %s805_s27 = sshll.u32 %s1110_s18, 6 }
  0x12   : > { %v808_v2 = vunpack.c.l.bf16 %v807_v0  ;;  %v816_v3 = vunpack.c.l.bf16 %v823_v1  ;;  %v809_v4 = vunpack.c.h.bf16 %v807_v0  ;;  %v817_v5 = vunpack.c.h.bf16 %v823_v1  ;;  %v824_v9 = vld [vmem:[%s310_s25 + $0x18] sm:$0xff]   ;;  %v448_v1 = vld [vmem:[%s317_s23] sm:$0x1]  ;;  %s336_s7 = scalar_lea.vmem %s1104_s5, %s805_s27 }
  0x13   : > { %v812_v7 = vunpack.c.l.bf16 %v822_v6  ;;  %v813_v8 = vunpack.c.h.bf16 %v822_v6  ;;  %v820_v10 = vunpack.c.l.bf16 %v824_v9  ;;  %v821_v11 = vunpack.c.h.bf16 %v824_v9 }
  0x14   : > { %359 = vadd.xlane.f32.xlu0 %v808_v2  ;;  %367 = vadd.xlane.f32.xlu1 %v816_v3  ;;  %v449_v6 = vadd.f32 1.0, %v448_v1 }
  0x15   : > { %844 = vmatpush3.bf16.msra.mxu0 %v904_v47  ;;  %872 = vmatpush3.bf16.msra.mxu1 %v904_v47 }
  0x16   : > { %845 = vmatprep.subr.bf16.mxu0 %v905_v48  ;;  %865 = vmatprep.subr.bf16.mxu1 %v905_v48 }
  0x18   : > { %361 = vadd.xlane.f32.xlu0 %v809_v4  ;;  %369 = vadd.xlane.f32.xlu1 %v817_v5 }
  0x19   : > { %846 = vmatpush3.bf16.msra.mxu0 %v905_v48  ;;  %873 = vmatpush3.bf16.msra.mxu1 %v905_v48 }
  0x1a   : > { %847 = vmatprep.subr.bf16.mxu0 %v906_v49  ;;  %866 = vmatprep.subr.bf16.mxu1 %v906_v49 }
  0x1c   : > { %363 = vadd.xlane.f32.xlu0 %v812_v7  ;;  %365 = vadd.xlane.f32.xlu1 %v813_v8 }
  0x1d   : > { %848 = vmatpush3.bf16.msra.mxu0 %v906_v49  ;;  %874 = vmatpush3.bf16.msra.mxu1 %v906_v49 }
  0x1e   : > { %849 = vmatprep.subr.bf16.mxu0 %v907_v50  ;;  %867 = vmatprep.subr.bf16.mxu1 %v907_v50 }
  0x20   : > { %371 = vadd.xlane.f32.xlu0 %v820_v10  ;;  %373 = vadd.xlane.f32.xlu1 %v821_v11 }
  0x21   : > { %850 = vmatpush3.bf16.msra.mxu0 %v907_v50  ;;  %875 = vmatpush3.bf16.msra.mxu1 %v907_v50 }
  0x22   : > { %851 = vmatprep.subr.bf16.mxu0 %v908_v51  ;;  %868 = vmatprep.subr.bf16.mxu1 %v908_v51 }
  0x25   : > { %852 = vmatpush3.bf16.msra.mxu0 %v908_v51  ;;  %876 = vmatpush3.bf16.msra.mxu1 %v908_v51 }
  0xa1   : > { %v360_v12 = vpop.xlane.xlu0 %359  ;;  %v368_v13 = vpop.xlane.xlu1 %367 }
  0xa2   : > { %v376_v14 = vmul.f32 0.0078125, %v360_v12  ;;  %v380_v15 = vmul.f32 0.0078125, %v368_v13 }
  0xa4   : > { %v1003_v16 = vsub.f32 %v808_v2, %v376_v14  ;;  %v1005_v17 = vsub.f32 %v816_v3, %v380_v15 }
  0xa5   : > { %v362_v18 = vpop.xlane.xlu0 %361  ;;  %v370_v19 = vpop.xlane.xlu1 %369 }
  0xa6   : > { %v377_v20 = vmul.f32 0.0078125, %v362_v18  ;;  %v392_v21 = vmul.f32 %v1003_v16, %v1003_v16  ;;  %v381_v22 = vmul.f32 0.0078125, %v370_v19  ;;  %v396_v25 = vmul.f32 %v1005_v17, %v1005_v17 }
  0xa8   : > { %v1009_v23 = vsub.f32 %v809_v4, %v377_v20  ;;  %400 = vadd.xlane.f32.xlu0 %v392_v21  ;;  %v1011_v24 = vsub.f32 %v817_v5, %v381_v22 }
  0xa9   : > { %v364_v26 = vpop.xlane.xlu0 %363  ;;  %v366_v27 = vpop.xlane.xlu1 %365 }
  0xaa   : > { %v378_v28 = vmul.f32 0.0078125, %v364_v26  ;;  %v393_v29 = vmul.f32 %v1009_v23, %v1009_v23  ;;  %v379_v30 = vmul.f32 0.0078125, %v366_v27  ;;  %v397_v33 = vmul.f32 %v1011_v24, %v1011_v24 }
  0xac   : > { %v1017_v31 = vsub.f32 %v812_v7, %v378_v28  ;;  %408 = vadd.xlane.f32.xlu0 %v396_v25  ;;  %402 = vadd.xlane.f32.xlu1 %v393_v29  ;;  %v1019_v32 = vsub.f32 %v813_v8, %v379_v30  ;;  %v453_v7 = vsub.s32 0, %v452_v62  ;;  %v792_v28 = vld [vmem:[%s314_s26] ss:$0 sm:$0xff] }
  0xad   : > { %v372_v34 = vpop.xlane.xlu0 %371  ;;  %v374_v35 = vpop.xlane.xlu1 %373 }
  0xae   : > { %v382_v36 = vmul.f32 0.0078125, %v372_v34  ;;  %v394_v37 = vmul.f32 %v1017_v31, %v1017_v31  ;;  %v383_v38 = vmul.f32 0.0078125, %v374_v35  ;;  %v395_v41 = vmul.f32 %v1019_v32, %v1019_v32 }
  0xaf   : > { %v454_v15 = vrot.slane %v449_v6, %v453_v7 }
  0xb0   : > { %v1025_v39 = vsub.f32 %v820_v10, %v382_v36  ;;  %410 = vadd.xlane.f32.xlu1 %v397_v33  ;;  %404 = vadd.xlane.f32.xlu0 %v394_v37  ;;  %v1027_v40 = vsub.f32 %v821_v11, %v383_v38 }
  0xb2   : > { %v398_v42 = vmul.f32 %v1025_v39, %v1025_v39  ;;  %v399_v43 = vmul.f32 %v1027_v40, %v1027_v40 }
  0xb4   : > { %406 = vadd.xlane.f32.xlu1 %v395_v41  ;;  %412 = vadd.xlane.f32.xlu0 %v398_v42 }
  0xb8   : > { %414 = vadd.xlane.f32.xlu1 %v399_v43 }
 0x135   : > { %v401_v52 = vpop.xlane.xlu0 %400 }
 0x136   : > { %v416_v53 = vmul.f32 0.0078125, %v401_v52 }
 0x138   : > { %v424_v54 = vadd.f32 1e-06, %v416_v53 }
 0x139   : > { %v403_v56 = vpop.xlane.xlu1 %402  ;;  %v409_v57 = vpop.xlane.xlu0 %408 }
 0x13a   : > { %909 = vrsqrt.f32 %v424_v54  ;;  %v417_v58 = vmul.f32 0.0078125, %v403_v56  ;;  %v420_v59 = vmul.f32 0.0078125, %v409_v57 }
 0x13c   : > { %v425_v60 = vadd.f32 1e-06, %v417_v58  ;;  %v428_v61 = vadd.f32 1e-06, %v420_v59 }
 0x13d   : > { %v411_v63 = vpop.xlane.xlu1 %410  ;;  %v405_v0 = vpop.xlane.xlu0 %404 }
 0x13e   : > { %911 = vrsqrt.f32 %v425_v60  ;;  %v421_v2 = vmul.f32 0.0078125, %v411_v63  ;;  %v418_v3 = vmul.f32 0.0078125, %v405_v0 }
 0x13f   : > { %913 = vrsqrt.f32 %v428_v61 }
 0x140   : > { %v429_v4 = vadd.f32 1e-06, %v421_v2  ;;  %v426_v5 = vadd.f32 1e-06, %v418_v3 }
 0x141   : > { %v407_v8 = vpop.xlane.xlu1 %406  ;;  %v413_v9 = vpop.xlane.xlu0 %412 }
 0x142   : > { %915 = vrsqrt.f32 %v429_v4  ;;  %v419_v10 = vmul.f32 0.0078125, %v407_v8  ;;  %v422_v11 = vmul.f32 0.0078125, %v413_v9 }
 0x143   : > { %917 = vrsqrt.f32 %v426_v5 }
 0x144   : > { %v910_v12 = vpop.eup %909  ;;  %v427_v13 = vadd.f32 1e-06, %v419_v10  ;;  %v430_v14 = vadd.f32 1e-06, %v422_v11 }
 0x145   : > { %v415_v18 = vpop.xlane.xlu1 %414  ;;  %v440_v19 = vmul.f32 %v910_v12, %v1003_v16 }
 0x146   : > { %919 = vrsqrt.f32 %v427_v13  ;;  %v423_v20 = vmul.f32 0.0078125, %v415_v18 }
 0x147   : > { %921 = vrsqrt.f32 %v430_v14  ;;  %v456_v27 = vmul.f32 %v454_v15, %v440_v19 }
 0x148   : > { %v912_v21 = vpop.eup %911  ;;  %v431_v22 = vadd.f32 1e-06, %v423_v20 }
 0x149   : > { %v914_v25 = vpop.eup %913  ;;  %v441_v26 = vmul.f32 %v912_v21, %v1009_v23  ;;  %v471_v34 = vadd.f32 %v792_v28, %v456_v27 }
 0x14a   : > { %923 = vrsqrt.f32 %v431_v22  ;;  %v444_v29 = vmul.f32 %v914_v25, %v1005_v17 }
 0x14b   : > { %v457_v30 = vmul.f32 %v454_v15, %v441_v26 }
 0x14c   : > { %v916_v33 = vpop.eup %915  ;;  %v460_v37 = vmul.f32 %v454_v15, %v444_v29 }
 0x14d   : > { %v918_v16 = vpop.eup %917  ;;  %v472_v35 = vadd.f32 %v792_v28, %v457_v30  ;;  %v445_v36 = vmul.f32 %v916_v33, %v1011_v24 }
 0x14e   : > { %v442_v38 = vmul.f32 %v918_v16, %v1017_v31  ;;  %v475_v23 = vadd.f32 %v792_v28, %v460_v37 }
 0x14f   : > { %v479_v41 = vpack.c.bf16 %v472_v35, %v471_v34  ;;  %v461_v42 = vmul.f32 %v454_v15, %v445_v36 }
 0x150   : > { %v920_v43 = vpop.eup %919  ;;  %v458_v17 = vmul.f32 %v454_v15, %v442_v38 }
 0x151   : > { %v922_v44 = vpop.eup %921  ;;  %853 = vmatprep.mubr.bf16.mxu0 %v479_v41  ;;  %v476_v45 = vadd.f32 %v792_v28, %v461_v42  ;;  %v443_v46 = vmul.f32 %v920_v43, %v1019_v32  ;;  %v793_v32 = vld [vmem:[%s1103_s4] ss:$0 sm:$0xff] }
 0x152   : > { %v446_v47 = vmul.f32 %v922_v44, %v1025_v39  ;;  %v473_v24 = vadd.f32 %v792_v28, %v458_v17 }
 0x153   : > { %v481_v48 = vpack.c.bf16 %v476_v45, %v475_v23  ;;  %v459_v49 = vmul.f32 %v454_v15, %v443_v46 }
 0x154   : > { %v924_v50 = vpop.eup %923  ;;  %v462_v52 = vmul.f32 %v454_v15, %v446_v47 }
 0x155   : > { %857 = vmatprep.mubr.bf16.mxu1 %v481_v48  ;;  %v474_v51 = vadd.f32 %v792_v28, %v459_v49  ;;  %v447_v31 = vmul.f32 %v924_v50, %v1027_v40 }
 0x156   : > { %v477_v55 = vadd.f32 %v792_v28, %v462_v52 }
 0x157   : > { %v480_v53 = vpack.c.bf16 %v474_v51, %v473_v24  ;;  %v463_v54 = vmul.f32 %v454_v15, %v447_v31 }
 0x159   : > { %854 = vmatmul.mubr.bf16.vlgmr.msra.gmra.mrb[0].mxu0 %v480_v53  ;;  %v478_v56 = vadd.f32 %v792_v28, %v463_v54 }
 0x15b   : > { %v482_v57 = vpack.c.bf16 %v478_v56, %v477_v55 }
 0x15d   : > { %858 = vmatmul.mubr.bf16.vlgmr.msra.gmra.mrb[0].mxu1 %v482_v57 }
 0x22c   : > { %v855_v39 = vpop.f32.mrb[0].mxu0 }
 0x22d   : > { %v605_v40 = vadd.f32 %v855_v39, %v793_v32  ;;  %v596_v58 = vpop.f32.mrb[1].mxu0 }
 0x22e   : > { %v597_v59 = vadd.f32 %v793_v32, %v596_v58  ;;  %v856_v60 = vpop.f32.mrb[2].mxu0 }
 0x22f   : > { %630 = vst.msk [vmem:[%s336_s7 + $0x10] sm:$0xff] %vm627_vm0, %v605_v40  ;;  %v608_v61 = vadd.f32 %v856_v60, %v793_v32  ;;  %v599_v62 = vpop.f32.mrb[3].mxu0 }
 0x230   : > { %628 = vst.msk [vmem:[%s336_s7] sm:$0xff] %vm627_vm0, %v597_v59  ;;  %v600_v63 = vadd.f32 %v793_v32, %v599_v62  ;;  %v859_v0 = vpop.f32.mrb[0].mxu1 }
 0x231   : > { %631 = vst.msk [vmem:[%s336_s7 + $0x18] sm:$0xff] %vm627_vm0, %v608_v61  ;;  %v621_v1 = vadd.f32 %v859_v0, %v793_v32  ;;  %v612_v2 = vpop.f32.mrb[1].mxu1 }
 0x232   : > { %629 = vst.msk [vmem:[%s336_s7 + $0x8] sm:$0xff] %vm627_vm0, %v600_v63  ;;  %v613_v3 = vadd.f32 %v793_v32, %v612_v2  ;;  %v860_v4 = vpop.f32.mrb[2].mxu1 }
 0x233   : > { %634 = vst.msk [vmem:[%s336_s7 + $0x30] sm:$0xff] %vm627_vm0, %v621_v1  ;;  %v624_v5 = vadd.f32 %v860_v4, %v793_v32  ;;  %v615_v6 = vpop.f32.mrb[3].mxu1 }
 0x234   : > { %632 = vst.msk [vmem:[%s336_s7 + $0x20] sm:$0xff] %vm627_vm0, %v613_v3  ;;  %v616_v7 = vadd.f32 %v793_v32, %v615_v6 }
 0x235   : > { %635 = vst.msk [vmem:[%s336_s7 + $0x38] sm:$0xff] %vm627_vm0, %v624_v5 }
 0x236   : > { %633 = vst.msk [vmem:[%s336_s7 + $0x28] sm:$0xff] %vm627_vm0, %v616_v7 }
 0x237 PF: > { %s15_s20 = sadd.s32 1, %s947_s20   ;;  %s1105_s18 = smov %s943_s19 }
 0x238   : > { %p12_p5 = scmp.ge.s32.totalorder %s15_s20, 4   ;;  %s1106_s19 = smov %s1108_s21 }
 0x23a   :  { %14 = sbr.rel (!%p12_p5) target bundleno = 2 (0x2), region = 86 }

// kernel: dit_forward.26
= control target key start
LH: loop header
LB: loop body
LE: loop exit
PB: predicated region body
PF: predicated region fallthrough
CT: control target
= control target key end

     0   :  { %s3444_s12 = smov 0   ;;  %s3446_s13 = smov 0   ;;  %s4531_s0 = inlined_call_operand.vmem [shape: bf16[2,64,128], index: 0, kind: input, shape index: {}]   ;;  %s4532_s1 = inlined_call_operand.vmem [shape: bf16[2,16,256], index: 1, kind: input, shape index: {}, may-alias: {1,2}]   ;;  %s4533_s2 = inlined_call_operand.vmem [shape: bf16[2,16,256], index: 2, kind: input, shape index: {}, may-alias: {1,2}]   ;;  %s4534_s3 = inlined_call_operand.vmem [shape: bf16[2,64,128], index: 3, kind: output, shape index: {}]  }
   0x1   :  { %s3448_s14 = smov 0   ;;  %s3450_s15 = smov 0  }
   0x2   :  { %s3452_s16 = smov 0  }
   0x3 LB: > { %s32_s17 = sadd.s32 1, %s3412_s15  ;;  %p76_p1 = scmp.ne.s32.totalorder %s3404_s13, %s3400_s12  ;;  %s3416_s16 = sphi %s3452_s16, %s13_s16   ;;  %s3412_s15 = sphi %s3450_s15, %s4549_s15   ;;  %s3408_s14 = sphi %s3448_s14, %s4548_s14   ;;  %s3404_s13 = sphi %s3446_s13, %s4547_s13   ;;  %s3400_s12 = sphi %s3444_s12, %s4546_s12  }
   0x4   : > { %p34_p0 = scmp.ge.s32.totalorder %s32_s17, 2  ;;  %p77_p2 = scmp.eq.s32.totalorder %s3416_s16, 0 }
   0x5   : > { %s69_s20 = sadd.s32 1, %s3404_s13  ;;  %p2848_p5 = scmp.ge.s32.totalorder %s3416_s16, 2 }
   0x6   : > { %s4551_s17 = smov (%p34_p0, %s32_s17), 0  ;;  %p3475_p3 = por %p77_p2, %p76_p1 }
   0x7   : > { %s64_s19 = ssub.s32 %s3412_s15, %s4551_s17  ;;  %158 = sbr.rel (%p2848_p5) target bundleno = 28 (0x1c), region = 16 }
   0x8   : > { %p67_p4 = scmp.eq.s32.totalorder %s64_s19, 0 }
   0xa   : > { %s3483_s21 = scalar_select %p67_p4, %s3404_s13, %s69_s20  }
   0xe   : > { %174 = sbr.rel (!%p3475_p3) target bundleno = 21 (0x15), region = 24  ;;  %s176_s22 = sand.u32 (%p3475_p3), 1, %s3404_s13  }
   0xf   : > { %s2912_s23 = sshll.u32 (%p3475_p3), %s3412_s15, 4  ;;  %s2849_s24 = sshll.u32 (%p3475_p3), %s176_s22, 3 }
  0x10   : > { %s184_s27 = scalar_lea.vmem (%p3475_p3), %s4532_s1, %s2912_s23  ;;  %s178_s28 = scalar_lea.vmem (%p3475_p3), [#allocation5], %s2849_s24 }
  0x11   : > { %v200_v0 = vld [vmem:[%s184_s27] sm:$0xf] (%p3475_p3)  ;;  %v202_v1 = vld [vmem:[%s184_s27 + $0x8] sm:$0xf] (%p3475_p3) }
  0x12   : > { %201 = vst [vmem:[%s178_s28] sm:$0xf] (%p3475_p3), %v200_v0  ;;  %203 = vst [vmem:[%s178_s28 + $0x4] sm:$0xf] (%p3475_p3), %v202_v1 }
  0x15 PF: > { %230 = sbr.rel (!%p3475_p3) target bundleno = 28 (0x1c), region = 65  ;;  %s232_s29 = sand.u32 (%p3475_p3), 1, %s3404_s13  }
  0x16   : > { %s2913_s30 = sshll.u32 (%p3475_p3), %s3412_s15, 4  ;;  %s2852_s4 = sshll.u32 (%p3475_p3), %s232_s29, 3 }
  0x17   : > { %s2759_s7 = scalar_lea.vmem (%p3475_p3), %s4533_s2, %s2913_s30  ;;  %s234_s8 = scalar_lea.vmem (%p3475_p3), [#allocation6], %s2852_s4 }
  0x18   : > { %v2855_v2 = vld [vmem:[%s2759_s7 + $0x4] sm:$0xf] (%p3475_p3)  ;;  %v2856_v3 = vld [vmem:[%s2759_s7 + $0xc] sm:$0xf] (%p3475_p3) }
  0x19   : > { %258 = vst [vmem:[%s234_s8] sm:$0xf] (%p3475_p3), %v2855_v2  ;;  %260 = vst [vmem:[%s234_s8 + $0x4] sm:$0xf] (%p3475_p3), %v2856_v3 }
  0x1c PF: > { %p2857_p6 = scmp.ge.s32.totalorder %s3416_s16, 1  ;;  %p286_p7 = scmp.lt.s32.totalorder %s3416_s16, 3 }
  0x1e   : > { %p287_p8 = pnand %p2857_p6, %p286_p7 }
  0x20   : > { %290 = sbr.rel (%p287_p8) target bundleno = 1594 (0x63a), region = 106 }
  0x27   : > { %s293_s9 = sand.u32 1, %s3400_s12   ;;  %p341_p9 = scmp.lt.s32.totalorder %s3408_s14, 1  ;;  %vm432_vm0 = vcmask 261120   ;;  %vm367_vm1 = vcmask 7168   ;;  %v3418_v10 = vmov -1e+30  }
  0x28   : > { %s3504_s10 = sshll.u32 %s293_s9, 3  ;;  %370 = vst.msk [vmem:[#allocation2 + $0x10] sm:$0xff] %vm367_vm1, %v3418_v10  ;;  %368 = vst.msk [vmem:[#allocation2] sm:$0xff] %vm367_vm1, %v3418_v10  ;;  %vm599_vm2 = vcmask 130048   ;;  %v3419_v27 = vmov 0   ;;  %v3420_v28 = vmov 0.0  }
  0x29   : > { %s295_s11 = scalar_lea.vmem [#allocation5], %s3504_s10  ;;  %s4553_s14 = smov (!%p341_p9, %s3408_s14), 1  ;;  %369 = vst.msk [vmem:[#allocation2 + $0x8] sm:$0xff] %vm367_vm1, %v3418_v10  ;;  %371 = vst.msk [vmem:[#allocation2 + $0x18] sm:$0xff] %vm367_vm1, %v3418_v10  ;;  %3117 = vset.pattern.permute.xlu0 %v3419_v27  ;;  %3118 = vset.pattern.permute.xlu1 %v3419_v27  ;;  %vm2654_vm3 = vcmask 523264   ;;  %vm2663_vm4 = vcmask 785408  }
  0x2a   : > { %v3507_v4 = vld [vmem:[%s295_s11] sm:$0xff]   ;;  %s2914_s18 = sshll.u32 %s4553_s14, 5  ;;  %372 = vst.msk [vmem:[#allocation2 + $0x20] sm:$0xff] %vm367_vm1, %v3418_v10  ;;  %373 = vst.msk [vmem:[#allocation2 + $0x28] sm:$0xff] %vm367_vm1, %v3418_v10  ;;  %s302_s22 = scalar_lea.vmem [#allocation6], %s3504_s10 }
  0x2b   : > { %3067 = vmatprep.subr.msk.bf16.mxu0 %vm432_vm0, %v3507_v4  ;;  %v516_v5 = vsel %vm432_vm0, %v3507_v4, 0  ;;  %s348_s20 = scalar_lea.vmem %s4531_s0, %s2914_s18  ;;  %374 = vst.msk [vmem:[#allocation2 + $0x30] sm:$0xff] %vm367_vm1, %v3418_v10  ;;  %375 = vst.msk [vmem:[#allocation2 + $0x38] sm:$0xff] %vm367_vm1, %v3418_v10  ;;  %v3733_v29 = vld [vmem:[%s302_s22] sm:$0xff]   ;;  %s3421_s23 = smov 96  }
  0x2c   : > { %2988 = vmatpush3.bf16.xpose.msra.mxu0 %v516_v5  ;;  %v3522_v6 = vld [vmem:[%s348_s20] sm:$0xff]   ;;  %v3526_v7 = vld [vmem:[%s348_s20 + $0x8] sm:$0xff]   ;;  %v3528_v8 = vld [vmem:[%s348_s20 + $0x10] sm:$0xff]   ;;  %376 = vst.msk [vmem:[#allocation2 + $0x40] sm:$0xff] %vm367_vm1, %v3418_v10  ;;  %2997 = vmatprep.subr.bf16.mxu1 %v3733_v29  ;;  %s3422_s24 = smov 64   ;;  %s3423_s25 = smov 32  }
  0x2d   : > { %2989 = vmatprep.mubr.msk.bf16.mxu0 %vm432_vm0, %v3522_v6  ;;  %v3534_v9 = vld [vmem:[%s348_s20 + $0x18] sm:$0xff]   ;;  %377 = vst.msk [vmem:[#allocation2 + $0x48] sm:$0xff] %vm367_vm1, %v3418_v10  ;;  %378 = vst.msk [vmem:[#allocation2 + $0x50] sm:$0xff] %vm367_vm1, %v3418_v10  ;;  %2998 = vmatpush3.bf16.msra.mxu1 %v3733_v29  ;;  %s4482_s28 = scalar_lea.vmem %s4534_s3, %s2914_s18 }
  0x2e   : > { %379 = vst.msk [vmem:[#allocation2 + $0x58] sm:$0xff] %vm367_vm1, %v3418_v10  ;;  %380 = vst.msk [vmem:[#allocation2 + $0x60] sm:$0xff] %vm367_vm1, %v3418_v10 }
  0x2f   : > { %381 = vst.msk [vmem:[#allocation2 + $0x68] sm:$0xff] %vm367_vm1, %v3418_v10  ;;  %382 = vst.msk [vmem:[#allocation2 + $0x70] sm:$0xff] %vm367_vm1, %v3418_v10  ;;  %v3737_v30 = vld [vmem:[#allocation2 + $0x10] sm:$0xff]  ;;  %v3739_v31 = vld [vmem:[#allocation2] sm:$0xff] }
  0x30   : > { %383 = vst.msk [vmem:[#allocation2 + $0x78] sm:$0xff] %vm367_vm1, %v3418_v10  ;;  %384 = vst.msk [vmem:[#allocation2 + $0x80] sm:$0xff] %vm367_vm1, %v3418_v10  ;;  %v3747_v36 = vld [vmem:[#allocation2 + $0x18] sm:$0xff]  ;;  %v584_v37 = vld [vmem:[#allocation2 + $0x8] sm:$0xff] }
  0x31   : > { %385 = vst.msk [vmem:[#allocation2 + $0x88] sm:$0xff] %vm367_vm1, %v3418_v10  ;;  %386 = vst.msk [vmem:[#allocation2 + $0x90] sm:$0xff] %vm367_vm1, %v3418_v10  ;;  %v587_v42 = vld [vmem:[#allocation2 + $0x20] sm:$0xff]  ;;  %v3764_v44 = vld [vmem:[#allocation2 + $0x28] sm:$0xff] }
  0x32   : > { %387 = vst.msk [vmem:[#allocation2 + $0x98] sm:$0xff] %vm367_vm1, %v3418_v10  ;;  %388 = vst.msk [vmem:[#allocation2 + $0xa0] sm:$0xff] %vm367_vm1, %v3418_v10  ;;  %v589_v47 = vld [vmem:[#allocation2 + $0x30] sm:$0xff]  ;;  %v590_v50 = vld [vmem:[#allocation2 + $0x38] sm:$0xff] }
  0x33   : > { %2990 = vmatmul.mubr.msk.bf16.vlgmr.msra.gmra.mrb[0].mxu0 %vm432_vm0, %v3526_v7  ;;  %389 = vst.msk [vmem:[#allocation2 + $0xa8] sm:$0xff] %vm367_vm1, %v3418_v10  ;;  %390 = vst.msk [vmem:[#allocation2 + $0xb0] sm:$0xff] %vm367_vm1, %v3418_v10 }
  0x34   : > { %2993 = vmatprep.mubr.msk.bf16.mxu0 %vm432_vm0, %v3528_v8  ;;  %391 = vst.msk [vmem:[#allocation2 + $0xb8] sm:$0xff] %vm367_vm1, %v3418_v10  ;;  %392 = vst.msk [vmem:[#allocation2 + $0xc0] sm:$0xff] %vm367_vm1, %v3418_v10 }
  0x35   : > { %393 = vst.msk [vmem:[#allocation2 + $0xc8] sm:$0xff] %vm367_vm1, %v3418_v10  ;;  %394 = vst.msk [vmem:[#allocation2 + $0xd0] sm:$0xff] %vm367_vm1, %v3418_v10 }
  0x36   : > { %395 = vst.msk [vmem:[#allocation2 + $0xd8] sm:$0xff] %vm367_vm1, %v3418_v10  ;;  %396 = vst.msk [vmem:[#allocation2 + $0xe0] sm:$0xff] %vm367_vm1, %v3418_v10 }
  0x37   : > { %397 = vst.msk [vmem:[#allocation2 + $0xe8] sm:$0xff] %vm367_vm1, %v3418_v10  ;;  %398 = vst.msk [vmem:[#allocation2 + $0xf0] sm:$0xff] %vm367_vm1, %v3418_v10 }
  0x38   : > { %399 = vst.msk [vmem:[#allocation2 + $0xf8] sm:$0xff] %vm367_vm1, %v3418_v10  ;;  %400 = vst.msk [vmem:[#allocation3] sm:$0xff] %vm367_vm1, %v3420_v28 }
  0x39   : > { %434 = vst.msk [vmem:[#allocation4 + $0x8] sm:$0xff] %vm432_vm0, %v3420_v28  ;;  %433 = vst.msk [vmem:[#allocation4] sm:$0xff] %vm432_vm0, %v3420_v28 }
  0x3a   : > { %401 = vst.msk [vmem:[#allocation3 + $0x8] sm:$0xff] %vm367_vm1, %v3420_v28  ;;  %402 = vst.msk [vmem:[#allocation3 + $0x10] sm:$0xff] %vm367_vm1, %v3420_v28 }
  0x3b   : > { %2994 = vmatmul.mubr.msk.bf16.gmra.mrb[4].mxu0 %vm432_vm0, %v3534_v9  ;;  %403 = vst.msk [vmem:[#allocation3 + $0x18] sm:$0xff] %vm367_vm1, %v3420_v28  ;;  %404 = vst.msk [vmem:[#allocation3 + $0x20] sm:$0xff] %vm367_vm1, %v3420_v28 }
  0x3c   : > { %405 = vst.msk [vmem:[#allocation3 + $0x28] sm:$0xff] %vm367_vm1, %v3420_v28  ;;  %406 = vst.msk [vmem:[#allocation3 + $0x30] sm:$0xff] %vm367_vm1, %v3420_v28 }
  0x3d   : > { %407 = vst.msk [vmem:[#allocation3 + $0x38] sm:$0xff] %vm367_vm1, %v3420_v28  ;;  %408 = vst.msk [vmem:[#allocation3 + $0x40] sm:$0xff] %vm367_vm1, %v3420_v28 }
  0x3e   : > { %409 = vst.msk [vmem:[#allocation3 + $0x48] sm:$0xff] %vm367_vm1, %v3420_v28  ;;  %410 = vst.msk [vmem:[#allocation3 + $0x50] sm:$0xff] %vm367_vm1, %v3420_v28 }
  0x3f   : > { %411 = vst.msk [vmem:[#allocation3 + $0x58] sm:$0xff] %vm367_vm1, %v3420_v28  ;;  %412 = vst.msk [vmem:[#allocation3 + $0x60] sm:$0xff] %vm367_vm1, %v3420_v28 }
  0x40   : > { %413 = vst.msk [vmem:[#allocation3 + $0x68] sm:$0xff] %vm367_vm1, %v3420_v28  ;;  %414 = vst.msk [vmem:[#allocation3 + $0x70] sm:$0xff] %vm367_vm1, %v3420_v28 }
  0x41   : > { %415 = vst.msk [vmem:[#allocation3 + $0x78] sm:$0xff] %vm367_vm1, %v3420_v28  ;;  %416 = vst.msk [vmem:[#allocation3 + $0x80] sm:$0xff] %vm367_vm1, %v3420_v28 }
  0x42   : > { %417 = vst.msk [vmem:[#allocation3 + $0x88] sm:$0xff] %vm367_vm1, %v3420_v28  ;;  %418 = vst.msk [vmem:[#allocation3 + $0x90] sm:$0xff] %vm367_vm1, %v3420_v28 }
  0x43   : > { %419 = vst.msk [vmem:[#allocation3 + $0x98] sm:$0xff] %vm367_vm1, %v3420_v28  ;;  %420 = vst.msk [vmem:[#allocation3 + $0xa0] sm:$0xff] %vm367_vm1, %v3420_v28 }
  0x44   : > { %421 = vst.msk [vmem:[#allocation3 + $0xa8] sm:$0xff] %vm367_vm1, %v3420_v28  ;;  %422 = vst.msk [vmem:[#allocation3 + $0xb0] sm:$0xff] %vm367_vm1, %v3420_v28 }
  0x45   : > { %423 = vst.msk [vmem:[#allocation3 + $0xb8] sm:$0xff] %vm367_vm1, %v3420_v28  ;;  %424 = vst.msk [vmem:[#allocation3 + $0xc0] sm:$0xff] %vm367_vm1, %v3420_v28 }
  0x46   : > { %425 = vst.msk [vmem:[#allocation3 + $0xc8] sm:$0xff] %vm367_vm1, %v3420_v28  ;;  %426 = vst.msk [vmem:[#allocation3 + $0xd0] sm:$0xff] %vm367_vm1, %v3420_v28 }
  0x47   : > { %427 = vst.msk [vmem:[#allocation3 + $0xd8] sm:$0xff] %vm367_vm1, %v3420_v28  ;;  %428 = vst.msk [vmem:[#allocation3 + $0xe0] sm:$0xff] %vm367_vm1, %v3420_v28 }
  0x48   : > { %429 = vst.msk [vmem:[#allocation3 + $0xe8] sm:$0xff] %vm367_vm1, %v3420_v28  ;;  %430 = vst.msk [vmem:[#allocation3 + $0xf0] sm:$0xff] %vm367_vm1, %v3420_v28 }
  0x49   : > { %431 = vst.msk [vmem:[#allocation3 + $0xf8] sm:$0xff] %vm367_vm1, %v3420_v28 }
  0x4a   : > { %435 = vst.msk [vmem:[#allocation4 + $0x10] sm:$0xff] %vm432_vm0, %v3420_v28  ;;  %436 = vst.msk [vmem:[#allocation4 + $0x18] sm:$0xff] %vm432_vm0, %v3420_v28 }
  0x4b   : > { %437 = vst.msk [vmem:[#allocation4 + $0x20] sm:$0xff] %vm432_vm0, %v3420_v28  ;;  %438 = vst.msk [vmem:[#allocation4 + $0x28] sm:$0xff] %vm432_vm0, %v3420_v28 }
  0x4c   : > { %439 = vst.msk [vmem:[#allocation4 + $0x30] sm:$0xff] %vm432_vm0, %v3420_v28  ;;  %440 = vst.msk [vmem:[#allocation4 + $0x38] sm:$0xff] %vm432_vm0, %v3420_v28 }
  0x4d   : > { %441 = vst.msk [vmem:[#allocation4 + $0x40] sm:$0xff] %vm432_vm0, %v3420_v28  ;;  %442 = vst.msk [vmem:[#allocation4 + $0x48] sm:$0xff] %vm432_vm0, %v3420_v28 }
  0x4e   : > { %443 = vst.msk [vmem:[#allocation4 + $0x50] sm:$0xff] %vm432_vm0, %v3420_v28  ;;  %444 = vst.msk [vmem:[#allocation4 + $0x58] sm:$0xff] %vm432_vm0, %v3420_v28 }
  0x4f   : > { %445 = vst.msk [vmem:[#allocation4 + $0x60] sm:$0xff] %vm432_vm0, %v3420_v28  ;;  %446 = vst.msk [vmem:[#allocation4 + $0x68] sm:$0xff] %vm432_vm0, %v3420_v28 }
  0x50   : > { %447 = vst.msk [vmem:[#allocation4 + $0x70] sm:$0xff] %vm432_vm0, %v3420_v28  ;;  %448 = vst.msk [vmem:[#allocation4 + $0x78] sm:$0xff] %vm432_vm0, %v3420_v28 }
  0x51   : > { %449 = vst.msk [vmem:[#allocation4 + $0x80] sm:$0xff] %vm432_vm0, %v3420_v28  ;;  %450 = vst.msk [vmem:[#allocation4 + $0x88] sm:$0xff] %vm432_vm0, %v3420_v28 }
  0x52   : > { %451 = vst.msk [vmem:[#allocation4 + $0x90] sm:$0xff] %vm432_vm0, %v3420_v28  ;;  %452 = vst.msk [vmem:[#allocation4 + $0x98] sm:$0xff] %vm432_vm0, %v3420_v28 }
  0x53   : > { %453 = vst.msk [vmem:[#allocation4 + $0xa0] sm:$0xff] %vm432_vm0, %v3420_v28  ;;  %454 = vst.msk [vmem:[#allocation4 + $0xa8] sm:$0xff] %vm432_vm0, %v3420_v28 }
  0x54   : > { %455 = vst.msk [vmem:[#allocation4 + $0xb0] sm:$0xff] %vm432_vm0, %v3420_v28  ;;  %456 = vst.msk [vmem:[#allocation4 + $0xb8] sm:$0xff] %vm432_vm0, %v3420_v28 }
  0x55   : > { %457 = vst.msk [vmem:[#allocation4 + $0xc0] sm:$0xff] %vm432_vm0, %v3420_v28  ;;  %458 = vst.msk [vmem:[#allocation4 + $0xc8] sm:$0xff] %vm432_vm0, %v3420_v28 }
  0x56   : > { %459 = vst.msk [vmem:[#allocation4 + $0xd0] sm:$0xff] %vm432_vm0, %v3420_v28  ;;  %460 = vst.msk [vmem:[#allocation4 + $0xd8] sm:$0xff] %vm432_vm0, %v3420_v28 }
  0x57   : > { %461 = vst.msk [vmem:[#allocation4 + $0xe0] sm:$0xff] %vm432_vm0, %v3420_v28  ;;  %462 = vst.msk [vmem:[#allocation4 + $0xe8] sm:$0xff] %vm432_vm0, %v3420_v28 }
  0x58   : > { %463 = vst.msk [vmem:[#allocation4 + $0xf0] sm:$0xff] %vm432_vm0, %v3420_v28  ;;  %464 = vst.msk [vmem:[#allocation4 + $0xf8] sm:$0xff] %vm432_vm0, %v3420_v28 }
 0x106   : > { %v3570_v11 = vpop.f32.mrb[0].mxu0 }
 0x107   : > { %v3572_v12 = vpop.f32.mrb[1].mxu0  ;;  %v606_v13 = vsel %vm599_vm2, %v3570_v11, -inf }
 0x108   : > { %607 = vmax.xlane.f32.xlu1 %v606_v13  ;;  %v3576_v14 = vpop.f32.mrb[2].mxu0  ;;  %v600_v15 = vsel %vm599_vm2, %v3572_v12, -inf }
 0x109   : > { %601 = vmax.xlane.f32.xlu0 %v600_v15  ;;  %v3580_v16 = vpop.f32.mrb[3].mxu0  ;;  %v609_v17 = vsel %vm599_vm2, %v3576_v14, -inf }
 0x10a   : > { %v603_v18 = vsel %vm599_vm2, %v3580_v16, -inf }
 0x10c   : > { %610 = vmax.xlane.f32.xlu1 %v609_v17 }
 0x10d   : > { %604 = vmax.xlane.f32.xlu0 %v603_v18 }
 0x10e   : > { %v3586_v19 = vpop.f32.mrb[4].mxu0 }
 0x10f   : > { %v3588_v20 = vpop.f32.mrb[5].mxu0  ;;  %v618_v25 = vsel %vm599_vm2, %v3586_v19, -inf }
 0x110   : > { %v3590_v21 = vpop.f32.mrb[6].mxu0  ;;  %v612_v22 = vsel %vm599_vm2, %v3588_v20, -inf }
 0x111   : > { %613 = vmax.xlane.f32.xlu0 %v612_v22  ;;  %v3594_v23 = vpop.f32.mrb[7].mxu0  ;;  %v621_v26 = vsel %vm599_vm2, %v3590_v21, -inf }
 0x112   : > { %v615_v24 = vsel %vm599_vm2, %v3594_v23, -inf }
 0x113   : > { %616 = vmax.xlane.f32.xlu1 %v615_v24 }
 0x115   : > { %619 = vmax.xlane.f32.xlu0 %v618_v25 }
 0x117   : > { %622 = vmax.xlane.f32.xlu1 %v621_v26 }
 0x195   : > { %v608_v32 = vpop.xlane.xlu1 %607 }
 0x196   : > { %v3742_v33 = vmax.f32 %v3737_v30, %v608_v32  ;;  %v602_v34 = vpop.xlane.xlu0 %601 }
 0x197   : > { %v3745_v35 = vmax.f32 %v3739_v31, %v602_v34 }
 0x198   : > { %930 = vst.msk [vmem:[#allocation2 + $0x10] sm:$0xff] %vm367_vm1, %v3742_v33  ;;  %668 = vperm.xlu1 %3118, %v3742_v33   ;;  %v634_v63 = vsub.f32 %v3737_v30, %v3742_v33 }
 0x199   : > { %928 = vst.msk [vmem:[#allocation2] sm:$0xff] %vm367_vm1, %v3745_v35  ;;  %v611_v38 = vpop.xlane.xlu1 %610  ;;  %658 = vperm.xlu0 %3117, %v3745_v35   ;;  %v632_v1 = vsub.f32 %v3739_v31, %v3745_v35 }
 0x19a   : > { %v3756_v39 = vmax.f32 %v3747_v36, %v611_v38  ;;  %v605_v40 = vpop.xlane.xlu0 %604  ;;  %v644_v0 = vmul.f32 1.442695, %v634_v63 }
 0x19b   : > { %v625_v41 = vmax.f32 %v584_v37, %v605_v40  ;;  %v640_v2 = vmul.f32 1.442695, %v632_v1 }
 0x19c   : > { %931 = vst.msk [vmem:[#allocation2 + $0x18] sm:$0xff] %vm367_vm1, %v3756_v39  ;;  %673 = vperm.xlu1 %3118, %v3756_v39   ;;  %v635_v3 = vsub.f32 %v3747_v36, %v3756_v39 }
 0x19d   : > { %929 = vst.msk [vmem:[#allocation2 + $0x8] sm:$0xff] %vm367_vm1, %v625_v41  ;;  %936 = vrot.lane.b32.xlu0 %v3522_v6, %s3421_s23  ;;  %v633_v54 = vsub.f32 %v584_v37, %v625_v41 }
 0x19e   : > { %v614_v43 = vpop.xlane.xlu0 %613  ;;  %v646_v5 = vmul.f32 1.442695, %v635_v3 }
 0x19f   : > { %v628_v45 = vmax.f32 %v587_v42, %v614_v43  ;;  %v642_v55 = vmul.f32 1.442695, %v633_v54 }
 0x1a0   : > { %663 = vperm.xlu1 %3118, %v625_v41   ;;  %v617_v46 = vpop.xlane.xlu1 %616 }
 0x1a1   : > { %932 = vst.msk [vmem:[#allocation2 + $0x20] sm:$0xff] %vm367_vm1, %v628_v45  ;;  %v629_v48 = vmax.f32 %v3764_v44, %v617_v46  ;;  %940 = vrot.lane.b32.xlu0 %v3528_v8, %s3421_s23  ;;  %3185 = vpow2.f32 %v642_v55  ;;  %v636_v57 = vsub.f32 %v587_v42, %v628_v45 }
 0x1a2   : > { %v620_v49 = vpop.xlane.xlu0 %619 }
 0x1a3   : > { %933 = vst.msk [vmem:[#allocation2 + $0x28] sm:$0xff] %vm367_vm1, %v629_v48  ;;  %v630_v51 = vmax.f32 %v589_v47, %v620_v49  ;;  %v648_v59 = vmul.f32 1.442695, %v636_v57 }
 0x1a4   : > { %v623_v52 = vpop.xlane.xlu1 %622 }
 0x1a5   : > { %934 = vst.msk [vmem:[#allocation2 + $0x30] sm:$0xff] %vm367_vm1, %v630_v51  ;;  %v631_v53 = vmax.f32 %v590_v50, %v623_v52  ;;  %1385 = vrot.lane.b32.xlu0 %v3507_v4, %s3422_s24  ;;  %688 = vperm.xlu1 %3118, %v630_v51   ;;  %v638_v56 = vsub.f32 %v589_v47, %v630_v51 }
 0x1a7   : > { %935 = vst.msk [vmem:[#allocation2 + $0x38] sm:$0xff] %vm367_vm1, %v631_v53  ;;  %v652_v58 = vmul.f32 1.442695, %v638_v56 }
 0x1a9   : > { %1379 = vrot.lane.b32.xlu0 %v3526_v7, %s3422_s24  ;;  %678 = vperm.xlu1 %3118, %v628_v45   ;;  %3187 = vpow2.f32 %v652_v58 }
 0x1aa   : > { %3189 = vpow2.f32 %v648_v59 }
 0x1ab   : > { %v3785_v60 = vpop.eup %3185  ;;  %3191 = vpow2.f32 %v644_v0 }
 0x1ac   : > { %3193 = vpow2.f32 %v640_v2 }
 0x1ad   : > { %1383 = vrot.lane.b32.xlu0 %v3534_v9, %s3422_s24  ;;  %683 = vperm.xlu1 %3118, %v629_v48   ;;  %3195 = vpow2.f32 %v646_v5 }
 0x1b1   : > { %1818 = vrot.lane.b32.xlu0 %v3522_v6, %s3423_s25  ;;  %693 = vperm.xlu1 %3118, %v631_v53  }
 0x1b3   : > { %v3790_v61 = vpop.eup %3187 }
 0x1b4   : > { %v3795_v62 = vpop.eup %3189 }
 0x1b5   : > { %1822 = vrot.lane.b32.xlu0 %v3528_v8, %s3423_s25  ;;  %944 = vrot.lane.b32.xlu1 %v3507_v4, %s3421_s23  ;;  %v3817_v10 = vpop.eup %3191 }
 0x1b6   : > { %v3820_v13 = vpop.eup %3193 }
 0x1b9   : > { %871 = vperm.xlu0 %3117, %v3785_v60   ;;  %938 = vrot.lane.b32.xlu1 %v3526_v7, %s3421_s23 }
 0x1bd   : > { %896 = vperm.xlu0 %3117, %v3790_v61   ;;  %942 = vrot.lane.b32.xlu1 %v3534_v9, %s3421_s23 }
 0x1c1   : > { %886 = vperm.xlu0 %3117, %v3795_v62   ;;  %1377 = vrot.lane.b32.xlu1 %v3522_v6, %s3422_s24  ;;  %v639_v6 = vsub.f32 %v590_v50, %v631_v53 }
 0x1c5   : > { %1381 = vrot.lane.b32.xlu1 %v3528_v8, %s3422_s24  ;;  %v654_v8 = vmul.f32 1.442695, %v639_v6 }
 0x1c7   : > { %3197 = vpow2.f32 %v654_v8 }
 0x1c9   : > { %1826 = vrot.lane.b32.xlu1 %v3507_v4, %s3423_s25  ;;  %v637_v4 = vsub.f32 %v3764_v44, %v629_v48 }
 0x1cd   : > { %1820 = vrot.lane.b32.xlu1 %v3526_v7, %s3423_s25  ;;  %v650_v7 = vmul.f32 1.442695, %v637_v4 }
 0x1cf   : > { %3199 = vpow2.f32 %v650_v7 }
 0x1d1   : > { %1824 = vrot.lane.b32.xlu1 %v3534_v9, %s3423_s25  ;;  %v3823_v9 = vpop.eup %3195 }
 0x1d2   : > { %v3826_v15 = vpop.eup %3197 }
 0x1d5   : > { %1216 = vrot.lane.b32.xlu1 %v3733_v29, %s3421_s23 }
 0x1d9   : > { %876 = vperm.xlu1 %3118, %v3817_v10   ;;  %v3829_v17 = vpop.eup %3199 }
 0x1dd   : > { %866 = vperm.xlu1 %3118, %v3820_v13  }
 0x1e1   : > { %881 = vperm.xlu1 %3118, %v3823_v9  }
 0x1e5   : > { %901 = vperm.xlu1 %3118, %v3826_v15  }
 0x1e9   : > { %891 = vperm.xlu1 %3118, %v3829_v17  }
 0x217   : > { %v669_v18 = vpop.permute.xlu1 %668 }
 0x218   : > { %v698_v22 = vsub.f32 %v3570_v11, %v669_v18  ;;  %v659_v24 = vpop.permute.xlu0 %658 }
 0x219   : > { %v696_v25 = vsub.f32 %v3572_v12, %v659_v24 }
 0x21a   : > { %v708_v26 = vmul.f32 1.442695, %v698_v22 }
 0x21b   : > { %v704_v27 = vmul.f32 1.442695, %v696_v25  ;;  %v674_v28 = vpop.permute.xlu1 %673 }
 0x21c   : > { %3201 = vpow2.f32 %v708_v26  ;;  %v699_v30 = vsub.f32 %v3576_v14, %v674_v28  ;;  %v937_v41 = vpop.permute.xlu0 %936 }
 0x21d   : > { %3203 = vpow2.f32 %v704_v27 }
 0x21e   : > { %v710_v31 = vmul.f32 1.442695, %v699_v30 }
 0x21f   : > { %v664_v32 = vpop.permute.xlu1 %663 }
 0x220   : > { %3205 = vpow2.f32 %v710_v31  ;;  %v697_v33 = vsub.f32 %v3580_v16, %v664_v32  ;;  %v941_v50 = vpop.permute.xlu0 %940 }
 0x222   : > { %v706_v34 = vmul.f32 1.442695, %v697_v33 }
 0x224   : > { %3207 = vpow2.f32 %v706_v34  ;;  %v689_v35 = vpop.permute.xlu1 %688  ;;  %v1386_v56 = vpop.permute.xlu0 %1385 }
 0x225   : > { %v702_v11 = vsub.f32 %v3586_v19, %v689_v35  ;;  %v1400_v7 = vsel %vm432_vm0, %v1386_v56, 0 }
 0x226   : > { %v3202_v36 = vpop.eup %3201 }
 0x227   : > { %v716_v37 = vmul.f32 1.442695, %v702_v11  ;;  %v734_v12 = vsel %vm599_vm2, %v3202_v36, 0.0  ;;  %v3204_v38 = vpop.eup %3203 }
 0x228   : > { %735 = vadd.xlane.f32.xlu0 %v734_v12  ;;  %v679_v39 = vpop.permute.xlu1 %678  ;;  %v728_v16 = vsel %vm599_vm2, %v3204_v38, 0.0  ;;  %v1380_v25 = vpop.permute.xlu0 %1379 }
 0x229   : > { %3209 = vpow2.f32 %v716_v37  ;;  %v700_v14 = vsub.f32 %v3588_v20, %v679_v39  ;;  %v591_v39 = vld [vmem:[#allocation3] sm:$0xff] }
 0x22a   : > { %v3206_v40 = vpop.eup %3205 }
 0x22b   : > { %v712_v42 = vmul.f32 1.442695, %v700_v14  ;;  %v770_v43 = vpack.c.bf16 %v3206_v40, %v3202_v36  ;;  %v737_v47 = vsel %vm599_vm2, %v3206_v40, 0.0  ;;  %v593_v36 = vld [vmem:[#allocation3 + $0x10] sm:$0xff]  ;;  %v720_v40 = vmul.f32 %v3820_v13, %v591_v39 }
 0x22c   : > { %729 = vadd.xlane.f32.xlu0 %v728_v16  ;;  %v684_v44 = vpop.permute.xlu1 %683  ;;  %v1384_v27 = vpop.permute.xlu0 %1383  ;;  %v722_v12 = vmul.f32 %v3817_v10, %v593_v36  ;;  %v594_v16 = vld [vmem:[#allocation3 + $0x18] sm:$0xff] }
 0x22d   : > { %3211 = vpow2.f32 %v712_v42  ;;  %v701_v19 = vsub.f32 %v3594_v23, %v684_v44 }
 0x22e   : > { %v3208_v45 = vpop.eup %3207 }
 0x22f   : > { %v714_v46 = vmul.f32 1.442695, %v701_v19  ;;  %v731_v48 = vsel %vm599_vm2, %v3208_v45, 0.0  ;;  %v769_v49 = vpack.c.bf16 %v3208_v45, %v3204_v38  ;;  %v723_v19 = vmul.f32 %v3823_v9, %v594_v16 }
 0x230   : > { %738 = vadd.xlane.f32.xlu0 %v737_v47  ;;  %732 = vadd.xlane.f32.xlu1 %v731_v48  ;;  %v694_v20 = vpop.permute.xlu1 %693  ;;  %v1819_v28 = vpop.permute.xlu0 %1818 }
 0x231   : > { %3213 = vpow2.f32 %v714_v46  ;;  %v703_v51 = vsub.f32 %v3590_v21, %v694_v20  ;;  %2999 = vmatprep.mubr.msk.bf16.mxu1 %vm599_vm2, %v769_v49  ;;  %v597_v49 = vld [vmem:[#allocation3 + $0x30] sm:$0xff]  ;;  %v595_v20 = vld [vmem:[#allocation3 + $0x20] sm:$0xff] }
 0x232   : > { %3000 = vmatmul.mubr.msk.bf16.vlgmr.msra.gmra.mrb[0].mxu1 %vm599_vm2, %v770_v43  ;;  %v592_v43 = vld [vmem:[#allocation3 + $0x8] sm:$0xff]  ;;  %v726_v13 = vmul.f32 %v3790_v61, %v597_v49  ;;  %v724_v9 = vmul.f32 %v3795_v62, %v595_v20  ;;  %v856_v62 = vld [vmem:[#allocation4] sm:$0xff] }
 0x233   : > { %v3210_v52 = vpop.eup %3209  ;;  %v718_v23 = vmul.f32 1.442695, %v703_v51  ;;  %v721_v45 = vmul.f32 %v3785_v60, %v592_v43 }
 0x234   : > { %v945_v53 = vpop.permute.xlu1 %944  ;;  %v746_v54 = vsel %vm599_vm2, %v3210_v52, 0.0  ;;  %v1823_v30 = vpop.permute.xlu0 %1822 }
 0x235   : > { %3215 = vpow2.f32 %v718_v23  ;;  %747 = vadd.xlane.f32.xlu1 %v746_v54  ;;  %3068 = vmatprep.subr.msk.bf16.mxu1 %vm432_vm0, %v945_v53  ;;  %v959_v55 = vsel %vm432_vm0, %v945_v53, 0  ;;  %v598_v23 = vld [vmem:[#allocation3 + $0x38] sm:$0xff] }
 0x236   : > { %3008 = vmatpush3.bf16.xpose.msra.mxu1 %v959_v55  ;;  %v727_v53 = vmul.f32 %v3826_v15, %v598_v23  ;;  %v596_v55 = vld [vmem:[#allocation3 + $0x28] sm:$0xff] }
 0x237   : > { %v3212_v57 = vpop.eup %3211  ;;  %3069 = vmatprep.subr.msk.bf16.mxu1 %vm432_vm0, %v1386_v56  ;;  %v725_v61 = vmul.f32 %v3829_v17, %v596_v55 }
 0x238   : > { %v939_v21 = vpop.permute.xlu1 %938  ;;  %v740_v58 = vsel %vm599_vm2, %v3212_v57, 0.0  ;;  %v872_v32 = vpop.permute.xlu0 %871 }
 0x239   : > { %741 = vadd.xlane.f32.xlu1 %v740_v58  ;;  %v858_v58 = vld [vmem:[#allocation4 + $0x10] sm:$0xff] }
 0x23b   : > { %v3214_v59 = vpop.eup %3213 }
 0x23c   : > { %v943_v63 = vpop.permute.xlu1 %942  ;;  %v771_v0 = vpack.c.bf16 %v3214_v59, %v3212_v57  ;;  %v743_v4 = vsel %vm599_vm2, %v3214_v59, 0.0  ;;  %v3870_v34 = vpop.permute.xlu0 %896  ;;  %v859_v59 = vld [vmem:[#allocation4 + $0x18] sm:$0xff] }
 0x23e   : > { %3003 = vmatprep.mubr.msk.bf16.mxu1 %vm599_vm2, %v771_v0 }
 0x23f   : > { %v3216_v1 = vpop.eup %3215 }
 0x240   : > { %v1378_v2 = vpop.permute.xlu1 %1377  ;;  %v749_v3 = vsel %vm599_vm2, %v3216_v1, 0.0  ;;  %v772_v5 = vpack.c.bf16 %v3216_v1, %v3210_v52  ;;  %v3872_v11 = vpop.permute.xlu0 %886 }
 0x241   : > { %750 = vadd.xlane.f32.xlu0 %v749_v3 }
 0x242   : > { %3004 = vmatmul.mubr.msk.bf16.gmra.mrb[4].mxu1 %vm599_vm2, %v772_v5 }
 0x243   : > { %3009 = vmatprep.mubr.msk.bf16.mxu1 %vm432_vm0, %v937_v41 }
 0x244   : > { %v1382_v6 = vpop.permute.xlu1 %1381 }
 0x245   : > { %744 = vadd.xlane.f32.xlu0 %v743_v4 }
 0x248   : > { %v1827_v8 = vpop.permute.xlu1 %1826 }
 0x249   : > { %v1841_v26 = vsel %vm432_vm0, %v1827_v8, 0 }
 0x24a   : > { %3010 = vmatmul.mubr.msk.bf16.vlgmr.msra.gmra.mrb[8].mxu1 %vm432_vm0, %v939_v21 }
 0x24b   : > { %3013 = vmatprep.mubr.msk.bf16.mxu1 %vm432_vm0, %v941_v50  ;;  %3028 = vmatpush3.bf16.xpose.msra.mxu1 %v1400_v7 }
 0x24c   : > { %v1821_v18 = vpop.permute.xlu1 %1820  ;;  %3070 = vmatprep.subr.msk.bf16.mxu1 %vm432_vm0, %v1827_v8 }
 0x250   : > { %v1825_v22 = vpop.permute.xlu1 %1824 }
 0x252   : > { %3014 = vmatmul.mubr.msk.bf16.gmra.mrb[12].mxu1 %vm432_vm0, %v943_v63  ;;  %v857_v63 = vld [vmem:[#allocation4 + $0x8] sm:$0xff] }
 0x253   : > { %3029 = vmatprep.mubr.msk.bf16.mxu1 %vm432_vm0, %v1378_v2 }
 0x254   : > { %v1217_v24 = vpop.permute.xlu1 %1216 }
 0x255   : > { %3017 = vmatprep.subr.bf16.mxu0 %v1217_v24 }
 0x256   : > { %3018 = vmatpush3.bf16.msra.mxu0 %v1217_v24  ;;  %v860_v24 = vld [vmem:[#allocation4 + $0x20] sm:$0xff] }
 0x258   : > { %v877_v31 = vpop.permute.xlu1 %876 }
 0x259   : > { %v906_v0 = vmul.f32 %v877_v31, %v858_v58 }
 0x25a   : > { %3030 = vmatmul.mubr.msk.bf16.vlgmr.msra.gmra.mrb[16].mxu1 %vm432_vm0, %v1380_v25  ;;  %v863_v25 = vld [vmem:[#allocation4 + $0x38] sm:$0xff] }
 0x25b   : > { %3033 = vmatprep.mubr.msk.bf16.mxu1 %vm432_vm0, %v1382_v6  ;;  %3048 = vmatpush3.bf16.xpose.msra.mxu1 %v1841_v26  ;;  %v905_v6 = vmul.f32 %v872_v32, %v857_v63 }
 0x25c   : > { %v867_v33 = vpop.permute.xlu1 %866 }
 0x25d   : > { %v904_v1 = vmul.f32 %v867_v33, %v856_v62 }
 0x260   : > { %v882_v35 = vpop.permute.xlu1 %881 }
 0x261   : > { %v907_v3 = vmul.f32 %v882_v35, %v859_v59 }
 0x262   : > { %3034 = vmatmul.mubr.msk.bf16.gmra.mrb[20].mxu1 %vm432_vm0, %v1384_v27  ;;  %v861_v27 = vld [vmem:[#allocation4 + $0x28] sm:$0xff] }
 0x263   : > { %3049 = vmatprep.mubr.msk.bf16.mxu1 %vm432_vm0, %v1819_v28  ;;  %v908_v28 = vmul.f32 %v3872_v11, %v860_v24  ;;  %v1029_v24 = vld [vmem:[#allocation2 + $0x50] sm:$0xff] }
 0x264   : > { %v3874_v37 = vpop.permute.xlu1 %901 }
 0x265   : > { %v911_v31 = vmul.f32 %v3874_v37, %v863_v25 }
 0x268   : > { %v3879_v41 = vpop.permute.xlu1 %891 }
 0x269   : > { %v909_v35 = vmul.f32 %v3879_v41, %v861_v27  ;;  %v1028_v27 = vld [vmem:[#allocation2 + $0x48] sm:$0xff] }
 0x26a   : > { %3050 = vmatmul.mubr.msk.bf16.vlgmr.msra.gmra.mrb[24].mxu1 %vm432_vm0, %v1821_v18 }
 0x26b   : > { %3053 = vmatprep.mubr.msk.bf16.mxu1 %vm432_vm0, %v1823_v30 }
 0x272   : > { %3054 = vmatmul.mubr.msk.bf16.gmra.mrb[28].mxu1 %vm432_vm0, %v1825_v22  ;;  %v862_v22 = vld [vmem:[#allocation4 + $0x30] sm:$0xff] }
 0x273   : > { %v910_v26 = vmul.f32 %v3870_v34, %v862_v22 }
 0x2b5   : > { %v736_v38 = vpop.xlane.xlu0 %735 }
 0x2b6   : > { %v754_v14 = vadd.f32 %v736_v38, %v722_v12 }
 0x2b8   : > { %763 = vst.msk [vmem:[#allocation3 + $0x10] sm:$0xff] %vm367_vm1, %v754_v14 }
 0x2b9   : > { %v730_v42 = vpop.xlane.xlu0 %729 }
 0x2ba   : > { %v752_v44 = vadd.f32 %v730_v42, %v720_v40 }
 0x2bc   : > { %761 = vst.msk [vmem:[#allocation3] sm:$0xff] %vm367_vm1, %v752_v44 }
 0x2bd   : > { %v739_v10 = vpop.xlane.xlu0 %738  ;;  %v733_v46 = vpop.xlane.xlu1 %732 }
 0x2be   : > { %v755_v47 = vadd.f32 %v739_v10, %v723_v19  ;;  %v753_v48 = vadd.f32 %v733_v46, %v721_v45 }
 0x2c0   : > { %764 = vst.msk [vmem:[#allocation3 + $0x18] sm:$0xff] %vm367_vm1, %v755_v47  ;;  %762 = vst.msk [vmem:[#allocation3 + $0x8] sm:$0xff] %vm367_vm1, %v753_v48 }
 0x2c2   : > { %v748_v50 = vpop.xlane.xlu1 %747 }
 0x2c3   : > { %v758_v51 = vadd.f32 %v748_v50, %v726_v13 }
 0x2c5   : > { %767 = vst.msk [vmem:[#allocation3 + $0x30] sm:$0xff] %vm367_vm1, %v758_v51 }
 0x2c6   : > { %v742_v52 = vpop.xlane.xlu1 %741 }
 0x2c7   : > { %v756_v60 = vadd.f32 %v742_v52, %v724_v9 }
 0x2c9   : > { %765 = vst.msk [vmem:[#allocation3 + $0x20] sm:$0xff] %vm367_vm1, %v756_v60 }
 0x2ce   : > { %v751_v54 = vpop.xlane.xlu0 %750 }
 0x2cf   : > { %v759_v56 = vadd.f32 %v751_v54, %v727_v53 }
 0x2d1   : > { %768 = vst.msk [vmem:[#allocation3 + $0x38] sm:$0xff] %vm367_vm1, %v759_v56 }
 0x2d2   : > { %v745_v57 = vpop.xlane.xlu0 %744 }
 0x2d3   : > { %v757_v21 = vadd.f32 %v745_v57, %v725_v61 }
 0x2d5   : > { %766 = vst.msk [vmem:[#allocation3 + $0x28] sm:$0xff] %vm367_vm1, %v757_v21 }
 0x305   : > { %v3001_v2 = vpop.f32.mrb[0].mxu1 }
 0x306   : > { %v914_v15 = vadd.f32 %v3001_v2, %v906_v0  ;;  %v825_v5 = vpop.f32.mrb[1].mxu1 }
 0x307   : > { %v912_v4 = vadd.f32 %v904_v1, %v825_v5  ;;  %v3002_v8 = vpop.f32.mrb[2].mxu1 }
 0x308   : > { %922 = vst.msk [vmem:[#allocation4 + $0x10] sm:$0xff] %vm432_vm0, %v914_v15  ;;  %v915_v17 = vadd.f32 %v3002_v8, %v907_v3  ;;  %v828_v7 = vpop.f32.mrb[3].mxu1 }
 0x309   : > { %920 = vst.msk [vmem:[#allocation4] sm:$0xff] %vm432_vm0, %v912_v4  ;;  %v913_v18 = vadd.f32 %v905_v6, %v828_v7 }
 0x30a   : > { %923 = vst.msk [vmem:[#allocation4 + $0x18] sm:$0xff] %vm432_vm0, %v915_v17 }
 0x30b   : > { %921 = vst.msk [vmem:[#allocation4 + $0x8] sm:$0xff] %vm432_vm0, %v913_v18 }
 0x315   : > { %v3005_v30 = vpop.f32.mrb[4].mxu1 }
 0x316   : > { %v918_v32 = vadd.f32 %v3005_v30, %v910_v26  ;;  %v841_v33 = vpop.f32.mrb[5].mxu1 }
 0x317   : > { %v916_v36 = vadd.f32 %v908_v28, %v841_v33  ;;  %v3006_v12 = vpop.f32.mrb[6].mxu1  ;;  %v1027_v28 = vld [vmem:[#allocation2 + $0x40] sm:$0xff] }
 0x318   : > { %926 = vst.msk [vmem:[#allocation4 + $0x30] sm:$0xff] %vm432_vm0, %v918_v32  ;;  %v919_v38 = vadd.f32 %v3006_v12, %v911_v31  ;;  %v844_v39 = vpop.f32.mrb[7].mxu1  ;;  %v1033_v12 = vld [vmem:[#allocation2 + $0x70] sm:$0xff] }
 0x319   : > { %924 = vst.msk [vmem:[#allocation4 + $0x20] sm:$0xff] %vm432_vm0, %v916_v36  ;;  %v917_v14 = vadd.f32 %v909_v35, %v844_v39  ;;  %v1030_v36 = vld [vmem:[#allocation2 + $0x58] sm:$0xff] }
 0x31a   : > { %927 = vst.msk [vmem:[#allocation4 + $0x38] sm:$0xff] %vm432_vm0, %v919_v38 }
 0x31b   : > { %925 = vst.msk [vmem:[#allocation4 + $0x28] sm:$0xff] %vm432_vm0, %v917_v14 }
 0x31d   : > { %v3906_v34 = vpop.f32.mrb[8].mxu1 }
 0x31e   : > { %v3908_v11 = vpop.f32.mrb[9].mxu1  ;;  %v1050_v37 = vsel %vm599_vm2, %v3906_v34, -inf }
 0x31f   : > { %1051 = vmax.xlane.f32.xlu0 %v1050_v37  ;;  %v3912_v40 = vpop.f32.mrb[10].mxu1  ;;  %v1044_v16 = vsel %vm599_vm2, %v3908_v11, -inf }
 0x320   : > { %v3914_v41 = vpop.f32.mrb[11].mxu1  ;;  %v1053_v19 = vsel %vm599_vm2, %v3912_v40, -inf }
 0x321   : > { %v1047_v42 = vsel %vm599_vm2, %v3914_v41, -inf }
 0x322   : > { %1048 = vmax.xlane.f32.xlu1 %v1047_v42 }
 0x323   : > { %1045 = vmax.xlane.f32.xlu0 %v1044_v16 }
 0x325   : > { %v3920_v43 = vpop.f32.mrb[12].mxu1 }
 0x326   : > { %v3922_v44 = vpop.f32.mrb[13].mxu1  ;;  %v1062_v45 = vsel %vm599_vm2, %v3920_v43, -inf }
 0x327   : > { %1054 = vmax.xlane.f32.xlu0 %v1053_v19  ;;  %1063 = vmax.xlane.f32.xlu1 %v1062_v45  ;;  %v3928_v10 = vpop.f32.mrb[14].mxu1  ;;  %v1056_v47 = vsel %vm599_vm2, %v3922_v44, -inf  ;;  %v1034_v45 = vld [vmem:[#allocation2 + $0x78] sm:$0xff] }
 0x328   : > { %v3930_v46 = vpop.f32.mrb[15].mxu1  ;;  %v1065_v48 = vsel %vm599_vm2, %v3928_v10, -inf }
 0x329   : > { %v1059_v13 = vsel %vm599_vm2, %v3930_v46, -inf }
 0x32b   : > { %1057 = vmax.xlane.f32.xlu1 %v1056_v47  ;;  %1066 = vmax.xlane.f32.xlu0 %v1065_v48  ;;  %v1031_v47 = vld [vmem:[#allocation2 + $0x60] sm:$0xff] }
 0x32d   : > { %v3936_v49 = vpop.f32.mrb[16].mxu1 }
 0x32e   : > { %v3940_v50 = vpop.f32.mrb[17].mxu1  ;;  %v1491_v9 = vsel %vm599_vm2, %v3936_v49, -inf }
 0x32f   : > { %1060 = vmax.xlane.f32.xlu0 %v1059_v13  ;;  %v1485_v20 = vsel %vm599_vm2, %v3940_v50, -inf  ;;  %v3944_v51 = vpop.f32.mrb[18].mxu1 }
 0x330   : > { %1486 = vmax.xlane.f32.xlu1 %v1485_v20  ;;  %v3948_v52 = vpop.f32.mrb[19].mxu1  ;;  %v1494_v60 = vsel %vm599_vm2, %v3944_v51, -inf }
 0x331   : > { %v1488_v23 = vsel %vm599_vm2, %v3948_v52, -inf }
 0x333   : > { %1492 = vmax.xlane.f32.xlu0 %v1491_v9 }
 0x334   : > { %1495 = vmax.xlane.f32.xlu1 %v1494_v60 }
 0x335   : > { %v3954_v53 = vpop.f32.mrb[20].mxu1 }
 0x336   : > { %v3956_v54 = vpop.f32.mrb[21].mxu1  ;;  %v1503_v56 = vsel %vm599_vm2, %v3954_v53, -inf }
 0x337   : > { %1489 = vmax.xlane.f32.xlu0 %v1488_v23  ;;  %v3958_v55 = vpop.f32.mrb[22].mxu1  ;;  %v1497_v58 = vsel %vm599_vm2, %v3956_v54, -inf }
 0x338   : > { %v1506_v61 = vsel %vm599_vm2, %v3958_v55, -inf  ;;  %v3964_v57 = vpop.f32.mrb[23].mxu1 }
 0x339   : > { %1507 = vmax.xlane.f32.xlu1 %v1506_v61  ;;  %v1500_v21 = vsel %vm599_vm2, %v3964_v57, -inf  ;;  %v1032_v61 = vld [vmem:[#allocation2 + $0x68] sm:$0xff] }
 0x33b   : > { %1504 = vmax.xlane.f32.xlu0 %v1503_v56 }
 0x33d   : > { %1501 = vmax.xlane.f32.xlu1 %v1500_v21  ;;  %v3970_v62 = vpop.f32.mrb[24].mxu1  ;;  %v4009_v21 = vld [vmem:[#allocation2 + $0x80] sm:$0xff] }
 0x33e   : > { %v3972_v59 = vpop.f32.mrb[25].mxu1  ;;  %v1932_v0 = vsel %vm599_vm2, %v3970_v62, -inf }
 0x33f   : > { %1498 = vmax.xlane.f32.xlu0 %v1497_v58  ;;  %v3974_v63 = vpop.f32.mrb[26].mxu1  ;;  %v1926_v15 = vsel %vm599_vm2, %v3972_v59, -inf }
 0x340   : > { %v1935_v1 = vsel %vm599_vm2, %v3974_v63, -inf  ;;  %v3980_v2 = vpop.f32.mrb[27].mxu1 }
 0x341   : > { %1936 = vmax.xlane.f32.xlu1 %v1935_v1  ;;  %v1929_v3 = vsel %vm599_vm2, %v3980_v2, -inf }
 0x343   : > { %1933 = vmax.xlane.f32.xlu0 %v1932_v0 }
 0x345   : > { %1930 = vmax.xlane.f32.xlu1 %v1929_v3  ;;  %v3986_v5 = vpop.f32.mrb[28].mxu1 }
 0x346   : > { %v3988_v6 = vpop.f32.mrb[29].mxu1  ;;  %v1944_v8 = vsel %vm599_vm2, %v3986_v5, -inf }
 0x347   : > { %1927 = vmax.xlane.f32.xlu0 %v1926_v15  ;;  %v3990_v4 = vpop.f32.mrb[30].mxu1  ;;  %v1938_v22 = vsel %vm599_vm2, %v3988_v6, -inf  ;;  %v4011_v15 = vld [vmem:[#allocation2 + $0x90] sm:$0xff] }
 0x348   : > { %v1947_v17 = vsel %vm599_vm2, %v3990_v4, -inf  ;;  %v3996_v7 = vpop.f32.mrb[31].mxu1 }
 0x349   : > { %1948 = vmax.xlane.f32.xlu1 %v1947_v17  ;;  %v1941_v18 = vsel %vm599_vm2, %v3996_v7, -inf }
 0x34b   : > { %1945 = vmax.xlane.f32.xlu0 %v1944_v8 }
 0x34d   : > { %1942 = vmax.xlane.f32.xlu1 %v1941_v18  ;;  %v4017_v18 = vld [vmem:[#allocation2 + $0x98] sm:$0xff] }
 0x34f   : > { %1939 = vmax.xlane.f32.xlu0 %v1938_v22 }
 0x3ac   : > { %v1052_v25 = vpop.xlane.xlu0 %1051 }
 0x3ad   : > { %v1070_v26 = vmax.f32 %v1029_v24, %v1052_v25 }
 0x3af   : > { %1371 = vst.msk [vmem:[#allocation2 + $0x50] sm:$0xff] %vm367_vm1, %v1070_v26  ;;  %1112 = vperm.xlu1 %3118, %v1070_v26   ;;  %v1049_v30 = vpop.xlane.xlu1 %1048  ;;  %v1078_v31 = vsub.f32 %v1029_v24, %v1070_v26 }
 0x3b0   : > { %v1069_v32 = vmax.f32 %v1028_v27, %v1049_v30  ;;  %v1046_v33 = vpop.xlane.xlu0 %1045  ;;  %v4029_v30 = vld [vmem:[#allocation2 + $0x88] sm:$0xff] }
 0x3b1   : > { %v1068_v35 = vmax.f32 %v1027_v28, %v1046_v33  ;;  %v1088_v39 = vmul.f32 1.442695, %v1078_v31 }
 0x3b2   : > { %1370 = vst.msk [vmem:[#allocation2 + $0x48] sm:$0xff] %vm367_vm1, %v1069_v32  ;;  %1107 = vperm.xlu0 %3117, %v1069_v32   ;;  %v1077_v13 = vsub.f32 %v1028_v27, %v1069_v32 }
 0x3b3   : > { %v1076_v38 = vsub.f32 %v1027_v28, %v1068_v35  ;;  %1369 = vst.msk [vmem:[#allocation2 + $0x40] sm:$0xff] %vm367_vm1, %v1068_v35  ;;  %1102 = vperm.xlu1 %3118, %v1068_v35  }
 0x3b4   : > { %v1055_v14 = vpop.xlane.xlu0 %1054  ;;  %v1064_v37 = vpop.xlane.xlu1 %1063  ;;  %v1086_v58 = vmul.f32 1.442695, %v1077_v13 }
 0x3b5   : > { %v1084_v42 = vmul.f32 1.442695, %v1076_v38  ;;  %v1071_v16 = vmax.f32 %v1030_v36, %v1055_v14  ;;  %v1074_v19 = vmax.f32 %v1033_v12, %v1064_v37  ;;  %v4047_v14 = vld [vmem:[#allocation2 + $0xb0] sm:$0xff] }
 0x3b7   : > { %3217 = vpow2.f32 %v1084_v42  ;;  %v1079_v48 = vsub.f32 %v1030_v36, %v1071_v16  ;;  %1372 = vst.msk [vmem:[#allocation2 + $0x58] sm:$0xff] %vm367_vm1, %v1071_v16  ;;  %1375 = vst.msk [vmem:[#allocation2 + $0x70] sm:$0xff] %vm367_vm1, %v1074_v19  ;;  %1117 = vperm.xlu1 %3118, %v1071_v16   ;;  %1132 = vperm.xlu0 %3117, %v1074_v19   ;;  %v1082_v22 = vsub.f32 %v1033_v12, %v1074_v19  ;;  %v4039_v12 = vld [vmem:[#allocation2 + $0xb8] sm:$0xff] }
 0x3b8   : > { %3219 = vpow2.f32 %v1088_v39  ;;  %v1067_v20 = vpop.xlane.xlu0 %1066  ;;  %v1058_v9 = vpop.xlane.xlu1 %1057 }
 0x3b9   : > { %v1090_v60 = vmul.f32 1.442695, %v1079_v48  ;;  %v1075_v23 = vmax.f32 %v1034_v45, %v1067_v20  ;;  %v1072_v56 = vmax.f32 %v1031_v47, %v1058_v9  ;;  %v1096_v33 = vmul.f32 1.442695, %v1082_v22  ;;  %v4065_v20 = vld [vmem:[#allocation2 + $0xa0] sm:$0xff]  ;;  %v4089_v22 = vld [vmem:[#allocation2 + $0xc8] sm:$0xff] }
 0x3bb   : > { %3221 = vpow2.f32 %v1090_v60  ;;  %1376 = vst.msk [vmem:[#allocation2 + $0x78] sm:$0xff] %vm367_vm1, %v1075_v23  ;;  %1373 = vst.msk [vmem:[#allocation2 + $0x60] sm:$0xff] %vm367_vm1, %v1072_v56  ;;  %1137 = vperm.xlu1 %3118, %v1075_v23   ;;  %1122 = vperm.xlu0 %3117, %v1072_v56   ;;  %v1083_v17 = vsub.f32 %v1034_v45, %v1075_v23  ;;  %v1080_v35 = vsub.f32 %v1031_v47, %v1072_v56  ;;  %v4055_v47 = vld [vmem:[#allocation2 + $0xa8] sm:$0xff] }
 0x3bc   : > { %v1061_v0 = vpop.xlane.xlu0 %1060  ;;  %3223 = vpow2.f32 %v1086_v58 }
 0x3bd   : > { %v1073_v1 = vmax.f32 %v1032_v61, %v1061_v0  ;;  %v1487_v3 = vpop.xlane.xlu1 %1486  ;;  %v1098_v32 = vmul.f32 1.442695, %v1083_v17  ;;  %v1092_v19 = vmul.f32 1.442695, %v1080_v35  ;;  %v4081_v0 = vld [vmem:[#allocation2 + $0xd0] sm:$0xff] }
 0x3be   : > { %v4014_v8 = vmax.f32 %v4009_v21, %v1487_v3 }
 0x3bf   : > { %1374 = vst.msk [vmem:[#allocation2 + $0x68] sm:$0xff] %vm367_vm1, %v1073_v1  ;;  %1127 = vperm.xlu1 %3118, %v1073_v1   ;;  %3225 = vpow2.f32 %v1098_v32  ;;  %v1081_v42 = vsub.f32 %v1032_v61, %v1073_v1  ;;  %v4073_v61 = vld [vmem:[#allocation2 + $0xd8] sm:$0xff] }
 0x3c0   : > { %v1493_v24 = vpop.xlane.xlu0 %1492  ;;  %1810 = vst.msk [vmem:[#allocation2 + $0x80] sm:$0xff] %vm367_vm1, %v4014_v8  ;;  %3227 = vpow2.f32 %v1096_v33  ;;  %v4101_v33 = vld [vmem:[#allocation2 + $0xc0] sm:$0xff] }
 0x3c1   : > { %v4021_v25 = vpop.eup %3217  ;;  %v4024_v26 = vmax.f32 %v4011_v15, %v1493_v24  ;;  %v1496_v27 = vpop.xlane.xlu1 %1495  ;;  %v1094_v60 = vmul.f32 1.442695, %v1081_v42  ;;  %3229 = vpow2.f32 %v1092_v19  ;;  %v4111_v19 = vld [vmem:[#allocation2 + $0xf8] sm:$0xff] }
 0x3c2   : > { %v4026_v28 = vpop.eup %3219  ;;  %1307 = vperm.xlu0 %3117, %v4021_v25   ;;  %v4032_v31 = vmax.f32 %v4017_v18, %v1496_v27 }
 0x3c3   : > { %1812 = vst.msk [vmem:[#allocation2 + $0x90] sm:$0xff] %vm367_vm1, %v4024_v26  ;;  %1317 = vperm.xlu1 %3118, %v4026_v28   ;;  %3231 = vpow2.f32 %v1094_v60  ;;  %v4120_v60 = vld [vmem:[#allocation2 + $0xf0] sm:$0xff] }
 0x3c4   : > { %v1490_v36 = vpop.xlane.xlu0 %1489  ;;  %1813 = vst.msk [vmem:[#allocation2 + $0x98] sm:$0xff] %vm367_vm1, %v4032_v31 }
 0x3c5   : > { %v4041_v38 = vpop.eup %3221  ;;  %v4044_v39 = vmax.f32 %v4029_v30, %v1490_v36 }
 0x3c6   : > { %1322 = vperm.xlu0 %3117, %v4041_v38   ;;  %v1508_v37 = vpop.xlane.xlu1 %1507  ;;  %v4062_v13 = vpop.eup %3223 }
 0x3c7   : > { %1811 = vst.msk [vmem:[#allocation2 + $0x88] sm:$0xff] %vm367_vm1, %v4044_v39  ;;  %1553 = vperm.xlu1 %3118, %v4024_v26   ;;  %v4053_v16 = vmax.f32 %v4039_v12, %v1508_v37  ;;  %v1517_v37 = vsub.f32 %v4009_v21, %v4014_v8 }
 0x3c8   : > { %v1505_v45 = vpop.xlane.xlu0 %1504 }
 0x3c9   : > { %v4058_v48 = vmax.f32 %v4047_v14, %v1505_v45  ;;  %1817 = vst.msk [vmem:[#allocation2 + $0xb8] sm:$0xff] %vm367_vm1, %v4053_v16  ;;  %v4091_v24 = vpop.eup %3225 }
 0x3ca   : > { %1543 = vperm.xlu0 %3117, %v4014_v8   ;;  %v1502_v9 = vpop.xlane.xlu1 %1501  ;;  %4539 = vst [vmem:[#allocation7_spill] sm:$0xff] %v4091_v24  ;;  %v4098_v32 = vpop.eup %3227  ;;  %v1519_v8 = vsub.f32 %v4011_v15, %v4024_v26 }
 0x3cb   : > { %1312 = vperm.xlu1 %3118, %v4062_v13   ;;  %1816 = vst.msk [vmem:[#allocation2 + $0xb0] sm:$0xff] %vm367_vm1, %v4058_v48  ;;  %v4071_v23 = vmax.f32 %v4055_v47, %v1502_v9  ;;  %v4116_v9 = vpop.eup %3229 }
 0x3cc   : > { %v1499_v56 = vpop.xlane.xlu0 %1498  ;;  %4540 = vst [vmem:[#allocation8_spill] sm:$0xff] %v4116_v9 }
 0x3cd   : > { %v4076_v58 = vmax.f32 %v4065_v20, %v1499_v56  ;;  %1815 = vst.msk [vmem:[#allocation2 + $0xa8] sm:$0xff] %vm367_vm1, %v4071_v23 }
 0x3ce   : > { %1558 = vperm.xlu0 %3117, %v4032_v31   ;;  %v1937_v1 = vpop.xlane.xlu1 %1936 }
 0x3cf   : > { %1548 = vperm.xlu1 %3118, %v4044_v39   ;;  %1814 = vst.msk [vmem:[#allocation2 + $0xa0] sm:$0xff] %vm367_vm1, %v4076_v58  ;;  %v4087_v3 = vmax.f32 %v4073_v61, %v1937_v1  ;;  %v1525_v1 = vmul.f32 1.442695, %v1517_v37  ;;  %v1529_v37 = vmul.f32 1.442695, %v1519_v8  ;;  %v1522_v8 = vsub.f32 %v4055_v47, %v4071_v23 }
 0x3d0   : > { %v1934_v17 = vpop.xlane.xlu0 %1933 }
 0x3d1   : > { %v4094_v27 = vmax.f32 %v4081_v0, %v1934_v17  ;;  %2254 = vst.msk [vmem:[#allocation2 + $0xd8] sm:$0xff] %vm367_vm1, %v4087_v3  ;;  %3233 = vpow2.f32 %v1525_v1 }
 0x3d2   : > { %1342 = vperm.xlu0 %3117, %v4091_v24   ;;  %v1931_v35 = vpop.xlane.xlu1 %1930  ;;  %3235 = vpow2.f32 %v1529_v37 }
 0x3d3   : > { %1337 = vperm.xlu1 %3118, %v4098_v32   ;;  %2253 = vst.msk [vmem:[#allocation2 + $0xd0] sm:$0xff] %vm367_vm1, %v4094_v27  ;;  %v4107_v36 = vmax.f32 %v4089_v22, %v1931_v35  ;;  %v1914_v35 = vld [vmem:[#allocation2 + $0xe8] sm:$0xff]  ;;  %v1960_v47 = vsub.f32 %v4081_v0, %v4094_v27 }
 0x3d4   : > { %v1928_v42 = vpop.xlane.xlu0 %1927 }
 0x3d5   : > { %v1950_v45 = vmax.f32 %v4101_v33, %v1928_v42  ;;  %2252 = vst.msk [vmem:[#allocation2 + $0xc8] sm:$0xff] %vm367_vm1, %v4107_v36  ;;  %v4129_v42 = vpop.eup %3231 }
 0x3d6   : > { %1657 = vrot.lane.b32.xlu0 %v3733_v29, %s3422_s24  ;;  %v1949_v56 = vpop.xlane.xlu1 %1948  ;;  %4541 = vst [vmem:[#allocation9_spill] sm:$0xff] %v4129_v42 }
 0x3d7   : > { %1327 = vperm.xlu1 %3118, %v4116_v9   ;;  %2251 = vst.msk [vmem:[#allocation2 + $0xc0] sm:$0xff] %vm367_vm1, %v1950_v45  ;;  %v4125_v21 = vmax.f32 %v4111_v19, %v1949_v56  ;;  %v4139_v56 = vld [vmem:[#allocation2 + $0xe0] sm:$0xff] }
 0x3d8   : > { %v1946_v17 = vpop.xlane.xlu0 %1945 }
 0x3d9   : > { %v4132_v29 = vmax.f32 %v4120_v60, %v1946_v17  ;;  %2258 = vst.msk [vmem:[#allocation2 + $0xf8] sm:$0xff] %vm367_vm1, %v4125_v21  ;;  %v1520_v17 = vsub.f32 %v4017_v18, %v4032_v31  ;;  %v3377_v18 = vld [vmem:[%s302_s22] sm:$0xff]   ;;  %v1524_v31 = vsub.f32 %v4039_v12, %v4053_v16  ;;  %v1958_v12 = vsub.f32 %v4101_v33, %v1950_v45 }
 0x3da   : > { %1332 = vperm.xlu0 %3117, %v4129_v42   ;;  %v1943_v9 = vpop.xlane.xlu1 %1942 }
 0x3db   : > { %1563 = vperm.xlu1 %3118, %v4076_v58   ;;  %v1964_v15 = vsub.f32 %v4120_v60, %v4132_v29  ;;  %2257 = vst.msk [vmem:[#allocation2 + $0xf0] sm:$0xff] %vm367_vm1, %v4132_v29  ;;  %v1955_v26 = vmax.f32 %v1914_v35, %v1943_v9  ;;  %v1531_v9 = vmul.f32 1.442695, %v1520_v17  ;;  %v4164_v1 = vpop.eup %3233  ;;  %v1539_v37 = vmul.f32 1.442695, %v1524_v31 }
 0x3dc   : > { %v1940_v24 = vpop.xlane.xlu0 %1939  ;;  %v1970_v17 = vmul.f32 1.442695, %v1960_v47  ;;  %v1966_v0 = vmul.f32 1.442695, %v1958_v12 }
 0x3dd   : > { %v4149_v42 = vmax.f32 %v4139_v56, %v1940_v24  ;;  %2256 = vst.msk [vmem:[#allocation2 + $0xe8] sm:$0xff] %vm367_vm1, %v1955_v26  ;;  %3237 = vpow2.f32 %v1531_v9  ;;  %v1535_v24 = vmul.f32 1.442695, %v1522_v8  ;;  %v1961_v9 = vsub.f32 %v4073_v61, %v4087_v3 }
 0x3de   : > { %1578 = vperm.xlu0 %3117, %v4053_v16   ;;  %v1518_v8 = vsub.f32 %v4029_v30, %v4044_v39  ;;  %v1521_v61 = vsub.f32 %v4065_v20, %v4076_v58  ;;  %v1523_v30 = vsub.f32 %v4047_v14, %v4058_v48  ;;  %v1959_v58 = vsub.f32 %v4089_v22, %v4107_v36 }
 0x3df   : > { %1573 = vperm.xlu1 %3118, %v4058_v48   ;;  %2255 = vst.msk [vmem:[#allocation2 + $0xe0] sm:$0xff] %vm367_vm1, %v4149_v42  ;;  %3239 = vpow2.f32 %v1535_v24  ;;  %v1972_v33 = vmul.f32 1.442695, %v1961_v9  ;;  %v1962_v48 = vsub.f32 %v4139_v56, %v4149_v42 }
 0x3e0   : > { %3241 = vpow2.f32 %v1539_v37  ;;  %v1527_v31 = vmul.f32 1.442695, %v1518_v8  ;;  %v1533_v39 = vmul.f32 1.442695, %v1521_v61  ;;  %v1537_v20 = vmul.f32 1.442695, %v1523_v30 }
 0x3e1   : > { %3243 = vpow2.f32 %v1970_v17  ;;  %v1968_v14 = vmul.f32 1.442695, %v1959_v58  ;;  %v1974_v22 = vmul.f32 1.442695, %v1962_v48 }
 0x3e2   : > { %1568 = vperm.xlu0 %3117, %v4071_v23   ;;  %v4170_v23 = vpop.eup %3235  ;;  %3245 = vpow2.f32 %v1966_v0 }
 0x3e3   : > { %2098 = vrot.lane.b32.xlu1 %v3377_v18, %s3423_s25  ;;  %3247 = vpow2.f32 %v1972_v33 }
 0x3e4   : > { %3249 = vpow2.f32 %v1527_v31 }
 0x3e6   : > { %1994 = vperm.xlu0 %3117, %v4094_v27  }
 0x3e7   : > { %1748 = vperm.xlu1 %3118, %v4164_v1   ;;  %v4174_v16 = vpop.eup %3237 }
 0x3e9   : > { %v4180_v27 = vpop.eup %3239 }
 0x3ea   : > { %1984 = vperm.xlu0 %3117, %v1950_v45   ;;  %v1963_v45 = vsub.f32 %v1914_v35, %v1955_v26  ;;  %v4186_v18 = vpop.eup %3241 }
 0x3eb   : > { %1758 = vperm.xlu1 %3118, %v4170_v23   ;;  %v4192_v24 = vpop.eup %3243 }
 0x3ec   : > { %v4198_v35 = vpop.eup %3245 }
 0x3ed   : > { %v4203_v37 = vpop.eup %3247 }
 0x3ee   : > { %1999 = vperm.xlu0 %3117, %v4087_v3   ;;  %v1976_v3 = vmul.f32 1.442695, %v1963_v45  ;;  %v4209_v47 = vpop.eup %3249 }
 0x3ef   : > { %1763 = vperm.xlu1 %3118, %v4174_v16  }
 0x3f0   : > { %3251 = vpow2.f32 %v1976_v3 }
 0x3f1   : > { %3253 = vpow2.f32 %v1533_v39 }
 0x3f2   : > { %1989 = vperm.xlu0 %3117, %v4107_v36   ;;  %3255 = vpow2.f32 %v1537_v20 }
 0x3f3   : > { %1773 = vperm.xlu1 %3118, %v4180_v27   ;;  %3257 = vpow2.f32 %v1968_v14 }
 0x3f4   : > { %3259 = vpow2.f32 %v1974_v22 }
 0x3f6   : > { %2014 = vperm.xlu0 %3117, %v4132_v29   ;;  %v2268_v29 = vld [vmem:[#allocation3 + $0x30] sm:$0xff] }
 0x3f7   : > { %1783 = vperm.xlu1 %3118, %v4186_v18  }
 0x3fa   : > { %2004 = vperm.xlu0 %3117, %v4149_v42  }
 0x3fb   : > { %2199 = vperm.xlu1 %3118, %v4192_v24  }
 0x3fe   : > { %2009 = vperm.xlu0 %3117, %v1955_v26   ;;  %v4211_v26 = vpop.eup %3251 }
 0x3ff   : > { %2189 = vperm.xlu1 %3118, %v4198_v35   ;;  %v4215_v36 = vpop.eup %3253 }
 0x400   : > { %v4218_v17 = vpop.eup %3255 }
 0x401   : > { %v4221_v42 = vpop.eup %3257 }
 0x402   : > { %2019 = vperm.xlu0 %3117, %v4125_v21   ;;  %v4224_v56 = vpop.eup %3259 }
 0x403   : > { %2204 = vperm.xlu1 %3118, %v4203_v37  }
 0x406   : > { %1753 = vperm.xlu0 %3117, %v4209_v47  }
 0x407   : > { %2214 = vperm.xlu1 %3118, %v4211_v26  }
 0x40a   : > { %1768 = vperm.xlu0 %3117, %v4215_v36  }
 0x40e   : > { %1778 = vperm.xlu0 %3117, %v4218_v17  }
 0x412   : > { %2194 = vperm.xlu0 %3117, %v4221_v42  }
 0x416   : > { %2209 = vperm.xlu0 %3117, %v4224_v56  }
 0x42e   : > { %v1113_v12 = vpop.permute.xlu1 %1112 }
 0x42f   : > { %v1142_v9 = vsub.f32 %v3906_v34, %v1113_v12 }
 0x431   : > { %v1152_v0 = vmul.f32 1.442695, %v1142_v9  ;;  %v1108_v8 = vpop.permute.xlu0 %1107 }
 0x432   : > { %v1141_v33 = vsub.f32 %v3914_v41, %v1108_v8  ;;  %v1103_v45 = vpop.permute.xlu1 %1102 }
 0x433   : > { %3261 = vpow2.f32 %v1152_v0  ;;  %v1140_v31 = vsub.f32 %v3908_v11, %v1103_v45 }
 0x434   : > { %v1150_v61 = vmul.f32 1.442695, %v1141_v33 }
 0x435   : > { %v1148_v3 = vmul.f32 1.442695, %v1140_v31 }
 0x436   : > { %3263 = vpow2.f32 %v1150_v61  ;;  %v1133_v30 = vpop.permute.xlu0 %1132  ;;  %v1118_v39 = vpop.permute.xlu1 %1117 }
 0x437   : > { %3265 = vpow2.f32 %v1148_v3  ;;  %v1146_v20 = vsub.f32 %v3920_v43, %v1133_v30  ;;  %v1143_v58 = vsub.f32 %v3912_v40, %v1118_v39 }
 0x439   : > { %v1160_v14 = vmul.f32 1.442695, %v1146_v20  ;;  %v1154_v34 = vmul.f32 1.442695, %v1143_v58 }
 0x43a   : > { %v1123_v48 = vpop.permute.xlu0 %1122  ;;  %v1138_v22 = vpop.permute.xlu1 %1137 }
 0x43b   : > { %3267 = vpow2.f32 %v1160_v14  ;;  %v1144_v41 = vsub.f32 %v3922_v44, %v1123_v48  ;;  %v1147_v12 = vsub.f32 %v3928_v10, %v1138_v22 }
 0x43c   : > { %3269 = vpow2.f32 %v1154_v34 }
 0x43d   : > { %v3262_v11 = vpop.eup %3261  ;;  %v1156_v9 = vmul.f32 1.442695, %v1144_v41  ;;  %v1162_v0 = vmul.f32 1.442695, %v1147_v12 }
 0x43e   : > { %v1128_v8 = vpop.permute.xlu1 %1127  ;;  %v1178_v33 = vsel %vm599_vm2, %v3262_v11, 0.0 }
 0x43f   : > { %3271 = vpow2.f32 %v1156_v9  ;;  %v1145_v43 = vsub.f32 %v3930_v46, %v1128_v8  ;;  %1179 = vadd.xlane.f32.xlu0 %v1178_v33 }
 0x440   : > { %v3264_v40 = vpop.eup %3263  ;;  %3273 = vpow2.f32 %v1162_v0 }
 0x441   : > { %v3266_v45 = vpop.eup %3265  ;;  %v1158_v31 = vmul.f32 1.442695, %v1145_v43  ;;  %v4236_v61 = vpop.permute.xlu0 %1307  ;;  %v1175_v44 = vsel %vm599_vm2, %v3264_v40, 0.0 }
 0x442   : > { %1176 = vadd.xlane.f32.xlu1 %v1175_v44  ;;  %v4239_v10 = vpop.permute.xlu1 %1317  ;;  %v1172_v3 = vsel %vm599_vm2, %v3266_v45, 0.0  ;;  %v1212_v30 = vpack.c.bf16 %v3264_v40, %v3266_v45 }
 0x443   : > { %3275 = vpow2.f32 %v1158_v31  ;;  %1173 = vadd.xlane.f32.xlu0 %v1172_v3 }
 0x444   : > { %3019 = vmatprep.mubr.msk.bf16.mxu0 %vm599_vm2, %v1212_v30 }
 0x445   : > { %v3268_v46 = vpop.eup %3267  ;;  %v4243_v39 = vpop.permute.xlu0 %1322 }
 0x446   : > { %v3270_v20 = vpop.eup %3269  ;;  %v1554_v58 = vpop.permute.xlu1 %1553  ;;  %v1190_v14 = vsel %vm599_vm2, %v3268_v46, 0.0 }
 0x447   : > { %v1213_v34 = vpack.c.bf16 %v3270_v20, %v3262_v11  ;;  %v1583_v48 = vsub.f32 %v3936_v49, %v1554_v58  ;;  %1191 = vadd.xlane.f32.xlu1 %v1190_v14  ;;  %v1181_v22 = vsel %vm599_vm2, %v3270_v20, 0.0 }
 0x448   : > { %1182 = vadd.xlane.f32.xlu0 %v1181_v22 }
 0x449   : > { %v3272_v41 = vpop.eup %3271  ;;  %v1593_v12 = vmul.f32 1.442695, %v1583_v48  ;;  %3020 = vmatmul.mubr.msk.bf16.vlgmr.msra.gmra.mrb[8].mxu0 %vm599_vm2, %v1213_v34  ;;  %v1544_v9 = vpop.permute.xlu0 %1543 }
 0x44a   : > { %v3274_v0 = vpop.eup %3273  ;;  %v1581_v8 = vsub.f32 %v3940_v50, %v1544_v9  ;;  %v4250_v33 = vpop.permute.xlu1 %1312  ;;  %v1184_v43 = vsel %vm599_vm2, %v3272_v41, 0.0 }
 0x44b   : > { %3277 = vpow2.f32 %v1593_v12  ;;  %1185 = vadd.xlane.f32.xlu1 %v1184_v43  ;;  %v1193_v49 = vsel %vm599_vm2, %v3274_v0, 0.0  ;;  %v1215_v11 = vpack.c.bf16 %v3274_v0, %v3268_v46 }
 0x44c   : > { %v1589_v40 = vmul.f32 1.442695, %v1581_v8  ;;  %1194 = vadd.xlane.f32.xlu0 %v1193_v49 }
 0x44d   : > { %v3276_v45 = vpop.eup %3275  ;;  %v1559_v31 = vpop.permute.xlu0 %1558 }
 0x44e   : > { %3279 = vpow2.f32 %v1589_v40  ;;  %v1584_v44 = vsub.f32 %v3944_v51, %v1559_v31  ;;  %v1549_v3 = vpop.permute.xlu1 %1548  ;;  %v1187_v30 = vsel %vm599_vm2, %v3276_v45, 0.0  ;;  %v1214_v50 = vpack.c.bf16 %v3276_v45, %v3272_v41 }
 0x44f   : > { %v1582_v20 = vsub.f32 %v3948_v52, %v1549_v3 }
 0x450   : > { %v1595_v58 = vmul.f32 1.442695, %v1584_v44  ;;  %1188 = vadd.xlane.f32.xlu0 %v1187_v30  ;;  %3023 = vmatprep.mubr.msk.bf16.mxu0 %vm599_vm2, %v1214_v50 }
 0x451   : > { %v1591_v14 = vmul.f32 1.442695, %v1582_v20  ;;  %v4258_v34 = vpop.permute.xlu0 %1342  ;;  %3024 = vmatmul.mubr.msk.bf16.gmra.mrb[12].mxu0 %vm599_vm2, %v1215_v11 }
 0x452   : > { %3281 = vpow2.f32 %v1595_v58  ;;  %v4261_v46 = vpop.permute.xlu1 %1337 }
 0x453   : > { %3283 = vpow2.f32 %v1591_v14 }
 0x455   : > { %v3278_v51 = vpop.eup %3277  ;;  %v1658_v48 = vpop.permute.xlu0 %1657 }
 0x456   : > { %3037 = vmatprep.subr.bf16.mxu0 %v1658_v48  ;;  %v4263_v22 = vpop.permute.xlu1 %1327  ;;  %v1619_v52 = vsel %vm599_vm2, %v3278_v51, 0.0 }
 0x457   : > { %3038 = vmatpush3.bf16.msra.mxu0 %v1658_v48  ;;  %1620 = vadd.xlane.f32.xlu1 %v1619_v52 }
 0x458   : > { %v3280_v41 = vpop.eup %3279 }
 0x459   : > { %v4266_v12 = vpop.permute.xlu0 %1332  ;;  %v1613_v9 = vsel %vm599_vm2, %v3280_v41, 0.0 }
 0x45a   : > { %v1564_v0 = vpop.permute.xlu1 %1563 }
 0x45b   : > { %1614 = vadd.xlane.f32.xlu1 %v1613_v9  ;;  %v1585_v11 = vsub.f32 %v3956_v54, %v1564_v0 }
 0x45c   : > { %v3282_v8 = vpop.eup %3281 }
 0x45d   : > { %v3284_v43 = vpop.eup %3283  ;;  %v1654_v49 = vpack.c.bf16 %v3282_v8, %v3278_v51  ;;  %v1579_v40 = vpop.permute.xlu0 %1578  ;;  %v1622_v45 = vsel %vm599_vm2, %v3282_v8, 0.0  ;;  %v1597_v20 = vmul.f32 1.442695, %v1585_v11 }
 0x45e   : > { %v1588_v31 = vsub.f32 %v3958_v55, %v1579_v40  ;;  %1623 = vadd.xlane.f32.xlu0 %v1622_v45  ;;  %v1574_v44 = vpop.permute.xlu1 %1573  ;;  %v1653_v3 = vpack.c.bf16 %v3284_v43, %v3280_v41  ;;  %v1616_v54 = vsel %vm599_vm2, %v3284_v43, 0.0 }
 0x45f   : > { %v1587_v30 = vsub.f32 %v3954_v53, %v1574_v44 }
 0x460   : > { %v1603_v50 = vmul.f32 1.442695, %v1588_v31  ;;  %3039 = vmatprep.mubr.msk.bf16.mxu0 %vm599_vm2, %v1653_v3 }
 0x461   : > { %v1601_v58 = vmul.f32 1.442695, %v1587_v30  ;;  %v1569_v14 = vpop.permute.xlu0 %1568  ;;  %3040 = vmatmul.mubr.msk.bf16.vlgmr.msra.gmra.mrb[16].mxu0 %vm599_vm2, %v1654_v49 }
 0x462   : > { %3285 = vpow2.f32 %v1603_v50  ;;  %v1586_v51 = vsub.f32 %v3964_v57, %v1569_v14  ;;  %1617 = vadd.xlane.f32.xlu0 %v1616_v54  ;;  %v2099_v55 = vpop.permute.xlu1 %2098 }
 0x463   : > { %3287 = vpow2.f32 %v1601_v58  ;;  %3057 = vmatprep.subr.bf16.mxu0 %v2099_v55 }
 0x464   : > { %v1599_v48 = vmul.f32 1.442695, %v1586_v51  ;;  %3058 = vmatpush3.bf16.msra.mxu0 %v2099_v55  ;;  %3289 = vpow2.f32 %v1597_v20 }
 0x465   : > { %v1995_v53 = vpop.permute.xlu0 %1994 }
 0x466   : > { %3291 = vpow2.f32 %v1599_v48  ;;  %v2024_v52 = vsub.f32 %v3970_v62, %v1995_v53 }
 0x468   : > { %v2034_v8 = vmul.f32 1.442695, %v2024_v52 }
 0x469   : > { %v1985_v41 = vpop.permute.xlu0 %1984 }
 0x46a   : > { %v2022_v43 = vsub.f32 %v3972_v59, %v1985_v41  ;;  %3293 = vpow2.f32 %v2034_v8 }
 0x46c   : > { %v3286_v9 = vpop.eup %3285  ;;  %v2030_v3 = vmul.f32 1.442695, %v2022_v43 }
 0x46d   : > { %v3288_v0 = vpop.eup %3287  ;;  %v2000_v49 = vpop.permute.xlu0 %1999  ;;  %v1634_v14 = vsel %vm599_vm2, %v3286_v9, 0.0 }
 0x46e   : > { %v2025_v57 = vsub.f32 %v3974_v63, %v2000_v49  ;;  %v1631_v11 = vsel %vm599_vm2, %v3288_v0, 0.0  ;;  %v1656_v40 = vpack.c.bf16 %v3286_v9, %v3288_v0  ;;  %v3290_v45 = vpop.eup %3289 }
 0x46f   : > { %1632 = vadd.xlane.f32.xlu0 %v1631_v11  ;;  %v1625_v20 = vsel %vm599_vm2, %v3290_v45, 0.0 }
 0x470   : > { %v3292_v31 = vpop.eup %3291  ;;  %v2036_v44 = vmul.f32 1.442695, %v2025_v57 }
 0x471   : > { %v1990_v30 = vpop.permute.xlu0 %1989  ;;  %v1655_v62 = vpack.c.bf16 %v3292_v31, %v3290_v45  ;;  %v1628_v55 = vsel %vm599_vm2, %v3292_v31, 0.0 }
 0x472   : > { %3295 = vpow2.f32 %v2036_v44  ;;  %v2023_v50 = vsub.f32 %v3980_v2, %v1990_v30 }
 0x473   : > { %3043 = vmatprep.mubr.msk.bf16.mxu0 %vm599_vm2, %v1655_v62  ;;  %1626 = vadd.xlane.f32.xlu0 %v1625_v20  ;;  %3297 = vpow2.f32 %v2030_v3 }
 0x474   : > { %v2032_v59 = vmul.f32 1.442695, %v2023_v50  ;;  %3044 = vmatmul.mubr.msk.bf16.gmra.mrb[20].mxu0 %vm599_vm2, %v1656_v40  ;;  %v3294_v48 = vpop.eup %3293  ;;  %v4542_v50 = vsub.f32 %v4111_v19, %v4125_v21  ;;  %v2267_v19 = vld [vmem:[#allocation3 + $0x28] sm:$0xff] }
 0x475   : > { %v2015_v63 = vpop.permute.xlu0 %2014 }
 0x476   : > { %3299 = vpow2.f32 %v2032_v59  ;;  %v2028_v58 = vsub.f32 %v3986_v5, %v2015_v63  ;;  %v2060_v5 = vsel %vm599_vm2, %v3294_v48, 0.0  ;;  %v1980_v20 = vmul.f32 1.442695, %v4542_v50  ;;  %v1038_v50 = vld [vmem:[#allocation3 + $0x50] sm:$0xff] }
 0x477   : > { %1635 = vadd.xlane.f32.xlu0 %v1634_v14 }
 0x478   : > { %v2042_v54 = vmul.f32 1.442695, %v2028_v58  ;;  %v2263_v58 = vld [vmem:[#allocation3 + $0x8] sm:$0xff] }
 0x479   : > { %v2005_v51 = vpop.permute.xlu0 %2004 }
 0x47a   : > { %3301 = vpow2.f32 %v2042_v54  ;;  %v2026_v2 = vsub.f32 %v3988_v6, %v2005_v51  ;;  %v2265_v51 = vld [vmem:[#allocation3 + $0x18] sm:$0xff] }
 0x47b   : > { %1629 = vadd.xlane.f32.xlu0 %v1628_v55  ;;  %v4308_v55 = vpop.permute.xlu1 %1748 }
 0x47c   : > { %v3296_v53 = vpop.eup %3295  ;;  %v2038_v52 = vmul.f32 1.442695, %v2026_v2 }
 0x47d   : > { %v2095_v41 = vpack.c.bf16 %v3296_v53, %v3294_v48  ;;  %v2010_v0 = vpop.permute.xlu0 %2009  ;;  %v3298_v9 = vpop.eup %3297  ;;  %v2063_v3 = vsel %vm599_vm2, %v3296_v53, 0.0  ;;  %v1978_v48 = vmul.f32 1.442695, %v1964_v15 }
 0x47e   : > { %3303 = vpow2.f32 %v2038_v52  ;;  %v2027_v8 = vsub.f32 %v3996_v7, %v2010_v0  ;;  %v2054_v45 = vsel %vm599_vm2, %v3298_v9, 0.0  ;;  %v2262_v0 = vld [vmem:[#allocation3] sm:$0xff] }
 0x47f   : > { %2061 = vadd.xlane.f32.xlu0 %v2060_v5  ;;  %v4314_v52 = vpop.permute.xlu1 %1758  ;;  %v2264_v5 = vld [vmem:[#allocation3 + $0x10] sm:$0xff] }
 0x480   : > { %v3300_v43 = vpop.eup %3299  ;;  %v2040_v49 = vmul.f32 1.442695, %v2027_v8 }
 0x481   : > { %v2020_v57 = vpop.permute.xlu0 %2019  ;;  %v2057_v6 = vsel %vm599_vm2, %v3300_v43, 0.0  ;;  %v2094_v11 = vpack.c.bf16 %v3300_v43, %v3298_v9  ;;  %v2266_v43 = vld [vmem:[#allocation3 + $0x20] sm:$0xff] }
 0x482   : > { %3305 = vpow2.f32 %v2040_v49  ;;  %v2029_v40 = vsub.f32 %v3990_v4, %v2020_v57  ;;  %2058 = vadd.xlane.f32.xlu1 %v2057_v6 }
 0x483   : > { %3059 = vmatprep.mubr.msk.bf16.mxu0 %vm599_vm2, %v2094_v11  ;;  %2055 = vadd.xlane.f32.xlu0 %v2054_v45  ;;  %v4316_v9 = vpop.permute.xlu1 %1763 }
 0x484   : > { %v3302_v7 = vpop.eup %3301  ;;  %v2044_v31 = vmul.f32 1.442695, %v2029_v40  ;;  %3060 = vmatmul.mubr.msk.bf16.vlgmr.msra.gmra.mrb[24].mxu0 %vm599_vm2, %v2095_v41 }
 0x485   : > { %v2072_v44 = vsel %vm599_vm2, %v3302_v7, 0.0  ;;  %v4323_v57 = vpop.permute.xlu0 %1753 }
 0x486   : > { %3307 = vpow2.f32 %v2044_v31  ;;  %2073 = vadd.xlane.f32.xlu1 %v2072_v44 }
 0x487   : > { %2064 = vadd.xlane.f32.xlu0 %v2063_v3  ;;  %3309 = vpow2.f32 %v1980_v20  ;;  %v4321_v60 = vpop.permute.xlu1 %1773 }
 0x488   : > { %v3304_v30 = vpop.eup %3303  ;;  %3311 = vrcp.f32 %v2263_v58 }
 0x489   : > { %v2066_v4 = vsel %vm599_vm2, %v3304_v30, 0.0  ;;  %3313 = vrcp.f32 %v2265_v51  ;;  %v4327_v40 = vpop.permute.xlu0 %1768 }
 0x48a   : > { %2067 = vadd.xlane.f32.xlu1 %v2066_v4  ;;  %3315 = vrcp.f32 %v2267_v19 }
 0x48b   : > { %3317 = vpow2.f32 %v1978_v48  ;;  %v4325_v11 = vpop.permute.xlu1 %1783 }
 0x48c   : > { %v3306_v62 = vpop.eup %3305  ;;  %3319 = vrcp.f32 %v2262_v0 }
 0x48d   : > { %v2096_v59 = vpack.c.bf16 %v3306_v62, %v3304_v30  ;;  %v2069_v2 = vsel %vm599_vm2, %v3306_v62, 0.0  ;;  %3321 = vrcp.f32 %v2264_v5  ;;  %v4331_v44 = vpop.permute.xlu0 %1778 }
 0x48e   : > { %3323 = vrcp.f32 %v2266_v43 }
 0x48f   : > { %3063 = vmatprep.mubr.msk.bf16.mxu0 %vm599_vm2, %v2096_v59  ;;  %3325 = vrcp.f32 %v2268_v29  ;;  %v1166_v59 = vmul.f32 %v4026_v28, %v1038_v50 }
 0x490   : > { %v3308_v63 = vpop.eup %3307 }
 0x491   : > { %v2075_v14 = vsel %vm599_vm2, %v3308_v63, 0.0  ;;  %v2097_v54 = vpack.c.bf16 %v3308_v63, %v3302_v7  ;;  %v4306_v21 = vpop.eup %3309  ;;  %v4329_v7 = vpop.permute.xlu1 %2199  ;;  %v1037_v63 = vld [vmem:[#allocation3 + $0x48] sm:$0xff] }
 0x492   : > { %2076 = vadd.xlane.f32.xlu0 %v2075_v14  ;;  %v3312_v53 = vpop.eup %3311  ;;  %v4335_v30 = vpop.permute.xlu0 %2194  ;;  %v1036_v14 = vld [vmem:[#allocation3 + $0x40] sm:$0xff]  ;;  %v1165_v51 = vmul.f32 %v4062_v13, %v1037_v63 }
 0x493   : > { %3064 = vmatmul.mubr.msk.bf16.gmra.mrb[28].mxu0 %vm599_vm2, %v2097_v54  ;;  %v3314_v41 = vpop.eup %3313  ;;  %v1164_v19 = vmul.f32 %v4021_v25, %v1036_v14  ;;  %v1040_v13 = vld [vmem:[#allocation3 + $0x60] sm:$0xff] }
 0x494   : > { %v3316_v8 = vpop.eup %3315 }
 0x495   : > { %v4318_v49 = vpop.eup %3317  ;;  %v4333_v3 = vpop.permute.xlu1 %2189 }
 0x496   : > { %2070 = vadd.xlane.f32.xlu0 %v2069_v2  ;;  %v3320_v15 = vpop.eup %3319  ;;  %v4339_v62 = vpop.permute.xlu0 %2209 }
 0x497   : > { %v3322_v6 = vpop.eup %3321 }
 0x498   : > { %v3324_v45 = vpop.eup %3323 }
 0x499   : > { %v3326_v31 = vpop.eup %3325  ;;  %v4337_v4 = vpop.permute.xlu1 %2204 }
 0x49b   : > { %2224 = vperm.xlu1 %3118, %v4306_v21  }
 0x49d   : > { %v4341_v20 = vpop.permute.xlu1 %2214 }
 0x49f   : > { %2293 = vperm.xlu1 %3118, %v3312_v53  }
 0x4a3   : > { %2303 = vperm.xlu1 %3118, %v3314_v41   ;;  %v1042_v41 = vld [vmem:[#allocation3 + $0x70] sm:$0xff] }
 0x4a4   : > { %v1170_v28 = vmul.f32 %v4098_v32, %v1042_v41 }
 0x4a7   : > { %2313 = vperm.xlu1 %3118, %v3316_v8   ;;  %v1039_v8 = vld [vmem:[#allocation3 + $0x58] sm:$0xff] }
 0x4a8   : > { %v1167_v5 = vmul.f32 %v4041_v38, %v1039_v8  ;;  %v1041_v38 = vld [vmem:[#allocation3 + $0x68] sm:$0xff]  ;;  %v1479_v8 = vld [vmem:[#allocation3 + $0x90] sm:$0xff] }
 0x4ac   : > { %2219 = vperm.xlu0 %3117, %v4318_v49  }
 0x4b0   : > { %2288 = vperm.xlu0 %3117, %v3320_v15  }
 0x4b4   : > { %2298 = vperm.xlu0 %3117, %v3322_v6   ;;  %v1043_v6 = vld [vmem:[#allocation3 + $0x78] sm:$0xff] }
 0x4b8   : > { %2308 = vperm.xlu0 %3117, %v3324_v45  }
 0x4bc   : > { %2318 = vperm.xlu0 %3117, %v3326_v31   ;;  %v4543_v31 = vld [vmem:[#allocation8_spill] sm:$0xff] }
 0x4bd   : > { %v1168_v50 = vmul.f32 %v4543_v31, %v1040_v13  ;;  %v1607_v13 = vmul.f32 %v4170_v23, %v1479_v8 }
 0x4cc   : > { %v1180_v58 = vpop.xlane.xlu0 %1179 }
 0x4cd   : > { %v1198_v54 = vadd.f32 %v1180_v58, %v1166_v59  ;;  %v4544_v59 = vld [vmem:[#allocation7_spill] sm:$0xff] }
 0x4ce   : > { %v1171_v63 = vmul.f32 %v4544_v59, %v1043_v6 }
 0x4cf   : > { %1206 = vst.msk [vmem:[#allocation3 + $0x50] sm:$0xff] %vm367_vm1, %v1198_v54  ;;  %v1177_v2 = vpop.xlane.xlu1 %1176 }
 0x4d0   : > { %v1197_v48 = vadd.f32 %v1177_v2, %v1165_v51  ;;  %v1174_v53 = vpop.xlane.xlu0 %1173  ;;  %v4545_v2 = vld [vmem:[#allocation9_spill] sm:$0xff] }
 0x4d1   : > { %v1196_v0 = vadd.f32 %v1174_v53, %v1164_v19  ;;  %v1169_v19 = vmul.f32 %v4545_v2, %v1041_v38 }
 0x4d2   : > { %1205 = vst.msk [vmem:[#allocation3 + $0x48] sm:$0xff] %vm367_vm1, %v1197_v48 }
 0x4d3   : > { %1204 = vst.msk [vmem:[#allocation3 + $0x40] sm:$0xff] %vm367_vm1, %v1196_v0 }
 0x4d4   : > { %v1192_v43 = vpop.xlane.xlu1 %1191 }
 0x4d5   : > { %v1183_v29 = vpop.xlane.xlu0 %1182  ;;  %v1202_v15 = vadd.f32 %v1192_v43, %v1170_v28 }
 0x4d6   : > { %v2336_v45 = vld [vmem:[#allocation3 + $0x50] sm:$0xff]  ;;  %v1199_v25 = vadd.f32 %v1183_v29, %v1167_v5 }
 0x4d7   : > { %3327 = vrcp.f32 %v2336_v45  ;;  %1210 = vst.msk [vmem:[#allocation3 + $0x70] sm:$0xff] %vm367_vm1, %v1202_v15  ;;  %v1477_v15 = vld [vmem:[#allocation3 + $0x80] sm:$0xff] }
 0x4d8   : > { %1207 = vst.msk [vmem:[#allocation3 + $0x58] sm:$0xff] %vm367_vm1, %v1199_v25  ;;  %v1186_v58 = vpop.xlane.xlu1 %1185  ;;  %v1605_v31 = vmul.f32 %v4164_v1, %v1477_v15  ;;  %v1481_v15 = vld [vmem:[#allocation3 + $0xa0] sm:$0xff] }
 0x4d9   : > { %v1195_v32 = vpop.xlane.xlu0 %1194  ;;  %v1200_v14 = vadd.f32 %v1186_v58, %v1168_v50  ;;  %v2335_v5 = vld [vmem:[#allocation3 + $0x48] sm:$0xff]  ;;  %v1480_v50 = vld [vmem:[#allocation3 + $0x98] sm:$0xff] }
 0x4da   : > { %v2334_v54 = vld [vmem:[#allocation3 + $0x40] sm:$0xff]  ;;  %v1203_v51 = vadd.f32 %v1195_v32, %v1171_v63  ;;  %v1608_v23 = vmul.f32 %v4174_v16, %v1480_v50 }
 0x4db   : > { %3329 = vrcp.f32 %v2334_v54  ;;  %1208 = vst.msk [vmem:[#allocation3 + $0x60] sm:$0xff] %vm367_vm1, %v1200_v14  ;;  %v1478_v54 = vld [vmem:[#allocation3 + $0x88] sm:$0xff] }
 0x4dc   : > { %1211 = vst.msk [vmem:[#allocation3 + $0x78] sm:$0xff] %vm367_vm1, %v1203_v51 }
 0x4dd   : > { %v1189_v48 = vpop.xlane.xlu0 %1188 }
 0x4de   : > { %v2340_v53 = vld [vmem:[#allocation3 + $0x70] sm:$0xff]  ;;  %v1201_v41 = vadd.f32 %v1189_v48, %v1169_v19  ;;  %v1606_v48 = vmul.f32 %v4209_v47, %v1478_v54 }
 0x4df   : > { %v2337_v0 = vld [vmem:[#allocation3 + $0x58] sm:$0xff]  ;;  %3331 = vrcp.f32 %v2340_v53 }
 0x4e0   : > { %3333 = vrcp.f32 %v2337_v0  ;;  %1209 = vst.msk [vmem:[#allocation3 + $0x68] sm:$0xff] %vm367_vm1, %v1201_v41 }
 0x4e1   : > { %v3328_v28 = vpop.eup %3327 }
 0x4e2   : > { %v2338_v43 = vld [vmem:[#allocation3 + $0x60] sm:$0xff]  ;;  %2370 = vperm.xlu1 %3118, %v3328_v28  }
 0x4e3   : > { %3335 = vrcp.f32 %v2338_v43  ;;  %v2341_v45 = vld [vmem:[#allocation3 + $0x78] sm:$0xff] }
 0x4e4   : > { %3337 = vrcp.f32 %v2335_v5  ;;  %v1621_v29 = vpop.xlane.xlu1 %1620  ;;  %v1483_v5 = vld [vmem:[#allocation3 + $0xb0] sm:$0xff] }
 0x4e5   : > { %v3330_v6 = vpop.eup %3329  ;;  %v1639_v25 = vadd.f32 %v1621_v29, %v1607_v13  ;;  %3339 = vrcp.f32 %v2341_v45  ;;  %v1611_v47 = vmul.f32 %v4218_v17, %v1483_v5 }
 0x4e6   : > { %2360 = vperm.xlu1 %3118, %v3330_v6  }
 0x4e7   : > { %1647 = vst.msk [vmem:[#allocation3 + $0x90] sm:$0xff] %vm367_vm1, %v1639_v25  ;;  %v2339_v58 = vld [vmem:[#allocation3 + $0x68] sm:$0xff]  ;;  %v1609_v25 = vmul.f32 %v4215_v36, %v1481_v15 }
 0x4e8   : > { %v1615_v59 = vpop.xlane.xlu1 %1614  ;;  %3341 = vrcp.f32 %v2339_v58 }
 0x4e9   : > { %v3332_v63 = vpop.eup %3331  ;;  %v1637_v32 = vadd.f32 %v1615_v59, %v1605_v31  ;;  %v1484_v59 = vld [vmem:[#allocation3 + $0xb8] sm:$0xff] }
 0x4ea   : > { %v3334_v14 = vpop.eup %3333  ;;  %2390 = vperm.xlu1 %3118, %v3332_v63   ;;  %v1612_v58 = vmul.f32 %v4186_v18, %v1484_v59 }
 0x4eb   : > { %1645 = vst.msk [vmem:[#allocation3 + $0x80] sm:$0xff] %vm367_vm1, %v1637_v32  ;;  %2375 = vperm.xlu0 %3117, %v3334_v14   ;;  %v1624_v38 = vpop.xlane.xlu0 %1623  ;;  %v1482_v14 = vld [vmem:[#allocation3 + $0xa8] sm:$0xff] }
 0x4ec   : > { %v1640_v51 = vadd.f32 %v1624_v38, %v1608_v23  ;;  %v1610_v36 = vmul.f32 %v4180_v27, %v1482_v14  ;;  %v1297_v14 = vld [vmem:[#allocation4 + $0x40] sm:$0xff] }
 0x4ed   : > { %v3336_v2 = vpop.eup %3335 }
 0x4ee   : > { %v3338_v19 = vpop.eup %3337  ;;  %v2408_v1 = vld [vmem:[#allocation3 + $0x90] sm:$0xff]  ;;  %1648 = vst.msk [vmem:[#allocation3 + $0x98] sm:$0xff] %vm367_vm1, %v1640_v51  ;;  %2380 = vperm.xlu1 %3118, %v3336_v2  }
 0x4ef   : > { %3343 = vrcp.f32 %v2408_v1  ;;  %2365 = vperm.xlu0 %3117, %v3338_v19   ;;  %v1618_v53 = vpop.xlane.xlu0 %1617  ;;  %v3340_v16 = vpop.eup %3339  ;;  %v1920_v51 = vld [vmem:[#allocation3 + $0xd0] sm:$0xff]  ;;  %v1919_v1 = vld [vmem:[#allocation3 + $0xc8] sm:$0xff] }
 0x4f0   : > { %v1638_v41 = vadd.f32 %v1618_v53, %v1606_v48  ;;  %v2048_v18 = vmul.f32 %v4192_v24, %v1920_v51  ;;  %v1918_v53 = vld [vmem:[#allocation3 + $0xc0] sm:$0xff] }
 0x4f2   : > { %v2406_v0 = vld [vmem:[#allocation3 + $0x80] sm:$0xff]  ;;  %1646 = vst.msk [vmem:[#allocation3 + $0x88] sm:$0xff] %vm367_vm1, %v1638_v41  ;;  %v3342_v28 = vpop.eup %3341 }
 0x4f3   : > { %3345 = vrcp.f32 %v2406_v0  ;;  %2395 = vperm.xlu0 %3117, %v3340_v16   ;;  %v2047_v0 = vmul.f32 %v4221_v42, %v1919_v1 }
 0x4f5   : > { %v2409_v8 = vld [vmem:[#allocation3 + $0x98] sm:$0xff] }
 0x4f6   : > { %3347 = vrcp.f32 %v2409_v8  ;;  %v2046_v8 = vmul.f32 %v4198_v35, %v1918_v53 }
 0x4f7   : > { %2385 = vperm.xlu0 %3117, %v3342_v28   ;;  %v1924_v28 = vld [vmem:[#allocation3 + $0xf0] sm:$0xff] }
 0x4f8   : > { %v2052_v15 = vmul.f32 %v4318_v49, %v1924_v28  ;;  %v1303_v28 = vld [vmem:[#allocation4 + $0x70] sm:$0xff] }
 0x4f9   : > { %v3344_v43 = vpop.eup %3343  ;;  %v2407_v13 = vld [vmem:[#allocation3 + $0x88] sm:$0xff] }
 0x4fa   : > { %3349 = vrcp.f32 %v2407_v13  ;;  %2442 = vperm.xlu1 %3118, %v3344_v43   ;;  %v1921_v13 = vld [vmem:[#allocation3 + $0xd8] sm:$0xff] }
 0x4fc   : > { %v1633_v29 = vpop.xlane.xlu0 %1632 }
 0x4fd   : > { %v3346_v6 = vpop.eup %3345  ;;  %v1643_v45 = vadd.f32 %v1633_v29, %v1611_v47 }
 0x4fe   : > { %2432 = vperm.xlu1 %3118, %v3346_v6   ;;  %v2049_v6 = vmul.f32 %v4203_v37, %v1921_v13  ;;  %v1300_v37 = vld [vmem:[#allocation4 + $0x58] sm:$0xff]  ;;  %v1301_v13 = vld [vmem:[#allocation4 + $0x60] sm:$0xff] }
 0x4ff   : > { %1651 = vst.msk [vmem:[#allocation3 + $0xb0] sm:$0xff] %vm367_vm1, %v1643_v45  ;;  %v1922_v45 = vld [vmem:[#allocation3 + $0xe0] sm:$0xff] }
 0x500   : > { %v3348_v31 = vpop.eup %3347  ;;  %v1627_v50 = vpop.xlane.xlu0 %1626 }
 0x501   : > { %v1641_v63 = vadd.f32 %v1627_v50, %v1609_v25  ;;  %2447 = vperm.xlu0 %3117, %v3348_v31  }
 0x503   : > { %1649 = vst.msk [vmem:[#allocation3 + $0xa0] sm:$0xff] %vm367_vm1, %v1641_v63  ;;  %v2050_v63 = vmul.f32 %v4224_v56, %v1922_v45  ;;  %v1345_v56 = vmul.f32 %v4236_v61, %v1297_v14  ;;  %v1349_v45 = vmul.f32 %v4263_v22, %v1301_v13 }
 0x504   : > { %v3350_v32 = vpop.eup %3349  ;;  %v1636_v17 = vpop.xlane.xlu0 %1635 }
 0x505   : > { %v1644_v23 = vadd.f32 %v1636_v17, %v1612_v58  ;;  %2437 = vperm.xlu0 %3117, %v3350_v32   ;;  %v1299_v58 = vld [vmem:[#allocation4 + $0x50] sm:$0xff] }
 0x506   : > { %v2412_v38 = vld [vmem:[#allocation3 + $0xb0] sm:$0xff] }
 0x507   : > { %3351 = vrcp.f32 %v2412_v38  ;;  %1652 = vst.msk [vmem:[#allocation3 + $0xb8] sm:$0xff] %vm367_vm1, %v1644_v23  ;;  %v1347_v38 = vmul.f32 %v4239_v10, %v1299_v58  ;;  %v2269_v58 = vld [vmem:[#allocation3 + $0x38] sm:$0xff] }
 0x508   : > { %v1630_v54 = vpop.xlane.xlu0 %1629 }
 0x509   : > { %v1642_v2 = vadd.f32 %v1630_v54, %v1610_v36  ;;  %v1298_v36 = vld [vmem:[#allocation4 + $0x48] sm:$0xff]  ;;  %v1925_v54 = vld [vmem:[#allocation3 + $0xf8] sm:$0xff] }
 0x50a   : > { %v2410_v19 = vld [vmem:[#allocation3 + $0xa0] sm:$0xff] }
 0x50b   : > { %3353 = vrcp.f32 %v2410_v19  ;;  %1650 = vst.msk [vmem:[#allocation3 + $0xa8] sm:$0xff] %vm367_vm1, %v1642_v2  ;;  %v1348_v19 = vmul.f32 %v4243_v39, %v1300_v37 }
 0x50c   : > { %v2062_v48 = vpop.xlane.xlu0 %2061 }
 0x50d   : > { %v2080_v41 = vadd.f32 %v2062_v48, %v2048_v18  ;;  %v1346_v48 = vmul.f32 %v4250_v33, %v1298_v36  ;;  %v1740_v36 = vld [vmem:[#allocation4 + $0x90] sm:$0xff] }
 0x50e   : > { %v2413_v16 = vld [vmem:[#allocation3 + $0xb8] sm:$0xff] }
 0x50f   : > { %3355 = vrcp.f32 %v2413_v16  ;;  %2088 = vst.msk [vmem:[#allocation3 + $0xd0] sm:$0xff] %vm367_vm1, %v2080_v41  ;;  %v2059_v27 = vpop.xlane.xlu1 %2058 }
 0x510   : > { %v2079_v5 = vadd.f32 %v2059_v27, %v2047_v0  ;;  %v2056_v43 = vpop.xlane.xlu0 %2055  ;;  %v2053_v0 = vmul.f32 %v4306_v21, %v1925_v54  ;;  %v1738_v54 = vld [vmem:[#allocation4 + $0x80] sm:$0xff] }
 0x511   : > { %v3352_v47 = vpop.eup %3351  ;;  %v2078_v29 = vadd.f32 %v2056_v43, %v2046_v8  ;;  %v1923_v8 = vld [vmem:[#allocation3 + $0xe8] sm:$0xff] }
 0x512   : > { %v2411_v24 = vld [vmem:[#allocation3 + $0xa8] sm:$0xff]  ;;  %2087 = vst.msk [vmem:[#allocation3 + $0xc8] sm:$0xff] %vm367_vm1, %v2079_v5  ;;  %2462 = vperm.xlu1 %3118, %v3352_v47   ;;  %v2051_v21 = vmul.f32 %v4211_v26, %v1923_v8 }
 0x513   : > { %3357 = vrcp.f32 %v2411_v24  ;;  %2086 = vst.msk [vmem:[#allocation3 + $0xc0] sm:$0xff] %vm367_vm1, %v2078_v29  ;;  %v2074_v42 = vpop.xlane.xlu1 %2073  ;;  %v1304_v29 = vld [vmem:[#allocation4 + $0x78] sm:$0xff]  ;;  %v1351_v24 = vmul.f32 %v4261_v46, %v1303_v28  ;;  %v1742_v28 = vld [vmem:[#allocation4 + $0xa0] sm:$0xff] }
 0x514   : > { %v2084_v35 = vadd.f32 %v2074_v42, %v2052_v15  ;;  %v2065_v25 = vpop.xlane.xlu0 %2064  ;;  %v1302_v15 = vld [vmem:[#allocation4 + $0x68] sm:$0xff] }
 0x515   : > { %v3354_v31 = vpop.eup %3353  ;;  %v2081_v50 = vadd.f32 %v2065_v25, %v2049_v6 }
 0x516   : > { %v2480_v59 = vld [vmem:[#allocation3 + $0xd0] sm:$0xff]  ;;  %2092 = vst.msk [vmem:[#allocation3 + $0xf0] sm:$0xff] %vm367_vm1, %v2084_v35  ;;  %2452 = vperm.xlu1 %3118, %v3354_v31  }
 0x517   : > { %3359 = vrcp.f32 %v2480_v59  ;;  %2089 = vst.msk [vmem:[#allocation3 + $0xd8] sm:$0xff] %vm367_vm1, %v2081_v50  ;;  %v2068_v49 = vpop.xlane.xlu1 %2067  ;;  %v1352_v50 = vmul.f32 %v4258_v34, %v1304_v29 }
 0x518   : > { %v2082_v32 = vadd.f32 %v2068_v49, %v2050_v63  ;;  %v1350_v49 = vmul.f32 %v4266_v12, %v1302_v15 }
 0x519   : > { %v3356_v17 = vpop.eup %3355  ;;  %v2479_v5 = vld [vmem:[#allocation3 + $0xc8] sm:$0xff] }
 0x51a   : > { %v2478_v23 = vld [vmem:[#allocation3 + $0xc0] sm:$0xff]  ;;  %2090 = vst.msk [vmem:[#allocation3 + $0xe0] sm:$0xff] %vm367_vm1, %v2082_v32  ;;  %2467 = vperm.xlu0 %3117, %v3356_v17  }
 0x51b   : > { %3361 = vrcp.f32 %v2478_v23 }
 0x51c   : > { %v3021_v51 = vpop.f32.mrb[8].mxu0 }
 0x51d   : > { %v3358_v2 = vpop.eup %3357  ;;  %v1355_v18 = vadd.f32 %v3021_v51, %v1347_v38  ;;  %v1265_v1 = vpop.f32.mrb[9].mxu0  ;;  %v2484_v42 = vld [vmem:[#allocation3 + $0xf0] sm:$0xff]  ;;  %v1788_v51 = vmul.f32 %v4314_v52, %v1740_v36  ;;  %v2186_v36 = vld [vmem:[#allocation4 + $0xf8] sm:$0xff] }
 0x51e   : > { %v2481_v53 = vld [vmem:[#allocation3 + $0xd8] sm:$0xff]  ;;  %v1353_v41 = vadd.f32 %v1345_v56, %v1265_v1  ;;  %v3022_v16 = vpop.f32.mrb[10].mxu0  ;;  %2457 = vperm.xlu0 %3117, %v3358_v2   ;;  %v1739_v2 = vld [vmem:[#allocation4 + $0x88] sm:$0xff] }
 0x51f   : > { %3363 = vrcp.f32 %v2481_v53  ;;  %1363 = vst.msk [vmem:[#allocation4 + $0x50] sm:$0xff] %vm432_vm0, %v1355_v18  ;;  %v1356_v10 = vadd.f32 %v3022_v16, %v1348_v19  ;;  %v1268_v27 = vpop.f32.mrb[11].mxu0  ;;  %v2077_v61 = vpop.xlane.xlu0 %2076  ;;  %v1741_v56 = vld [vmem:[#allocation4 + $0x98] sm:$0xff]  ;;  %v1786_v18 = vmul.f32 %v4308_v55, %v1738_v54  ;;  %v1787_v16 = vmul.f32 %v4323_v57, %v1739_v2  ;;  %v2184_v54 = vld [vmem:[#allocation4 + $0xe8] sm:$0xff] }
 0x520   : > { %1361 = vst.msk [vmem:[#allocation4 + $0x40] sm:$0xff] %vm432_vm0, %v1353_v41  ;;  %v1354_v39 = vadd.f32 %v1346_v48, %v1268_v27  ;;  %v2085_v43 = vadd.f32 %v2077_v61, %v2053_v0  ;;  %v1789_v48 = vmul.f32 %v4316_v9, %v1741_v56  ;;  %v1744_v9 = vld [vmem:[#allocation4 + $0xb0] sm:$0xff]  ;;  %v1745_v57 = vld [vmem:[#allocation4 + $0xb8] sm:$0xff] }
 0x521   : > { %v3360_v33 = vpop.eup %3359  ;;  %v2482_v47 = vld [vmem:[#allocation3 + $0xe0] sm:$0xff]  ;;  %1364 = vst.msk [vmem:[#allocation4 + $0x58] sm:$0xff] %vm432_vm0, %v1356_v10  ;;  %v1793_v13 = vmul.f32 %v4325_v11, %v1745_v57 }
 0x522   : > { %3365 = vrcp.f32 %v2482_v47  ;;  %1362 = vst.msk [vmem:[#allocation4 + $0x48] sm:$0xff] %vm432_vm0, %v1354_v39  ;;  %2514 = vperm.xlu1 %3118, %v3360_v33   ;;  %v1792_v39 = vmul.f32 %v4331_v44, %v1744_v9  ;;  %v2181_v44 = vld [vmem:[#allocation4 + $0xd0] sm:$0xff] }
 0x523   : > { %2093 = vst.msk [vmem:[#allocation3 + $0xf8] sm:$0xff] %vm367_vm1, %v2085_v43  ;;  %3367 = vrcp.f32 %v2479_v5  ;;  %v2071_v6 = vpop.xlane.xlu0 %2070  ;;  %v1743_v5 = vld [vmem:[#allocation4 + $0xa8] sm:$0xff]  ;;  %v1790_v43 = vmul.f32 %v4327_v40, %v1742_v28 }
 0x524   : > { %v2083_v35 = vadd.f32 %v2071_v6, %v2051_v21  ;;  %v3025_v25 = vpop.f32.mrb[12].mxu0  ;;  %3369 = vrcp.f32 %v2484_v42  ;;  %v1791_v21 = vmul.f32 %v4321_v60, %v1743_v5 }
 0x525   : > { %v3362_v31 = vpop.eup %3361  ;;  %v1359_v59 = vadd.f32 %v3025_v25, %v1351_v24  ;;  %v1281_v63 = vpop.f32.mrb[13].mxu0  ;;  %3371 = vrcp.f32 %v2269_v58  ;;  %v2179_v25 = vld [vmem:[#allocation4 + $0xc0] sm:$0xff] }
 0x526   : > { %2091 = vst.msk [vmem:[#allocation3 + $0xe8] sm:$0xff] %vm367_vm1, %v2083_v35  ;;  %v1357_v26 = vadd.f32 %v1349_v45, %v1281_v63  ;;  %v3026_v46 = vpop.f32.mrb[14].mxu0  ;;  %2504 = vperm.xlu1 %3118, %v3362_v31   ;;  %v2225_v35 = vpop.permute.xlu1 %2224  ;;  %v2182_v31 = vld [vmem:[#allocation4 + $0xd8] sm:$0xff]  ;;  %v2227_v63 = vmul.f32 %v4333_v3, %v2179_v25 }
 0x527   : > { %1367 = vst.msk [vmem:[#allocation4 + $0x70] sm:$0xff] %vm432_vm0, %v1359_v59  ;;  %v1360_v32 = vadd.f32 %v3026_v46, %v1352_v50  ;;  %v1284_v22 = vpop.f32.mrb[15].mxu0  ;;  %v2229_v50 = vmul.f32 %v4329_v7, %v2181_v44  ;;  %v2180_v59 = vld [vmem:[#allocation4 + $0xc8] sm:$0xff]  ;;  %v2350_v28 = vld [vmem:[#allocation4 + $0x40] sm:$0xff] }
 0x528   : > { %1365 = vst.msk [vmem:[#allocation4 + $0x60] sm:$0xff] %vm432_vm0, %v1357_v26  ;;  %v1358_v17 = vadd.f32 %v1350_v49, %v1284_v22  ;;  %v2230_v26 = vmul.f32 %v4337_v4, %v2182_v31  ;;  %v2228_v22 = vmul.f32 %v4335_v30, %v2180_v59  ;;  %v2185_v30 = vld [vmem:[#allocation4 + $0xf0] sm:$0xff] }
 0x529   : > { %v3364_v14 = vpop.eup %3363  ;;  %1368 = vst.msk [vmem:[#allocation4 + $0x78] sm:$0xff] %vm432_vm0, %v1360_v32  ;;  %v2351_v5 = vld [vmem:[#allocation4 + $0x48] sm:$0xff] }
 0x52a   : > { %1366 = vst.msk [vmem:[#allocation4 + $0x68] sm:$0xff] %vm432_vm0, %v1358_v17  ;;  %2519 = vperm.xlu0 %3117, %v3364_v14   ;;  %v2485_v23 = vld [vmem:[#allocation3 + $0xf8] sm:$0xff]  ;;  %v4423_v11 = vpop.permute.xlu1 %2293 }
 0x52b   : > { %v2220_v40 = vpop.permute.xlu0 %2219 }
 0x52c   : > { %v3366_v34 = vpop.eup %3365  ;;  %v2233_v56 = vmul.f32 %v2220_v40, %v2185_v30 }
 0x52d   : > { %v3368_v12 = vpop.eup %3367  ;;  %v2483_v37 = vld [vmem:[#allocation3 + $0xe8] sm:$0xff]  ;;  %2524 = vperm.xlu1 %3118, %v3366_v34  }
 0x52e   : > { %3373 = vrcp.f32 %v2483_v37  ;;  %2509 = vperm.xlu0 %3117, %v3368_v12   ;;  %v3370_v38 = vpop.eup %3369  ;;  %v4430_v46 = vpop.permute.xlu1 %2303 }
 0x52f   : > { %3375 = vrcp.f32 %v2485_v23  ;;  %v3372_v19 = vpop.eup %3371  ;;  %v4425_v60 = vpop.permute.xlu0 %2288 }
 0x531   : > { %2534 = vperm.xlu1 %3118, %v3370_v38   ;;  %v2183_v38 = vld [vmem:[#allocation4 + $0xe0] sm:$0xff] }
 0x532   : > { %v4439_v4 = vpop.permute.xlu1 %2313 }
 0x533   : > { %v4433_v34 = vpop.permute.xlu0 %2298 }
 0x534   : > { %v3041_v1 = vpop.f32.mrb[16].mxu0 }
 0x535   : > { %v1796_v53 = vadd.f32 %v3041_v1, %v1788_v51  ;;  %v1706_v41 = vpop.f32.mrb[17].mxu0  ;;  %2323 = vperm.xlu1 %3118, %v3372_v19   ;;  %v2231_v51 = vmul.f32 %v4339_v62, %v2183_v38 }
 0x536   : > { %v1794_v0 = vadd.f32 %v1786_v18, %v1706_v41  ;;  %v3042_v10 = vpop.f32.mrb[18].mxu0  ;;  %v2234_v18 = vmul.f32 %v2225_v35, %v2186_v36  ;;  %v2355_v35 = vld [vmem:[#allocation4 + $0x68] sm:$0xff] }
 0x537   : > { %1804 = vst.msk [vmem:[#allocation4 + $0x90] sm:$0xff] %vm432_vm0, %v1796_v53  ;;  %v1797_v27 = vadd.f32 %v3042_v10, %v1789_v48  ;;  %v1709_v61 = vpop.f32.mrb[19].mxu0  ;;  %v4441_v37 = vpop.permute.xlu0 %2308  ;;  %v2232_v53 = vmul.f32 %v4341_v20, %v2184_v54 }
 0x538   : > { %v3374_v8 = vpop.eup %3373  ;;  %1802 = vst.msk [vmem:[#allocation4 + $0x80] sm:$0xff] %vm432_vm0, %v1794_v0  ;;  %v1795_v52 = vadd.f32 %v1787_v16, %v1709_v61  ;;  %v2352_v61 = vld [vmem:[#allocation4 + $0x50] sm:$0xff] }
 0x539   : > { %1805 = vst.msk [vmem:[#allocation4 + $0x98] sm:$0xff] %vm432_vm0, %v1797_v27  ;;  %2529 = vperm.xlu0 %3117, %v3374_v8   ;;  %v3376_v55 = vpop.eup %3375  ;;  %v2353_v8 = vld [vmem:[#allocation4 + $0x58] sm:$0xff] }
 0x53a   : > { %1803 = vst.msk [vmem:[#allocation4 + $0x88] sm:$0xff] %vm432_vm0, %v1795_v52 }
 0x53b   : > { %v4444_v2 = vpop.permute.xlu0 %2318 }
 0x53d   : > { %2539 = vperm.xlu0 %3117, %v3376_v55  }
 0x53e   : > { %v2424_v59 = vld [vmem:[#allocation4 + $0x90] sm:$0xff] }
 0x547   : > { %v3045_v33 = vpop.f32.mrb[20].mxu0 }
 0x548   : > { %v1800_v47 = vadd.f32 %v3045_v33, %v1792_v39  ;;  %v1722_v29 = vpop.f32.mrb[21].mxu0 }
 0x549   : > { %v1798_v24 = vadd.f32 %v1790_v43, %v1722_v29  ;;  %v3046_v15 = vpop.f32.mrb[22].mxu0  ;;  %v2357_v29 = vld [vmem:[#allocation4 + $0x78] sm:$0xff] }
 0x54a   : > { %1808 = vst.msk [vmem:[#allocation4 + $0xb0] sm:$0xff] %vm432_vm0, %v1800_v47  ;;  %v1801_v42 = vadd.f32 %v3046_v15, %v1793_v13  ;;  %v1725_v6 = vpop.f32.mrb[23].mxu0  ;;  %v2356_v47 = vld [vmem:[#allocation4 + $0x70] sm:$0xff] }
 0x54b   : > { %1806 = vst.msk [vmem:[#allocation4 + $0xa0] sm:$0xff] %vm432_vm0, %v1798_v24  ;;  %v1799_v45 = vadd.f32 %v1791_v21, %v1725_v6 }
 0x54c   : > { %1809 = vst.msk [vmem:[#allocation4 + $0xb8] sm:$0xff] %vm432_vm0, %v1801_v42 }
 0x54d   : > { %1807 = vst.msk [vmem:[#allocation4 + $0xa8] sm:$0xff] %vm432_vm0, %v1799_v45  ;;  %v2354_v45 = vld [vmem:[#allocation4 + $0x60] sm:$0xff] }
 0x551   : > { %v2428_v38 = vld [vmem:[#allocation4 + $0xb0] sm:$0xff] }
 0x553   : > { %v2429_v36 = vld [vmem:[#allocation4 + $0xb8] sm:$0xff] }
 0x557   : > { %v3061_v49 = vpop.f32.mrb[24].mxu0 }
 0x558   : > { %v2237_v58 = vadd.f32 %v3061_v49, %v2229_v50  ;;  %v2147_v32 = vpop.f32.mrb[25].mxu0 }
 0x559   : > { %v2235_v17 = vadd.f32 %v2227_v63, %v2147_v32  ;;  %v3062_v14 = vpop.f32.mrb[26].mxu0  ;;  %v2425_v63 = vld [vmem:[#allocation4 + $0x98] sm:$0xff] }
 0x55a   : > { %2245 = vst.msk [vmem:[#allocation4 + $0xd0] sm:$0xff] %vm432_vm0, %v2237_v58  ;;  %v2238_v12 = vadd.f32 %v3062_v14, %v2230_v26  ;;  %v2150_v7 = vpop.f32.mrb[27].mxu0  ;;  %v2423_v14 = vld [vmem:[#allocation4 + $0x88] sm:$0xff] }
 0x55b   : > { %2243 = vst.msk [vmem:[#allocation4 + $0xc0] sm:$0xff] %vm432_vm0, %v2235_v17  ;;  %v2236_v3 = vadd.f32 %v2228_v22, %v2150_v7  ;;  %v2422_v17 = vld [vmem:[#allocation4 + $0x80] sm:$0xff] }
 0x55c   : > { %2246 = vst.msk [vmem:[#allocation4 + $0xd8] sm:$0xff] %vm432_vm0, %v2238_v12 }
 0x55d   : > { %2244 = vst.msk [vmem:[#allocation4 + $0xc8] sm:$0xff] %vm432_vm0, %v2236_v3 }
 0x561   : > { %v2371_v23 = vpop.permute.xlu1 %2370 }
 0x562   : > { %v2400_v55 = vmul.f32 %v2371_v23, %v2352_v61 }
 0x563   : > { %v2497_v61 = vld [vmem:[#allocation4 + $0xd8] sm:$0xff] }
 0x565   : > { %v2361_v41 = vpop.permute.xlu1 %2360 }
 0x566   : > { %v3065_v19 = vpop.f32.mrb[28].mxu0  ;;  %v2398_v43 = vmul.f32 %v2361_v41, %v2350_v28  ;;  %v2495_v28 = vld [vmem:[#allocation4 + $0xc8] sm:$0xff] }
 0x567   : > { %v2241_v1 = vadd.f32 %v3065_v19, %v2233_v56  ;;  %v2163_v48 = vpop.f32.mrb[29].mxu0 }
 0x568   : > { %v2239_v16 = vadd.f32 %v2231_v51, %v2163_v48  ;;  %v3066_v0 = vpop.f32.mrb[30].mxu0  ;;  %v2427_v48 = vld [vmem:[#allocation4 + $0xa8] sm:$0xff] }
 0x569   : > { %2249 = vst.msk [vmem:[#allocation4 + $0xf0] sm:$0xff] %vm432_vm0, %v2241_v1  ;;  %v2242_v10 = vadd.f32 %v3066_v0, %v2234_v18  ;;  %v2166_v27 = vpop.f32.mrb[31].mxu0  ;;  %v2391_v57 = vpop.permute.xlu1 %2390  ;;  %v2426_v1 = vld [vmem:[#allocation4 + $0xa0] sm:$0xff] }
 0x56a   : > { %2247 = vst.msk [vmem:[#allocation4 + $0xe0] sm:$0xff] %vm432_vm0, %v2239_v16  ;;  %v2376_v62 = vpop.permute.xlu0 %2375  ;;  %v2240_v52 = vadd.f32 %v2232_v53, %v2166_v27  ;;  %v2404_v24 = vmul.f32 %v2391_v57, %v2356_v47  ;;  %v2496_v27 = vld [vmem:[#allocation4 + $0xd0] sm:$0xff] }
 0x56b   : > { %2250 = vst.msk [vmem:[#allocation4 + $0xf8] sm:$0xff] %vm432_vm0, %v2242_v10  ;;  %v2401_v9 = vmul.f32 %v2376_v62, %v2353_v8 }
 0x56c   : > { %2248 = vst.msk [vmem:[#allocation4 + $0xe8] sm:$0xff] %vm432_vm0, %v2240_v52 }
 0x56d   : > { %v3119_v20 = vpack.i.bf16 %v2401_v9, %v2400_v55  ;;  %v2381_v42 = vpop.permute.xlu1 %2380 }
 0x56e   : > { %v2366_v39 = vpop.permute.xlu0 %2365  ;;  %v2402_v44 = vmul.f32 %v2381_v42, %v2354_v45 }
 0x56f   : > { %v2399_v33 = vmul.f32 %v2366_v39, %v2351_v5  ;;  %3120 = vrot.lane.b32.xlu1 %v3119_v20, %s3423_s25  ;;  %v2494_v20 = vld [vmem:[#allocation4 + $0xc0] sm:$0xff] }
 0x571   : > { %v3124_v13 = vpack.i.bf16 %v2399_v33, %v2398_v43 }
 0x572   : > { %v2396_v21 = vpop.permute.xlu0 %2395 }
 0x573   : > { %v2405_v15 = vmul.f32 %v2396_v21, %v2357_v29  ;;  %3125 = vrot.lane.b32.xlu0 %v3124_v13, %s3423_s25  ;;  %v2498_v13 = vld [vmem:[#allocation4 + $0xe0] sm:$0xff]  ;;  %v2499_v47 = vld [vmem:[#allocation4 + $0xe8] sm:$0xff] }
 0x575   : > { %v3129_v6 = vpack.i.bf16 %v2405_v15, %v2404_v24 }
 0x576   : > { %v2386_v40 = vpop.permute.xlu0 %2385 }
 0x577   : > { %v2403_v25 = vmul.f32 %v2386_v40, %v2355_v35  ;;  %3130 = vrot.lane.b32.xlu1 %v3129_v6, %s3423_s25  ;;  %v2500_v6 = vld [vmem:[#allocation4 + $0xf0] sm:$0xff]  ;;  %v2501_v35 = vld [vmem:[#allocation4 + $0xf8] sm:$0xff] }
 0x579   : > { %v3134_v31 = vpack.i.bf16 %v2403_v25, %v2402_v44  ;;  %v2443_v50 = vpop.permute.xlu1 %2442 }
 0x57a   : > { %v2472_v26 = vmul.f32 %v2443_v50, %v2424_v59 }
 0x57b   : > { %3135 = vrot.lane.b32.xlu0 %v3134_v31, %s3423_s25 }
 0x57d   : > { %v2433_v32 = vpop.permute.xlu1 %2432 }
 0x57e   : > { %v2470_v7 = vmul.f32 %v2433_v32, %v2422_v17 }
 0x580   : > { %v2448_v49 = vpop.permute.xlu0 %2447 }
 0x581   : > { %v2473_v58 = vmul.f32 %v2448_v49, %v2425_v63 }
 0x583   : > { %v3139_v22 = vpack.i.bf16 %v2473_v58, %v2472_v26 }
 0x584   : > { %v2438_v12 = vpop.permute.xlu0 %2437 }
 0x585   : > { %v2471_v3 = vmul.f32 %v2438_v12, %v2423_v14  ;;  %3140 = vrot.lane.b32.xlu1 %v3139_v22, %s3422_s24  ;;  %v2281_v14 = vld [vmem:[#allocation4 + $0x18] sm:$0xff]  ;;  %v2280_v12 = vld [vmem:[#allocation4 + $0x10] sm:$0xff] }
 0x587   : > { %v3144_v30 = vpack.i.bf16 %v2471_v3, %v2470_v7  ;;  %v2329_v7 = vmul.f32 %v4430_v46, %v2281_v14  ;;  %v2328_v3 = vmul.f32 %v4433_v34, %v2280_v12 }
 0x589   : > { %3145 = vrot.lane.b32.xlu0 %v3144_v30, %s3422_s24 }
 0x591   : > { %v2463_v23 = vpop.permute.xlu1 %2462 }
 0x592   : > { %v2476_v56 = vmul.f32 %v2463_v23, %v2428_v38 }
 0x595   : > { %v2453_v19 = vpop.permute.xlu1 %2452 }
 0x596   : > { %v2474_v41 = vmul.f32 %v2453_v19, %v2426_v1 }
 0x599   : > { %v2468_v54 = vpop.permute.xlu0 %2467 }
 0x59a   : > { %v2477_v51 = vmul.f32 %v2468_v54, %v2429_v36 }
 0x59c   : > { %v3149_v18 = vpack.i.bf16 %v2477_v51, %v2476_v56 }
 0x59d   : > { %v2458_v53 = vpop.permute.xlu0 %2457 }
 0x59e   : > { %v2475_v16 = vmul.f32 %v2458_v53, %v2427_v48  ;;  %3150 = vrot.lane.b32.xlu1 %v3149_v18, %s3422_s24  ;;  %v2279_v48 = vld [vmem:[#allocation4 + $0x8] sm:$0xff]  ;;  %v2278_v53 = vld [vmem:[#allocation4] sm:$0xff] }
 0x5a0   : > { %v3154_v0 = vpack.i.bf16 %v2475_v16, %v2474_v41 }
 0x5a1   : > { %v2515_v10 = vpop.permute.xlu1 %2514 }
 0x5a2   : > { %3155 = vrot.lane.b32.xlu0 %v3154_v0, %s3422_s24  ;;  %v2544_v62 = vmul.f32 %v2515_v10, %v2496_v27  ;;  %v2327_v0 = vmul.f32 %v4423_v11, %v2279_v48  ;;  %v2326_v10 = vmul.f32 %v4425_v60, %v2278_v53 }
 0x5a5   : > { %v2505_v55 = vpop.permute.xlu1 %2504 }
 0x5a6   : > { %v2542_v5 = vmul.f32 %v2505_v55, %v2494_v20 }
 0x5a9   : > { %v2520_v8 = vpop.permute.xlu0 %2519 }
 0x5aa   : > { %v2545_v52 = vmul.f32 %v2520_v8, %v2497_v61 }
 0x5ac   : > { %v3159_v9 = vpack.i.bf16 %v2545_v52, %v2544_v62  ;;  %v2525_v33 = vpop.permute.xlu1 %2524 }
 0x5ad   : > { %v2510_v57 = vpop.permute.xlu0 %2509  ;;  %v2546_v21 = vmul.f32 %v2525_v33, %v2498_v13  ;;  %v2283_v33 = vld [vmem:[#allocation4 + $0x28] sm:$0xff]  ;;  %v2282_v13 = vld [vmem:[#allocation4 + $0x20] sm:$0xff] }
 0x5ae   : > { %v2543_v39 = vmul.f32 %v2510_v57, %v2495_v28  ;;  %3160 = vrot.lane.b32.xlu1 %v3159_v9, %s3421_s23 }
 0x5b0   : > { %v3164_v43 = vpack.i.bf16 %v2543_v39, %v2542_v5  ;;  %v2535_v15 = vpop.permute.xlu1 %2534 }
 0x5b1   : > { %v2548_v40 = vmul.f32 %v2535_v15, %v2500_v6 }
 0x5b2   : > { %3165 = vrot.lane.b32.xlu0 %v3164_v43, %s3421_s23 }
 0x5b4   : > { %v4463_v31 = vpop.permute.xlu1 %2323 }
 0x5b8   : > { %v2530_v29 = vpop.permute.xlu0 %2529 }
 0x5b9   : > { %v2547_v24 = vmul.f32 %v2530_v29, %v2499_v47 }
 0x5bb   : > { %v3169_v42 = vpack.i.bf16 %v2547_v24, %v2546_v21  ;;  %v2331_v21 = vmul.f32 %v4439_v4, %v2283_v33  ;;  %v2330_v24 = vmul.f32 %v4441_v37, %v2282_v13 }
 0x5bc   : > { %v2540_v45 = vpop.permute.xlu0 %2539 }
 0x5bd   : > { %v2549_v44 = vmul.f32 %v2540_v45, %v2501_v35  ;;  %3170 = vrot.lane.b32.xlu0 %v3169_v42, %s3421_s23 }
 0x5bf   : > { %v3174_v25 = vpack.i.bf16 %v2549_v44, %v2548_v40 }
 0x5c1   : > { %3175 = vrot.lane.b32.xlu1 %v3174_v25, %s3421_s23  ;;  %v2284_v25 = vld [vmem:[#allocation4 + $0x30] sm:$0xff] }
 0x5e1   : > { %v3121_v50 = vpop.permute.xlu1 %3120 }
 0x5e2   : > { %v3123_v58 = vunpack.i.h.bf16 %v3121_v50  ;;  %v3122_v32 = vunpack.i.l.bf16 %v3121_v50  ;;  %v2285_v50 = vld [vmem:[#allocation4 + $0x38] sm:$0xff] }
 0x5e4   : > { %v2649_v38 = vsel %vm432_vm0, %v2329_v7, %v3123_v58  ;;  %v2648_v36 = vsel %vm432_vm0, %v2328_v3, %v3122_v32 }
 0x5e5   : > { %v3126_v59 = vpop.permute.xlu0 %3125 }
 0x5e6   : > { %v3128_v51 = vunpack.i.h.bf16 %v3126_v59  ;;  %v3127_v19 = vunpack.i.l.bf16 %v3126_v59 }
 0x5e8   : > { %v2647_v52 = vsel %vm432_vm0, %v2327_v0, %v3128_v51  ;;  %v2646_v11 = vsel %vm432_vm0, %v2326_v10, %v3127_v19 }
 0x5e9   : > { %v4465_v63 = vpop.permute.xlu1 %3130 }
 0x5ea   : > { %v3133_v15 = vunpack.i.h.bf16 %v4465_v63  ;;  %v3132_v42 = vunpack.i.l.bf16 %v4465_v63  ;;  %v2332_v63 = vmul.f32 %v4444_v2, %v2284_v25 }
 0x5ec   : > { %v2652_v7 = vsel %vm432_vm0, %v2332_v63, %v3132_v42 }
 0x5ed   : > { %v3136_v49 = vpop.permute.xlu0 %3135 }
 0x5ee   : > { %v3138_v39 = vunpack.i.h.bf16 %v3136_v49  ;;  %v3137_v43 = vunpack.i.l.bf16 %v3136_v49 }
 0x5f0   : > { %v2651_v45 = vsel %vm432_vm0, %v2331_v21, %v3138_v39  ;;  %v2650_v35 = vsel %vm432_vm0, %v2330_v24, %v3137_v43 }
 0x5f7   : > { %v3141_v26 = vpop.permute.xlu1 %3140 }
 0x5f8   : > { %v3143_v30 = vunpack.i.h.bf16 %v3141_v26  ;;  %v3142_v23 = vunpack.i.l.bf16 %v3141_v26  ;;  %v2333_v26 = vmul.f32 %v4463_v31, %v2285_v50 }
 0x5fa   : > { %v2657_v46 = vsel %vm2654_vm3, %v2648_v36, %v3142_v23  ;;  %v2658_v34 = vsel %vm2654_vm3, %v2649_v38, %v3143_v30  ;;  %v2653_v12 = vsel %vm432_vm0, %v2333_v26, %v3133_v15 }
 0x5fb   : > { %v3146_v22 = vpop.permute.xlu0 %3145 }
 0x5fc   : > { %v3148_v41 = vunpack.i.h.bf16 %v3146_v22  ;;  %v3147_v16 = vunpack.i.l.bf16 %v3146_v22 }
 0x5fe   : > { %v2656_v9 = vsel %vm2654_vm3, %v2647_v52, %v3148_v41  ;;  %v2655_v20 = vsel %vm2654_vm3, %v2646_v11, %v3147_v16 }
 0x610   : > { %v4467_v17 = vpop.permute.xlu1 %3150 }
 0x611   : > { %v3153_v59 = vunpack.i.h.bf16 %v4467_v17  ;;  %v3152_v4 = vunpack.i.l.bf16 %v4467_v17 }
 0x613   : > { %v2661_v30 = vsel %vm2654_vm3, %v2652_v7, %v3152_v4  ;;  %v2662_v23 = vsel %vm2654_vm3, %v2653_v12, %v3153_v59 }
 0x614   : > { %v3156_v54 = vpop.permute.xlu0 %3155 }
 0x615   : > { %v3158_v47 = vunpack.i.h.bf16 %v3156_v54  ;;  %v3157_v29 = vunpack.i.l.bf16 %v3156_v54 }
 0x617   : > { %v2660_v37 = vsel %vm2654_vm3, %v2651_v45, %v3158_v47  ;;  %v2659_v49 = vsel %vm2654_vm3, %v2650_v35, %v3157_v29 }
 0x620   : > { %v3161_v56 = vpop.permute.xlu1 %3160 }
 0x621   : > { %v3163_v18 = vunpack.i.h.bf16 %v3161_v56  ;;  %v3162_v1 = vunpack.i.l.bf16 %v3161_v56 }
 0x623   : > { %v2666_v27 = vsel %vm2663_vm4, %v2657_v46, %v3162_v1  ;;  %v2667_v61 = vsel %vm2663_vm4, %v2658_v34, %v3163_v18 }
 0x624   : > { %v2932_v8 = vpack.c.bf16 %v2667_v61, %v2666_v27  ;;  %v3166_v62 = vpop.permute.xlu0 %3165 }
 0x625   : > { %v3168_v55 = vunpack.i.h.bf16 %v3166_v62  ;;  %v3167_v60 = vunpack.i.l.bf16 %v3166_v62 }
 0x626   : > { %2944 = vst [vmem:[%s4482_s28 + $0x8] sm:$0xff] %v2932_v8  }
 0x627   : > { %v2665_v28 = vsel %vm2663_vm4, %v2656_v9, %v3168_v55  ;;  %v2664_v57 = vsel %vm2663_vm4, %v2655_v20, %v3167_v60 }
 0x628   : > { %v2927_v5 = vpack.c.bf16 %v2665_v28, %v2664_v57 }
 0x62a   : > { %2928 = vst [vmem:[%s4482_s28] sm:$0xff] %v2927_v5  }
 0x62f   : > { %v3171_v6 = vpop.permute.xlu0 %3170 }
 0x630   : > { %v3173_v40 = vunpack.i.h.bf16 %v3171_v6  ;;  %v3172_v44 = vunpack.i.l.bf16 %v3171_v6 }
 0x632   : > { %v2669_v58 = vsel %vm2663_vm4, %v2660_v37, %v3173_v40  ;;  %v2668_v32 = vsel %vm2663_vm4, %v2659_v49, %v3172_v44 }
 0x633   : > { %v2937_v22 = vpack.c.bf16 %v2669_v58, %v2668_v32  ;;  %v3176_v14 = vpop.permute.xlu1 %3175 }
 0x634   : > { %v3178_v17 = vunpack.i.h.bf16 %v3176_v14  ;;  %v3177_v3 = vunpack.i.l.bf16 %v3176_v14 }
 0x635   : > { %2945 = vst [vmem:[%s4482_s28 + $0x10] sm:$0xff] %v2937_v22  }
 0x636   : > { %v2670_v2 = vsel %vm2663_vm4, %v2661_v30, %v3177_v3  ;;  %v2671_v31 = vsel %vm2663_vm4, %v2662_v23, %v3178_v17 }
 0x637   : > { %v2942_v38 = vpack.c.bf16 %v2671_v31, %v2670_v2 }
 0x639   : > { %2946 = vst [vmem:[%s4482_s28 + $0x18] sm:$0xff] %v2942_v38  }
 0x63a PF: > { %s13_s16 = sadd.s32 1, %s3416_s16   ;;  %s4546_s12 = smov %s3404_s13 }
 0x63b   : > { %p10_p10 = scmp.ge.s32.totalorder %s13_s16, 4   ;;  %s4547_s13 = smov %s3483_s21 }
 0x63c   : > { %s4548_s14 = smov %s3412_s15  ;;  %s4549_s15 = smov %s4551_s17 }
 0x63d   :  { %12 = sbr.rel (!%p10_p10) target bundleno = 3 (0x3), region = 177 }

</bundles_post_ra>
